<compile_context>
chip_gen: v7x
topology: tpu7x:2x2x1
jax: 0.10.0
libtpu: 0.0.40
codegen_flags: <defaults>
</compile_context>

<pallas_src>
import functools
import math

import jax
import jax.numpy as jnp
from jax import lax
from jax.experimental import pallas as pl
from jax.experimental.pallas import tpu as pltpu


CFG = dict(
    pos_dim=2, ang_dim=2, point_feat_dim=2, out_dim=2,
    pe_numfreq=8, d_model=64, nhead=4, num_encoder_layers=2,
    dim_feedforward=128, layer_norm_eps=1e-5,
)

IN_PAD = 64      # pad the PE+feature input to a round K (50 -> 64)
OUT_PAD = 128    # pad the final linear to 128 output lanes (lane-dense store)
NEG_BIG = -1e30  # finite "minus infinity" for key padding (avoids NaN)

# ---- merged bias / LayerNorm parameter table (row layout) -------------------
R_INIT_B = 0          # initial linear bias            (d)
R_FN_G = 1            # final encoder LN gamma         (d)
R_FN_B = 2            # final encoder LN beta          (d)
R_FIN_B = 3           # final linear bias              (OUT_PAD)
R_LAYER0 = 4
ROW_QKV_B, ROW_OUTP_B, ROW_FF1_B, ROW_FF2_B = 0, 1, 2, 3
ROW_N1_G, ROW_N1_B, ROW_N2_G, ROW_N2_B = 4, 5, 6, 7
ROWS_PER_LAYER = 8
VEC_W = max(3 * CFG["d_model"], CFG["dim_feedforward"], OUT_PAD)   # 192


# ----------------------------- fused Pallas kernel ---------------------------

def _layer_norm(z, g, b, eps):
    mu = jnp.mean(z, axis=-1, keepdims=True)
    var = jnp.mean(jnp.square(z - mu), axis=-1, keepdims=True)
    return (z - mu) * lax.rsqrt(var + eps) * g + b


def _fused_transformer_kernel(
        inp_ref, bias_ref,
        init_w_ref, qkv_w_ref, outp_w_ref, ff1_w_ref, ff2_w_ref, fin_w_ref,
        vec_ref, o_ref,
        *, num_layers, nhead, d_model, dff, eps):
    bt, n, in_pad = inp_ref.shape
    d = d_model
    dh = d // nhead
    scale = 1.0 / math.sqrt(dh)
    m_rows = bt * n

    vec = vec_ref[...]                                   # (rows, VEC_W) f32, tiny

    def row(r, w):                                       # (1, w) static table slice
        return vec[r:r + 1, :w]

    # hoisted: additive key-padding bias broadcast ONCE, reused every layer/head
    bias_b = jnp.broadcast_to(bias_ref[...], (bt, n, n))           # (bt, n, n)

    # ---- initial linear on flattened (bt*n, in_pad) rows ----
    x = inp_ref[...].reshape(m_rows, in_pad).astype(jnp.bfloat16)
    h = jnp.dot(x, init_w_ref[...],
                preferred_element_type=jnp.float32) + row(R_INIT_B, d)   # (m, d) f32

    for l in range(num_layers):                          # static unroll (L small)
        base = R_LAYER0 + l * ROWS_PER_LAYER

        # ---- multi-head self-attention: ONE fused lane-dense QKV matmul ----
        qkv = jnp.dot(h.astype(jnp.bfloat16), qkv_w_ref[l],
                      preferred_element_type=jnp.float32) + row(base + ROW_QKV_B, 3 * d)

        ctx_heads = []
        for hh in range(nhead):                          # static unroll over heads
            qh = qkv[:, hh * dh:(hh + 1) * dh].reshape(bt, n, dh).astype(jnp.bfloat16)
            kh = qkv[:, d + hh * dh: d + (hh + 1) * dh].reshape(bt, n, dh).astype(jnp.bfloat16)
            vh = qkv[:, 2 * d + hh * dh: 2 * d + (hh + 1) * dh].reshape(bt, n, dh).astype(jnp.bfloat16)

            # batched scores over the Bt sequences of this grid step
            s = jnp.einsum('bqd,bkd->bqk', qh, kh,
                           preferred_element_type=jnp.float32) * scale + bias_b
            mx = jnp.max(s, axis=-1, keepdims=True)
            p = jnp.exp(s - mx)
            p = p * pl.reciprocal(jnp.sum(p, axis=-1, keepdims=True), approx=True)
            ctx = jnp.einsum('bqk,bkd->bqd', p.astype(jnp.bfloat16), vh,
                             preferred_element_type=jnp.float32)            # (bt, n, dh)
            ctx_heads.append(ctx.reshape(m_rows, dh))

        # concat heads back to (m, d) and one out-projection matmul
        ctx_all = jnp.concatenate(ctx_heads, axis=-1)
        attn = jnp.dot(ctx_all.astype(jnp.bfloat16), outp_w_ref[l],
                       preferred_element_type=jnp.float32) + row(base + ROW_OUTP_B, d)
        h = _layer_norm(h + attn, row(base + ROW_N1_G, d), row(base + ROW_N1_B, d), eps)

        # ---- feed-forward ----
        ff = jnp.dot(h.astype(jnp.bfloat16), ff1_w_ref[l],
                     preferred_element_type=jnp.float32) + row(base + ROW_FF1_B, dff)
        ff = jnp.maximum(ff, 0.0)
        ff = jnp.dot(ff.astype(jnp.bfloat16), ff2_w_ref[l],
                     preferred_element_type=jnp.float32) + row(base + ROW_FF2_B, d)
        h = _layer_norm(h + ff, row(base + ROW_N2_G, d), row(base + ROW_N2_B, d), eps)

    # ---- final encoder LayerNorm + lane-padded output linear ----
    h = _layer_norm(h, row(R_FN_G, d), row(R_FN_B, d), eps)
    out = jnp.dot(h.astype(jnp.bfloat16), fin_w_ref[...],
                  preferred_element_type=jnp.float32) + row(R_FIN_B, OUT_PAD)
    o_ref[...] = out.reshape(bt, n, OUT_PAD).astype(o_ref.dtype)   # unmasked lane-dense store


# ----------------------------- wrapper (one pallas_call) ---------------------

def _resident(shape):
    """Constant-index BlockSpec: weight block stays VMEM-resident across grid steps."""
    if len(shape) == 2:
        return pl.BlockSpec(shape, lambda b: (0, 0))
    return pl.BlockSpec(shape, lambda b: (0, 0, 0))


def fused_forward(params, inp_padded, mask_bias, cfg, bt):
    B_pad, N, in_pad = inp_padded.shape
    d = cfg["d_model"]
    H = cfg["nhead"]
    L = cfg["num_encoder_layers"]
    dff = cfg["dim_feedforward"]
    G = B_pad // bt
    n_rows = params["vec"].shape[0]

    kernel = functools.partial(
        _fused_transformer_kernel,
        num_layers=L, nhead=H, d_model=d, dff=dff, eps=cfg["layer_norm_eps"])

    in_specs = [
        pl.BlockSpec((bt, N, in_pad), lambda b: (b, 0, 0)),   # Bt sequences per step
        pl.BlockSpec((bt, 1, N), lambda b: (b, 0, 0)),        # per-sequence mask bias
        _resident((in_pad, d)),                               # initial linear (bf16)
        _resident((L, d, 3 * d)),                             # fused QKV slabs (bf16)
        _resident((L, d, d)),                                 # out-proj (bf16)
        _resident((L, d, dff)),                               # ff1 (bf16)
        _resident((L, dff, d)),                               # ff2 (bf16)
        _resident((d, OUT_PAD)),                              # final linear (bf16, lane-padded)
        _resident((n_rows, VEC_W)),                           # merged bias/LN table (f32)
    ]

    return pl.pallas_call(
        kernel,
        out_shape=jax.ShapeDtypeStruct((B_pad, N, OUT_PAD), jnp.float32),
        grid_spec=pltpu.PrefetchScalarGridSpec(
            num_scalar_prefetch=0,
            grid=(G,),
            in_specs=in_specs,
            out_specs=pl.BlockSpec((bt, N, OUT_PAD), lambda b: (b, 0, 0)),
        ),
        compiler_params=pltpu.CompilerParams(
            dimension_semantics=("parallel",),        # batch blocks split across TCs (v7x)
            vmem_limit_bytes=32 * 1024 * 1024,        # explicit; safe on v5e/v6e/v7x
        ),
    )(inp_padded, mask_bias,
      params["init_w"], params["qkv_w"], params["outp_w"],
      params["ff1_w"], params["ff2_w"], params["fin_w"], params["vec"])


# ----------------------------- params + full forward -------------------------

def init_params(key, cfg, in_feat, in_pad):
    d = cfg["d_model"]
    dff = cfg["dim_feedforward"]
    L = cfg["num_encoder_layers"]
    out_dim = cfg["out_dim"]

    def nrm(k, shape, scale=0.05):
        return (scale * jax.random.normal(k, shape)).astype(jnp.float32)

    keys = list(jax.random.split(key, 64))
    ki = iter(keys)

    init_w = jnp.zeros((in_pad, d), jnp.float32).at[:in_feat].set(nrm(next(ki), (in_feat, d)))
    fin_w = jnp.zeros((d, OUT_PAD), jnp.float32).at[:, :out_dim].set(nrm(next(ki), (d, out_dim)))

    qkv_w = jnp.stack([nrm(next(ki), (d, 3 * d)) for _ in range(L)])
    outp_w = jnp.stack([nrm(next(ki), (d, d)) for _ in range(L)])
    ff1_w = jnp.stack([nrm(next(ki), (d, dff)) for _ in range(L)])
    ff2_w = jnp.stack([nrm(next(ki), (dff, d)) for _ in range(L)])

    # merged bias / LayerNorm table (f32, lane-dense)
    n_rows = R_LAYER0 + ROWS_PER_LAYER * L
    vec = jnp.zeros((n_rows, VEC_W), jnp.float32)

    def setrow(v, r, vals):
        return v.at[r, :vals.shape[-1]].set(vals)

    vec = setrow(vec, R_INIT_B, nrm(next(ki), (d,), 0.02))
    vec = setrow(vec, R_FN_G, jnp.ones((d,), jnp.float32))
    vec = setrow(vec, R_FN_B, jnp.zeros((d,), jnp.float32))
    fin_b = jnp.zeros((OUT_PAD,), jnp.float32).at[:out_dim].set(nrm(next(ki), (out_dim,), 0.02))
    vec = setrow(vec, R_FIN_B, fin_b)
    for l in range(L):
        base = R_LAYER0 + l * ROWS_PER_LAYER
        vec = setrow(vec, base + ROW_QKV_B, nrm(next(ki), (3 * d,), 0.02))
        vec = setrow(vec, base + ROW_OUTP_B, nrm(next(ki), (d,), 0.02))
        vec = setrow(vec, base + ROW_FF1_B, nrm(next(ki), (dff,), 0.02))
        vec = setrow(vec, base + ROW_FF2_B, nrm(next(ki), (d,), 0.02))
        vec = setrow(vec, base + ROW_N1_G, jnp.ones((d,), jnp.float32))
        vec = setrow(vec, base + ROW_N1_B, jnp.zeros((d,), jnp.float32))
        vec = setrow(vec, base + ROW_N2_G, jnp.ones((d,), jnp.float32))
        vec = setrow(vec, base + ROW_N2_B, jnp.zeros((d,), jnp.float32))

    # weights pre-cast to bf16 (MXU operands); biases / LN params stay f32
    return dict(
        init_w=init_w.astype(jnp.bfloat16),
        qkv_w=qkv_w.astype(jnp.bfloat16),
        outp_w=outp_w.astype(jnp.bfloat16),
        ff1_w=ff1_w.astype(jnp.bfloat16),
        ff2_w=ff2_w.astype(jnp.bfloat16),
        fin_w=fin_w.astype(jnp.bfloat16),
        vec=vec,
    )


def forward(params, x, padding_mask, cfg, block_batch=None):
    B, N, _ = x.shape
    pd, ad = cfg["pos_dim"], cfg["ang_dim"]
    nf = cfg["pe_numfreq"]

    # ---- FixedPositionalEncoding feature construction (tiny plain-JAX glue) ----
    # TODO(synk): fuse into the kernel prologue (atan2/sin/cos land on the EUP slot).
    pos = x[:, :, :pd]
    ang = jnp.arctan2(x[:, :, pd + 1], x[:, :, pd])[..., None] / jnp.pi
    pe_input = jnp.concatenate([pos, ang], axis=-1)                      # (B, N, pd + ad//2)
    exb = jnp.linspace(0.0, nf - 1, nf) / (nf - 1)
    sigma = (jnp.pi * jnp.power(10.0, exb)).astype(jnp.float32)          # (nf,)
    xs = pe_input[..., None] * sigma                                     # (B, N, C, nf)
    pe_out = jnp.concatenate([jnp.sin(xs), jnp.cos(xs)], axis=-1).reshape(B, N, -1)
    input_feat = x[:, :, pd + ad:]
    inp = jnp.concatenate([pe_out, input_feat], axis=-1)                 # (B, N, in_feat)

    in_pad = params["init_w"].shape[0]
    inp = jnp.pad(inp, ((0, 0), (0, 0), (0, in_pad - inp.shape[-1]))).astype(jnp.float32)

    # additive key-padding bias (finite large negative -> never NaN)
    mask_bias = jnp.where(padding_mask, NEG_BIG, 0.0).astype(jnp.float32)[:, None, :]  # (B,1,N)

    # ---- batch blocking: Bt sequences per grid step (targets ~128 MXU rows) ----
    if block_batch is None:
        block_batch = max(1, min(B, 128 // max(N, 1)))
    bt = int(block_batch)
    G = -(-B // bt)
    B_pad = G * bt
    if B_pad != B:
        inp = jnp.pad(inp, ((0, B_pad - B), (0, 0), (0, 0)))
        mask_bias = jnp.pad(mask_bias, ((0, B_pad - B), (0, 0), (0, 0)))

    out = fused_forward(params, inp, mask_bias, cfg, bt)                 # (B_pad, N, OUT_PAD)
    return out[:B, :, :cfg["out_dim"]]


# ----------------------------- Demo ------------------------------------------

if __name__ == "__main__":
    key = jax.random.PRNGKey(0)
    k_param, k_x = jax.random.split(key)

    cfg = CFG
    pe_term = cfg["pos_dim"] + cfg["ang_dim"] // 2
    in_feat = 2 * cfg["pe_numfreq"] * pe_term + cfg["point_feat_dim"]    # 50
    assert in_feat <= IN_PAD
    params = init_params(k_param, cfg, in_feat, IN_PAD)

    B, N = 16, 8
    in_dim = cfg["pos_dim"] + cfg["ang_dim"] + cfg["point_feat_dim"]     # 6
    x = jax.random.normal(k_x, (B, N, in_dim), dtype=jnp.float32)
    # key padding mask: True = ignore that key (last two tokens of batch 0 are padding)
    padding_mask = jnp.zeros((B, N), dtype=bool).at[0, -2:].set(True)

    # Bt=8 -> grid=(2,) (keeps >=2 grid steps for v7x megacore), 64 MXU rows / step.
    fwd = jax.jit(functools.partial(forward, cfg=cfg, block_batch=8))
    out = fwd(params, x, padding_mask)
    out = jax.block_until_ready(out)

    assert out.shape == (B, N, cfg["out_dim"])
    assert bool(jnp.all(jnp.isfinite(out)))
    print("KERNEL_OK")
</pallas_src>

<mosaic_0001>
module attributes {stable_mosaic.version = 11 : i64} {
  func.func @_fused_transformer_kernel(%arg0: i32, %arg1: memref<8x8x64xf32, #tpu.memory_space<vmem>>, %arg2: memref<8x1x8xf32, #tpu.memory_space<vmem>>, %arg3: memref<64x64xbf16, #tpu.memory_space<vmem>>, %arg4: memref<2x64x192xbf16, #tpu.memory_space<vmem>>, %arg5: memref<2x64x64xbf16, #tpu.memory_space<vmem>>, %arg6: memref<2x64x128xbf16, #tpu.memory_space<vmem>>, %arg7: memref<2x128x64xbf16, #tpu.memory_space<vmem>>, %arg8: memref<64x128xbf16, #tpu.memory_space<vmem>>, %arg9: memref<20x192xf32, #tpu.memory_space<vmem>>, %arg10: memref<8x8x128xf32, #tpu.memory_space<vmem>>) attributes {dimension_semantics = [#tpu.dimension_semantics<parallel>], iteration_bounds = array<i64: 2>, scalar_prefetch = 0 : i64, scratch_operands = 0 : i64, tpu.core_type = #tpu.core_type<tc>, window_params = [{transform_indices = @transform_0, window_bounds = array<i64: 8, 8, 64>}, {transform_indices = @transform_1, window_bounds = array<i64: 8, 1, 8>}, {pipeline_mode = #tpu.pipeline_mode<synchronous>, transform_indices = @transform_2, window_bounds = array<i64: 64, 64>}, {pipeline_mode = #tpu.pipeline_mode<synchronous>, transform_indices = @transform_3, window_bounds = array<i64: 2, 64, 192>}, {pipeline_mode = #tpu.pipeline_mode<synchronous>, transform_indices = @transform_4, window_bounds = array<i64: 2, 64, 64>}, {pipeline_mode = #tpu.pipeline_mode<synchronous>, transform_indices = @transform_5, window_bounds = array<i64: 2, 64, 128>}, {pipeline_mode = #tpu.pipeline_mode<synchronous>, transform_indices = @transform_6, window_bounds = array<i64: 2, 128, 64>}, {pipeline_mode = #tpu.pipeline_mode<synchronous>, transform_indices = @transform_7, window_bounds = array<i64: 64, 128>}, {pipeline_mode = #tpu.pipeline_mode<synchronous>, transform_indices = @transform_8, window_bounds = array<i64: 20, 192>}, {transform_indices = @transform_9, window_bounds = array<i64: 8, 8, 128>}]} {
    %c0 = arith.constant 0 : index
    %c0_0 = arith.constant 0 : index
    %0 = vector.load %arg9[%c0, %c0_0] : memref<20x192xf32, #tpu.memory_space<vmem>>, vector<20x192xf32>
    %c0_1 = arith.constant 0 : index
    %c0_2 = arith.constant 0 : index
    %c0_3 = arith.constant 0 : index
    %1 = vector.load %arg2[%c0_1, %c0_2, %c0_3] : memref<8x1x8xf32, #tpu.memory_space<vmem>>, vector<8x1x8xf32>
    %2 = vector.shape_cast %1 : vector<8x1x8xf32> to vector<8x1x8xf32>
    %3 = vector.broadcast %2 : vector<8x1x8xf32> to vector<8x8x8xf32>
    %c0_4 = arith.constant 0 : index
    %c0_5 = arith.constant 0 : index
    %c0_6 = arith.constant 0 : index
    %4 = vector.load %arg1[%c0_4, %c0_5, %c0_6] : memref<8x8x64xf32, #tpu.memory_space<vmem>>, vector<8x8x64xf32>
    %5 = vector.shape_cast %4 : vector<8x8x64xf32> to vector<64x64xf32>
    %6 = arith.truncf %5 : vector<64x64xf32> to vector<64x64xbf16>
    %c0_7 = arith.constant 0 : index
    %c0_8 = arith.constant 0 : index
    %7 = vector.load %arg3[%c0_7, %c0_8] : memref<64x64xbf16, #tpu.memory_space<vmem>>, vector<64x64xbf16>
    %cst = arith.constant dense<0.000000e+00> : vector<64x64xf32>
    %8 = tpu.matmul %6, %7, %cst {dimension_numbers = #tpu.dot_dimension_numbers<[1], [0], [0], [1], [0, 0, 1, 1], [], []>} : vector<64x64xbf16>, vector<64x64xbf16>, vector<64x64xf32> -> vector<64x64xf32>
    %9 = vector.extract_strided_slice %0 {offsets = [0, 0], sizes = [1, 64], strides = [1, 1]} : vector<20x192xf32> to vector<1x64xf32>
    %10 = vector.broadcast %9 : vector<1x64xf32> to vector<64x64xf32>
    %11 = arith.addf %8, %10 : vector<64x64xf32>
    %12 = arith.truncf %11 : vector<64x64xf32> to vector<64x64xbf16>
    %c0_9 = arith.constant 0 : index
    %c0_10 = arith.constant 0 : index
    %c0_11 = arith.constant 0 : index
    %13 = vector.load %arg4[%c0_9, %c0_10, %c0_11] : memref<2x64x192xbf16, #tpu.memory_space<vmem>>, vector<1x64x192xbf16>
    %14 = vector.shape_cast %13 : vector<1x64x192xbf16> to vector<64x192xbf16>
    %cst_12 = arith.constant dense<0.000000e+00> : vector<64x192xf32>
    %15 = tpu.matmul %12, %14, %cst_12 {dimension_numbers = #tpu.dot_dimension_numbers<[1], [0], [0], [1], [0, 0, 1, 1], [], []>} : vector<64x64xbf16>, vector<64x192xbf16>, vector<64x192xf32> -> vector<64x192xf32>
    %16 = vector.extract_strided_slice %0 {offsets = [4, 0], sizes = [1, 192], strides = [1, 1]} : vector<20x192xf32> to vector<1x192xf32>
    %17 = vector.broadcast %16 : vector<1x192xf32> to vector<64x192xf32>
    %18 = arith.addf %15, %17 : vector<64x192xf32>
    %19 = vector.extract_strided_slice %18 {offsets = [0, 0], sizes = [64, 16], strides = [1, 1]} : vector<64x192xf32> to vector<64x16xf32>
    %20 = vector.shape_cast %19 : vector<64x16xf32> to vector<8x8x16xf32>
    %21 = arith.truncf %20 : vector<8x8x16xf32> to vector<8x8x16xbf16>
    %22 = vector.extract_strided_slice %18 {offsets = [0, 64], sizes = [64, 16], strides = [1, 1]} : vector<64x192xf32> to vector<64x16xf32>
    %23 = vector.shape_cast %22 : vector<64x16xf32> to vector<8x8x16xf32>
    %24 = arith.truncf %23 : vector<8x8x16xf32> to vector<8x8x16xbf16>
    %25 = vector.extract_strided_slice %18 {offsets = [0, 128], sizes = [64, 16], strides = [1, 1]} : vector<64x192xf32> to vector<64x16xf32>
    %26 = vector.shape_cast %25 : vector<64x16xf32> to vector<8x8x16xf32>
    %27 = arith.truncf %26 : vector<8x8x16xf32> to vector<8x8x16xbf16>
    "tpu.trace_start"() <{level = 10 : i32, message = "bqd,bkd->bqk"}> : () -> ()
    %cst_13 = arith.constant dense<0.000000e+00> : vector<8x8x8xf32>
    %28 = tpu.matmul %21, %24, %cst_13 {dimension_numbers = #tpu.dot_dimension_numbers<[2], [2], [1], [1], [0, 0, 0, 1, 1, 1], [0], [0]>} : vector<8x8x16xbf16>, vector<8x8x16xbf16>, vector<8x8x8xf32> -> vector<8x8x8xf32>
    "tpu.trace_stop"() : () -> ()
    %cst_14 = arith.constant 2.500000e-01 : f32
    %29 = vector.broadcast %cst_14 : f32 to vector<8x8x8xf32>
    %30 = arith.mulf %28, %29 : vector<8x8x8xf32>
    %31 = arith.addf %30, %3 : vector<8x8x8xf32>
    %cst_15 = arith.constant dense<0xFF800000> : vector<8x8xf32>
    %32 = vector.multi_reduction <maximumf>, %31, %cst_15 [2] : vector<8x8x8xf32> to vector<8x8xf32>
    %33 = vector.shape_cast %32 : vector<8x8xf32> to vector<8x8x1xf32>
    %34 = vector.broadcast %33 : vector<8x8x1xf32> to vector<8x8x8xf32>
    %35 = arith.subf %31, %34 : vector<8x8x8xf32>
    %36 = math.exp %35 : vector<8x8x8xf32>
    %cst_16 = arith.constant dense<0.000000e+00> : vector<8x8xf32>
    %37 = vector.multi_reduction <add>, %36, %cst_16 [2] : vector<8x8x8xf32> to vector<8x8xf32>
    %38 = vector.shape_cast %37 : vector<8x8xf32> to vector<8x8x1xf32>
    %39 = tpu.reciprocal %38 {approx = true} : vector<8x8x1xf32> -> vector<8x8x1xf32>
    %40 = vector.broadcast %39 : vector<8x8x1xf32> to vector<8x8x8xf32>
    %41 = arith.mulf %36, %40 : vector<8x8x8xf32>
    %42 = arith.truncf %41 : vector<8x8x8xf32> to vector<8x8x8xbf16>
    "tpu.trace_start"() <{level = 10 : i32, message = "bqk,bkd->bqd"}> : () -> ()
    %cst_17 = arith.constant dense<0.000000e+00> : vector<8x8x16xf32>
    %43 = tpu.matmul %42, %27, %cst_17 {dimension_numbers = #tpu.dot_dimension_numbers<[2], [1], [1], [2], [0, 0, 0, 1, 1, 2], [0], [0]>} : vector<8x8x8xbf16>, vector<8x8x16xbf16>, vector<8x8x16xf32> -> vector<8x8x16xf32>
    "tpu.trace_stop"() : () -> ()
    %44 = vector.shape_cast %43 : vector<8x8x16xf32> to vector<64x16xf32>
    %45 = vector.extract_strided_slice %18 {offsets = [0, 16], sizes = [64, 16], strides = [1, 1]} : vector<64x192xf32> to vector<64x16xf32>
    %46 = vector.shape_cast %45 : vector<64x16xf32> to vector<8x8x16xf32>
    %47 = arith.truncf %46 : vector<8x8x16xf32> to vector<8x8x16xbf16>
    %48 = vector.extract_strided_slice %18 {offsets = [0, 80], sizes = [64, 16], strides = [1, 1]} : vector<64x192xf32> to vector<64x16xf32>
    %49 = vector.shape_cast %48 : vector<64x16xf32> to vector<8x8x16xf32>
    %50 = arith.truncf %49 : vector<8x8x16xf32> to vector<8x8x16xbf16>
    %51 = vector.extract_strided_slice %18 {offsets = [0, 144], sizes = [64, 16], strides = [1, 1]} : vector<64x192xf32> to vector<64x16xf32>
    %52 = vector.shape_cast %51 : vector<64x16xf32> to vector<8x8x16xf32>
    %53 = arith.truncf %52 : vector<8x8x16xf32> to vector<8x8x16xbf16>
    "tpu.trace_start"() <{level = 10 : i32, message = "bqd,bkd->bqk"}> : () -> ()
    %cst_18 = arith.constant dense<0.000000e+00> : vector<8x8x8xf32>
    %54 = tpu.matmul %47, %50, %cst_18 {dimension_numbers = #tpu.dot_dimension_numbers<[2], [2], [1], [1], [0, 0, 0, 1, 1, 1], [0], [0]>} : vector<8x8x16xbf16>, vector<8x8x16xbf16>, vector<8x8x8xf32> -> vector<8x8x8xf32>
    "tpu.trace_stop"() : () -> ()
    %cst_19 = arith.constant 2.500000e-01 : f32
    %55 = vector.broadcast %cst_19 : f32 to vector<8x8x8xf32>
    %56 = arith.mulf %54, %55 : vector<8x8x8xf32>
    %57 = arith.addf %56, %3 : vector<8x8x8xf32>
    %cst_20 = arith.constant dense<0xFF800000> : vector<8x8xf32>
    %58 = vector.multi_reduction <maximumf>, %57, %cst_20 [2] : vector<8x8x8xf32> to vector<8x8xf32>
    %59 = vector.shape_cast %58 : vector<8x8xf32> to vector<8x8x1xf32>
    %60 = vector.broadcast %59 : vector<8x8x1xf32> to vector<8x8x8xf32>
    %61 = arith.subf %57, %60 : vector<8x8x8xf32>
    %62 = math.exp %61 : vector<8x8x8xf32>
    %cst_21 = arith.constant dense<0.000000e+00> : vector<8x8xf32>
    %63 = vector.multi_reduction <add>, %62, %cst_21 [2] : vector<8x8x8xf32> to vector<8x8xf32>
    %64 = vector.shape_cast %63 : vector<8x8xf32> to vector<8x8x1xf32>
    %65 = tpu.reciprocal %64 {approx = true} : vector<8x8x1xf32> -> vector<8x8x1xf32>
    %66 = vector.broadcast %65 : vector<8x8x1xf32> to vector<8x8x8xf32>
    %67 = arith.mulf %62, %66 : vector<8x8x8xf32>
    %68 = arith.truncf %67 : vector<8x8x8xf32> to vector<8x8x8xbf16>
    "tpu.trace_start"() <{level = 10 : i32, message = "bqk,bkd->bqd"}> : () -> ()
    %cst_22 = arith.constant dense<0.000000e+00> : vector<8x8x16xf32>
    %69 = tpu.matmul %68, %53, %cst_22 {dimension_numbers = #tpu.dot_dimension_numbers<[2], [1], [1], [2], [0, 0, 0, 1, 1, 2], [0], [0]>} : vector<8x8x8xbf16>, vector<8x8x16xbf16>, vector<8x8x16xf32> -> vector<8x8x16xf32>
    "tpu.trace_stop"() : () -> ()
    %70 = vector.shape_cast %69 : vector<8x8x16xf32> to vector<64x16xf32>
    %71 = vector.extract_strided_slice %18 {offsets = [0, 32], sizes = [64, 16], strides = [1, 1]} : vector<64x192xf32> to vector<64x16xf32>
    %72 = vector.shape_cast %71 : vector<64x16xf32> to vector<8x8x16xf32>
    %73 = arith.truncf %72 : vector<8x8x16xf32> to vector<8x8x16xbf16>
    %74 = vector.extract_strided_slice %18 {offsets = [0, 96], sizes = [64, 16], strides = [1, 1]} : vector<64x192xf32> to vector<64x16xf32>
    %75 = vector.shape_cast %74 : vector<64x16xf32> to vector<8x8x16xf32>
    %76 = arith.truncf %75 : vector<8x8x16xf32> to vector<8x8x16xbf16>
    %77 = vector.extract_strided_slice %18 {offsets = [0, 160], sizes = [64, 16], strides = [1, 1]} : vector<64x192xf32> to vector<64x16xf32>
    %78 = vector.shape_cast %77 : vector<64x16xf32> to vector<8x8x16xf32>
    %79 = arith.truncf %78 : vector<8x8x16xf32> to vector<8x8x16xbf16>
    "tpu.trace_start"() <{level = 10 : i32, message = "bqd,bkd->bqk"}> : () -> ()
    %cst_23 = arith.constant dense<0.000000e+00> : vector<8x8x8xf32>
    %80 = tpu.matmul %73, %76, %cst_23 {dimension_numbers = #tpu.dot_dimension_numbers<[2], [2], [1], [1], [0, 0, 0, 1, 1, 1], [0], [0]>} : vector<8x8x16xbf16>, vector<8x8x16xbf16>, vector<8x8x8xf32> -> vector<8x8x8xf32>
    "tpu.trace_stop"() : () -> ()
    %cst_24 = arith.constant 2.500000e-01 : f32
    %81 = vector.broadcast %cst_24 : f32 to vector<8x8x8xf32>
    %82 = arith.mulf %80, %81 : vector<8x8x8xf32>
    %83 = arith.addf %82, %3 : vector<8x8x8xf32>
    %cst_25 = arith.constant dense<0xFF800000> : vector<8x8xf32>
    %84 = vector.multi_reduction <maximumf>, %83, %cst_25 [2] : vector<8x8x8xf32> to vector<8x8xf32>
    %85 = vector.shape_cast %84 : vector<8x8xf32> to vector<8x8x1xf32>
    %86 = vector.broadcast %85 : vector<8x8x1xf32> to vector<8x8x8xf32>
    %87 = arith.subf %83, %86 : vector<8x8x8xf32>
    %88 = math.exp %87 : vector<8x8x8xf32>
    %cst_26 = arith.constant dense<0.000000e+00> : vector<8x8xf32>
    %89 = vector.multi_reduction <add>, %88, %cst_26 [2] : vector<8x8x8xf32> to vector<8x8xf32>
    %90 = vector.shape_cast %89 : vector<8x8xf32> to vector<8x8x1xf32>
    %91 = tpu.reciprocal %90 {approx = true} : vector<8x8x1xf32> -> vector<8x8x1xf32>
    %92 = vector.broadcast %91 : vector<8x8x1xf32> to vector<8x8x8xf32>
    %93 = arith.mulf %88, %92 : vector<8x8x8xf32>
    %94 = arith.truncf %93 : vector<8x8x8xf32> to vector<8x8x8xbf16>
    "tpu.trace_start"() <{level = 10 : i32, message = "bqk,bkd->bqd"}> : () -> ()
    %cst_27 = arith.constant dense<0.000000e+00> : vector<8x8x16xf32>
    %95 = tpu.matmul %94, %79, %cst_27 {dimension_numbers = #tpu.dot_dimension_numbers<[2], [1], [1], [2], [0, 0, 0, 1, 1, 2], [0], [0]>} : vector<8x8x8xbf16>, vector<8x8x16xbf16>, vector<8x8x16xf32> -> vector<8x8x16xf32>
    "tpu.trace_stop"() : () -> ()
    %96 = vector.shape_cast %95 : vector<8x8x16xf32> to vector<64x16xf32>
    %97 = vector.extract_strided_slice %18 {offsets = [0, 48], sizes = [64, 16], strides = [1, 1]} : vector<64x192xf32> to vector<64x16xf32>
    %98 = vector.shape_cast %97 : vector<64x16xf32> to vector<8x8x16xf32>
    %99 = arith.truncf %98 : vector<8x8x16xf32> to vector<8x8x16xbf16>
    %100 = vector.extract_strided_slice %18 {offsets = [0, 112], sizes = [64, 16], strides = [1, 1]} : vector<64x192xf32> to vector<64x16xf32>
    %101 = vector.shape_cast %100 : vector<64x16xf32> to vector<8x8x16xf32>
    %102 = arith.truncf %101 : vector<8x8x16xf32> to vector<8x8x16xbf16>
    %103 = vector.extract_strided_slice %18 {offsets = [0, 176], sizes = [64, 16], strides = [1, 1]} : vector<64x192xf32> to vector<64x16xf32>
    %104 = vector.shape_cast %103 : vector<64x16xf32> to vector<8x8x16xf32>
    %105 = arith.truncf %104 : vector<8x8x16xf32> to vector<8x8x16xbf16>
    "tpu.trace_start"() <{level = 10 : i32, message = "bqd,bkd->bqk"}> : () -> ()
    %cst_28 = arith.constant dense<0.000000e+00> : vector<8x8x8xf32>
    %106 = tpu.matmul %99, %102, %cst_28 {dimension_numbers = #tpu.dot_dimension_numbers<[2], [2], [1], [1], [0, 0, 0, 1, 1, 1], [0], [0]>} : vector<8x8x16xbf16>, vector<8x8x16xbf16>, vector<8x8x8xf32> -> vector<8x8x8xf32>
    "tpu.trace_stop"() : () -> ()
    %cst_29 = arith.constant 2.500000e-01 : f32
    %107 = vector.broadcast %cst_29 : f32 to vector<8x8x8xf32>
    %108 = arith.mulf %106, %107 : vector<8x8x8xf32>
    %109 = arith.addf %108, %3 : vector<8x8x8xf32>
    %cst_30 = arith.constant dense<0xFF800000> : vector<8x8xf32>
    %110 = vector.multi_reduction <maximumf>, %109, %cst_30 [2] : vector<8x8x8xf32> to vector<8x8xf32>
    %111 = vector.shape_cast %110 : vector<8x8xf32> to vector<8x8x1xf32>
    %112 = vector.broadcast %111 : vector<8x8x1xf32> to vector<8x8x8xf32>
    %113 = arith.subf %109, %112 : vector<8x8x8xf32>
    %114 = math.exp %113 : vector<8x8x8xf32>
    %cst_31 = arith.constant dense<0.000000e+00> : vector<8x8xf32>
    %115 = vector.multi_reduction <add>, %114, %cst_31 [2] : vector<8x8x8xf32> to vector<8x8xf32>
    %116 = vector.shape_cast %115 : vector<8x8xf32> to vector<8x8x1xf32>
    %117 = tpu.reciprocal %116 {approx = true} : vector<8x8x1xf32> -> vector<8x8x1xf32>
    %118 = vector.broadcast %117 : vector<8x8x1xf32> to vector<8x8x8xf32>
    %119 = arith.mulf %114, %118 : vector<8x8x8xf32>
    %120 = arith.truncf %119 : vector<8x8x8xf32> to vector<8x8x8xbf16>
    "tpu.trace_start"() <{level = 10 : i32, message = "bqk,bkd->bqd"}> : () -> ()
    %cst_32 = arith.constant dense<0.000000e+00> : vector<8x8x16xf32>
    %121 = tpu.matmul %120, %105, %cst_32 {dimension_numbers = #tpu.dot_dimension_numbers<[2], [1], [1], [2], [0, 0, 0, 1, 1, 2], [0], [0]>} : vector<8x8x8xbf16>, vector<8x8x16xbf16>, vector<8x8x16xf32> -> vector<8x8x16xf32>
    "tpu.trace_stop"() : () -> ()
    %122 = vector.shape_cast %121 : vector<8x8x16xf32> to vector<64x16xf32>
    %123 = tpu.concatenate %44, %70, %96, %122 in 1 : vector<64x16xf32>, vector<64x16xf32>, vector<64x16xf32>, vector<64x16xf32> -> vector<64x64xf32>
    %124 = arith.truncf %123 : vector<64x64xf32> to vector<64x64xbf16>
    %c0_33 = arith.constant 0 : index
    %c0_34 = arith.constant 0 : index
    %c0_35 = arith.constant 0 : index
    %125 = vector.load %arg5[%c0_33, %c0_34, %c0_35] : memref<2x64x64xbf16, #tpu.memory_space<vmem>>, vector<1x64x64xbf16>
    %126 = vector.shape_cast %125 : vector<1x64x64xbf16> to vector<64x64xbf16>
    %cst_36 = arith.constant dense<0.000000e+00> : vector<64x64xf32>
    %127 = tpu.matmul %124, %126, %cst_36 {dimension_numbers = #tpu.dot_dimension_numbers<[1], [0], [0], [1], [0, 0, 1, 1], [], []>} : vector<64x64xbf16>, vector<64x64xbf16>, vector<64x64xf32> -> vector<64x64xf32>
    %128 = vector.extract_strided_slice %0 {offsets = [5, 0], sizes = [1, 64], strides = [1, 1]} : vector<20x192xf32> to vector<1x64xf32>
    %129 = vector.broadcast %128 : vector<1x64xf32> to vector<64x64xf32>
    %130 = arith.addf %127, %129 : vector<64x64xf32>
    %131 = arith.addf %11, %130 : vector<64x64xf32>
    %132 = vector.extract_strided_slice %0 {offsets = [8, 0], sizes = [1, 64], strides = [1, 1]} : vector<20x192xf32> to vector<1x64xf32>
    %133 = vector.extract_strided_slice %0 {offsets = [9, 0], sizes = [1, 64], strides = [1, 1]} : vector<20x192xf32> to vector<1x64xf32>
    %cst_37 = arith.constant dense<0.000000e+00> : vector<64xf32>
    %134 = vector.multi_reduction <add>, %131, %cst_37 [1] : vector<64x64xf32> to vector<64xf32>
    %135 = vector.shape_cast %134 : vector<64xf32> to vector<64x1xf32>
    %cst_38 = arith.constant 6.400000e+01 : f32
    %136 = vector.broadcast %cst_38 : f32 to vector<64x1xf32>
    %137 = arith.divf %135, %136 : vector<64x1xf32>
    %138 = vector.broadcast %137 : vector<64x1xf32> to vector<64x64xf32>
    %139 = arith.subf %131, %138 : vector<64x64xf32>
    %140 = arith.mulf %139, %139 : vector<64x64xf32>
    %cst_39 = arith.constant dense<0.000000e+00> : vector<64xf32>
    %141 = vector.multi_reduction <add>, %140, %cst_39 [1] : vector<64x64xf32> to vector<64xf32>
    %142 = vector.shape_cast %141 : vector<64xf32> to vector<64x1xf32>
    %cst_40 = arith.constant 6.400000e+01 : f32
    %143 = vector.broadcast %cst_40 : f32 to vector<64x1xf32>
    %144 = arith.divf %142, %143 : vector<64x1xf32>
    %145 = vector.broadcast %137 : vector<64x1xf32> to vector<64x64xf32>
    %146 = arith.subf %131, %145 : vector<64x64xf32>
    %cst_41 = arith.constant 9.99999974E-6 : f32
    %147 = vector.broadcast %cst_41 : f32 to vector<64x1xf32>
    %148 = arith.addf %144, %147 : vector<64x1xf32>
    %149 = math.rsqrt %148 : vector<64x1xf32>
    %150 = vector.broadcast %149 : vector<64x1xf32> to vector<64x64xf32>
    %151 = arith.mulf %146, %150 : vector<64x64xf32>
    %152 = vector.broadcast %132 : vector<1x64xf32> to vector<64x64xf32>
    %153 = arith.mulf %151, %152 : vector<64x64xf32>
    %154 = vector.broadcast %133 : vector<1x64xf32> to vector<64x64xf32>
    %155 = arith.addf %153, %154 : vector<64x64xf32>
    %156 = arith.truncf %155 : vector<64x64xf32> to vector<64x64xbf16>
    %c0_42 = arith.constant 0 : index
    %c0_43 = arith.constant 0 : index
    %c0_44 = arith.constant 0 : index
    %157 = vector.load %arg6[%c0_42, %c0_43, %c0_44] : memref<2x64x128xbf16, #tpu.memory_space<vmem>>, vector<1x64x128xbf16>
    %158 = vector.shape_cast %157 : vector<1x64x128xbf16> to vector<64x128xbf16>
    %cst_45 = arith.constant dense<0.000000e+00> : vector<64x128xf32>
    %159 = tpu.matmul %156, %158, %cst_45 {dimension_numbers = #tpu.dot_dimension_numbers<[1], [0], [0], [1], [0, 0, 1, 1], [], []>} : vector<64x64xbf16>, vector<64x128xbf16>, vector<64x128xf32> -> vector<64x128xf32>
    %160 = vector.extract_strided_slice %0 {offsets = [6, 0], sizes = [1, 128], strides = [1, 1]} : vector<20x192xf32> to vector<1x128xf32>
    %161 = vector.broadcast %160 : vector<1x128xf32> to vector<64x128xf32>
    %162 = arith.addf %159, %161 : vector<64x128xf32>
    %cst_46 = arith.constant 0.000000e+00 : f32
    %163 = vector.broadcast %cst_46 : f32 to vector<64x128xf32>
    %164 = arith.maximumf %162, %163 : vector<64x128xf32>
    %165 = arith.truncf %164 : vector<64x128xf32> to vector<64x128xbf16>
    %c0_47 = arith.constant 0 : index
    %c0_48 = arith.constant 0 : index
    %c0_49 = arith.constant 0 : index
    %166 = vector.load %arg7[%c0_47, %c0_48, %c0_49] : memref<2x128x64xbf16, #tpu.memory_space<vmem>>, vector<1x128x64xbf16>
    %167 = vector.shape_cast %166 : vector<1x128x64xbf16> to vector<128x64xbf16>
    %cst_50 = arith.constant dense<0.000000e+00> : vector<64x64xf32>
    %168 = tpu.matmul %165, %167, %cst_50 {dimension_numbers = #tpu.dot_dimension_numbers<[1], [0], [0], [1], [0, 0, 1, 1], [], []>} : vector<64x128xbf16>, vector<128x64xbf16>, vector<64x64xf32> -> vector<64x64xf32>
    %169 = vector.extract_strided_slice %0 {offsets = [7, 0], sizes = [1, 64], strides = [1, 1]} : vector<20x192xf32> to vector<1x64xf32>
    %170 = vector.broadcast %169 : vector<1x64xf32> to vector<64x64xf32>
    %171 = arith.addf %168, %170 : vector<64x64xf32>
    %172 = arith.addf %155, %171 : vector<64x64xf32>
    %173 = vector.extract_strided_slice %0 {offsets = [10, 0], sizes = [1, 64], strides = [1, 1]} : vector<20x192xf32> to vector<1x64xf32>
    %174 = vector.extract_strided_slice %0 {offsets = [11, 0], sizes = [1, 64], strides = [1, 1]} : vector<20x192xf32> to vector<1x64xf32>
    %cst_51 = arith.constant dense<0.000000e+00> : vector<64xf32>
    %175 = vector.multi_reduction <add>, %172, %cst_51 [1] : vector<64x64xf32> to vector<64xf32>
    %176 = vector.shape_cast %175 : vector<64xf32> to vector<64x1xf32>
    %cst_52 = arith.constant 6.400000e+01 : f32
    %177 = vector.broadcast %cst_52 : f32 to vector<64x1xf32>
    %178 = arith.divf %176, %177 : vector<64x1xf32>
    %179 = vector.broadcast %178 : vector<64x1xf32> to vector<64x64xf32>
    %180 = arith.subf %172, %179 : vector<64x64xf32>
    %181 = arith.mulf %180, %180 : vector<64x64xf32>
    %cst_53 = arith.constant dense<0.000000e+00> : vector<64xf32>
    %182 = vector.multi_reduction <add>, %181, %cst_53 [1] : vector<64x64xf32> to vector<64xf32>
    %183 = vector.shape_cast %182 : vector<64xf32> to vector<64x1xf32>
    %cst_54 = arith.constant 6.400000e+01 : f32
    %184 = vector.broadcast %cst_54 : f32 to vector<64x1xf32>
    %185 = arith.divf %183, %184 : vector<64x1xf32>
    %186 = vector.broadcast %178 : vector<64x1xf32> to vector<64x64xf32>
    %187 = arith.subf %172, %186 : vector<64x64xf32>
    %cst_55 = arith.constant 9.99999974E-6 : f32
    %188 = vector.broadcast %cst_55 : f32 to vector<64x1xf32>
    %189 = arith.addf %185, %188 : vector<64x1xf32>
    %190 = math.rsqrt %189 : vector<64x1xf32>
    %191 = vector.broadcast %190 : vector<64x1xf32> to vector<64x64xf32>
    %192 = arith.mulf %187, %191 : vector<64x64xf32>
    %193 = vector.broadcast %173 : vector<1x64xf32> to vector<64x64xf32>
    %194 = arith.mulf %192, %193 : vector<64x64xf32>
    %195 = vector.broadcast %174 : vector<1x64xf32> to vector<64x64xf32>
    %196 = arith.addf %194, %195 : vector<64x64xf32>
    %197 = arith.truncf %196 : vector<64x64xf32> to vector<64x64xbf16>
    %c1 = arith.constant 1 : index
    %c0_56 = arith.constant 0 : index
    %c0_57 = arith.constant 0 : index
    %198 = vector.load %arg4[%c1, %c0_56, %c0_57] : memref<2x64x192xbf16, #tpu.memory_space<vmem>>, vector<1x64x192xbf16>
    %199 = vector.shape_cast %198 : vector<1x64x192xbf16> to vector<64x192xbf16>
    %cst_58 = arith.constant dense<0.000000e+00> : vector<64x192xf32>
    %200 = tpu.matmul %197, %199, %cst_58 {dimension_numbers = #tpu.dot_dimension_numbers<[1], [0], [0], [1], [0, 0, 1, 1], [], []>} : vector<64x64xbf16>, vector<64x192xbf16>, vector<64x192xf32> -> vector<64x192xf32>
    %201 = vector.extract_strided_slice %0 {offsets = [12, 0], sizes = [1, 192], strides = [1, 1]} : vector<20x192xf32> to vector<1x192xf32>
    %202 = vector.broadcast %201 : vector<1x192xf32> to vector<64x192xf32>
    %203 = arith.addf %200, %202 : vector<64x192xf32>
    %204 = vector.extract_strided_slice %203 {offsets = [0, 0], sizes = [64, 16], strides = [1, 1]} : vector<64x192xf32> to vector<64x16xf32>
    %205 = vector.shape_cast %204 : vector<64x16xf32> to vector<8x8x16xf32>
    %206 = arith.truncf %205 : vector<8x8x16xf32> to vector<8x8x16xbf16>
    %207 = vector.extract_strided_slice %203 {offsets = [0, 64], sizes = [64, 16], strides = [1, 1]} : vector<64x192xf32> to vector<64x16xf32>
    %208 = vector.shape_cast %207 : vector<64x16xf32> to vector<8x8x16xf32>
    %209 = arith.truncf %208 : vector<8x8x16xf32> to vector<8x8x16xbf16>
    %210 = vector.extract_strided_slice %203 {offsets = [0, 128], sizes = [64, 16], strides = [1, 1]} : vector<64x192xf32> to vector<64x16xf32>
    %211 = vector.shape_cast %210 : vector<64x16xf32> to vector<8x8x16xf32>
    %212 = arith.truncf %211 : vector<8x8x16xf32> to vector<8x8x16xbf16>
    "tpu.trace_start"() <{level = 10 : i32, message = "bqd,bkd->bqk"}> : () -> ()
    %cst_59 = arith.constant dense<0.000000e+00> : vector<8x8x8xf32>
    %213 = tpu.matmul %206, %209, %cst_59 {dimension_numbers = #tpu.dot_dimension_numbers<[2], [2], [1], [1], [0, 0, 0, 1, 1, 1], [0], [0]>} : vector<8x8x16xbf16>, vector<8x8x16xbf16>, vector<8x8x8xf32> -> vector<8x8x8xf32>
    "tpu.trace_stop"() : () -> ()
    %cst_60 = arith.constant 2.500000e-01 : f32
    %214 = vector.broadcast %cst_60 : f32 to vector<8x8x8xf32>
    %215 = arith.mulf %213, %214 : vector<8x8x8xf32>
    %216 = arith.addf %215, %3 : vector<8x8x8xf32>
    %cst_61 = arith.constant dense<0xFF800000> : vector<8x8xf32>
    %217 = vector.multi_reduction <maximumf>, %216, %cst_61 [2] : vector<8x8x8xf32> to vector<8x8xf32>
    %218 = vector.shape_cast %217 : vector<8x8xf32> to vector<8x8x1xf32>
    %219 = vector.broadcast %218 : vector<8x8x1xf32> to vector<8x8x8xf32>
    %220 = arith.subf %216, %219 : vector<8x8x8xf32>
    %221 = math.exp %220 : vector<8x8x8xf32>
    %cst_62 = arith.constant dense<0.000000e+00> : vector<8x8xf32>
    %222 = vector.multi_reduction <add>, %221, %cst_62 [2] : vector<8x8x8xf32> to vector<8x8xf32>
    %223 = vector.shape_cast %222 : vector<8x8xf32> to vector<8x8x1xf32>
    %224 = tpu.reciprocal %223 {approx = true} : vector<8x8x1xf32> -> vector<8x8x1xf32>
    %225 = vector.broadcast %224 : vector<8x8x1xf32> to vector<8x8x8xf32>
    %226 = arith.mulf %221, %225 : vector<8x8x8xf32>
    %227 = arith.truncf %226 : vector<8x8x8xf32> to vector<8x8x8xbf16>
    "tpu.trace_start"() <{level = 10 : i32, message = "bqk,bkd->bqd"}> : () -> ()
    %cst_63 = arith.constant dense<0.000000e+00> : vector<8x8x16xf32>
    %228 = tpu.matmul %227, %212, %cst_63 {dimension_numbers = #tpu.dot_dimension_numbers<[2], [1], [1], [2], [0, 0, 0, 1, 1, 2], [0], [0]>} : vector<8x8x8xbf16>, vector<8x8x16xbf16>, vector<8x8x16xf32> -> vector<8x8x16xf32>
    "tpu.trace_stop"() : () -> ()
    %229 = vector.shape_cast %228 : vector<8x8x16xf32> to vector<64x16xf32>
    %230 = vector.extract_strided_slice %203 {offsets = [0, 16], sizes = [64, 16], strides = [1, 1]} : vector<64x192xf32> to vector<64x16xf32>
    %231 = vector.shape_cast %230 : vector<64x16xf32> to vector<8x8x16xf32>
    %232 = arith.truncf %231 : vector<8x8x16xf32> to vector<8x8x16xbf16>
    %233 = vector.extract_strided_slice %203 {offsets = [0, 80], sizes = [64, 16], strides = [1, 1]} : vector<64x192xf32> to vector<64x16xf32>
    %234 = vector.shape_cast %233 : vector<64x16xf32> to vector<8x8x16xf32>
    %235 = arith.truncf %234 : vector<8x8x16xf32> to vector<8x8x16xbf16>
    %236 = vector.extract_strided_slice %203 {offsets = [0, 144], sizes = [64, 16], strides = [1, 1]} : vector<64x192xf32> to vector<64x16xf32>
    %237 = vector.shape_cast %236 : vector<64x16xf32> to vector<8x8x16xf32>
    %238 = arith.truncf %237 : vector<8x8x16xf32> to vector<8x8x16xbf16>
    "tpu.trace_start"() <{level = 10 : i32, message = "bqd,bkd->bqk"}> : () -> ()
    %cst_64 = arith.constant dense<0.000000e+00> : vector<8x8x8xf32>
    %239 = tpu.matmul %232, %235, %cst_64 {dimension_numbers = #tpu.dot_dimension_numbers<[2], [2], [1], [1], [0, 0, 0, 1, 1, 1], [0], [0]>} : vector<8x8x16xbf16>, vector<8x8x16xbf16>, vector<8x8x8xf32> -> vector<8x8x8xf32>
    "tpu.trace_stop"() : () -> ()
    %cst_65 = arith.constant 2.500000e-01 : f32
    %240 = vector.broadcast %cst_65 : f32 to vector<8x8x8xf32>
    %241 = arith.mulf %239, %240 : vector<8x8x8xf32>
    %242 = arith.addf %241, %3 : vector<8x8x8xf32>
    %cst_66 = arith.constant dense<0xFF800000> : vector<8x8xf32>
    %243 = vector.multi_reduction <maximumf>, %242, %cst_66 [2] : vector<8x8x8xf32> to vector<8x8xf32>
    %244 = vector.shape_cast %243 : vector<8x8xf32> to vector<8x8x1xf32>
    %245 = vector.broadcast %244 : vector<8x8x1xf32> to vector<8x8x8xf32>
    %246 = arith.subf %242, %245 : vector<8x8x8xf32>
    %247 = math.exp %246 : vector<8x8x8xf32>
    %cst_67 = arith.constant dense<0.000000e+00> : vector<8x8xf32>
    %248 = vector.multi_reduction <add>, %247, %cst_67 [2] : vector<8x8x8xf32> to vector<8x8xf32>
    %249 = vector.shape_cast %248 : vector<8x8xf32> to vector<8x8x1xf32>
    %250 = tpu.reciprocal %249 {approx = true} : vector<8x8x1xf32> -> vector<8x8x1xf32>
    %251 = vector.broadcast %250 : vector<8x8x1xf32> to vector<8x8x8xf32>
    %252 = arith.mulf %247, %251 : vector<8x8x8xf32>
    %253 = arith.truncf %252 : vector<8x8x8xf32> to vector<8x8x8xbf16>
    "tpu.trace_start"() <{level = 10 : i32, message = "bqk,bkd->bqd"}> : () -> ()
    %cst_68 = arith.constant dense<0.000000e+00> : vector<8x8x16xf32>
    %254 = tpu.matmul %253, %238, %cst_68 {dimension_numbers = #tpu.dot_dimension_numbers<[2], [1], [1], [2], [0, 0, 0, 1, 1, 2], [0], [0]>} : vector<8x8x8xbf16>, vector<8x8x16xbf16>, vector<8x8x16xf32> -> vector<8x8x16xf32>
    "tpu.trace_stop"() : () -> ()
    %255 = vector.shape_cast %254 : vector<8x8x16xf32> to vector<64x16xf32>
    %256 = vector.extract_strided_slice %203 {offsets = [0, 32], sizes = [64, 16], strides = [1, 1]} : vector<64x192xf32> to vector<64x16xf32>
    %257 = vector.shape_cast %256 : vector<64x16xf32> to vector<8x8x16xf32>
    %258 = arith.truncf %257 : vector<8x8x16xf32> to vector<8x8x16xbf16>
    %259 = vector.extract_strided_slice %203 {offsets = [0, 96], sizes = [64, 16], strides = [1, 1]} : vector<64x192xf32> to vector<64x16xf32>
    %260 = vector.shape_cast %259 : vector<64x16xf32> to vector<8x8x16xf32>
    %261 = arith.truncf %260 : vector<8x8x16xf32> to vector<8x8x16xbf16>
    %262 = vector.extract_strided_slice %203 {offsets = [0, 160], sizes = [64, 16], strides = [1, 1]} : vector<64x192xf32> to vector<64x16xf32>
    %263 = vector.shape_cast %262 : vector<64x16xf32> to vector<8x8x16xf32>
    %264 = arith.truncf %263 : vector<8x8x16xf32> to vector<8x8x16xbf16>
    "tpu.trace_start"() <{level = 10 : i32, message = "bqd,bkd->bqk"}> : () -> ()
    %cst_69 = arith.constant dense<0.000000e+00> : vector<8x8x8xf32>
    %265 = tpu.matmul %258, %261, %cst_69 {dimension_numbers = #tpu.dot_dimension_numbers<[2], [2], [1], [1], [0, 0, 0, 1, 1, 1], [0], [0]>} : vector<8x8x16xbf16>, vector<8x8x16xbf16>, vector<8x8x8xf32> -> vector<8x8x8xf32>
    "tpu.trace_stop"() : () -> ()
    %cst_70 = arith.constant 2.500000e-01 : f32
    %266 = vector.broadcast %cst_70 : f32 to vector<8x8x8xf32>
    %267 = arith.mulf %265, %266 : vector<8x8x8xf32>
    %268 = arith.addf %267, %3 : vector<8x8x8xf32>
    %cst_71 = arith.constant dense<0xFF800000> : vector<8x8xf32>
    %269 = vector.multi_reduction <maximumf>, %268, %cst_71 [2] : vector<8x8x8xf32> to vector<8x8xf32>
    %270 = vector.shape_cast %269 : vector<8x8xf32> to vector<8x8x1xf32>
    %271 = vector.broadcast %270 : vector<8x8x1xf32> to vector<8x8x8xf32>
    %272 = arith.subf %268, %271 : vector<8x8x8xf32>
    %273 = math.exp %272 : vector<8x8x8xf32>
    %cst_72 = arith.constant dense<0.000000e+00> : vector<8x8xf32>
    %274 = vector.multi_reduction <add>, %273, %cst_72 [2] : vector<8x8x8xf32> to vector<8x8xf32>
    %275 = vector.shape_cast %274 : vector<8x8xf32> to vector<8x8x1xf32>
    %276 = tpu.reciprocal %275 {approx = true} : vector<8x8x1xf32> -> vector<8x8x1xf32>
    %277 = vector.broadcast %276 : vector<8x8x1xf32> to vector<8x8x8xf32>
    %278 = arith.mulf %273, %277 : vector<8x8x8xf32>
    %279 = arith.truncf %278 : vector<8x8x8xf32> to vector<8x8x8xbf16>
    "tpu.trace_start"() <{level = 10 : i32, message = "bqk,bkd->bqd"}> : () -> ()
    %cst_73 = arith.constant dense<0.000000e+00> : vector<8x8x16xf32>
    %280 = tpu.matmul %279, %264, %cst_73 {dimension_numbers = #tpu.dot_dimension_numbers<[2], [1], [1], [2], [0, 0, 0, 1, 1, 2], [0], [0]>} : vector<8x8x8xbf16>, vector<8x8x16xbf16>, vector<8x8x16xf32> -> vector<8x8x16xf32>
    "tpu.trace_stop"() : () -> ()
    %281 = vector.shape_cast %280 : vector<8x8x16xf32> to vector<64x16xf32>
    %282 = vector.extract_strided_slice %203 {offsets = [0, 48], sizes = [64, 16], strides = [1, 1]} : vector<64x192xf32> to vector<64x16xf32>
    %283 = vector.shape_cast %282 : vector<64x16xf32> to vector<8x8x16xf32>
    %284 = arith.truncf %283 : vector<8x8x16xf32> to vector<8x8x16xbf16>
    %285 = vector.extract_strided_slice %203 {offsets = [0, 112], sizes = [64, 16], strides = [1, 1]} : vector<64x192xf32> to vector<64x16xf32>
    %286 = vector.shape_cast %285 : vector<64x16xf32> to vector<8x8x16xf32>
    %287 = arith.truncf %286 : vector<8x8x16xf32> to vector<8x8x16xbf16>
    %288 = vector.extract_strided_slice %203 {offsets = [0, 176], sizes = [64, 16], strides = [1, 1]} : vector<64x192xf32> to vector<64x16xf32>
    %289 = vector.shape_cast %288 : vector<64x16xf32> to vector<8x8x16xf32>
    %290 = arith.truncf %289 : vector<8x8x16xf32> to vector<8x8x16xbf16>
    "tpu.trace_start"() <{level = 10 : i32, message = "bqd,bkd->bqk"}> : () -> ()
    %cst_74 = arith.constant dense<0.000000e+00> : vector<8x8x8xf32>
    %291 = tpu.matmul %284, %287, %cst_74 {dimension_numbers = #tpu.dot_dimension_numbers<[2], [2], [1], [1], [0, 0, 0, 1, 1, 1], [0], [0]>} : vector<8x8x16xbf16>, vector<8x8x16xbf16>, vector<8x8x8xf32> -> vector<8x8x8xf32>
    "tpu.trace_stop"() : () -> ()
    %cst_75 = arith.constant 2.500000e-01 : f32
    %292 = vector.broadcast %cst_75 : f32 to vector<8x8x8xf32>
    %293 = arith.mulf %291, %292 : vector<8x8x8xf32>
    %294 = arith.addf %293, %3 : vector<8x8x8xf32>
    %cst_76 = arith.constant dense<0xFF800000> : vector<8x8xf32>
    %295 = vector.multi_reduction <maximumf>, %294, %cst_76 [2] : vector<8x8x8xf32> to vector<8x8xf32>
    %296 = vector.shape_cast %295 : vector<8x8xf32> to vector<8x8x1xf32>
    %297 = vector.broadcast %296 : vector<8x8x1xf32> to vector<8x8x8xf32>
    %298 = arith.subf %294, %297 : vector<8x8x8xf32>
    %299 = math.exp %298 : vector<8x8x8xf32>
    %cst_77 = arith.constant dense<0.000000e+00> : vector<8x8xf32>
    %300 = vector.multi_reduction <add>, %299, %cst_77 [2] : vector<8x8x8xf32> to vector<8x8xf32>
    %301 = vector.shape_cast %300 : vector<8x8xf32> to vector<8x8x1xf32>
    %302 = tpu.reciprocal %301 {approx = true} : vector<8x8x1xf32> -> vector<8x8x1xf32>
    %303 = vector.broadcast %302 : vector<8x8x1xf32> to vector<8x8x8xf32>
    %304 = arith.mulf %299, %303 : vector<8x8x8xf32>
    %305 = arith.truncf %304 : vector<8x8x8xf32> to vector<8x8x8xbf16>
    "tpu.trace_start"() <{level = 10 : i32, message = "bqk,bkd->bqd"}> : () -> ()
    %cst_78 = arith.constant dense<0.000000e+00> : vector<8x8x16xf32>
    %306 = tpu.matmul %305, %290, %cst_78 {dimension_numbers = #tpu.dot_dimension_numbers<[2], [1], [1], [2], [0, 0, 0, 1, 1, 2], [0], [0]>} : vector<8x8x8xbf16>, vector<8x8x16xbf16>, vector<8x8x16xf32> -> vector<8x8x16xf32>
    "tpu.trace_stop"() : () -> ()
    %307 = vector.shape_cast %306 : vector<8x8x16xf32> to vector<64x16xf32>
    %308 = tpu.concatenate %229, %255, %281, %307 in 1 : vector<64x16xf32>, vector<64x16xf32>, vector<64x16xf32>, vector<64x16xf32> -> vector<64x64xf32>
    %309 = arith.truncf %308 : vector<64x64xf32> to vector<64x64xbf16>
    %c1_79 = arith.constant 1 : index
    %c0_80 = arith.constant 0 : index
    %c0_81 = arith.constant 0 : index
    %310 = vector.load %arg5[%c1_79, %c0_80, %c0_81] : memref<2x64x64xbf16, #tpu.memory_space<vmem>>, vector<1x64x64xbf16>
    %311 = vector.shape_cast %310 : vector<1x64x64xbf16> to vector<64x64xbf16>
    %cst_82 = arith.constant dense<0.000000e+00> : vector<64x64xf32>
    %312 = tpu.matmul %309, %311, %cst_82 {dimension_numbers = #tpu.dot_dimension_numbers<[1], [0], [0], [1], [0, 0, 1, 1], [], []>} : vector<64x64xbf16>, vector<64x64xbf16>, vector<64x64xf32> -> vector<64x64xf32>
    %313 = vector.extract_strided_slice %0 {offsets = [13, 0], sizes = [1, 64], strides = [1, 1]} : vector<20x192xf32> to vector<1x64xf32>
    %314 = vector.broadcast %313 : vector<1x64xf32> to vector<64x64xf32>
    %315 = arith.addf %312, %314 : vector<64x64xf32>
    %316 = arith.addf %196, %315 : vector<64x64xf32>
    %317 = vector.extract_strided_slice %0 {offsets = [16, 0], sizes = [1, 64], strides = [1, 1]} : vector<20x192xf32> to vector<1x64xf32>
    %318 = vector.extract_strided_slice %0 {offsets = [17, 0], sizes = [1, 64], strides = [1, 1]} : vector<20x192xf32> to vector<1x64xf32>
    %cst_83 = arith.constant dense<0.000000e+00> : vector<64xf32>
    %319 = vector.multi_reduction <add>, %316, %cst_83 [1] : vector<64x64xf32> to vector<64xf32>
    %320 = vector.shape_cast %319 : vector<64xf32> to vector<64x1xf32>
    %cst_84 = arith.constant 6.400000e+01 : f32
    %321 = vector.broadcast %cst_84 : f32 to vector<64x1xf32>
    %322 = arith.divf %320, %321 : vector<64x1xf32>
    %323 = vector.broadcast %322 : vector<64x1xf32> to vector<64x64xf32>
    %324 = arith.subf %316, %323 : vector<64x64xf32>
    %325 = arith.mulf %324, %324 : vector<64x64xf32>
    %cst_85 = arith.constant dense<0.000000e+00> : vector<64xf32>
    %326 = vector.multi_reduction <add>, %325, %cst_85 [1] : vector<64x64xf32> to vector<64xf32>
    %327 = vector.shape_cast %326 : vector<64xf32> to vector<64x1xf32>
    %cst_86 = arith.constant 6.400000e+01 : f32
    %328 = vector.broadcast %cst_86 : f32 to vector<64x1xf32>
    %329 = arith.divf %327, %328 : vector<64x1xf32>
    %330 = vector.broadcast %322 : vector<64x1xf32> to vector<64x64xf32>
    %331 = arith.subf %316, %330 : vector<64x64xf32>
    %cst_87 = arith.constant 9.99999974E-6 : f32
    %332 = vector.broadcast %cst_87 : f32 to vector<64x1xf32>
    %333 = arith.addf %329, %332 : vector<64x1xf32>
    %334 = math.rsqrt %333 : vector<64x1xf32>
    %335 = vector.broadcast %334 : vector<64x1xf32> to vector<64x64xf32>
    %336 = arith.mulf %331, %335 : vector<64x64xf32>
    %337 = vector.broadcast %317 : vector<1x64xf32> to vector<64x64xf32>
    %338 = arith.mulf %336, %337 : vector<64x64xf32>
    %339 = vector.broadcast %318 : vector<1x64xf32> to vector<64x64xf32>
    %340 = arith.addf %338, %339 : vector<64x64xf32>
    %341 = arith.truncf %340 : vector<64x64xf32> to vector<64x64xbf16>
    %c1_88 = arith.constant 1 : index
    %c0_89 = arith.constant 0 : index
    %c0_90 = arith.constant 0 : index
    %342 = vector.load %arg6[%c1_88, %c0_89, %c0_90] : memref<2x64x128xbf16, #tpu.memory_space<vmem>>, vector<1x64x128xbf16>
    %343 = vector.shape_cast %342 : vector<1x64x128xbf16> to vector<64x128xbf16>
    %cst_91 = arith.constant dense<0.000000e+00> : vector<64x128xf32>
    %344 = tpu.matmul %341, %343, %cst_91 {dimension_numbers = #tpu.dot_dimension_numbers<[1], [0], [0], [1], [0, 0, 1, 1], [], []>} : vector<64x64xbf16>, vector<64x128xbf16>, vector<64x128xf32> -> vector<64x128xf32>
    %345 = vector.extract_strided_slice %0 {offsets = [14, 0], sizes = [1, 128], strides = [1, 1]} : vector<20x192xf32> to vector<1x128xf32>
    %346 = vector.broadcast %345 : vector<1x128xf32> to vector<64x128xf32>
    %347 = arith.addf %344, %346 : vector<64x128xf32>
    %cst_92 = arith.constant 0.000000e+00 : f32
    %348 = vector.broadcast %cst_92 : f32 to vector<64x128xf32>
    %349 = arith.maximumf %347, %348 : vector<64x128xf32>
    %350 = arith.truncf %349 : vector<64x128xf32> to vector<64x128xbf16>
    %c1_93 = arith.constant 1 : index
    %c0_94 = arith.constant 0 : index
    %c0_95 = arith.constant 0 : index
    %351 = vector.load %arg7[%c1_93, %c0_94, %c0_95] : memref<2x128x64xbf16, #tpu.memory_space<vmem>>, vector<1x128x64xbf16>
    %352 = vector.shape_cast %351 : vector<1x128x64xbf16> to vector<128x64xbf16>
    %cst_96 = arith.constant dense<0.000000e+00> : vector<64x64xf32>
    %353 = tpu.matmul %350, %352, %cst_96 {dimension_numbers = #tpu.dot_dimension_numbers<[1], [0], [0], [1], [0, 0, 1, 1], [], []>} : vector<64x128xbf16>, vector<128x64xbf16>, vector<64x64xf32> -> vector<64x64xf32>
    %354 = vector.extract_strided_slice %0 {offsets = [15, 0], sizes = [1, 64], strides = [1, 1]} : vector<20x192xf32> to vector<1x64xf32>
    %355 = vector.broadcast %354 : vector<1x64xf32> to vector<64x64xf32>
    %356 = arith.addf %353, %355 : vector<64x64xf32>
    %357 = arith.addf %340, %356 : vector<64x64xf32>
    %358 = vector.extract_strided_slice %0 {offsets = [18, 0], sizes = [1, 64], strides = [1, 1]} : vector<20x192xf32> to vector<1x64xf32>
    %359 = vector.extract_strided_slice %0 {offsets = [19, 0], sizes = [1, 64], strides = [1, 1]} : vector<20x192xf32> to vector<1x64xf32>
    %cst_97 = arith.constant dense<0.000000e+00> : vector<64xf32>
    %360 = vector.multi_reduction <add>, %357, %cst_97 [1] : vector<64x64xf32> to vector<64xf32>
    %361 = vector.shape_cast %360 : vector<64xf32> to vector<64x1xf32>
    %cst_98 = arith.constant 6.400000e+01 : f32
    %362 = vector.broadcast %cst_98 : f32 to vector<64x1xf32>
    %363 = arith.divf %361, %362 : vector<64x1xf32>
    %364 = vector.broadcast %363 : vector<64x1xf32> to vector<64x64xf32>
    %365 = arith.subf %357, %364 : vector<64x64xf32>
    %366 = arith.mulf %365, %365 : vector<64x64xf32>
    %cst_99 = arith.constant dense<0.000000e+00> : vector<64xf32>
    %367 = vector.multi_reduction <add>, %366, %cst_99 [1] : vector<64x64xf32> to vector<64xf32>
    %368 = vector.shape_cast %367 : vector<64xf32> to vector<64x1xf32>
    %cst_100 = arith.constant 6.400000e+01 : f32
    %369 = vector.broadcast %cst_100 : f32 to vector<64x1xf32>
    %370 = arith.divf %368, %369 : vector<64x1xf32>
    %371 = vector.broadcast %363 : vector<64x1xf32> to vector<64x64xf32>
    %372 = arith.subf %357, %371 : vector<64x64xf32>
    %cst_101 = arith.constant 9.99999974E-6 : f32
    %373 = vector.broadcast %cst_101 : f32 to vector<64x1xf32>
    %374 = arith.addf %370, %373 : vector<64x1xf32>
    %375 = math.rsqrt %374 : vector<64x1xf32>
    %376 = vector.broadcast %375 : vector<64x1xf32> to vector<64x64xf32>
    %377 = arith.mulf %372, %376 : vector<64x64xf32>
    %378 = vector.broadcast %358 : vector<1x64xf32> to vector<64x64xf32>
    %379 = arith.mulf %377, %378 : vector<64x64xf32>
    %380 = vector.broadcast %359 : vector<1x64xf32> to vector<64x64xf32>
    %381 = arith.addf %379, %380 : vector<64x64xf32>
    %382 = vector.extract_strided_slice %0 {offsets = [1, 0], sizes = [1, 64], strides = [1, 1]} : vector<20x192xf32> to vector<1x64xf32>
    %383 = vector.extract_strided_slice %0 {offsets = [2, 0], sizes = [1, 64], strides = [1, 1]} : vector<20x192xf32> to vector<1x64xf32>
    %cst_102 = arith.constant dense<0.000000e+00> : vector<64xf32>
    %384 = vector.multi_reduction <add>, %381, %cst_102 [1] : vector<64x64xf32> to vector<64xf32>
    %385 = vector.shape_cast %384 : vector<64xf32> to vector<64x1xf32>
    %cst_103 = arith.constant 6.400000e+01 : f32
    %386 = vector.broadcast %cst_103 : f32 to vector<64x1xf32>
    %387 = arith.divf %385, %386 : vector<64x1xf32>
    %388 = vector.broadcast %387 : vector<64x1xf32> to vector<64x64xf32>
    %389 = arith.subf %381, %388 : vector<64x64xf32>
    %390 = arith.mulf %389, %389 : vector<64x64xf32>
    %cst_104 = arith.constant dense<0.000000e+00> : vector<64xf32>
    %391 = vector.multi_reduction <add>, %390, %cst_104 [1] : vector<64x64xf32> to vector<64xf32>
    %392 = vector.shape_cast %391 : vector<64xf32> to vector<64x1xf32>
    %cst_105 = arith.constant 6.400000e+01 : f32
    %393 = vector.broadcast %cst_105 : f32 to vector<64x1xf32>
    %394 = arith.divf %392, %393 : vector<64x1xf32>
    %395 = vector.broadcast %387 : vector<64x1xf32> to vector<64x64xf32>
    %396 = arith.subf %381, %395 : vector<64x64xf32>
    %cst_106 = arith.constant 9.99999974E-6 : f32
    %397 = vector.broadcast %cst_106 : f32 to vector<64x1xf32>
    %398 = arith.addf %394, %397 : vector<64x1xf32>
    %399 = math.rsqrt %398 : vector<64x1xf32>
    %400 = vector.broadcast %399 : vector<64x1xf32> to vector<64x64xf32>
    %401 = arith.mulf %396, %400 : vector<64x64xf32>
    %402 = vector.broadcast %382 : vector<1x64xf32> to vector<64x64xf32>
    %403 = arith.mulf %401, %402 : vector<64x64xf32>
    %404 = vector.broadcast %383 : vector<1x64xf32> to vector<64x64xf32>
    %405 = arith.addf %403, %404 : vector<64x64xf32>
    %406 = arith.truncf %405 : vector<64x64xf32> to vector<64x64xbf16>
    %c0_107 = arith.constant 0 : index
    %c0_108 = arith.constant 0 : index
    %407 = vector.load %arg8[%c0_107, %c0_108] : memref<64x128xbf16, #tpu.memory_space<vmem>>, vector<64x128xbf16>
    %cst_109 = arith.constant dense<0.000000e+00> : vector<64x128xf32>
    %408 = tpu.matmul %406, %407, %cst_109 {dimension_numbers = #tpu.dot_dimension_numbers<[1], [0], [0], [1], [0, 0, 1, 1], [], []>} : vector<64x64xbf16>, vector<64x128xbf16>, vector<64x128xf32> -> vector<64x128xf32>
    %409 = vector.extract_strided_slice %0 {offsets = [3, 0], sizes = [1, 128], strides = [1, 1]} : vector<20x192xf32> to vector<1x128xf32>
    %410 = vector.broadcast %409 : vector<1x128xf32> to vector<64x128xf32>
    %411 = arith.addf %408, %410 : vector<64x128xf32>
    %412 = vector.shape_cast %411 : vector<64x128xf32> to vector<8x8x128xf32>
    %c0_110 = arith.constant 0 : index
    %c0_111 = arith.constant 0 : index
    %c0_112 = arith.constant 0 : index
    %413 = vector.load %arg10[%c0_110, %c0_111, %c0_112] : memref<8x8x128xf32, #tpu.memory_space<vmem>>, vector<8x8x128xf32>
    tpu.vector_store %arg10[%c0_110, %c0_111, %c0_112], %412 {strides = array<i32>} : memref<8x8x128xf32, #tpu.memory_space<vmem>>, vector<8x8x128xf32>,
    return
  }
  func.func @transform_0(%arg0: i32) -> (i32, i32, i32) {
    %c0_i32 = arith.constant 0 : i32
    %c0_i32_0 = arith.constant 0 : i32
    %c0_i32_1 = arith.constant 0 : i32
    return %arg0, %c0_i32, %c0_i32_0 : i32, i32, i32
  }
  func.func @transform_1(%arg0: i32) -> (i32, i32, i32) {
    %c0_i32 = arith.constant 0 : i32
    %c0_i32_0 = arith.constant 0 : i32
    %c0_i32_1 = arith.constant 0 : i32
    return %arg0, %c0_i32, %c0_i32_0 : i32, i32, i32
  }
  func.func @transform_2(%arg0: i32) -> (i32, i32) {
    %c0_i32 = arith.constant 0 : i32
    %c0_i32_0 = arith.constant 0 : i32
    %c0_i32_1 = arith.constant 0 : i32
    return %c0_i32, %c0_i32_0 : i32, i32
  }
  func.func @transform_3(%arg0: i32) -> (i32, i32, i32) {
    %c0_i32 = arith.constant 0 : i32
    %c0_i32_0 = arith.constant 0 : i32
    %c0_i32_1 = arith.constant 0 : i32
    %c0_i32_2 = arith.constant 0 : i32
    return %c0_i32, %c0_i32_0, %c0_i32_1 : i32, i32, i32
  }
  func.func @transform_4(%arg0: i32) -> (i32, i32, i32) {
    %c0_i32 = arith.constant 0 : i32
    %c0_i32_0 = arith.constant 0 : i32
    %c0_i32_1 = arith.constant 0 : i32
    %c0_i32_2 = arith.constant 0 : i32
    return %c0_i32, %c0_i32_0, %c0_i32_1 : i32, i32, i32
  }
  func.func @transform_5(%arg0: i32) -> (i32, i32, i32) {
    %c0_i32 = arith.constant 0 : i32
    %c0_i32_0 = arith.constant 0 : i32
    %c0_i32_1 = arith.constant 0 : i32
    %c0_i32_2 = arith.constant 0 : i32
    return %c0_i32, %c0_i32_0, %c0_i32_1 : i32, i32, i32
  }
  func.func @transform_6(%arg0: i32) -> (i32, i32, i32) {
    %c0_i32 = arith.constant 0 : i32
    %c0_i32_0 = arith.constant 0 : i32
    %c0_i32_1 = arith.constant 0 : i32
    %c0_i32_2 = arith.constant 0 : i32
    return %c0_i32, %c0_i32_0, %c0_i32_1 : i32, i32, i32
  }
  func.func @transform_7(%arg0: i32) -> (i32, i32) {
    %c0_i32 = arith.constant 0 : i32
    %c0_i32_0 = arith.constant 0 : i32
    %c0_i32_1 = arith.constant 0 : i32
    return %c0_i32, %c0_i32_0 : i32, i32
  }
  func.func @transform_8(%arg0: i32) -> (i32, i32) {
    %c0_i32 = arith.constant 0 : i32
    %c0_i32_0 = arith.constant 0 : i32
    %c0_i32_1 = arith.constant 0 : i32
    return %c0_i32, %c0_i32_0 : i32, i32
  }
  func.func @transform_9(%arg0: i32) -> (i32, i32, i32) {
    %c0_i32 = arith.constant 0 : i32
    %c0_i32_0 = arith.constant 0 : i32
    %c0_i32_1 = arith.constant 0 : i32
    return %arg0, %c0_i32, %c0_i32_0 : i32, i32, i32
  }
}

</mosaic_0001>

<bundles_post_ra>
// kernel: forward.1
= control target key start
LH: loop header
LB: loop body
LE: loop exit
PB: predicated region body
PF: predicated region fallthrough
CT: control target
= control target key end

     0   :  { %s12020_s30 = smov 0   ;;  %s14831_s0 = inlined_call_operand.vmem [shape: f32[16,8,64], index: 0, kind: input, shape index: {}]   ;;  %s14832_s1 = inlined_call_operand.vmem [shape: f32[16,1,8], index: 1, kind: input, shape index: {}]   ;;  %s14833_s2 = inlined_call_operand.vmem [shape: bf16[64,64], index: 2, kind: input, shape index: {}]   ;;  %s14834_s3 = inlined_call_operand.vmem [shape: bf16[2,64,192], index: 3, kind: input, shape index: {}]   ;;  %s14835_s4 = inlined_call_operand.vmem [shape: bf16[2,64,64], index: 4, kind: input, shape index: {}]   ;;  %s14836_s5 = inlined_call_operand.vmem [shape: bf16[2,64,128], index: 5, kind: input, shape index: {}]   ;;  %s14837_s6 = inlined_call_operand.vmem [shape: bf16[2,128,64], index: 6, kind: input, shape index: {}]   ;;  %s14838_s7 = inlined_call_operand.vmem [shape: bf16[64,128], index: 7, kind: input, shape index: {}]   ;;  %s14839_s8 = inlined_call_operand.vmem [shape: f32[20,192], index: 8, kind: input, shape index: {}]   ;;  %s14840_s9 = inlined_call_operand.vmem [shape: f32[16,8,128], index: 9, kind: output, shape index: {}]  }
   0x1 LB: > { %s9871_s10 = sadd.s32 4294967295, %s11958_s30   ;;  %p9875_p0 = scmp.ge.s32.totalorder %s11958_s30, 1  ;;  %s11958_s30 = sphi %s12020_s30, %s19_s30  }
   0x2   : > { %p298_p1 = scmp.lt.s32.totalorder %s11958_s30, 3 }
   0x4   : > { %p299_p2 = pnand %p9875_p0, %p298_p1 }
   0x6   : > { %302 = sbr.rel (%p299_p2) target bundleno = 9572 (0x2564), region = 56 }
   0xd   : > { %v11525_v0 = vld [vmem:[%s14833_s2] sm:$0xff]   ;;  %s9876_s13 = sshll.u32 %s9871_s10, 3  ;;  %v11526_v1 = vld [vmem:[%s14833_s2 + $0x8] sm:$0xff]   ;;  %v11527_v2 = vld [vmem:[%s14833_s2 + $0x10] sm:$0xff]   ;;  %vm465_vm0 = vcmask 523264   ;;  %v14841_v24 = vmov 0   ;;  %v437_v25 = vlaneseq }
   0xe   : > { %p339_p3 = scmp.lt.s32.totalorder %s9876_s13, 15  ;;  %10475 = vmatprep.subr.bf16.mxu0 %v11525_v0  ;;  %v11529_v3 = vld [vmem:[%s14834_s3 + $0x4] ss:$8 sps:$4 sm:$0xff]   ;;  %v11531_v4 = vld [vmem:[%s14834_s3] ss:$8 sps:$4 sm:$0xff]   ;;  %v11528_v9 = vld [vmem:[%s14833_s2 + $0x18] sm:$0xff]   ;;  %647 = vmatprep.mubr.bf16.mxu1 %v14841_v24 }
   0xf   : > { %10476 = vmatpush3.bf16.msra.mxu0 %v11525_v0  ;;  %615 = vmatprep.subr.bf16.mxu1 %v11529_v3  ;;  %v11532_v5 = vld [vmem:[%s14834_s3 + $0x14] ss:$8 sps:$4 sm:$0xff]   ;;  %v11534_v8 = vld [vmem:[%s14834_s3 + $0x10] ss:$8 sps:$4 sm:$0xff]   ;;  %v11535_v20 = vld [vmem:[%s14834_s3 + $0x24] ss:$8 sps:$4 sm:$0xff]  }
  0x10   : > { %s14943_s13 = smov (!%p339_p3, %s9876_s13), 15  ;;  %10477 = vmatprep.subr.bf16.mxu0 %v11526_v1  ;;  %616 = vmatpush1.bf16.msra.mxu1 %v11531_v4  ;;  %v11537_v21 = vld [vmem:[%s14834_s3 + $0x20] ss:$8 sps:$4 sm:$0xff]   ;;  %v11538_v22 = vld [vmem:[%s14834_s3 + $0x34] ss:$8 sps:$4 sm:$0xff]   ;;  %v12077_v26 = vshrl.u32 %v437_v25, 7 }
  0x11   : > { %s9877_s20 = sshll.u32 %s14943_s13, 3  ;;  %617 = vmatprep.subr.bf16.mxu1 %v11532_v5  ;;  %v11540_v23 = vld [vmem:[%s14834_s3 + $0x30] ss:$8 sps:$4 sm:$0xff]   ;;  %v356_v28 = vld [vmem:[%s14839_s8] sm:$0xff]  ;;  %v14843_v50 = vmov 0.0   ;;  %vm11962_vm1 = vmmov 0   ;;  %s12253_s29 = scalar_lea.vmem %s14832_s1, %s14943_s13 }
  0x12   : > { %s342_s25 = scalar_lea.vmem %s14831_s0, %s9877_s20  ;;  %14877 = vst [vmem:[#allocation2_spill] sm:$0xff] %v12077_v26  ;;  %v12080_v27 = vsub.s32 0, %v12077_v26  ;;  %v12120_v51 = vsub.s32 4, %v12077_v26  ;;  %v357_v60 = vld [vmem:[%s14839_s8 + $0x8] sm:$0xff]  ;;  %s11963_s26 = smov 64   ;;  %vm707_vm2 = vcmask 130048  }
  0x13   : > { %10478 = vmatpush3.bf16.msra.mxu0 %v11526_v1  ;;  %v417_v6 = vld [vmem:[%s342_s25] sm:$0xff]  ;;  %v418_v7 = vld [vmem:[%s342_s25 + $0x8] sm:$0xff]  ;;  %v419_v11 = vld [vmem:[%s342_s25 + $0x10] sm:$0xff]  ;;  %vm1213_vm3 = vcmask 1043456   ;;  %vm1113_vm4 = vcmask 64512   ;;  %s11964_s10 = smov 48   ;;  %s353_s27 = scalar_lea.vmem %s14840_s9, %s9877_s20 }
  0x14   : > { %10479 = vmatprep.subr.bf16.mxu0 %v11527_v2  ;;  %v425_v10 = vpack.c.bf16 %v418_v7, %v417_v6  ;;  %v420_v12 = vld [vmem:[%s342_s25 + $0x18] sm:$0xff]  ;;  %v421_v13 = vld [vmem:[%s342_s25 + $0x20] sm:$0xff]  ;;  %v422_v14 = vld [vmem:[%s342_s25 + $0x28] sm:$0xff]  ;;  %618 = vmatpush1.bf16.msra.mxu1 %v11534_v8  ;;  %14878 = vst [vmem:[#allocation3_spill] sm:$0xff] %v12080_v27  ;;  %v440_v29 = vrot.slane %v356_v28, %v12080_v27  ;;  %s11965_s11 = smov 112   ;;  %s11966_s12 = smov 32  }
  0x15   : > { %v426_v15 = vpack.c.bf16 %v420_v12, %v419_v11  ;;  %v427_v16 = vpack.c.bf16 %v422_v14, %v421_v13  ;;  %v423_v17 = vld [vmem:[%s342_s25 + $0x30] sm:$0xff]  ;;  %v424_v18 = vld [vmem:[%s342_s25 + $0x38] sm:$0xff]  ;;  %619 = vmatprep.subr.bf16.mxu1 %v11535_v20  ;;  %14887 = vst [vmem:[#allocation12_spill] sm:$0xff] %v12120_v51  ;;  %v558_v52 = vrot.slane %v356_v28, %v12120_v51  ;;  %s11967_s14 = smov 96   ;;  %s11968_s15 = smov 16   ;;  %vm4379_vm5 = vcmask 261120  }
  0x16   : > { %10483 = vmatprep.mubr.msk.bf16.mxu0 %vm465_vm0, %v425_v10  ;;  %v428_v19 = vpack.c.bf16 %v424_v18, %v423_v17  ;;  %v12141_v62 = vrot.slane %v357_v60, %v12120_v51  ;;  %s11969_s16 = smov 80   ;;  %vm4388_vm6 = vcmask 392192  }
  0x17   : > { %10480 = vmatpush3.bf16.msra.mxu0 %v11527_v2 }
  0x18   : > { %10481 = vmatprep.subr.bf16.mxu0 %v11528_v9  ;;  %620 = vmatpush1.bf16.msra.mxu1 %v11537_v21 }
  0x19   : > { %621 = vmatprep.subr.bf16.mxu1 %v11538_v22 }
  0x1b   : > { %10482 = vmatpush3.bf16.msra.mxu0 %v11528_v9 }
  0x1c   : > { %622 = vmatpush1.bf16.msra.mxu1 %v11540_v23  ;;  %10497 = vmatprep.subr.bf16.mxu0 %v14843_v50 }
  0x1d   : > { %10491 = vmatprep.subr.bf16.mxu1 %v14843_v50 }
  0x1e   : > { %10484 = vmatmul.mubr.msk.bf16.vlgmr.msra.gmra.mrb[0].mxu0 %vm465_vm0, %v426_v15 }
  0x1f   : > { %10487 = vmatprep.mubr.msk.bf16.mxu0 %vm465_vm0, %v427_v16 }
  0x26   : > { %10488 = vmatmul.mubr.msk.bf16.gmra.mrb[4].mxu0 %vm465_vm0, %v428_v19 }
  0x27   : > { %10499 = vmatprep.mubr.msk.bf16.mxu0 %vm11962_vm1, %v14843_v50 }
  0xf1   : > { %v10485_v30 = vpop.f32.mrb[0].mxu0 }
  0xf2   : > { %v512_v31 = vpop.f32.mrb[1].mxu0  ;;  %v12096_v42 = vadd.f32 %v10485_v30, %v440_v29 }
  0xf3   : > { %v10486_v32 = vpop.f32.mrb[2].mxu0  ;;  %v12086_v34 = vadd.f32 %v512_v31, %v440_v29 }
  0xf4   : > { %v515_v33 = vpop.f32.mrb[3].mxu0  ;;  %v12094_v39 = vadd.f32 %v10486_v32, %v440_v29  ;;  %14882 = vst [vmem:[#allocation7_spill] sm:$0xff] %v12096_v42 }
  0xf5   : > { %14879 = vst [vmem:[#allocation4_spill] sm:$0xff] %v12086_v34  ;;  %v12088_v35 = vadd.f32 %v515_v33, %v440_v29 }
  0xf6   : > { %14881 = vst [vmem:[#allocation6_spill] sm:$0xff] %v12094_v39  ;;  %v544_v43 = vpack.c.bf16 %v12094_v39, %v12096_v42 }
  0xf7   : > { %14880 = vst [vmem:[#allocation5_spill] sm:$0xff] %v12088_v35  ;;  %v543_v36 = vpack.c.bf16 %v12088_v35, %v12086_v34 }
  0xf9   : > { %9905 = vmatmul.mubr.msk.bf16.vlgmr.msra.gmra.mrb[0].mxu1 %vm465_vm0, %v543_v36  ;;  %v10489_v37 = vpop.f32.mrb[4].mxu0 }
  0xfa   : > { %657 = vmatprep.mubr.bf16.mxu1 %v14841_v24  ;;  %v528_v38 = vpop.f32.mrb[5].mxu0  ;;  %v12110_v47 = vadd.f32 %v10489_v37, %v440_v29 }
  0xfb   : > { %v10490_v40 = vpop.f32.mrb[6].mxu0  ;;  %v12101_v44 = vadd.f32 %v528_v38, %v440_v29 }
  0xfc   : > { %v531_v41 = vpop.f32.mrb[7].mxu0  ;;  %14885 = vst [vmem:[#allocation10_spill] sm:$0xff] %v12110_v47  ;;  %v12112_v48 = vadd.f32 %v10490_v40, %v440_v29 }
  0xfd   : > { %14883 = vst [vmem:[#allocation8_spill] sm:$0xff] %v12101_v44  ;;  %v12103_v45 = vadd.f32 %v531_v41, %v440_v29 }
  0xfe   : > { %14886 = vst [vmem:[#allocation11_spill] sm:$0xff] %v12112_v48  ;;  %v546_v49 = vpack.c.bf16 %v12112_v48, %v12110_v47 }
  0xff   : > { %14884 = vst [vmem:[#allocation9_spill] sm:$0xff] %v12103_v45  ;;  %v545_v46 = vpack.c.bf16 %v12103_v45, %v12101_v44  ;;  %v12768_v45 = vld [vmem:[%s12253_s29 + $0x6] ss:$0 sm:$0xff]  ;;  %v12772_v44 = vld [vmem:[%s12253_s29 + $0x7] ss:$0 sm:$0xff] }
 0x101   : > { %9906 = vmatmul.mubr.msk.bf16.gmra.mrb[4].mxu1 %vm465_vm0, %v544_v43 }
 0x102   : > { %667 = vmatprep.mubr.bf16.mxu1 %v14841_v24 }
 0x109   : > { %9907 = vmatmul.mubr.msk.bf16.gmra.mrb[8].mxu1 %vm465_vm0, %v545_v46 }
 0x10a   : > { %677 = vmatprep.mubr.bf16.mxu1 %v14841_v24 }
 0x111   : > { %9908 = vmatmul.mubr.msk.bf16.gmra.mrb[12].mxu1 %vm465_vm0, %v546_v49 }
 0x112   : > { %10493 = vmatprep.mubr.msk.bf16.mxu1 %vm11962_vm1, %v14843_v50 }
 0x1cc   : > { %v649_v53 = vpop.f32.mrb[0].mxu1 }
 0x1cd   : > { %v650_v54 = vadd.f32 %v649_v53, %v558_v52  ;;  %v12127_v55 = vpop.f32.mrb[1].mxu1 }
 0x1ce   : > { %v653_v56 = vpop.f32.mrb[2].mxu1 }
 0x1cf   : > { %v12129_v57 = vpack.c.bf16 %v650_v54, %v650_v54  ;;  %v654_v58 = vadd.f32 %v653_v56, %v558_v52  ;;  %v12131_v59 = vpop.f32.mrb[3].mxu1 }
 0x1d0   : > { %v656_v60 = vadd.f32 %v12131_v59, %v12141_v62 }
 0x1d1   : > { %705 = vrot.lane.b32.xlu0 %v12129_v57, %s11963_s26  ;;  %v12138_v61 = vpack.c.bf16 %v654_v58, %v654_v58  ;;  %v652_v58 = vadd.f32 %v12127_v55, %v12141_v62 }
 0x1d2   : > { %v12233_v59 = vpack.c.bf16 %v656_v60, %v656_v60 }
 0x1d3   : > { %v12231_v55 = vpack.c.bf16 %v652_v58, %v652_v58 }
 0x1d4   : > { %v659_v63 = vpop.f32.mrb[4].mxu1 }
 0x1d5   : > { %v660_v0 = vadd.f32 %v659_v63, %v558_v52  ;;  %v661_v1 = vpop.f32.mrb[5].mxu1  ;;  %755 = vrot.lane.b32.xlu0 %v12138_v61, %s11963_s26 }
 0x1d6   : > { %v12146_v2 = vadd.f32 %v661_v1, %v12141_v62  ;;  %v663_v3 = vpop.f32.mrb[6].mxu1  ;;  %v1261_v1 = vsel %vm1213_vm3, %v12233_v59, 0 }
 0x1d7   : > { %v12148_v4 = vpack.c.bf16 %v660_v0, %v660_v0  ;;  %v664_v5 = vadd.f32 %v663_v3, %v558_v52  ;;  %v665_v6 = vpop.f32.mrb[7].mxu1 }
 0x1d8   : > { %v12151_v7 = vadd.f32 %v665_v6, %v12141_v62 }
 0x1d9   : > { %804 = vrot.lane.b32.xlu1 %v12148_v4, %s11963_s26  ;;  %v12155_v8 = vpack.c.bf16 %v664_v5, %v664_v5  ;;  %v12256_v5 = vld [vmem:[%s12253_s29] ss:$0 sm:$0xff] }
 0x1dc   : > { %v669_v9 = vpop.f32.mrb[8].mxu1 }
 0x1dd   : > { %853 = vrot.lane.b32.xlu1 %v12155_v8, %s11963_s26  ;;  %v670_v10 = vadd.f32 %v669_v9, %v558_v52  ;;  %v671_v11 = vpop.f32.mrb[9].mxu1 }
 0x1de   : > { %v12160_v12 = vadd.f32 %v671_v11, %v12141_v62  ;;  %v673_v13 = vpop.f32.mrb[10].mxu1 }
 0x1df   : > { %v12162_v14 = vpack.c.bf16 %v670_v10, %v670_v10  ;;  %v674_v15 = vadd.f32 %v673_v13, %v558_v52  ;;  %v675_v16 = vpop.f32.mrb[11].mxu1 }
 0x1e0   : > { %v12165_v17 = vadd.f32 %v675_v16, %v12141_v62  ;;  %v12262_v16 = vld [vmem:[%s12253_s29 + $0x1] ss:$0 sm:$0xff] }
 0x1e1   : > { %v12167_v18 = vpack.c.bf16 %v674_v15, %v674_v15  ;;  %902 = vrot.lane.b32.xlu0 %v12162_v14, %s11963_s26 }
 0x1e3   : > { %951 = vrot.lane.b32.xlu1 %v12167_v18, %s11963_s26 }
 0x1e4   : > { %v679_v19 = vpop.f32.mrb[12].mxu1 }
 0x1e5   : > { %v680_v20 = vadd.f32 %v679_v19, %v558_v52  ;;  %v681_v21 = vpop.f32.mrb[13].mxu1 }
 0x1e6   : > { %v12174_v22 = vadd.f32 %v681_v21, %v12141_v62  ;;  %v683_v23 = vpop.f32.mrb[14].mxu1 }
 0x1e7   : > { %v12176_v25 = vpack.c.bf16 %v680_v20, %v680_v20  ;;  %v684_v28 = vadd.f32 %v683_v23, %v558_v52  ;;  %v685_v29 = vpop.f32.mrb[15].mxu1 }
 0x1e8   : > { %v12179_v30 = vadd.f32 %v685_v29, %v12141_v62  ;;  %v1215_v62 = vsel %vm1213_vm3, %v12231_v55, 0 }
 0x1e9   : > { %v12181_v31 = vpack.c.bf16 %v684_v28, %v684_v28  ;;  %1000 = vrot.lane.b32.xlu0 %v12176_v25, %s11963_s26 }
 0x1eb   : > { %1049 = vrot.lane.b32.xlu1 %v12181_v31, %s11963_s26 }
 0x243   : > { %v706_v32 = vpop.permute.xlu0 %705 }
 0x244   : > { %v712_v33 = vsel %vm707_vm2, %v706_v32, 0 }
 0x245   : > { %10492 = vmatpush3.bf16.xpose.msra.mxu1 %v712_v33 }
 0x246   : > { %10509 = vmatprep.subr.bf16.mxu1 %v14843_v50 }
 0x247   : > { %v756_v36 = vpop.permute.xlu0 %755 }
 0x248   : > { %v761_v37 = vsel %vm707_vm2, %v756_v36, 0 }
 0x249   : > { %10498 = vmatpush3.bf16.xpose.msra.mxu0 %v761_v37  ;;  %v12272_v37 = vld [vmem:[%s12253_s29 + $0x2] ss:$0 sm:$0xff] }
 0x24a   : > { %10503 = vmatprep.subr.bf16.mxu0 %v14843_v50 }
 0x24b   : > { %v805_v38 = vpop.permute.xlu1 %804 }
 0x24c   : > { %10494 = vmatmul.mubr.msk.bf16.vlgmr.msra.gmra.mrb[16].mxu1 %vm707_vm2, %v12129_v57  ;;  %v810_v41 = vsel %vm707_vm2, %v805_v38, 0 }
 0x24d   : > { %10511 = vmatprep.mubr.msk.bf16.mxu1 %vm11962_vm1, %v14843_v50 }
 0x24f   : > { %v854_v40 = vpop.permute.xlu1 %853 }
 0x250   : > { %v859_v43 = vsel %vm707_vm2, %v854_v40, 0  ;;  %10500 = vmatmul.mubr.msk.bf16.vlgmr.msra.gmra.mrb[8].mxu0 %vm707_vm2, %v12138_v61 }
 0x251   : > { %10504 = vmatpush3.bf16.xpose.msra.mxu0 %v810_v41  ;;  %10510 = vmatpush3.bf16.xpose.msra.mxu1 %v859_v43 }
 0x252   : > { %10505 = vmatprep.mubr.msk.bf16.mxu0 %vm11962_vm1, %v14843_v50  ;;  %10515 = vmatprep.subr.bf16.mxu0 %v14843_v50 }
 0x253   : > { %10521 = vmatprep.subr.bf16.mxu1 %v14843_v50  ;;  %v903_v49 = vpop.permute.xlu0 %902 }
 0x254   : > { %v908_v53 = vsel %vm707_vm2, %v903_v49, 0 }
 0x255   : > { %v952_v46 = vpop.permute.xlu1 %951 }
 0x256   : > { %v957_v52 = vsel %vm707_vm2, %v952_v46, 0 }
 0x258   : > { %10506 = vmatmul.mubr.msk.bf16.vlgmr.msra.gmra.mrb[12].mxu0 %vm707_vm2, %v12148_v4  ;;  %10512 = vmatmul.mubr.msk.bf16.vlgmr.msra.gmra.mrb[20].mxu1 %vm707_vm2, %v12155_v8 }
 0x259   : > { %10516 = vmatpush3.bf16.xpose.msra.mxu0 %v908_v53  ;;  %10522 = vmatpush3.bf16.xpose.msra.mxu1 %v957_v52  ;;  %v12275_v52 = vld [vmem:[%s12253_s29 + $0x3] ss:$0 sm:$0xff] }
 0x25a   : > { %10517 = vmatprep.mubr.msk.bf16.mxu0 %vm11962_vm1, %v14843_v50  ;;  %10523 = vmatprep.mubr.msk.bf16.mxu1 %vm11962_vm1, %v14843_v50 }
 0x25b   : > { %10527 = vmatprep.subr.bf16.mxu0 %v14843_v50  ;;  %10533 = vmatprep.subr.bf16.mxu1 %v14843_v50  ;;  %v1001_v56 = vpop.permute.xlu0 %1000 }
 0x25c   : > { %v1006_v0 = vsel %vm707_vm2, %v1001_v56, 0 }
 0x25d   : > { %v1050_v54 = vpop.permute.xlu1 %1049 }
 0x25e   : > { %v1055_v63 = vsel %vm707_vm2, %v1050_v54, 0 }
 0x260   : > { %10518 = vmatmul.mubr.msk.bf16.vlgmr.msra.gmra.mrb[16].mxu0 %vm707_vm2, %v12162_v14  ;;  %10524 = vmatmul.mubr.msk.bf16.vlgmr.msra.gmra.mrb[24].mxu1 %vm707_vm2, %v12167_v18 }
 0x261   : > { %10528 = vmatpush3.bf16.xpose.msra.mxu0 %v1006_v0  ;;  %10534 = vmatpush3.bf16.xpose.msra.mxu1 %v1055_v63 }
 0x262   : > { %10529 = vmatprep.mubr.msk.bf16.mxu0 %vm11962_vm1, %v14843_v50  ;;  %10535 = vmatprep.mubr.msk.bf16.mxu1 %vm11962_vm1, %v14843_v50 }
 0x263   : > { %10539 = vmatprep.subr.bf16.mxu0 %v14843_v50  ;;  %10545 = vmatprep.subr.bf16.mxu1 %v14843_v50 }
 0x268   : > { %10530 = vmatmul.mubr.msk.bf16.vlgmr.msra.gmra.mrb[20].mxu0 %vm707_vm2, %v12176_v25  ;;  %10536 = vmatmul.mubr.msk.bf16.vlgmr.msra.gmra.mrb[28].mxu1 %vm707_vm2, %v12181_v31 }
 0x269   : > { %10540 = vmatpush3.bf16.msra.mxu0 %v1215_v62  ;;  %10546 = vmatpush3.bf16.msra.mxu1 %v1261_v1  ;;  %v12281_v62 = vld [vmem:[%s12253_s29 + $0x5] ss:$0 sm:$0xff]  ;;  %v12284_v1 = vld [vmem:[%s12253_s29 + $0x4] ss:$0 sm:$0xff] }
 0x26a   : > { %10541 = vmatprep.mubr.msk.bf16.mxu0 %vm11962_vm1, %v14843_v50  ;;  %10551 = vmatprep.subr.bf16.mxu0 %v14843_v50 }
 0x26b   : > { %10547 = vmatprep.mubr.msk.bf16.mxu1 %vm11962_vm1, %v14843_v50  ;;  %10557 = vmatprep.subr.bf16.mxu1 %v14843_v50 }
 0x31f   : > { %v748_v3 = vpop.f32.mrb[16].mxu1 }
 0x320   : > { %v1097_v6 = vmul.f32 0.25, %v748_v3  ;;  %v10495_v9 = vpop.f32.mrb[17].mxu1 }
 0x321   : > { %v751_v10 = vpop.f32.mrb[18].mxu1 }
 0x322   : > { %v10496_v11 = vpop.f32.mrb[19].mxu1  ;;  %v12259_v13 = vadd.f32 %v12256_v5, %v1097_v6 }
 0x323   : > { %v797_v15 = vpop.f32.mrb[8].mxu0 }
 0x324   : > { %v1098_v19 = vmul.f32 0.25, %v797_v15  ;;  %v10501_v20 = vpop.f32.mrb[9].mxu0  ;;  %v1114_v21 = vsel %vm1113_vm4, %v12259_v13, -inf }
 0x325   : > { %1115 = vmax.xlane.f32.xlu0 %v1114_v21  ;;  %v800_v23 = vpop.f32.mrb[10].mxu0 }
 0x326   : > { %v10502_v28 = vpop.f32.mrb[11].mxu0  ;;  %v12267_v29 = vadd.f32 %v12262_v16, %v1098_v19 }
 0x328   : > { %v1117_v32 = vsel %vm1113_vm4, %v12267_v29, -inf }
 0x329   : > { %1118 = vmax.xlane.f32.xlu1 %v1117_v32 }
 0x32b   : > { %v846_v33 = vpop.f32.mrb[12].mxu0  ;;  %v895_v36 = vpop.f32.mrb[20].mxu1 }
 0x32c   : > { %v1099_v38 = vmul.f32 0.25, %v846_v33  ;;  %v1100_v40 = vmul.f32 0.25, %v895_v36  ;;  %v10507_v41 = vpop.f32.mrb[13].mxu0  ;;  %v10513_v43 = vpop.f32.mrb[21].mxu1 }
 0x32d   : > { %v849_v46 = vpop.f32.mrb[14].mxu0  ;;  %v898_v49 = vpop.f32.mrb[22].mxu1  ;;  %v12295_v41 = vld [vmem:[%s12253_s29 + $0x6] ss:$0 sm:$0xff] }
 0x32e   : > { %v10508_v53 = vpop.f32.mrb[15].mxu0  ;;  %v10514_v54 = vpop.f32.mrb[23].mxu1  ;;  %v1107_v56 = vadd.f32 %v12272_v37, %v1099_v38  ;;  %v1108_v60 = vadd.f32 %v12275_v52, %v1100_v40  ;;  %v12292_v40 = vld [vmem:[%s12253_s29 + $0x7] ss:$0 sm:$0xff] }
 0x330   : > { %v1120_v58 = vsel %vm1113_vm4, %v1107_v56, -inf  ;;  %v1123_v11 = vsel %vm1113_vm4, %v1108_v60, -inf }
 0x331   : > { %1121 = vmax.xlane.f32.xlu0 %v1120_v58 }
 0x333   : > { %v944_v63 = vpop.f32.mrb[16].mxu0  ;;  %v993_v0 = vpop.f32.mrb[24].mxu1 }
 0x334   : > { %v1101_v3 = vmul.f32 0.25, %v944_v63  ;;  %v1102_v6 = vmul.f32 0.25, %v993_v0  ;;  %v10519_v9 = vpop.f32.mrb[17].mxu0  ;;  %v10525_v10 = vpop.f32.mrb[25].mxu1 }
 0x335   : > { %v996_v15 = vpop.f32.mrb[26].mxu1  ;;  %1124 = vmax.xlane.f32.xlu0 %v1123_v11  ;;  %v947_v19 = vpop.f32.mrb[18].mxu0 }
 0x336   : > { %v10520_v20 = vpop.f32.mrb[19].mxu0  ;;  %v10526_v21 = vpop.f32.mrb[27].mxu1  ;;  %v1110_v23 = vadd.f32 %v12281_v62, %v1102_v6  ;;  %v1109_v28 = vadd.f32 %v12284_v1, %v1101_v3 }
 0x338   : > { %v1129_v32 = vsel %vm1113_vm4, %v1110_v23, -inf  ;;  %v1126_v33 = vsel %vm1113_vm4, %v1109_v28, -inf }
 0x339   : > { %1130 = vmax.xlane.f32.xlu0 %v1129_v32  ;;  %1127 = vmax.xlane.f32.xlu1 %v1126_v33 }
 0x33b   : > { %v1042_v36 = vpop.f32.mrb[20].mxu0  ;;  %v1091_v38 = vpop.f32.mrb[28].mxu1 }
 0x33c   : > { %v1103_v43 = vmul.f32 0.25, %v1042_v36  ;;  %v1104_v46 = vmul.f32 0.25, %v1091_v38  ;;  %v10531_v49 = vpop.f32.mrb[21].mxu0  ;;  %v10537_v53 = vpop.f32.mrb[29].mxu1 }
 0x33d   : > { %v1045_v54 = vpop.f32.mrb[22].mxu0  ;;  %v1094_v58 = vpop.f32.mrb[30].mxu1 }
 0x33e   : > { %v10532_v63 = vpop.f32.mrb[23].mxu0  ;;  %v10538_v0 = vpop.f32.mrb[31].mxu1  ;;  %v1112_v3 = vadd.f32 %v12292_v40, %v1104_v46  ;;  %v1111_v6 = vadd.f32 %v12295_v41, %v1103_v43 }
 0x340   : > { %v1135_v9 = vsel %vm1113_vm4, %v1112_v3, -inf  ;;  %v1132_v10 = vsel %vm1113_vm4, %v1111_v6, -inf }
 0x341   : > { %1136 = vmax.xlane.f32.xlu0 %v1135_v9  ;;  %1133 = vmax.xlane.f32.xlu1 %v1132_v10 }
 0x3b2   : > { %v1116_v11 = vpop.xlane.xlu0 %1115 }
 0x3b3   : > { %v1138_v15 = vsub.f32 %v12259_v13, %v1116_v11 }
 0x3b5   : > { %v1146_v19 = vmul.f32 1.442695, %v1138_v15 }
 0x3b6   : > { %v1119_v20 = vpop.xlane.xlu1 %1118 }
 0x3b7   : > { %11589 = vpow2.f32 %v1146_v19  ;;  %v1139_v21 = vsub.f32 %v12267_v29, %v1119_v20 }
 0x3b9   : > { %v1148_v32 = vmul.f32 1.442695, %v1139_v21 }
 0x3bb   : > { %11591 = vpow2.f32 %v1148_v32 }
 0x3be   : > { %v1122_v33 = vpop.xlane.xlu0 %1121 }
 0x3bf   : > { %v1140_v36 = vsub.f32 %v1107_v56, %v1122_v33 }
 0x3c1   : > { %v12303_v38 = vpop.eup %11589  ;;  %v1150_v43 = vmul.f32 1.442695, %v1140_v36 }
 0x3c2   : > { %v1125_v46 = vpop.xlane.xlu0 %1124  ;;  %v1162_v49 = vsel %vm1113_vm4, %v12303_v38, 0.0 }
 0x3c3   : > { %11593 = vpow2.f32 %v1150_v43  ;;  %v1141_v53 = vsub.f32 %v1108_v60, %v1125_v46  ;;  %1163 = vadd.xlane.f32.xlu1 %v1162_v49 }
 0x3c5   : > { %v12307_v13 = vpop.eup %11591  ;;  %v1152_v54 = vmul.f32 1.442695, %v1141_v53 }
 0x3c6   : > { %v1128_v58 = vpop.xlane.xlu1 %1127  ;;  %v1131_v63 = vpop.xlane.xlu0 %1130  ;;  %v1165_v29 = vsel %vm1113_vm4, %v12307_v13, 0.0 }
 0x3c7   : > { %11595 = vpow2.f32 %v1152_v54  ;;  %v1142_v56 = vsub.f32 %v1109_v28, %v1128_v58  ;;  %v1143_v0 = vsub.f32 %v1110_v23, %v1131_v63  ;;  %1166 = vadd.xlane.f32.xlu0 %v1165_v29  ;;  %v12373_v58 = vpack.c.bf16 %v12146_v2, %v12146_v2 }
 0x3c8   : > { %v12379_v63 = vpack.c.bf16 %v12151_v7, %v12151_v7 }
 0x3c9   : > { %v1154_v9 = vmul.f32 1.442695, %v1142_v56  ;;  %v1156_v10 = vmul.f32 1.442695, %v1143_v0  ;;  %v1307_v7 = vsel %vm1213_vm3, %v12373_v58, 0 }
 0x3cb   : > { %11597 = vpow2.f32 %v1154_v9 }
 0x3cc   : > { %11599 = vpow2.f32 %v1156_v10 }
 0x3cd   : > { %v12311_v11 = vpop.eup %11593 }
 0x3ce   : > { %v1137_v60 = vpop.xlane.xlu0 %1136  ;;  %v1168_v15 = vsel %vm1113_vm4, %v12311_v11, 0.0  ;;  %v1134_v46 = vpop.xlane.xlu1 %1133 }
 0x3cf   : > { %v1145_v19 = vsub.f32 %v1112_v3, %v1137_v60  ;;  %1169 = vadd.xlane.f32.xlu1 %v1168_v15  ;;  %v1144_v49 = vsub.f32 %v1111_v6, %v1134_v46 }
 0x3d1   : > { %v12315_v20 = vpop.eup %11595  ;;  %v1160_v21 = vmul.f32 1.442695, %v1145_v19  ;;  %v1158_v53 = vmul.f32 1.442695, %v1144_v49 }
 0x3d2   : > { %v1171_v28 = vsel %vm1113_vm4, %v12315_v20, 0.0 }
 0x3d3   : > { %1172 = vadd.xlane.f32.xlu0 %v1171_v28  ;;  %11601 = vpow2.f32 %v1160_v21  ;;  %v1353_v28 = vsel %vm1213_vm3, %v12379_v63, 0 }
 0x3d4   : > { %11603 = vpow2.f32 %v1158_v53  ;;  %v12404_v53 = vpack.c.bf16 %v12165_v17, %v12165_v17  ;;  %v12415_v17 = vpack.c.bf16 %v12174_v22, %v12174_v22  ;;  %v12427_v22 = vpack.c.bf16 %v12179_v30, %v12179_v30 }
 0x3d5   : > { %v12319_v23 = vpop.eup %11597 }
 0x3d6   : > { %v12321_v32 = vpop.eup %11599  ;;  %v1174_v33 = vsel %vm1113_vm4, %v12319_v23, 0.0 }
 0x3d7   : > { %1175 = vadd.xlane.f32.xlu1 %v1174_v33  ;;  %v1177_v3 = vsel %vm1113_vm4, %v12321_v32, 0.0 }
 0x3d8   : > { %1178 = vadd.xlane.f32.xlu0 %v1177_v3  ;;  %v12399_v3 = vpack.c.bf16 %v12160_v12, %v12160_v12 }
 0x3dd   : > { %v12327_v36 = vpop.eup %11601 }
 0x3de   : > { %v1183_v43 = vsel %vm1113_vm4, %v12327_v36, 0.0  ;;  %v12343_v54 = vpop.eup %11603 }
 0x3df   : > { %1184 = vadd.xlane.f32.xlu0 %v1183_v43  ;;  %v1180_v6 = vsel %vm1113_vm4, %v12343_v54, 0.0 }
 0x3e8   : > { %1581 = vrot.lane.b32.xlu1 %v12129_v57, %s11964_s10 }
 0x3f5   : > { %1631 = vrot.lane.b32.xlu0 %v12138_v61, %s11964_s10 }
 0x3f9   : > { %1681 = vrot.lane.b32.xlu0 %v12148_v4, %s11964_s10 }
 0x3fd   : > { %1679 = vrot.lane.b32.xlu0 %v12148_v4, %s11965_s11 }
 0x401   : > { %1781 = vrot.lane.b32.xlu0 %v12162_v14, %s11964_s10 }
 0x405   : > { %1779 = vrot.lane.b32.xlu0 %v12162_v14, %s11965_s11 }
 0x409   : > { %1881 = vrot.lane.b32.xlu0 %v12176_v25, %s11964_s10 }
 0x40c   : > { %1181 = vadd.xlane.f32.xlu1 %v1180_v6  ;;  %v1399_v6 = vsel %vm1213_vm3, %v12399_v3, 0 }
 0x40d   : > { %1879 = vrot.lane.b32.xlu0 %v12176_v25, %s11965_s11 }
 0x411   : > { %2141 = vrot.lane.b32.xlu0 %v12233_v59, %s11965_s11 }
 0x41d   : > { %1579 = vrot.lane.b32.xlu1 %v12129_v57, %s11965_s11 }
 0x421   : > { %1629 = vrot.lane.b32.xlu1 %v12138_v61, %s11965_s11 }
 0x425   : > { %1731 = vrot.lane.b32.xlu1 %v12155_v8, %s11964_s10 }
 0x429   : > { %1729 = vrot.lane.b32.xlu1 %v12155_v8, %s11965_s11 }
 0x42d   : > { %1831 = vrot.lane.b32.xlu1 %v12167_v18, %s11964_s10 }
 0x431   : > { %1829 = vrot.lane.b32.xlu1 %v12167_v18, %s11965_s11 }
 0x435   : > { %1931 = vrot.lane.b32.xlu1 %v12181_v31, %s11964_s10 }
 0x439   : > { %1929 = vrot.lane.b32.xlu1 %v12181_v31, %s11965_s11 }
 0x43d   : > { %2092 = vrot.lane.b32.xlu1 %v12231_v55, %s11965_s11 }
 0x441   : > { %2190 = vrot.lane.b32.xlu1 %v12373_v58, %s11965_s11 }
 0x445   : > { %2239 = vrot.lane.b32.xlu1 %v12379_v63, %s11965_s11 }
 0x450   : > { %v1164_v29 = vpop.xlane.xlu1 %1163 }
 0x451   : > { %11605 = vrcp.f32 %v1164_v29 }
 0x454   : > { %v1167_v56 = vpop.xlane.xlu0 %1166 }
 0x455   : > { %11607 = vrcp.f32 %v1167_v56 }
 0x45b   : > { %v11606_v0 = vpop.eup %11605 }
 0x45c   : > { %v1170_v9 = vpop.xlane.xlu1 %1169  ;;  %v1194_v10 = vmul.f32 %v11606_v0, %v12303_v38 }
 0x45d   : > { %11609 = vrcp.f32 %v1170_v9 }
 0x45e   : > { %v1202_v2 = vpack.c.bf16 %v1194_v10, %v1194_v10 }
 0x45f   : > { %v11608_v60 = vpop.eup %11607 }
 0x460   : > { %10542 = vmatmul.mubr.msk.bf16.vlgmr.msra.gmra.mrb[24].mxu0 %vm1113_vm4, %v1202_v2  ;;  %v1173_v15 = vpop.xlane.xlu0 %1172  ;;  %v1195_v19 = vmul.f32 %v11608_v60, %v12307_v13  ;;  %v1491_v60 = vsel %vm1213_vm3, %v12415_v17, 0 }
 0x461   : > { %10552 = vmatpush3.bf16.msra.mxu0 %v1307_v7  ;;  %11611 = vrcp.f32 %v1173_v15  ;;  %10553 = vmatprep.mubr.msk.bf16.mxu0 %vm11962_vm1, %v14843_v50 }
 0x462   : > { %v1203_v21 = vpack.c.bf16 %v1195_v19, %v1195_v19  ;;  %10563 = vmatprep.subr.bf16.mxu0 %v14843_v50 }
 0x464   : > { %v1176_v38 = vpop.xlane.xlu1 %1175  ;;  %10548 = vmatmul.mubr.msk.bf16.vlgmr.msra.gmra.mrb[32].mxu1 %vm1113_vm4, %v1203_v21 }
 0x465   : > { %11613 = vrcp.f32 %v1176_v38  ;;  %10558 = vmatpush3.bf16.msra.mxu1 %v1353_v28  ;;  %v1179_v33 = vpop.xlane.xlu0 %1178  ;;  %10559 = vmatprep.mubr.msk.bf16.mxu1 %vm11962_vm1, %v14843_v50 }
 0x466   : > { %11615 = vrcp.f32 %v1179_v33  ;;  %10569 = vmatprep.subr.bf16.mxu1 %v14843_v50 }
 0x467   : > { %v11610_v13 = vpop.eup %11609 }
 0x468   : > { %v1196_v43 = vmul.f32 %v11610_v13, %v12311_v11  ;;  %v1582_v38 = vpop.permute.xlu1 %1581 }
 0x46a   : > { %v1204_v46 = vpack.c.bf16 %v1196_v43, %v1196_v43 }
 0x46b   : > { %v11612_v49 = vpop.eup %11611 }
 0x46c   : > { %10554 = vmatmul.mubr.msk.bf16.vlgmr.msra.gmra.mrb[28].mxu0 %vm1113_vm4, %v1204_v46  ;;  %v1197_v29 = vmul.f32 %v11612_v49, %v12315_v20  ;;  %v1185_v56 = vpop.xlane.xlu0 %1184  ;;  %v1445_v20 = vsel %vm1213_vm3, %v12404_v53, 0 }
 0x46d   : > { %10564 = vmatpush3.bf16.msra.mxu0 %v1399_v6  ;;  %10565 = vmatprep.mubr.msk.bf16.mxu0 %vm11962_vm1, %v14843_v50  ;;  %11617 = vrcp.f32 %v1185_v56 }
 0x46e   : > { %v1205_v12 = vpack.c.bf16 %v1197_v29, %v1197_v29  ;;  %10575 = vmatprep.subr.bf16.mxu0 %v14843_v50 }
 0x46f   : > { %v11614_v11 = vpop.eup %11613 }
 0x470   : > { %v11616_v0 = vpop.eup %11615  ;;  %10560 = vmatmul.mubr.msk.bf16.vlgmr.msra.gmra.mrb[36].mxu1 %vm1113_vm4, %v1205_v12  ;;  %v1198_v9 = vmul.f32 %v11614_v11, %v12319_v23  ;;  %v1632_v15 = vpop.permute.xlu0 %1631  ;;  %v1587_v11 = vsel %vm707_vm2, %v1582_v38, 0 }
 0x471   : > { %10570 = vmatpush3.bf16.msra.mxu1 %v1445_v20  ;;  %10571 = vmatprep.mubr.msk.bf16.mxu1 %vm11962_vm1, %v14843_v50  ;;  %v1199_v2 = vmul.f32 %v11616_v0, %v12321_v32  ;;  %v1537_v32 = vsel %vm1213_vm3, %v12427_v22, 0  ;;  %v1637_v21 = vsel %vm707_vm2, %v1632_v15, 0 }
 0x472   : > { %v1206_v10 = vpack.c.bf16 %v1198_v9, %v1198_v9  ;;  %10581 = vmatprep.subr.bf16.mxu1 %v14843_v50 }
 0x473   : > { %v1207_v23 = vpack.c.bf16 %v1199_v2, %v1199_v2 }
 0x474   : > { %10566 = vmatmul.mubr.msk.bf16.vlgmr.msra.gmra.mrb[32].mxu0 %vm1113_vm4, %v1206_v10  ;;  %v1682_v28 = vpop.permute.xlu0 %1681 }
 0x475   : > { %10576 = vmatpush3.bf16.msra.mxu0 %v1491_v60  ;;  %10577 = vmatprep.mubr.msk.bf16.mxu0 %vm11962_vm1, %v14843_v50  ;;  %v1687_v2 = vsel %vm707_vm2, %v1682_v28, 0 }
 0x476   : > { %10587 = vmatprep.subr.bf16.mxu0 %v14843_v50 }
 0x477   : > { %v11618_v7 = vpop.eup %11617 }
 0x478   : > { %10572 = vmatmul.mubr.msk.bf16.vlgmr.msra.gmra.mrb[40].mxu1 %vm1113_vm4, %v1207_v23  ;;  %v1201_v30 = vmul.f32 %v11618_v7, %v12327_v36  ;;  %v1680_v13 = vpop.permute.xlu0 %1679 }
 0x479   : > { %10582 = vmatpush3.bf16.msra.mxu1 %v1537_v32  ;;  %10583 = vmatprep.mubr.msk.bf16.mxu1 %vm11962_vm1, %v14843_v50 }
 0x47a   : > { %10593 = vmatprep.subr.bf16.mxu1 %v14843_v50  ;;  %v1209_v19 = vpack.c.bf16 %v1201_v30, %v1201_v30 }
 0x47c   : > { %v1782_v46 = vpop.permute.xlu0 %1781 }
 0x47d   : > { %v1787_v30 = vsel %vm707_vm2, %v1782_v46, 0 }
 0x480   : > { %10584 = vmatmul.mubr.msk.bf16.vlgmr.msra.gmra.mrb[44].mxu1 %vm1113_vm4, %v1209_v19  ;;  %v1780_v0 = vpop.permute.xlu0 %1779 }
 0x481   : > { %10595 = vmatprep.mubr.msk.bf16.mxu1 %vm11962_vm1, %v14843_v50 }
 0x482   : > { %10594 = vmatpush3.bf16.xpose.msra.mxu1 %v1637_v21 }
 0x483   : > { %10605 = vmatprep.subr.bf16.mxu1 %v14843_v50 }
 0x484   : > { %v1882_v10 = vpop.permute.xlu0 %1881 }
 0x485   : > { %v1887_v38 = vsel %vm707_vm2, %v1882_v10, 0 }
 0x488   : > { %v1880_v23 = vpop.permute.xlu0 %1879 }
 0x48c   : > { %v2142_v15 = vpop.permute.xlu0 %2141 }
 0x48d   : > { %v2147_v21 = vsel %vm1213_vm3, %v2142_v15, 0 }
 0x499   : > { %v1182_v33 = vpop.xlane.xlu1 %1181 }
 0x49a   : > { %11619 = vrcp.f32 %v1182_v33 }
 0x49d   : > { %v1580_v36 = vpop.permute.xlu1 %1579 }
 0x4a1   : > { %v1630_v43 = vpop.permute.xlu1 %1629 }
 0x4a2   : > { %10596 = vmatmul.mubr.msk.bf16.vlgmr.msra.gmra.mrb[48].mxu1 %vm707_vm2, %v1630_v43 }
 0x4a3   : > { %10607 = vmatprep.mubr.msk.bf16.mxu1 %vm11962_vm1, %v14843_v50 }
 0x4a4   : > { %v11620_v49 = vpop.eup %11619 }
 0x4a5   : > { %v1732_v6 = vpop.permute.xlu1 %1731  ;;  %v1200_v29 = vmul.f32 %v11620_v49, %v12343_v54 }
 0x4a6   : > { %v1737_v56 = vsel %vm707_vm2, %v1732_v6, 0 }
 0x4a7   : > { %10606 = vmatpush3.bf16.xpose.msra.mxu1 %v1737_v56  ;;  %v1208_v12 = vpack.c.bf16 %v1200_v29, %v1200_v29 }
 0x4a8   : > { %10617 = vmatprep.subr.bf16.mxu1 %v14843_v50 }
 0x4a9   : > { %10578 = vmatmul.mubr.msk.bf16.vlgmr.msra.gmra.mrb[36].mxu0 %vm1113_vm4, %v1208_v12  ;;  %v1730_v20 = vpop.permute.xlu1 %1729 }
 0x4aa   : > { %10588 = vmatpush3.bf16.xpose.msra.mxu0 %v1587_v11  ;;  %10589 = vmatprep.mubr.msk.bf16.mxu0 %vm11962_vm1, %v14843_v50 }
 0x4ab   : > { %10599 = vmatprep.subr.bf16.mxu0 %v14843_v50 }
 0x4ad   : > { %v1832_v9 = vpop.permute.xlu1 %1831 }
 0x4ae   : > { %v1837_v54 = vsel %vm707_vm2, %v1832_v9, 0  ;;  %10608 = vmatmul.mubr.msk.bf16.vlgmr.msra.gmra.mrb[52].mxu1 %vm707_vm2, %v1730_v20 }
 0x4af   : > { %10618 = vmatpush3.bf16.xpose.msra.mxu1 %v1837_v54  ;;  %10619 = vmatprep.mubr.msk.bf16.mxu1 %vm11962_vm1, %v14843_v50 }
 0x4b0   : > { %10629 = vmatprep.subr.bf16.mxu1 %v14843_v50 }
 0x4b1   : > { %10590 = vmatmul.mubr.msk.bf16.vlgmr.msra.gmra.mrb[40].mxu0 %vm707_vm2, %v1580_v36  ;;  %v1830_v60 = vpop.permute.xlu1 %1829 }
 0x4b2   : > { %10600 = vmatpush3.bf16.xpose.msra.mxu0 %v1687_v2  ;;  %10601 = vmatprep.mubr.msk.bf16.mxu0 %vm11962_vm1, %v14843_v50 }
 0x4b3   : > { %10611 = vmatprep.subr.bf16.mxu0 %v14843_v50 }
 0x4b5   : > { %v1932_v7 = vpop.permute.xlu1 %1931 }
 0x4b6   : > { %v1937_v32 = vsel %vm707_vm2, %v1932_v7, 0  ;;  %10620 = vmatmul.mubr.msk.bf16.vlgmr.msra.gmra.mrb[56].mxu1 %vm707_vm2, %v1830_v60 }
 0x4b7   : > { %10630 = vmatpush3.bf16.xpose.msra.mxu1 %v1937_v32  ;;  %10631 = vmatprep.mubr.msk.bf16.mxu1 %vm11962_vm1, %v14843_v50 }
 0x4b8   : > { %10641 = vmatprep.subr.bf16.mxu1 %v14843_v50 }
 0x4b9   : > { %10602 = vmatmul.mubr.msk.bf16.vlgmr.msra.gmra.mrb[44].mxu0 %vm707_vm2, %v1680_v13  ;;  %v1930_v19 = vpop.permute.xlu1 %1929 }
 0x4ba   : > { %10612 = vmatpush3.bf16.xpose.msra.mxu0 %v1787_v30  ;;  %10613 = vmatprep.mubr.msk.bf16.mxu0 %vm11962_vm1, %v14843_v50 }
 0x4bb   : > { %10623 = vmatprep.subr.bf16.mxu0 %v14843_v50 }
 0x4bd   : > { %v2093_v28 = vpop.permute.xlu1 %2092 }
 0x4be   : > { %10632 = vmatmul.mubr.msk.bf16.vlgmr.msra.gmra.mrb[60].mxu1 %vm707_vm2, %v1930_v19  ;;  %v2098_v33 = vsel %vm1213_vm3, %v2093_v28, 0 }
 0x4bf   : > { %10642 = vmatpush3.bf16.msra.mxu1 %v2147_v21  ;;  %10643 = vmatprep.mubr.msk.bf16.mxu1 %vm11962_vm1, %v14843_v50 }
 0x4c0   : > { %10653 = vmatprep.subr.bf16.mxu1 %v14843_v50 }
 0x4c1   : > { %10614 = vmatmul.mubr.msk.bf16.vlgmr.msra.gmra.mrb[48].mxu0 %vm707_vm2, %v1780_v0 }
 0x4c2   : > { %10624 = vmatpush3.bf16.xpose.msra.mxu0 %v1887_v38  ;;  %10625 = vmatprep.mubr.msk.bf16.mxu0 %vm11962_vm1, %v14843_v50 }
 0x4c3   : > { %10635 = vmatprep.subr.bf16.mxu0 %v14843_v50 }
 0x4c9   : > { %10626 = vmatmul.mubr.msk.bf16.vlgmr.msra.gmra.mrb[52].mxu0 %vm707_vm2, %v1880_v23 }
 0x4ca   : > { %10636 = vmatpush3.bf16.msra.mxu0 %v2098_v33  ;;  %10637 = vmatprep.mubr.msk.bf16.mxu0 %vm11962_vm1, %v14843_v50 }
 0x4cb   : > { %10647 = vmatprep.subr.bf16.mxu0 %v14843_v50 }
 0x533   : > { %v12493_v13 = vpop.f32.mrb[24].mxu0 }
 0x534   : > { %v10543_v36 = vpop.f32.mrb[25].mxu0 }
 0x535   : > { %v1254_v43 = vpop.f32.mrb[26].mxu0 }
 0x536   : > { %v10544_v46 = vpop.f32.mrb[27].mxu0 }
 0x537   : > { %v12495_v49 = vpop.f32.mrb[32].mxu1 }
 0x538   : > { %v10549_v6 = vpop.f32.mrb[33].mxu1 }
 0x539   : > { %v1300_v29 = vpop.f32.mrb[34].mxu1 }
 0x53a   : > { %v10550_v56 = vpop.f32.mrb[35].mxu1 }
 0x53f   : > { %v12497_v12 = vpop.f32.mrb[28].mxu0 }
 0x540   : > { %v10555_v11 = vpop.f32.mrb[29].mxu0 }
 0x541   : > { %v1346_v0 = vpop.f32.mrb[30].mxu0 }
 0x542   : > { %v10556_v20 = vpop.f32.mrb[31].mxu0 }
 0x543   : > { %v12499_v9 = vpop.f32.mrb[36].mxu1 }
 0x544   : > { %v10561_v54 = vpop.f32.mrb[37].mxu1 }
 0x545   : > { %v1392_v10 = vpop.f32.mrb[38].mxu1 }
 0x546   : > { %v10562_v2 = vpop.f32.mrb[39].mxu1 }
 0x547   : > { %v12501_v60 = vpop.f32.mrb[32].mxu0 }
 0x548   : > { %v10567_v23 = vpop.f32.mrb[33].mxu0 }
 0x549   : > { %v1438_v7 = vpop.f32.mrb[34].mxu0 }
 0x54a   : > { %v10568_v32 = vpop.f32.mrb[35].mxu0 }
 0x54b   : > { %v12503_v30 = vpop.f32.mrb[40].mxu1 }
 0x54c   : > { %v10573_v15 = vpop.f32.mrb[41].mxu1 }
 0x54d   : > { %v1484_v19 = vpop.f32.mrb[42].mxu1 }
 0x54e   : > { %v10574_v21 = vpop.f32.mrb[43].mxu1 }
 0x553   : > { %v12505_v38 = vpop.f32.mrb[44].mxu1 }
 0x554   : > { %v10585_v28 = vpop.f32.mrb[45].mxu1 }
 0x555   : > { %v1576_v33 = vpop.f32.mrb[46].mxu1 }
 0x556   : > { %v10586_v36 = vpop.f32.mrb[47].mxu1 }
 0x575   : > { %v1673_v43 = vpop.f32.mrb[48].mxu1 }
 0x576   : > { %v1980_v46 = vmul.f32 0.25, %v1673_v43  ;;  %v10597_v6 = vpop.f32.mrb[49].mxu1 }
 0x577   : > { %v1676_v29 = vpop.f32.mrb[50].mxu1 }
 0x578   : > { %v10598_v56 = vpop.f32.mrb[51].mxu1  ;;  %v12508_v11 = vadd.f32 %v12262_v16, %v1980_v46 }
 0x57a   : > { %v1998_v0 = vsel %vm1113_vm4, %v12508_v11, -inf }
 0x57b   : > { %1999 = vmax.xlane.f32.xlu1 %v1998_v0 }
 0x57c   : > { %v12512_v20 = vpop.f32.mrb[36].mxu0 }
 0x57d   : > { %14888 = vst [vmem:[#allocation13_spill] sm:$0xff] %v12512_v20  ;;  %v10579_v54 = vpop.f32.mrb[37].mxu0 }
 0x57e   : > { %v1530_v10 = vpop.f32.mrb[38].mxu0 }
 0x57f   : > { %v10580_v2 = vpop.f32.mrb[39].mxu0 }
 0x581   : > { %v1773_v23 = vpop.f32.mrb[52].mxu1 }
 0x582   : > { %v10609_v7 = vpop.f32.mrb[53].mxu1  ;;  %v1982_v54 = vmul.f32 0.25, %v1773_v23 }
 0x583   : > { %v1776_v32 = vpop.f32.mrb[54].mxu1 }
 0x584   : > { %v1623_v15 = vpop.f32.mrb[40].mxu0  ;;  %v10610_v19 = vpop.f32.mrb[55].mxu1 }
 0x585   : > { %v1979_v21 = vmul.f32 0.25, %v1623_v15  ;;  %v10591_v28 = vpop.f32.mrb[41].mxu0 }
 0x586   : > { %v1626_v33 = vpop.f32.mrb[42].mxu0 }
 0x587   : > { %v10592_v36 = vpop.f32.mrb[43].mxu0  ;;  %v1987_v16 = vadd.f32 %v12256_v5, %v1979_v21  ;;  %v1990_v5 = vadd.f32 %v12275_v52, %v1982_v54 }
 0x589   : > { %v1873_v43 = vpop.f32.mrb[56].mxu1  ;;  %v1995_v46 = vsel %vm1113_vm4, %v1987_v16, -inf }
 0x58a   : > { %1996 = vmax.xlane.f32.xlu0 %v1995_v46  ;;  %v10621_v6 = vpop.f32.mrb[57].mxu1  ;;  %v1984_v19 = vmul.f32 0.25, %v1873_v43 }
 0x58b   : > { %v1876_v29 = vpop.f32.mrb[58].mxu1 }
 0x58c   : > { %v1723_v56 = vpop.f32.mrb[44].mxu0  ;;  %v10622_v0 = vpop.f32.mrb[59].mxu1 }
 0x58d   : > { %v1981_v10 = vmul.f32 0.25, %v1723_v56  ;;  %v10603_v2 = vpop.f32.mrb[45].mxu0  ;;  %v2004_v56 = vsel %vm1113_vm4, %v1990_v5, -inf }
 0x58e   : > { %v1726_v7 = vpop.f32.mrb[46].mxu0  ;;  %v1992_v2 = vadd.f32 %v12281_v62, %v1984_v19 }
 0x58f   : > { %v10604_v32 = vpop.f32.mrb[47].mxu0  ;;  %v1989_v15 = vadd.f32 %v12272_v37, %v1981_v10 }
 0x590   : > { %v2010_v7 = vsel %vm1113_vm4, %v1992_v2, -inf }
 0x591   : > { %v1973_v28 = vpop.f32.mrb[60].mxu1  ;;  %v2001_v33 = vsel %vm1113_vm4, %v1989_v15, -inf }
 0x592   : > { %v10633_v21 = vpop.f32.mrb[61].mxu1  ;;  %2002 = vmax.xlane.f32.xlu0 %v2001_v33  ;;  %v1986_v29 = vmul.f32 0.25, %v1973_v28 }
 0x593   : > { %v1976_v36 = vpop.f32.mrb[62].mxu1 }
 0x594   : > { %v1823_v46 = vpop.f32.mrb[48].mxu0  ;;  %v10634_v6 = vpop.f32.mrb[63].mxu1  ;;  %v12525_v54 = vadd.f32 %v12292_v40, %v1986_v29 }
 0x595   : > { %v1983_v0 = vmul.f32 0.25, %v1823_v46  ;;  %v10615_v23 = vpop.f32.mrb[49].mxu0  ;;  %v12535_v40 = vpop.permute.xlu1 %2190 }
 0x596   : > { %2005 = vmax.xlane.f32.xlu0 %v2004_v56  ;;  %v1826_v37 = vpop.f32.mrb[50].mxu0  ;;  %v2016_v62 = vsel %vm1113_vm4, %v12525_v54, -inf }
 0x597   : > { %v10616_v43 = vpop.f32.mrb[51].mxu0  ;;  %v1991_v10 = vadd.f32 %v12284_v1, %v1983_v0 }
 0x599   : > { %v2007_v52 = vsel %vm1113_vm4, %v1991_v10, -inf  ;;  %v12537_v46 = vpop.permute.xlu1 %2239 }
 0x59a   : > { %2011 = vmax.xlane.f32.xlu0 %v2010_v7  ;;  %2008 = vmax.xlane.f32.xlu1 %v2007_v52 }
 0x59c   : > { %v1923_v32 = vpop.f32.mrb[52].mxu0 }
 0x59d   : > { %v1985_v28 = vmul.f32 0.25, %v1923_v32  ;;  %v10627_v33 = vpop.f32.mrb[53].mxu0 }
 0x59e   : > { %2017 = vmax.xlane.f32.xlu0 %v2016_v62  ;;  %v1926_v19 = vpop.f32.mrb[54].mxu0 }
 0x59f   : > { %v10628_v21 = vpop.f32.mrb[55].mxu0  ;;  %v1993_v1 = vadd.f32 %v12295_v41, %v1985_v28 }
 0x5a1   : > { %v2013_v36 = vsel %vm1113_vm4, %v1993_v1, -inf }
 0x5a2   : > { %2014 = vmax.xlane.f32.xlu1 %v2013_v36 }
 0x5b3   : > { %2337 = vrot.lane.b32.xlu1 %v12404_v53, %s11965_s11 }
 0x5b4   : > { %2288 = vrot.lane.b32.xlu0 %v12399_v3, %s11965_s11 }
 0x608   : > { %v2000_v6 = vpop.xlane.xlu1 %1999 }
 0x609   : > { %v2020_v29 = vsub.f32 %v12508_v11, %v2000_v6 }
 0x60b   : > { %v2029_v0 = vmul.f32 1.442695, %v2020_v29 }
 0x60d   : > { %11621 = vpow2.f32 %v2029_v0 }
 0x617   : > { %v12540_v23 = vpop.eup %11621  ;;  %v1997_v41 = vpop.xlane.xlu0 %1996 }
 0x618   : > { %v2019_v56 = vsub.f32 %v1987_v16, %v1997_v41  ;;  %v2046_v37 = vsel %vm1113_vm4, %v12540_v23, 0.0 }
 0x619   : > { %2047 = vadd.xlane.f32.xlu0 %v2046_v37 }
 0x61a   : > { %v2027_v43 = vmul.f32 1.442695, %v2019_v56 }
 0x61c   : > { %11623 = vpow2.f32 %v2027_v43 }
 0x61f   : > { %v2003_v7 = vpop.xlane.xlu0 %2002 }
 0x620   : > { %v2021_v52 = vsub.f32 %v1989_v15, %v2003_v7 }
 0x622   : > { %v2031_v32 = vmul.f32 1.442695, %v2021_v52 }
 0x623   : > { %v2006_v28 = vpop.xlane.xlu0 %2005 }
 0x624   : > { %11625 = vpow2.f32 %v2031_v32  ;;  %v2022_v33 = vsub.f32 %v1990_v5, %v2006_v28 }
 0x626   : > { %v12544_v62 = vpop.eup %11623  ;;  %v2033_v11 = vmul.f32 1.442695, %v2022_v33 }
 0x627   : > { %v2009_v19 = vpop.xlane.xlu1 %2008  ;;  %v2012_v21 = vpop.xlane.xlu0 %2011  ;;  %v2043_v16 = vsel %vm1113_vm4, %v12544_v62, 0.0 }
 0x628   : > { %11627 = vpow2.f32 %v2033_v11  ;;  %v2023_v36 = vsub.f32 %v1991_v10, %v2009_v19  ;;  %v2024_v6 = vsub.f32 %v1992_v2, %v2012_v21  ;;  %2044 = vadd.xlane.f32.xlu1 %v2043_v16 }
 0x62a   : > { %v2035_v29 = vmul.f32 1.442695, %v2023_v36  ;;  %v2037_v0 = vmul.f32 1.442695, %v2024_v6 }
 0x62b   : > { %v2018_v52 = vpop.xlane.xlu0 %2017 }
 0x62c   : > { %11629 = vpow2.f32 %v2035_v29  ;;  %v2026_v28 = vsub.f32 %v12525_v54, %v2018_v52 }
 0x62d   : > { %11631 = vpow2.f32 %v2037_v0 }
 0x62e   : > { %v12548_v15 = vpop.eup %11625  ;;  %v2041_v11 = vmul.f32 1.442695, %v2026_v28 }
 0x62f   : > { %v2049_v5 = vsel %vm1113_vm4, %v12548_v15, 0.0  ;;  %v2015_v7 = vpop.xlane.xlu1 %2014  ;;  %v2289_v54 = vpop.permute.xlu0 %2288 }
 0x630   : > { %2050 = vadd.xlane.f32.xlu1 %v2049_v5  ;;  %v2025_v32 = vsub.f32 %v1993_v1, %v2015_v7 }
 0x632   : > { %v12552_v41 = vpop.eup %11627  ;;  %v2039_v33 = vmul.f32 1.442695, %v2025_v32 }
 0x633   : > { %v2052_v56 = vsel %vm1113_vm4, %v12552_v41, 0.0  ;;  %v2338_v29 = vpop.permute.xlu1 %2337 }
 0x634   : > { %2053 = vadd.xlane.f32.xlu0 %v2052_v56  ;;  %11633 = vpow2.f32 %v2039_v33 }
 0x635   : > { %11635 = vpow2.f32 %v2041_v11 }
 0x636   : > { %v12556_v37 = vpop.eup %11629 }
 0x637   : > { %v12558_v2 = vpop.eup %11631  ;;  %v2055_v10 = vsel %vm1113_vm4, %v12556_v37, 0.0 }
 0x638   : > { %2056 = vadd.xlane.f32.xlu1 %v2055_v10  ;;  %v2058_v43 = vsel %vm1113_vm4, %v12558_v2, 0.0  ;;  %v2245_v10 = vsel %vm1213_vm3, %v12537_v46, 0  ;;  %v2196_v46 = vsel %vm1213_vm3, %v12535_v40, 0 }
 0x639   : > { %2059 = vadd.xlane.f32.xlu0 %v2058_v43 }
 0x63e   : > { %v12569_v19 = vpop.eup %11633 }
 0x63f   : > { %v12571_v21 = vpop.eup %11635  ;;  %v2061_v16 = vsel %vm1113_vm4, %v12569_v19, 0.0 }
 0x640   : > { %v2064_v36 = vsel %vm1113_vm4, %v12571_v21, 0.0 }
 0x649   : > { %2435 = vrot.lane.b32.xlu1 %v12427_v22, %s11965_s11 }
 0x64f   : > { %2386 = vrot.lane.b32.xlu0 %v12415_v17, %s11965_s11 }
 0x66d   : > { %2062 = vadd.xlane.f32.xlu1 %v2061_v16 }
 0x66e   : > { %2065 = vadd.xlane.f32.xlu0 %v2064_v36 }
 0x67e   : > { %2535 = vrot.lane.b32.xlu1 %v12138_v61, %s11966_s12 }
 0x682   : > { %2533 = vrot.lane.b32.xlu1 %v12138_v61, %s11967_s14 }
 0x684   : > { %2485 = vrot.lane.b32.xlu0 %v12129_v57, %s11966_s12 }
 0x686   : > { %2635 = vrot.lane.b32.xlu1 %v12155_v8, %s11966_s12 }
 0x688   : > { %2483 = vrot.lane.b32.xlu0 %v12129_v57, %s11967_s14 }
 0x68a   : > { %2633 = vrot.lane.b32.xlu1 %v12155_v8, %s11967_s14 }
 0x68c   : > { %2585 = vrot.lane.b32.xlu0 %v12148_v4, %s11966_s12 }
 0x68e   : > { %2735 = vrot.lane.b32.xlu1 %v12167_v18, %s11966_s12 }
 0x690   : > { %2583 = vrot.lane.b32.xlu0 %v12148_v4, %s11967_s14 }
 0x692   : > { %2733 = vrot.lane.b32.xlu1 %v12167_v18, %s11967_s14 }
 0x694   : > { %2685 = vrot.lane.b32.xlu0 %v12162_v14, %s11966_s12 }
 0x696   : > { %2835 = vrot.lane.b32.xlu1 %v12181_v31, %s11966_s12 }
 0x698   : > { %2683 = vrot.lane.b32.xlu0 %v12162_v14, %s11967_s14 }
 0x69a   : > { %2833 = vrot.lane.b32.xlu1 %v12181_v31, %s11967_s14 }
 0x69c   : > { %2785 = vrot.lane.b32.xlu0 %v12176_v25, %s11966_s12 }
 0x69e   : > { %2995 = vrot.lane.b32.xlu1 %v12231_v55, %s11967_s14 }
 0x6a0   : > { %2783 = vrot.lane.b32.xlu0 %v12176_v25, %s11967_s14 }
 0x6a2   : > { %3091 = vrot.lane.b32.xlu1 %v12373_v58, %s11967_s14 }
 0x6a4   : > { %3043 = vrot.lane.b32.xlu0 %v12233_v59, %s11967_s14 }
 0x6a6   : > { %3139 = vrot.lane.b32.xlu1 %v12379_v63, %s11967_s14  ;;  %v2048_v1 = vpop.xlane.xlu0 %2047 }
 0x6a7   : > { %11637 = vrcp.f32 %v2048_v1  ;;  %v2294_v1 = vsel %vm1213_vm3, %v2289_v54, 0 }
 0x6b1   : > { %v11638_v6 = vpop.eup %11637 }
 0x6b2   : > { %v2076_v0 = vmul.f32 %v11638_v6, %v12540_v23 }
 0x6b4   : > { %v2084_v5 = vpack.c.bf16 %v2076_v0, %v2076_v0 }
 0x6b5   : > { %v2045_v56 = vpop.xlane.xlu1 %2044 }
 0x6b6   : > { %11639 = vrcp.f32 %v2045_v56  ;;  %10644 = vmatmul.mubr.msk.bf16.vlgmr.msra.gmra.mrb[64].mxu1 %vm1113_vm4, %v2084_v5  ;;  %v2343_v56 = vsel %vm1213_vm3, %v2338_v29, 0 }
 0x6b7   : > { %10654 = vmatpush3.bf16.msra.mxu1 %v2245_v10  ;;  %10655 = vmatprep.mubr.msk.bf16.mxu1 %vm11962_vm1, %v14843_v50 }
 0x6b8   : > { %10665 = vmatprep.subr.bf16.mxu1 %v14843_v50 }
 0x6bd   : > { %v2051_v43 = vpop.xlane.xlu1 %2050 }
 0x6be   : > { %11641 = vrcp.f32 %v2051_v43 }
 0x6c0   : > { %v11640_v7 = vpop.eup %11639 }
 0x6c1   : > { %v2054_v52 = vpop.xlane.xlu0 %2053  ;;  %v2075_v23 = vmul.f32 %v11640_v7, %v12544_v62 }
 0x6c2   : > { %11643 = vrcp.f32 %v2054_v52 }
 0x6c3   : > { %v2083_v32 = vpack.c.bf16 %v2075_v23, %v2075_v23 }
 0x6c5   : > { %10638 = vmatmul.mubr.msk.bf16.vlgmr.msra.gmra.mrb[56].mxu0 %vm1113_vm4, %v2083_v32  ;;  %v2057_v28 = vpop.xlane.xlu1 %2056 }
 0x6c6   : > { %10648 = vmatpush3.bf16.msra.mxu0 %v2196_v46  ;;  %11645 = vrcp.f32 %v2057_v28  ;;  %v2060_v33 = vpop.xlane.xlu0 %2059  ;;  %10649 = vmatprep.mubr.msk.bf16.mxu0 %vm11962_vm1, %v14843_v50 }
 0x6c7   : > { %11647 = vrcp.f32 %v2060_v33  ;;  %10659 = vmatprep.subr.bf16.mxu0 %v14843_v50 }
 0x6c8   : > { %v11642_v11 = vpop.eup %11641 }
 0x6c9   : > { %v2077_v62 = vmul.f32 %v11642_v11, %v12548_v15  ;;  %v2436_v7 = vpop.permute.xlu1 %2435 }
 0x6ca   : > { %v2387_v54 = vpop.permute.xlu0 %2386  ;;  %v2441_v29 = vsel %vm1213_vm3, %v2436_v7, 0 }
 0x6cb   : > { %v2085_v16 = vpack.c.bf16 %v2077_v62, %v2077_v62  ;;  %v2392_v43 = vsel %vm1213_vm3, %v2387_v54, 0 }
 0x6cc   : > { %v11644_v36 = vpop.eup %11643 }
 0x6cd   : > { %10650 = vmatmul.mubr.msk.bf16.vlgmr.msra.gmra.mrb[60].mxu0 %vm1113_vm4, %v2085_v16  ;;  %v2078_v40 = vmul.f32 %v11644_v36, %v12552_v41 }
 0x6ce   : > { %10660 = vmatpush3.bf16.msra.mxu0 %v2294_v1  ;;  %10661 = vmatprep.mubr.msk.bf16.mxu0 %vm11962_vm1, %v14843_v50 }
 0x6cf   : > { %v2086_v6 = vpack.c.bf16 %v2078_v40, %v2078_v40  ;;  %10671 = vmatprep.subr.bf16.mxu0 %v14843_v50 }
 0x6d0   : > { %v11646_v0 = vpop.eup %11645 }
 0x6d1   : > { %v11648_v5 = vpop.eup %11647  ;;  %10656 = vmatmul.mubr.msk.bf16.vlgmr.msra.gmra.mrb[68].mxu1 %vm1113_vm4, %v2086_v6  ;;  %v2079_v15 = vmul.f32 %v11646_v0, %v12556_v37 }
 0x6d2   : > { %10666 = vmatpush3.bf16.msra.mxu1 %v2343_v56  ;;  %10667 = vmatprep.mubr.msk.bf16.mxu1 %vm11962_vm1, %v14843_v50  ;;  %v2080_v10 = vmul.f32 %v11648_v5, %v12558_v2 }
 0x6d3   : > { %v2087_v41 = vpack.c.bf16 %v2079_v15, %v2079_v15  ;;  %10677 = vmatprep.subr.bf16.mxu1 %v14843_v50 }
 0x6d4   : > { %v2088_v37 = vpack.c.bf16 %v2080_v10, %v2080_v10 }
 0x6d5   : > { %10662 = vmatmul.mubr.msk.bf16.vlgmr.msra.gmra.mrb[64].mxu0 %vm1113_vm4, %v2087_v41 }
 0x6d6   : > { %10672 = vmatpush3.bf16.msra.mxu0 %v2392_v43  ;;  %10673 = vmatprep.mubr.msk.bf16.mxu0 %vm11962_vm1, %v14843_v50 }
 0x6d7   : > { %10683 = vmatprep.subr.bf16.mxu0 %v14843_v50 }
 0x6d9   : > { %10668 = vmatmul.mubr.msk.bf16.vlgmr.msra.gmra.mrb[72].mxu1 %vm1113_vm4, %v2088_v37 }
 0x6da   : > { %10678 = vmatpush3.bf16.msra.mxu1 %v2441_v29  ;;  %10679 = vmatprep.mubr.msk.bf16.mxu1 %vm11962_vm1, %v14843_v50 }
 0x6db   : > { %10689 = vmatprep.subr.bf16.mxu1 %v14843_v50 }
 0x6fa   : > { %v2063_v2 = vpop.xlane.xlu1 %2062 }
 0x6fb   : > { %11649 = vrcp.f32 %v2063_v2  ;;  %v2066_v52 = vpop.xlane.xlu0 %2065 }
 0x6fc   : > { %11651 = vrcp.f32 %v2066_v52 }
 0x6fe   : > { %v2536_v23 = vpop.permute.xlu1 %2535 }
 0x6ff   : > { %v2486_v32 = vpop.permute.xlu0 %2485  ;;  %v2541_v56 = vsel %vm707_vm2, %v2536_v23, 0 }
 0x700   : > { %v2491_v0 = vsel %vm707_vm2, %v2486_v32, 0 }
 0x702   : > { %v2534_v46 = vpop.permute.xlu1 %2533 }
 0x703   : > { %v2484_v28 = vpop.permute.xlu0 %2483 }
 0x705   : > { %v11650_v33 = vpop.eup %11649 }
 0x706   : > { %v11652_v11 = vpop.eup %11651  ;;  %v2636_v62 = vpop.permute.xlu1 %2635  ;;  %v2081_v16 = vmul.f32 %v11650_v33, %v12569_v19 }
 0x707   : > { %v2586_v36 = vpop.permute.xlu0 %2585  ;;  %v2082_v1 = vmul.f32 %v11652_v11, %v12571_v21  ;;  %v2641_v41 = vsel %vm707_vm2, %v2636_v62, 0 }
 0x708   : > { %v2089_v40 = vpack.c.bf16 %v2081_v16, %v2081_v16  ;;  %v2591_v54 = vsel %vm707_vm2, %v2586_v36, 0 }
 0x709   : > { %v2090_v6 = vpack.c.bf16 %v2082_v1, %v2082_v1 }
 0x70a   : > { %v2634_v5 = vpop.permute.xlu1 %2633  ;;  %10674 = vmatmul.mubr.msk.bf16.vlgmr.msra.gmra.mrb[68].mxu0 %vm1113_vm4, %v2089_v40 }
 0x70b   : > { %10680 = vmatmul.mubr.msk.bf16.vlgmr.msra.gmra.mrb[76].mxu1 %vm1113_vm4, %v2090_v6  ;;  %10684 = vmatpush3.bf16.xpose.msra.mxu0 %v2491_v0  ;;  %v2584_v15 = vpop.permute.xlu0 %2583 }
 0x70c   : > { %10690 = vmatpush3.bf16.xpose.msra.mxu1 %v2541_v56  ;;  %10685 = vmatprep.mubr.msk.bf16.mxu0 %vm11962_vm1, %v14843_v50 }
 0x70d   : > { %10691 = vmatprep.mubr.msk.bf16.mxu1 %vm11962_vm1, %v14843_v50  ;;  %10695 = vmatprep.subr.bf16.mxu0 %v14843_v50 }
 0x70e   : > { %10701 = vmatprep.subr.bf16.mxu1 %v14843_v50  ;;  %v2736_v19 = vpop.permute.xlu1 %2735 }
 0x70f   : > { %v2686_v21 = vpop.permute.xlu0 %2685  ;;  %v2741_v37 = vsel %vm707_vm2, %v2736_v19, 0 }
 0x710   : > { %v2691_v7 = vsel %vm707_vm2, %v2686_v21, 0 }
 0x712   : > { %10686 = vmatmul.mubr.msk.bf16.vlgmr.msra.gmra.mrb[72].mxu0 %vm707_vm2, %v2484_v28  ;;  %v2734_v10 = vpop.permute.xlu1 %2733 }
 0x713   : > { %10692 = vmatmul.mubr.msk.bf16.vlgmr.msra.gmra.mrb[80].mxu1 %vm707_vm2, %v2534_v46  ;;  %10696 = vmatpush3.bf16.xpose.msra.mxu0 %v2591_v54  ;;  %v2684_v43 = vpop.permute.xlu0 %2683 }
 0x714   : > { %10702 = vmatpush3.bf16.xpose.msra.mxu1 %v2641_v41  ;;  %10697 = vmatprep.mubr.msk.bf16.mxu0 %vm11962_vm1, %v14843_v50 }
 0x715   : > { %10703 = vmatprep.mubr.msk.bf16.mxu1 %vm11962_vm1, %v14843_v50  ;;  %10707 = vmatprep.subr.bf16.mxu0 %v14843_v50 }
 0x716   : > { %10713 = vmatprep.subr.bf16.mxu1 %v14843_v50  ;;  %v2836_v29 = vpop.permute.xlu1 %2835 }
 0x717   : > { %v2786_v2 = vpop.permute.xlu0 %2785  ;;  %v2841_v46 = vsel %vm707_vm2, %v2836_v29, 0 }
 0x718   : > { %v2791_v23 = vsel %vm707_vm2, %v2786_v2, 0 }
 0x71a   : > { %10698 = vmatmul.mubr.msk.bf16.vlgmr.msra.gmra.mrb[76].mxu0 %vm707_vm2, %v2584_v15  ;;  %v2834_v52 = vpop.permute.xlu1 %2833 }
 0x71b   : > { %10704 = vmatmul.mubr.msk.bf16.vlgmr.msra.gmra.mrb[84].mxu1 %vm707_vm2, %v2634_v5  ;;  %10708 = vmatpush3.bf16.xpose.msra.mxu0 %v2691_v7  ;;  %v2784_v32 = vpop.permute.xlu0 %2783 }
 0x71c   : > { %10714 = vmatpush3.bf16.xpose.msra.mxu1 %v2741_v37  ;;  %10709 = vmatprep.mubr.msk.bf16.mxu0 %vm11962_vm1, %v14843_v50 }
 0x71d   : > { %10715 = vmatprep.mubr.msk.bf16.mxu1 %vm11962_vm1, %v14843_v50  ;;  %10719 = vmatprep.subr.bf16.mxu0 %v14843_v50 }
 0x71e   : > { %10725 = vmatprep.subr.bf16.mxu1 %v14843_v50  ;;  %v2996_v28 = vpop.permute.xlu1 %2995 }
 0x71f   : > { %v3044_v33 = vpop.permute.xlu0 %3043  ;;  %v3001_v11 = vsel %vm1213_vm3, %v2996_v28, 0 }
 0x720   : > { %v3049_v62 = vsel %vm1213_vm3, %v3044_v33, 0 }
 0x722   : > { %10710 = vmatmul.mubr.msk.bf16.vlgmr.msra.gmra.mrb[80].mxu0 %vm707_vm2, %v2684_v43  ;;  %v12753_v43 = vld [vmem:[%s12253_s29 + $0x3] ss:$0 sm:$0xff] }
 0x723   : > { %10716 = vmatmul.mubr.msk.bf16.vlgmr.msra.gmra.mrb[88].mxu1 %vm707_vm2, %v2734_v10  ;;  %10720 = vmatpush3.bf16.xpose.msra.mxu0 %v2791_v23 }
 0x724   : > { %10726 = vmatpush3.bf16.xpose.msra.mxu1 %v2841_v46  ;;  %10721 = vmatprep.mubr.msk.bf16.mxu0 %vm11962_vm1, %v14843_v50 }
 0x725   : > { %10727 = vmatprep.mubr.msk.bf16.mxu1 %vm11962_vm1, %v14843_v50  ;;  %10731 = vmatprep.subr.bf16.mxu0 %v14843_v50 }
 0x726   : > { %10737 = vmatprep.subr.bf16.mxu1 %v14843_v50 }
 0x72a   : > { %10722 = vmatmul.mubr.msk.bf16.vlgmr.msra.gmra.mrb[84].mxu0 %vm707_vm2, %v2784_v32 }
 0x72b   : > { %10728 = vmatmul.mubr.msk.bf16.vlgmr.msra.gmra.mrb[92].mxu1 %vm707_vm2, %v2834_v52  ;;  %10732 = vmatpush3.bf16.msra.mxu0 %v3001_v11 }
 0x72c   : > { %10738 = vmatpush3.bf16.msra.mxu1 %v3049_v62  ;;  %10733 = vmatprep.mubr.msk.bf16.mxu0 %vm11962_vm1, %v14843_v50 }
 0x72d   : > { %10739 = vmatprep.mubr.msk.bf16.mxu1 %vm11962_vm1, %v14843_v50  ;;  %10743 = vmatprep.subr.bf16.mxu0 %v14843_v50 }
 0x72e   : > { %10749 = vmatprep.subr.bf16.mxu1 %v14843_v50  ;;  %v12758_v50 = vld [vmem:[%s12253_s29 + $0x4] ss:$0 sm:$0xff] }
 0x789   : > { %v12707_v16 = vpop.f32.mrb[64].mxu1 }
 0x78a   : > { %v10645_v36 = vpop.f32.mrb[65].mxu1 }
 0x78b   : > { %v2186_v1 = vpop.f32.mrb[66].mxu1 }
 0x78c   : > { %v10646_v40 = vpop.f32.mrb[67].mxu1 }
 0x798   : > { %v12709_v6 = vpop.f32.mrb[56].mxu0 }
 0x799   : > { %v10639_v5 = vpop.f32.mrb[57].mxu0 }
 0x79a   : > { %v2137_v56 = vpop.f32.mrb[58].mxu0 }
 0x79b   : > { %v10640_v15 = vpop.f32.mrb[59].mxu0 }
 0x7a0   : > { %v12713_v19 = vpop.f32.mrb[60].mxu0 }
 0x7a1   : > { %v10651_v21 = vpop.f32.mrb[61].mxu0 }
 0x7a2   : > { %v2235_v54 = vpop.f32.mrb[62].mxu0 }
 0x7a3   : > { %v10652_v41 = vpop.f32.mrb[63].mxu0 }
 0x7a4   : > { %v12715_v10 = vpop.f32.mrb[68].mxu1 }
 0x7a5   : > { %v10657_v7 = vpop.f32.mrb[69].mxu1 }
 0x7a6   : > { %v2284_v37 = vpop.f32.mrb[70].mxu1 }
 0x7a7   : > { %v10658_v29 = vpop.f32.mrb[71].mxu1 }
 0x7a8   : > { %v12719_v2 = vpop.f32.mrb[64].mxu0 }
 0x7a9   : > { %v10663_v52 = vpop.f32.mrb[65].mxu0 }
 0x7aa   : > { %v2333_v23 = vpop.f32.mrb[66].mxu0 }
 0x7ab   : > { %v10664_v32 = vpop.f32.mrb[67].mxu0 }
 0x7ac   : > { %v12721_v46 = vpop.f32.mrb[72].mxu1 }
 0x7ad   : > { %v10669_v33 = vpop.f32.mrb[73].mxu1 }
 0x7ae   : > { %v2382_v11 = vpop.f32.mrb[74].mxu1 }
 0x7af   : > { %v10670_v62 = vpop.f32.mrb[75].mxu1 }
 0x7dd   : > { %v12725_v36 = vpop.f32.mrb[68].mxu0 }
 0x7de   : > { %v12727_v1 = vpop.f32.mrb[76].mxu1  ;;  %v10675_v40 = vpop.f32.mrb[69].mxu0 }
 0x7df   : > { %v10681_v56 = vpop.f32.mrb[77].mxu1  ;;  %v2431_v15 = vpop.f32.mrb[70].mxu0  ;;  %v12732_v40 = vld [vmem:[%s12253_s29] ss:$0 sm:$0xff] }
 0x7e0   : > { %v2480_v21 = vpop.f32.mrb[78].mxu1  ;;  %v10676_v54 = vpop.f32.mrb[71].mxu0  ;;  %v12738_v15 = vld [vmem:[%s12253_s29 + $0x1] ss:$0 sm:$0xff] }
 0x7e1   : > { %v10682_v41 = vpop.f32.mrb[79].mxu1 }
 0x7e5   : > { %v2527_v7 = vpop.f32.mrb[72].mxu0 }
 0x7e6   : > { %v2883_v37 = vmul.f32 0.25, %v2527_v7  ;;  %v2577_v29 = vpop.f32.mrb[80].mxu1  ;;  %v10687_v52 = vpop.f32.mrb[73].mxu0 }
 0x7e7   : > { %v2884_v23 = vmul.f32 0.25, %v2577_v29  ;;  %v10693_v32 = vpop.f32.mrb[81].mxu1  ;;  %v2530_v33 = vpop.f32.mrb[74].mxu0 }
 0x7e8   : > { %v2580_v11 = vpop.f32.mrb[82].mxu1  ;;  %v10688_v62 = vpop.f32.mrb[75].mxu0  ;;  %v12735_v24 = vadd.f32 %v12732_v40, %v2883_v37 }
 0x7e9   : > { %v10694_v56 = vpop.f32.mrb[83].mxu1  ;;  %v12741_v21 = vadd.f32 %v12738_v15, %v2884_v23  ;;  %v12748_v23 = vld [vmem:[%s12253_s29 + $0x2] ss:$0 sm:$0xff] }
 0x7ea   : > { %v2899_v54 = vsel %vm1113_vm4, %v12735_v24, -inf }
 0x7eb   : > { %v2902_v41 = vsel %vm1113_vm4, %v12741_v21, -inf  ;;  %2900 = vmax.xlane.f32.xlu0 %v2899_v54 }
 0x7ec   : > { %2903 = vmax.xlane.f32.xlu1 %v2902_v41 }
 0x7ed   : > { %v2627_v7 = vpop.f32.mrb[76].mxu0 }
 0x7ee   : > { %v2885_v29 = vmul.f32 0.25, %v2627_v7  ;;  %v2677_v37 = vpop.f32.mrb[84].mxu1  ;;  %v10699_v52 = vpop.f32.mrb[77].mxu0 }
 0x7ef   : > { %v2886_v32 = vmul.f32 0.25, %v2677_v37  ;;  %v10705_v33 = vpop.f32.mrb[85].mxu1  ;;  %v2630_v11 = vpop.f32.mrb[78].mxu0 }
 0x7f0   : > { %v2680_v62 = vpop.f32.mrb[86].mxu1  ;;  %v10700_v56 = vpop.f32.mrb[79].mxu0  ;;  %v2893_v5 = vadd.f32 %v12748_v23, %v2885_v29 }
 0x7f1   : > { %v10706_v28 = vpop.f32.mrb[87].mxu1  ;;  %v2894_v54 = vadd.f32 %v12753_v43, %v2886_v32  ;;  %v12762_v32 = vld [vmem:[%s12253_s29 + $0x5] ss:$0 sm:$0xff] }
 0x7f2   : > { %v2905_v0 = vsel %vm1113_vm4, %v2893_v5, -inf }
 0x7f3   : > { %2906 = vmax.xlane.f32.xlu0 %v2905_v0  ;;  %v2908_v33 = vsel %vm1113_vm4, %v2894_v54, -inf }
 0x7f5   : > { %v2727_v41 = vpop.f32.mrb[80].mxu0 }
 0x7f6   : > { %v2887_v7 = vmul.f32 0.25, %v2727_v41  ;;  %v2777_v37 = vpop.f32.mrb[88].mxu1  ;;  %v10711_v52 = vpop.f32.mrb[81].mxu0 }
 0x7f7   : > { %v2888_v11 = vmul.f32 0.25, %v2777_v37  ;;  %v10717_v62 = vpop.f32.mrb[89].mxu1  ;;  %2909 = vmax.xlane.f32.xlu0 %v2908_v33  ;;  %v2730_v29 = vpop.f32.mrb[82].mxu0 }
 0x7f8   : > { %v2780_v28 = vpop.f32.mrb[90].mxu1  ;;  %v10712_v56 = vpop.f32.mrb[83].mxu0  ;;  %v2895_v51 = vadd.f32 %v12758_v50, %v2887_v7 }
 0x7f9   : > { %v10718_v27 = vpop.f32.mrb[91].mxu1  ;;  %v2896_v0 = vadd.f32 %v12762_v32, %v2888_v11 }
 0x7fa   : > { %v2911_v41 = vsel %vm1113_vm4, %v2895_v51, -inf }
 0x7fb   : > { %v2914_v37 = vsel %vm1113_vm4, %v2896_v0, -inf  ;;  %2912 = vmax.xlane.f32.xlu1 %v2911_v41 }
 0x7fc   : > { %2915 = vmax.xlane.f32.xlu0 %v2914_v37 }
 0x7fd   : > { %v2827_v52 = vpop.f32.mrb[84].mxu0 }
 0x7fe   : > { %v2889_v33 = vmul.f32 0.25, %v2827_v52  ;;  %v2877_v62 = vpop.f32.mrb[92].mxu1  ;;  %v10723_v29 = vpop.f32.mrb[85].mxu0 }
 0x7ff   : > { %v2890_v28 = vmul.f32 0.25, %v2877_v62  ;;  %v10729_v56 = vpop.f32.mrb[93].mxu1  ;;  %v2830_v7 = vpop.f32.mrb[86].mxu0 }
 0x800   : > { %v2880_v27 = vpop.f32.mrb[94].mxu1  ;;  %v10724_v48 = vpop.f32.mrb[87].mxu0  ;;  %v2897_v11 = vadd.f32 %v12768_v45, %v2889_v33 }
 0x801   : > { %v10730_v47 = vpop.f32.mrb[95].mxu1  ;;  %v2898_v39 = vadd.f32 %v12772_v44, %v2890_v28  ;;  %v12781_v48 = vpop.permute.xlu1 %3091 }
 0x802   : > { %v2917_v41 = vsel %vm1113_vm4, %v2897_v11, -inf }
 0x803   : > { %v2920_v37 = vsel %vm1113_vm4, %v2898_v39, -inf  ;;  %2918 = vmax.xlane.f32.xlu1 %v2917_v41 }
 0x804   : > { %2921 = vmax.xlane.f32.xlu0 %v2920_v37 }
 0x805   : > { %v12783_v52 = vpop.permute.xlu1 %3139 }
 0x814   : > { %3235 = vrot.lane.b32.xlu1 %v12404_v53, %s11967_s14 }
 0x81a   : > { %3187 = vrot.lane.b32.xlu0 %v12399_v3, %s11967_s14 }
 0x878   : > { %v2901_v47 = vpop.xlane.xlu0 %2900 }
 0x879   : > { %v2904_v33 = vpop.xlane.xlu1 %2903  ;;  %v2923_v62 = vsub.f32 %v12735_v24, %v2901_v47 }
 0x87a   : > { %v2924_v29 = vsub.f32 %v12741_v21, %v2904_v33 }
 0x87b   : > { %v2931_v28 = vmul.f32 1.442695, %v2923_v62 }
 0x87c   : > { %v2933_v56 = vmul.f32 1.442695, %v2924_v29 }
 0x87d   : > { %11653 = vpow2.f32 %v2931_v28 }
 0x87e   : > { %11655 = vpow2.f32 %v2933_v56 }
 0x880   : > { %v2907_v7 = vpop.xlane.xlu0 %2906 }
 0x881   : > { %v2925_v27 = vsub.f32 %v2893_v5, %v2907_v7 }
 0x883   : > { %v2935_v41 = vmul.f32 1.442695, %v2925_v27 }
 0x884   : > { %v2910_v37 = vpop.xlane.xlu0 %2909 }
 0x885   : > { %11657 = vpow2.f32 %v2935_v41  ;;  %v2926_v35 = vsub.f32 %v2894_v54, %v2910_v37 }
 0x887   : > { %v12787_v42 = vpop.eup %11653  ;;  %v2937_v34 = vmul.f32 1.442695, %v2926_v35 }
 0x888   : > { %v12789_v26 = vpop.eup %11655  ;;  %v2913_v20 = vpop.xlane.xlu1 %2912  ;;  %v2947_v24 = vsel %vm1113_vm4, %v12787_v42, 0.0 }
 0x889   : > { %11659 = vpow2.f32 %v2937_v34  ;;  %v2927_v21 = vsub.f32 %v2895_v51, %v2913_v20  ;;  %v2916_v47 = vpop.xlane.xlu0 %2915  ;;  %v2950_v33 = vsel %vm1113_vm4, %v12789_v26, 0.0  ;;  %2948 = vadd.xlane.f32.xlu1 %v2947_v24 }
 0x88a   : > { %v2928_v5 = vsub.f32 %v2896_v0, %v2916_v47  ;;  %2951 = vadd.xlane.f32.xlu0 %v2950_v33 }
 0x88b   : > { %v2939_v62 = vmul.f32 1.442695, %v2927_v21 }
 0x88c   : > { %v2941_v54 = vmul.f32 1.442695, %v2928_v5 }
 0x88d   : > { %11661 = vpow2.f32 %v2939_v62 }
 0x88e   : > { %11663 = vpow2.f32 %v2941_v54 }
 0x88f   : > { %v12795_v35 = vpop.eup %11657 }
 0x890   : > { %v2953_v29 = vsel %vm1113_vm4, %v12795_v35, 0.0  ;;  %v2919_v7 = vpop.xlane.xlu1 %2918 }
 0x891   : > { %2954 = vadd.xlane.f32.xlu1 %v2953_v29  ;;  %v2922_v27 = vpop.xlane.xlu0 %2921  ;;  %v2929_v41 = vsub.f32 %v2897_v11, %v2919_v7 }
 0x892   : > { %v2930_v37 = vsub.f32 %v2898_v39, %v2922_v27 }
 0x893   : > { %v12799_v28 = vpop.eup %11659  ;;  %v2943_v24 = vmul.f32 1.442695, %v2929_v41 }
 0x894   : > { %v2956_v34 = vsel %vm1113_vm4, %v12799_v28, 0.0  ;;  %v2945_v21 = vmul.f32 1.442695, %v2930_v37  ;;  %v3236_v39 = vpop.permute.xlu1 %3235 }
 0x895   : > { %2957 = vadd.xlane.f32.xlu0 %v2956_v34  ;;  %11665 = vpow2.f32 %v2943_v24 }
 0x896   : > { %11667 = vpow2.f32 %v2945_v21 }
 0x897   : > { %v12803_v51 = vpop.eup %11661 }
 0x898   : > { %v12805_v20 = vpop.eup %11663  ;;  %v2959_v0 = vsel %vm1113_vm4, %v12803_v51, 0.0 }
 0x899   : > { %2960 = vadd.xlane.f32.xlu1 %v2959_v0  ;;  %v2962_v56 = vsel %vm1113_vm4, %v12805_v20, 0.0  ;;  %v3145_v0 = vsel %vm1213_vm3, %v12783_v52, 0 }
 0x89a   : > { %2963 = vadd.xlane.f32.xlu0 %v2962_v56 }
 0x89f   : > { %v12815_v47 = vpop.eup %11665 }
 0x8a0   : > { %v12817_v33 = vpop.eup %11667  ;;  %v2965_v5 = vsel %vm1113_vm4, %v12815_v47, 0.0 }
 0x8a1   : > { %v2968_v62 = vsel %vm1113_vm4, %v12817_v33, 0.0 }
 0x8aa   : > { %3331 = vrot.lane.b32.xlu1 %v12427_v22, %s11967_s14 }
 0x8b0   : > { %3283 = vrot.lane.b32.xlu0 %v12415_v17, %s11967_s14 }
 0x8ce   : > { %2966 = vadd.xlane.f32.xlu1 %v2965_v5 }
 0x8cf   : > { %2969 = vadd.xlane.f32.xlu0 %v2968_v62 }
 0x8df   : > { %3431 = vrot.lane.b32.xlu1 %v12138_v61, %s11968_s15 }
 0x8e3   : > { %3429 = vrot.lane.b32.xlu1 %v12138_v61, %s11969_s16 }
 0x8e5   : > { %3381 = vrot.lane.b32.xlu0 %v12129_v57, %s11968_s15 }
 0x8e7   : > { %3531 = vrot.lane.b32.xlu1 %v12155_v8, %s11968_s15 }
 0x8e9   : > { %3379 = vrot.lane.b32.xlu0 %v12129_v57, %s11969_s16  ;;  %v3188_v57 = vpop.permute.xlu0 %3187 }
 0x8ea   : > { %v3193_v27 = vsel %vm1213_vm3, %v3188_v57, 0 }
 0x8eb   : > { %3529 = vrot.lane.b32.xlu1 %v12155_v8, %s11969_s16 }
 0x8ed   : > { %3481 = vrot.lane.b32.xlu0 %v12148_v4, %s11968_s15 }
 0x8ef   : > { %3631 = vrot.lane.b32.xlu1 %v12167_v18, %s11968_s15 }
 0x8f1   : > { %3479 = vrot.lane.b32.xlu0 %v12148_v4, %s11969_s16 }
 0x8f3   : > { %3629 = vrot.lane.b32.xlu1 %v12167_v18, %s11969_s16 }
 0x8f5   : > { %3581 = vrot.lane.b32.xlu0 %v12162_v14, %s11968_s15 }
 0x8f7   : > { %3731 = vrot.lane.b32.xlu1 %v12181_v31, %s11968_s15 }
 0x8f9   : > { %3579 = vrot.lane.b32.xlu0 %v12162_v14, %s11969_s16 }
 0x8fb   : > { %3729 = vrot.lane.b32.xlu1 %v12181_v31, %s11969_s16 }
 0x8fd   : > { %3681 = vrot.lane.b32.xlu0 %v12176_v25, %s11968_s15 }
 0x8ff   : > { %3891 = vrot.lane.b32.xlu1 %v12231_v55, %s11969_s16 }
 0x901   : > { %3679 = vrot.lane.b32.xlu0 %v12176_v25, %s11969_s16  ;;  %v3097_v25 = vsel %vm1213_vm3, %v12781_v48, 0 }
 0x916   : > { %v2949_v61 = vpop.xlane.xlu1 %2948 }
 0x917   : > { %11669 = vrcp.f32 %v2949_v61  ;;  %v2952_v4 = vpop.xlane.xlu0 %2951 }
 0x918   : > { %11671 = vrcp.f32 %v2952_v4 }
 0x91e   : > { %v2955_v8 = vpop.xlane.xlu1 %2954 }
 0x91f   : > { %11673 = vrcp.f32 %v2955_v8 }
 0x921   : > { %v11670_v14 = vpop.eup %11669 }
 0x922   : > { %v11672_v18 = vpop.eup %11671  ;;  %v2958_v31 = vpop.xlane.xlu0 %2957  ;;  %v2979_v11 = vmul.f32 %v11670_v14, %v12787_v42  ;;  %v14889_v42 = vmov 0.0  }
 0x923   : > { %11675 = vrcp.f32 %v2958_v31  ;;  %v2980_v54 = vmul.f32 %v11672_v18, %v12789_v26 }
 0x924   : > { %v2987_v55 = vpack.c.bf16 %v2979_v11, %v2979_v11 }
 0x925   : > { %v2988_v29 = vpack.c.bf16 %v2980_v54, %v2980_v54 }
 0x926   : > { %10734 = vmatmul.mubr.msk.bf16.vlgmr.msra.gmra.mrb[88].mxu0 %vm1113_vm4, %v2987_v55  ;;  %v2961_v34 = vpop.xlane.xlu1 %2960 }
 0x927   : > { %10744 = vmatpush3.bf16.msra.mxu0 %v3097_v25  ;;  %11677 = vrcp.f32 %v2961_v34  ;;  %10740 = vmatmul.mubr.msk.bf16.vlgmr.msra.gmra.mrb[96].mxu1 %vm1113_vm4, %v2988_v29  ;;  %v2964_v56 = vpop.xlane.xlu0 %2963 }
 0x928   : > { %10750 = vmatpush3.bf16.msra.mxu1 %v3145_v0  ;;  %11679 = vrcp.f32 %v2964_v56  ;;  %10745 = vmatprep.mubr.msk.bf16.mxu0 %vm11962_vm1, %v14889_v42 }
 0x929   : > { %v11674_v26 = vpop.eup %11673  ;;  %10755 = vmatprep.subr.bf16.mxu0 %v14889_v42  ;;  %10751 = vmatprep.mubr.msk.bf16.mxu1 %vm11962_vm1, %v14889_v42 }
 0x92a   : > { %v2981_v48 = vmul.f32 %v11674_v26, %v12795_v35  ;;  %10761 = vmatprep.subr.bf16.mxu1 %v14889_v42  ;;  %v3241_v35 = vsel %vm1213_vm3, %v3236_v39, 0  ;;  %v3332_v4 = vpop.permute.xlu1 %3331 }
 0x92b   : > { %v3284_v62 = vpop.permute.xlu0 %3283  ;;  %v3337_v39 = vsel %vm1213_vm3, %v3332_v4, 0 }
 0x92c   : > { %v2989_v52 = vpack.c.bf16 %v2981_v48, %v2981_v48  ;;  %v3289_v61 = vsel %vm1213_vm3, %v3284_v62, 0 }
 0x92d   : > { %v11676_v7 = vpop.eup %11675 }
 0x92e   : > { %10746 = vmatmul.mubr.msk.bf16.vlgmr.msra.gmra.mrb[92].mxu0 %vm1113_vm4, %v2989_v52  ;;  %v2982_v41 = vmul.f32 %v11676_v7, %v12799_v28 }
 0x92f   : > { %10756 = vmatpush3.bf16.msra.mxu0 %v3193_v27  ;;  %10757 = vmatprep.mubr.msk.bf16.mxu0 %vm11962_vm1, %v14889_v42 }
 0x930   : > { %v2990_v37 = vpack.c.bf16 %v2982_v41, %v2982_v41  ;;  %10767 = vmatprep.subr.bf16.mxu0 %v14889_v42 }
 0x931   : > { %v11678_v24 = vpop.eup %11677 }
 0x932   : > { %v11680_v21 = vpop.eup %11679  ;;  %10752 = vmatmul.mubr.msk.bf16.vlgmr.msra.gmra.mrb[100].mxu1 %vm1113_vm4, %v2990_v37  ;;  %v2983_v5 = vmul.f32 %v11678_v24, %v12803_v51 }
 0x933   : > { %10762 = vmatpush3.bf16.msra.mxu1 %v3241_v35  ;;  %10763 = vmatprep.mubr.msk.bf16.mxu1 %vm11962_vm1, %v14889_v42  ;;  %v2984_v57 = vmul.f32 %v11680_v21, %v12805_v20 }
 0x934   : > { %v2991_v28 = vpack.c.bf16 %v2983_v5, %v2983_v5  ;;  %10773 = vmatprep.subr.bf16.mxu1 %v14889_v42 }
 0x935   : > { %v2992_v51 = vpack.c.bf16 %v2984_v57, %v2984_v57 }
 0x936   : > { %10758 = vmatmul.mubr.msk.bf16.vlgmr.msra.gmra.mrb[96].mxu0 %vm1113_vm4, %v2991_v28 }
 0x937   : > { %10768 = vmatpush3.bf16.msra.mxu0 %v3289_v61  ;;  %10769 = vmatprep.mubr.msk.bf16.mxu0 %vm11962_vm1, %v14889_v42 }
 0x938   : > { %10779 = vmatprep.subr.bf16.mxu0 %v14889_v42 }
 0x93a   : > { %10764 = vmatmul.mubr.msk.bf16.vlgmr.msra.gmra.mrb[104].mxu1 %vm1113_vm4, %v2992_v51 }
 0x93b   : > { %10774 = vmatpush3.bf16.msra.mxu1 %v3337_v39  ;;  %10775 = vmatprep.mubr.msk.bf16.mxu1 %vm11962_vm1, %v14889_v42 }
 0x93c   : > { %10785 = vmatprep.subr.bf16.mxu1 %v14889_v42 }
 0x95b   : > { %v2967_v20 = vpop.xlane.xlu1 %2966 }
 0x95c   : > { %11681 = vrcp.f32 %v2967_v20  ;;  %v2970_v8 = vpop.xlane.xlu0 %2969 }
 0x95d   : > { %11683 = vrcp.f32 %v2970_v8 }
 0x95f   : > { %v3432_v14 = vpop.permute.xlu1 %3431 }
 0x960   : > { %v3382_v18 = vpop.permute.xlu0 %3381  ;;  %v3437_v7 = vsel %vm707_vm2, %v3432_v14, 0 }
 0x961   : > { %v3387_v48 = vsel %vm707_vm2, %v3382_v18, 0 }
 0x963   : > { %v3430_v31 = vpop.permute.xlu1 %3429 }
 0x964   : > { %v3380_v11 = vpop.permute.xlu0 %3379 }
 0x966   : > { %v11682_v54 = vpop.eup %11681 }
 0x967   : > { %v11684_v55 = vpop.eup %11683  ;;  %v3532_v29 = vpop.permute.xlu1 %3531  ;;  %v2985_v25 = vmul.f32 %v11682_v54, %v12815_v47 }
 0x968   : > { %v3482_v34 = vpop.permute.xlu0 %3481  ;;  %v2986_v0 = vmul.f32 %v11684_v55, %v12817_v33  ;;  %v3537_v41 = vsel %vm707_vm2, %v3532_v29, 0 }
 0x969   : > { %v2993_v56 = vpack.c.bf16 %v2985_v25, %v2985_v25  ;;  %v3487_v27 = vsel %vm707_vm2, %v3482_v34, 0 }
 0x96a   : > { %v2994_v26 = vpack.c.bf16 %v2986_v0, %v2986_v0 }
 0x96b   : > { %v3530_v52 = vpop.permute.xlu1 %3529  ;;  %10770 = vmatmul.mubr.msk.bf16.vlgmr.msra.gmra.mrb[100].mxu0 %vm1113_vm4, %v2993_v56 }
 0x96c   : > { %10776 = vmatmul.mubr.msk.bf16.vlgmr.msra.gmra.mrb[108].mxu1 %vm1113_vm4, %v2994_v26  ;;  %10780 = vmatpush3.bf16.xpose.msra.mxu0 %v3387_v48  ;;  %v3480_v47 = vpop.permute.xlu0 %3479 }
 0x96d   : > { %10786 = vmatpush3.bf16.xpose.msra.mxu1 %v3437_v7  ;;  %10781 = vmatprep.mubr.msk.bf16.mxu0 %vm11962_vm1, %v14889_v42 }
 0x96e   : > { %10787 = vmatprep.mubr.msk.bf16.mxu1 %vm11962_vm1, %v14889_v42  ;;  %10791 = vmatprep.subr.bf16.mxu0 %v14889_v42 }
 0x96f   : > { %10797 = vmatprep.subr.bf16.mxu1 %v14889_v42  ;;  %v3632_v33 = vpop.permute.xlu1 %3631 }
 0x970   : > { %v3582_v37 = vpop.permute.xlu0 %3581  ;;  %v3637_v5 = vsel %vm707_vm2, %v3632_v33, 0 }
 0x971   : > { %v3587_v35 = vsel %vm707_vm2, %v3582_v37, 0 }
 0x973   : > { %10782 = vmatmul.mubr.msk.bf16.vlgmr.msra.gmra.mrb[104].mxu0 %vm707_vm2, %v3380_v11  ;;  %v3630_v24 = vpop.permute.xlu1 %3629 }
 0x974   : > { %10788 = vmatmul.mubr.msk.bf16.vlgmr.msra.gmra.mrb[112].mxu1 %vm707_vm2, %v3430_v31  ;;  %10792 = vmatpush3.bf16.xpose.msra.mxu0 %v3487_v27  ;;  %v3580_v21 = vpop.permute.xlu0 %3579 }
 0x975   : > { %10798 = vmatpush3.bf16.xpose.msra.mxu1 %v3537_v41  ;;  %10793 = vmatprep.mubr.msk.bf16.mxu0 %vm11962_vm1, %v14889_v42 }
 0x976   : > { %10799 = vmatprep.mubr.msk.bf16.mxu1 %vm11962_vm1, %v14889_v42  ;;  %10803 = vmatprep.subr.bf16.mxu0 %v14889_v42 }
 0x977   : > { %10809 = vmatprep.subr.bf16.mxu1 %v14889_v42  ;;  %v3732_v62 = vpop.permute.xlu1 %3731 }
 0x978   : > { %v3682_v28 = vpop.permute.xlu0 %3681  ;;  %v3737_v4 = vsel %vm707_vm2, %v3732_v62, 0 }
 0x979   : > { %v3687_v61 = vsel %vm707_vm2, %v3682_v28, 0 }
 0x97b   : > { %10794 = vmatmul.mubr.msk.bf16.vlgmr.msra.gmra.mrb[108].mxu0 %vm707_vm2, %v3480_v47  ;;  %v3730_v57 = vpop.permute.xlu1 %3729 }
 0x97c   : > { %10800 = vmatmul.mubr.msk.bf16.vlgmr.msra.gmra.mrb[116].mxu1 %vm707_vm2, %v3530_v52  ;;  %10804 = vmatpush3.bf16.xpose.msra.mxu0 %v3587_v35  ;;  %v3680_v39 = vpop.permute.xlu0 %3679 }
 0x97d   : > { %10810 = vmatpush3.bf16.xpose.msra.mxu1 %v3637_v5  ;;  %10805 = vmatprep.mubr.msk.bf16.mxu0 %vm11962_vm1, %v14889_v42 }
 0x97e   : > { %10811 = vmatprep.mubr.msk.bf16.mxu1 %vm11962_vm1, %v14889_v42  ;;  %10815 = vmatprep.subr.bf16.mxu0 %v14889_v42 }
 0x97f   : > { %10821 = vmatprep.subr.bf16.mxu1 %v14889_v42  ;;  %v3892_v51 = vpop.permute.xlu1 %3891 }
 0x980   : > { %v3897_v20 = vsel %vm1213_vm3, %v3892_v51, 0 }
 0x983   : > { %10806 = vmatmul.mubr.msk.bf16.vlgmr.msra.gmra.mrb[112].mxu0 %vm707_vm2, %v3580_v21 }
 0x984   : > { %10812 = vmatmul.mubr.msk.bf16.vlgmr.msra.gmra.mrb[120].mxu1 %vm707_vm2, %v3630_v24  ;;  %10816 = vmatpush3.bf16.xpose.msra.mxu0 %v3687_v61 }
 0x985   : > { %10822 = vmatpush3.bf16.xpose.msra.mxu1 %v3737_v4  ;;  %10817 = vmatprep.mubr.msk.bf16.mxu0 %vm11962_vm1, %v14889_v42 }
 0x986   : > { %10823 = vmatprep.mubr.msk.bf16.mxu1 %vm11962_vm1, %v14889_v42  ;;  %10827 = vmatprep.subr.bf16.mxu0 %v14889_v42 }
 0x987   : > { %10833 = vmatprep.subr.bf16.mxu1 %v14889_v42 }
 0x98b   : > { %10818 = vmatmul.mubr.msk.bf16.vlgmr.msra.gmra.mrb[116].mxu0 %vm707_vm2, %v3680_v39 }
 0x98c   : > { %10824 = vmatmul.mubr.msk.bf16.vlgmr.msra.gmra.mrb[124].mxu1 %vm707_vm2, %v3730_v57  ;;  %10828 = vmatpush3.bf16.msra.mxu0 %v3897_v20 }
 0x98d   : > { %10829 = vmatprep.mubr.msk.bf16.mxu0 %vm11962_vm1, %v14889_v42  ;;  %10835 = vmatprep.mubr.msk.bf16.mxu1 %vm11962_vm1, %v14889_v42 }
 0x98e   : > { %10839 = vmatprep.subr.bf16.mxu0 %v14889_v42 }
 0x9f9   : > { %v12945_v8 = vpop.f32.mrb[88].mxu0 }
 0x9fa   : > { %v12947_v14 = vpop.f32.mrb[96].mxu1  ;;  %v10735_v18 = vpop.f32.mrb[89].mxu0 }
 0x9fb   : > { %v11415_v31 = vpack.i.bf16 %v12947_v14, %v12945_v8  ;;  %v10741_v11 = vpop.f32.mrb[97].mxu1  ;;  %v3040_v54 = vpop.f32.mrb[90].mxu0 }
 0x9fc   : > { %v3088_v55 = vpop.f32.mrb[98].mxu1  ;;  %v10736_v29 = vpop.f32.mrb[91].mxu0 }
 0x9fd   : > { %v10742_v25 = vpop.f32.mrb[99].mxu1 }
 0xa01   : > { %v12951_v34 = vpop.f32.mrb[92].mxu0 }
 0xa02   : > { %v10747_v0 = vpop.f32.mrb[93].mxu0 }
 0xa03   : > { %v3136_v56 = vpop.f32.mrb[94].mxu0 }
 0xa04   : > { %v10748_v26 = vpop.f32.mrb[95].mxu0 }
 0xa05   : > { %v12953_v48 = vpop.f32.mrb[100].mxu1 }
 0xa06   : > { %v11420_v52 = vpack.i.bf16 %v12953_v48, %v12951_v34  ;;  %v10753_v7 = vpop.f32.mrb[101].mxu1 }
 0xa07   : > { %v3184_v47 = vpop.f32.mrb[102].mxu1 }
 0xa08   : > { %v10754_v33 = vpop.f32.mrb[103].mxu1 }
 0xa09   : > { %v12957_v27 = vpop.f32.mrb[96].mxu0 }
 0xa0a   : > { %v10759_v41 = vpop.f32.mrb[97].mxu0 }
 0xa0b   : > { %v3232_v37 = vpop.f32.mrb[98].mxu0 }
 0xa0c   : > { %v10760_v24 = vpop.f32.mrb[99].mxu0 }
 0xa0d   : > { %v12959_v21 = vpop.f32.mrb[104].mxu1 }
 0xa0e   : > { %v11445_v35 = vpack.i.bf16 %v12959_v21, %v12957_v27  ;;  %v10765_v5 = vpop.f32.mrb[105].mxu1 }
 0xa0f   : > { %v3280_v62 = vpop.f32.mrb[106].mxu1 }
 0xa10   : > { %v10766_v28 = vpop.f32.mrb[107].mxu1 }
 0xa3e   : > { %v12963_v57 = vpop.f32.mrb[100].mxu0 }
 0xa3f   : > { %v12965_v61 = vpop.f32.mrb[108].mxu1  ;;  %v10771_v4 = vpop.f32.mrb[101].mxu0 }
 0xa40   : > { %v11450_v51 = vpack.i.bf16 %v12965_v61, %v12963_v57  ;;  %v10777_v39 = vpop.f32.mrb[109].mxu1  ;;  %v3328_v20 = vpop.f32.mrb[102].mxu0 }
 0xa41   : > { %v3376_v18 = vpop.f32.mrb[110].mxu1  ;;  %v10772_v11 = vpop.f32.mrb[103].mxu0 }
 0xa42   : > { %v10778_v54 = vpop.f32.mrb[111].mxu1 }
 0xa46   : > { %v3423_v55 = vpop.f32.mrb[104].mxu0 }
 0xa47   : > { %v3779_v29 = vmul.f32 0.25, %v3423_v55  ;;  %v3473_v25 = vpop.f32.mrb[112].mxu1  ;;  %v10783_v0 = vpop.f32.mrb[105].mxu0 }
 0xa48   : > { %v3780_v56 = vmul.f32 0.25, %v3473_v25  ;;  %v10789_v26 = vpop.f32.mrb[113].mxu1  ;;  %v3426_v7 = vpop.f32.mrb[106].mxu0 }
 0xa49   : > { %v12970_v47 = vadd.f32 %v12732_v40, %v3779_v29  ;;  %v3476_v33 = vpop.f32.mrb[114].mxu1  ;;  %v10784_v41 = vpop.f32.mrb[107].mxu0 }
 0xa4a   : > { %v3788_v37 = vadd.f32 %v12738_v15, %v3780_v56  ;;  %v10790_v24 = vpop.f32.mrb[115].mxu1 }
 0xa4b   : > { %v3795_v5 = vsel %vm1113_vm4, %v12970_v47, -inf }
 0xa4c   : > { %v3798_v62 = vsel %vm1113_vm4, %v3788_v37, -inf  ;;  %3796 = vmax.xlane.f32.xlu0 %v3795_v5 }
 0xa4d   : > { %3799 = vmax.xlane.f32.xlu1 %v3798_v62 }
 0xa4e   : > { %v3523_v28 = vpop.f32.mrb[108].mxu0 }
 0xa4f   : > { %v3781_v4 = vmul.f32 0.25, %v3523_v28  ;;  %v3573_v39 = vpop.f32.mrb[116].mxu1  ;;  %v10795_v20 = vpop.f32.mrb[109].mxu0 }
 0xa50   : > { %v3782_v18 = vmul.f32 0.25, %v3573_v39  ;;  %v10801_v11 = vpop.f32.mrb[117].mxu1  ;;  %v3526_v40 = vpop.f32.mrb[110].mxu0 }
 0xa51   : > { %v3789_v54 = vadd.f32 %v12748_v23, %v3781_v4  ;;  %v3576_v55 = vpop.f32.mrb[118].mxu1  ;;  %v10796_v29 = vpop.f32.mrb[111].mxu0 }
 0xa52   : > { %v10802_v15 = vpop.f32.mrb[119].mxu1  ;;  %v3790_v25 = vadd.f32 %v12753_v43, %v3782_v18 }
 0xa53   : > { %v3801_v0 = vsel %vm1113_vm4, %v3789_v54, -inf }
 0xa54   : > { %3802 = vmax.xlane.f32.xlu0 %v3801_v0  ;;  %v3804_v41 = vsel %vm1113_vm4, %v3790_v25, -inf }
 0xa56   : > { %v3623_v56 = vpop.f32.mrb[112].mxu0 }
 0xa57   : > { %v3783_v26 = vmul.f32 0.25, %v3623_v56  ;;  %v3673_v7 = vpop.f32.mrb[120].mxu1  ;;  %v10807_v33 = vpop.f32.mrb[113].mxu0 }
 0xa58   : > { %v3784_v24 = vmul.f32 0.25, %v3673_v7  ;;  %v10813_v5 = vpop.f32.mrb[121].mxu1  ;;  %3805 = vmax.xlane.f32.xlu0 %v3804_v41  ;;  %v3626_v62 = vpop.f32.mrb[114].mxu0 }
 0xa59   : > { %v12981_v23 = vadd.f32 %v12758_v50, %v3783_v26  ;;  %v3676_v28 = vpop.f32.mrb[122].mxu1  ;;  %v10808_v4 = vpop.f32.mrb[115].mxu0 }
 0xa5a   : > { %v12984_v43 = vadd.f32 %v12762_v32, %v3784_v24  ;;  %v10814_v39 = vpop.f32.mrb[123].mxu1 }
 0xa5b   : > { %v3807_v20 = vsel %vm1113_vm4, %v12981_v23, -inf }
 0xa5c   : > { %v3810_v18 = vsel %vm1113_vm4, %v12984_v43, -inf  ;;  %3808 = vmax.xlane.f32.xlu1 %v3807_v20 }
 0xa5d   : > { %3811 = vmax.xlane.f32.xlu0 %v3810_v18 }
 0xa5e   : > { %v3723_v11 = vpop.f32.mrb[116].mxu0 }
 0xa5f   : > { %v3785_v40 = vmul.f32 0.25, %v3723_v11  ;;  %v3773_v55 = vpop.f32.mrb[124].mxu1  ;;  %v10819_v29 = vpop.f32.mrb[117].mxu0 }
 0xa60   : > { %v3786_v50 = vmul.f32 0.25, %v3773_v55  ;;  %v10825_v15 = vpop.f32.mrb[125].mxu1  ;;  %v3726_v0 = vpop.f32.mrb[118].mxu0 }
 0xa61   : > { %v3793_v56 = vadd.f32 %v12768_v45, %v3785_v40  ;;  %v3776_v32 = vpop.f32.mrb[126].mxu1  ;;  %v10820_v26 = vpop.f32.mrb[119].mxu0 }
 0xa62   : > { %v3794_v7 = vadd.f32 %v12772_v44, %v3786_v50  ;;  %v10826_v33 = vpop.f32.mrb[127].mxu1 }
 0xa63   : > { %v3813_v41 = vsel %vm1113_vm4, %v3793_v56, -inf }
 0xa64   : > { %v3816_v24 = vsel %vm1113_vm4, %v3794_v7, -inf  ;;  %3814 = vmax.xlane.f32.xlu1 %v3813_v41 }
 0xa65   : > { %3817 = vmax.xlane.f32.xlu0 %v3816_v24 }
 0xa75   : > { %3987 = vrot.lane.b32.xlu1 %v12373_v58, %s11969_s16 }
 0xa79   : > { %4035 = vrot.lane.b32.xlu1 %v12379_v63, %s11969_s16 }
 0xa7b   : > { %3939 = vrot.lane.b32.xlu0 %v12233_v59, %s11969_s16 }
 0xad9   : > { %v3797_v45 = vpop.xlane.xlu0 %3796 }
 0xada   : > { %v3800_v5 = vpop.xlane.xlu1 %3799  ;;  %v3819_v44 = vsub.f32 %v12970_v47, %v3797_v45 }
 0xadb   : > { %v3820_v62 = vsub.f32 %v3788_v37, %v3800_v5 }
 0xadc   : > { %v3827_v28 = vmul.f32 1.442695, %v3819_v44 }
 0xadd   : > { %v3829_v4 = vmul.f32 1.442695, %v3820_v62 }
 0xade   : > { %11685 = vpow2.f32 %v3827_v28 }
 0xadf   : > { %11687 = vpow2.f32 %v3829_v4 }
 0xae1   : > { %v3803_v39 = vpop.xlane.xlu0 %3802 }
 0xae2   : > { %v3821_v20 = vsub.f32 %v3789_v54, %v3803_v39 }
 0xae4   : > { %v3831_v18 = vmul.f32 1.442695, %v3821_v20 }
 0xae5   : > { %v3806_v11 = vpop.xlane.xlu0 %3805 }
 0xae6   : > { %11689 = vpow2.f32 %v3831_v18  ;;  %v3822_v58 = vsub.f32 %v3790_v25, %v3806_v11  ;;  %v14890_v18 = vpack.i.bf16 %v12715_v10, %v12713_v19  ;;  %v14891_v11 = vpack.i.bf16 %v12707_v16, %v12709_v6 }
 0xae8   : > { %v13001_v40 = vpop.eup %11685  ;;  %v3833_v63 = vmul.f32 1.442695, %v3822_v58 }
 0xae9   : > { %v13003_v55 = vpop.eup %11687  ;;  %v3843_v59 = vsel %vm1113_vm4, %v13001_v40, 0.0  ;;  %v3809_v26 = vpop.xlane.xlu1 %3808 }
 0xaea   : > { %11691 = vpow2.f32 %v3833_v63  ;;  %v3846_v47 = vsel %vm1113_vm4, %v13003_v55, 0.0  ;;  %3844 = vadd.xlane.f32.xlu1 %v3843_v59  ;;  %v3812_v37 = vpop.xlane.xlu0 %3811  ;;  %v3823_v33 = vsub.f32 %v12981_v23, %v3809_v26 }
 0xaeb   : > { %3847 = vadd.xlane.f32.xlu0 %v3846_v47  ;;  %v3824_v24 = vsub.f32 %v12984_v43, %v3812_v37 }
 0xaec   : > { %v3835_v45 = vmul.f32 1.442695, %v3823_v33 }
 0xaed   : > { %v3837_v44 = vmul.f32 1.442695, %v3824_v24 }
 0xaee   : > { %11693 = vpow2.f32 %v3835_v45 }
 0xaef   : > { %11695 = vpow2.f32 %v3837_v44 }
 0xaf0   : > { %v13009_v54 = vpop.eup %11689 }
 0xaf1   : > { %v3849_v25 = vsel %vm1113_vm4, %v13009_v54, 0.0  ;;  %v3815_v41 = vpop.xlane.xlu1 %3814 }
 0xaf2   : > { %v3818_v29 = vpop.xlane.xlu0 %3817  ;;  %3850 = vadd.xlane.f32.xlu1 %v3849_v25  ;;  %v3825_v5 = vsub.f32 %v3793_v56, %v3815_v41 }
 0xaf3   : > { %v3826_v28 = vsub.f32 %v3794_v7, %v3818_v29 }
 0xaf4   : > { %v13013_v50 = vpop.eup %11691  ;;  %v3839_v62 = vmul.f32 1.442695, %v3825_v5 }
 0xaf5   : > { %v3852_v15 = vsel %vm1113_vm4, %v13013_v50, 0.0  ;;  %v3841_v4 = vmul.f32 1.442695, %v3826_v28 }
 0xaf6   : > { %v3940_v0 = vpop.permute.xlu0 %3939  ;;  %3853 = vadd.xlane.f32.xlu0 %v3852_v15  ;;  %11697 = vpow2.f32 %v3839_v62 }
 0xaf7   : > { %v3945_v32 = vsel %vm1213_vm3, %v3940_v0, 0  ;;  %11699 = vpow2.f32 %v3841_v4 }
 0xaf8   : > { %10834 = vmatpush3.bf16.msra.mxu1 %v3945_v32 }
 0xaf9   : > { %10845 = vmatprep.subr.bf16.mxu1 %v14889_v42 }
 0xb03   : > { %4131 = vrot.lane.b32.xlu1 %v12404_v53, %s11969_s16  ;;  %v13025_v53 = vpop.eup %11693 }
 0xb04   : > { %v13027_v39 = vpop.eup %11695 }
 0xb05   : > { %v13031_v23 = vpop.eup %11697  ;;  %v3858_v56 = vsel %vm1113_vm4, %v13027_v39, 0.0 }
 0xb06   : > { %v3861_v43 = vsel %vm1113_vm4, %v13031_v23, 0.0  ;;  %v13037_v7 = vpop.eup %11699 }
 0xb07   : > { %v3864_v20 = vsel %vm1113_vm4, %v13037_v7, 0.0 }
 0xb0c   : > { %4083 = vrot.lane.b32.xlu0 %v12399_v3, %s11969_s16  ;;  %v3855_v3 = vsel %vm1113_vm4, %v13025_v53, 0.0 }
 0xb27   : > { %3856 = vadd.xlane.f32.xlu1 %v3855_v3 }
 0xb2b   : > { %3862 = vadd.xlane.f32.xlu1 %v3861_v43  ;;  %3859 = vadd.xlane.f32.xlu0 %v3858_v56 }
 0xb2f   : > { %3865 = vadd.xlane.f32.xlu0 %v3864_v20 }
 0xb3c   : > { %4227 = vrot.lane.b32.xlu1 %v12427_v22, %s11969_s16  ;;  %v3988_v22 = vpop.permute.xlu1 %3987 }
 0xb3d   : > { %v3993_v8 = vsel %vm1213_vm3, %v3988_v22, 0 }
 0xb40   : > { %11411 = vrot.lane.b32.xlu1 %v14890_v18, %s11968_s15  ;;  %v4036_v19 = vpop.permute.xlu1 %4035 }
 0xb41   : > { %v4041_v14 = vsel %vm1213_vm3, %v4036_v19, 0 }
 0xb44   : > { %11421 = vrot.lane.b32.xlu1 %v11420_v52, %s11966_s12 }
 0xb45   : > { %4179 = vrot.lane.b32.xlu0 %v12415_v17, %s11969_s16 }
 0xb49   : > { %11406 = vrot.lane.b32.xlu0 %v14891_v11, %s11968_s15 }
 0xb4d   : > { %11416 = vrot.lane.b32.xlu0 %v11415_v31, %s11966_s12 }
 0xb77   : > { %v3845_v10 = vpop.xlane.xlu1 %3844 }
 0xb78   : > { %11701 = vrcp.f32 %v3845_v10  ;;  %v3848_v58 = vpop.xlane.xlu0 %3847 }
 0xb79   : > { %11703 = vrcp.f32 %v3848_v58 }
 0xb7f   : > { %v3851_v34 = vpop.xlane.xlu1 %3850 }
 0xb80   : > { %11705 = vrcp.f32 %v3851_v34 }
 0xb82   : > { %v11702_v48 = vpop.eup %11701 }
 0xb83   : > { %v11704_v17 = vpop.eup %11703  ;;  %v3854_v52 = vpop.xlane.xlu0 %3853  ;;  %v3875_v63 = vmul.f32 %v11702_v48, %v13001_v40 }
 0xb84   : > { %11707 = vrcp.f32 %v3854_v52  ;;  %v3876_v16 = vmul.f32 %v11704_v17, %v13003_v55  ;;  %v4132_v15 = vpop.permute.xlu1 %4131 }
 0xb85   : > { %v3883_v6 = vpack.c.bf16 %v3875_v63, %v3875_v63 }
 0xb86   : > { %v3884_v59 = vpack.c.bf16 %v3876_v16, %v3876_v16 }
 0xb87   : > { %10830 = vmatmul.mubr.msk.bf16.vlgmr.msra.gmra.mrb[120].mxu0 %vm1113_vm4, %v3883_v6  ;;  %v4084_v55 = vpop.permute.xlu0 %4083  ;;  %v11544_v6 = vld [vmem:[%s14835_s4 + $0x18] sm:$0xff]  }
 0xb88   : > { %10836 = vmatmul.mubr.msk.bf16.vlgmr.msra.gmra.mrb[128].mxu1 %vm1113_vm4, %v3884_v59  ;;  %10840 = vmatpush3.bf16.msra.mxu0 %v3993_v8  ;;  %v4089_v25 = vsel %vm1213_vm3, %v4084_v55, 0  ;;  %v14892_v59 = vpack.i.bf16 %v12721_v46, %v12719_v2  ;;  %v14893_v2 = vpack.i.bf16 %v12727_v1, %v12725_v36 }
 0xb89   : > { %10846 = vmatpush3.bf16.msra.mxu1 %v4041_v14  ;;  %10841 = vmatprep.mubr.msk.bf16.mxu0 %vm11962_vm1, %v14889_v42 }
 0xb8a   : > { %v11706_v31 = vpop.eup %11705  ;;  %10851 = vmatprep.subr.bf16.mxu0 %v14889_v42  ;;  %10847 = vmatprep.mubr.msk.bf16.mxu1 %vm11962_vm1, %v14889_v42 }
 0xb8b   : > { %v3877_v40 = vmul.f32 %v11706_v31, %v13009_v54  ;;  %10857 = vmatprep.subr.bf16.mxu1 %v14889_v42  ;;  %v4137_v54 = vsel %vm1213_vm3, %v4132_v15, 0 }
 0xb8d   : > { %v3885_v47 = vpack.c.bf16 %v3877_v40, %v3877_v40 }
 0xb8e   : > { %v11708_v37 = vpop.eup %11707 }
 0xb8f   : > { %10842 = vmatmul.mubr.msk.bf16.vlgmr.msra.gmra.mrb[124].mxu0 %vm1113_vm4, %v3885_v47  ;;  %v3878_v29 = vmul.f32 %v11708_v37, %v13013_v50 }
 0xb90   : > { %10852 = vmatpush3.bf16.msra.mxu0 %v4089_v25  ;;  %10853 = vmatprep.mubr.msk.bf16.mxu0 %vm11962_vm1, %v14889_v42 }
 0xb91   : > { %v3886_v0 = vpack.c.bf16 %v3878_v29, %v3878_v29  ;;  %10863 = vmatprep.subr.bf16.mxu0 %v14889_v42 }
 0xb93   : > { %10848 = vmatmul.mubr.msk.bf16.vlgmr.msra.gmra.mrb[132].mxu1 %vm1113_vm4, %v3886_v0 }
 0xb94   : > { %10858 = vmatpush3.bf16.msra.mxu1 %v4137_v54  ;;  %10859 = vmatprep.mubr.msk.bf16.mxu1 %vm11962_vm1, %v14889_v42 }
 0xb95   : > { %10869 = vmatprep.subr.bf16.mxu1 %v14889_v42 }
 0xbb4   : > { %v3857_v32 = vpop.xlane.xlu1 %3856 }
 0xbb5   : > { %11709 = vrcp.f32 %v3857_v32 }
 0xbb8   : > { %v3863_v50 = vpop.xlane.xlu1 %3862  ;;  %v3860_v26 = vpop.xlane.xlu0 %3859 }
 0xbb9   : > { %11711 = vrcp.f32 %v3863_v50 }
 0xbba   : > { %11713 = vrcp.f32 %v3860_v26 }
 0xbbc   : > { %v3866_v33 = vpop.xlane.xlu0 %3865  ;;  %v4228_v43 = vpop.permute.xlu1 %4227 }
 0xbbd   : > { %11715 = vrcp.f32 %v3866_v33 }
 0xbbf   : > { %v11710_v41 = vpop.eup %11709 }
 0xbc0   : > { %v3879_v24 = vmul.f32 %v11710_v41, %v13025_v53  ;;  %v4180_v45 = vpop.permute.xlu0 %4179  ;;  %v4233_v53 = vsel %vm1213_vm3, %v4228_v43, 0 }
 0xbc1   : > { %v4185_v28 = vsel %vm1213_vm3, %v4180_v45, 0 }
 0xbc2   : > { %v3887_v5 = vpack.c.bf16 %v3879_v24, %v3879_v24 }
 0xbc3   : > { %v11712_v44 = vpop.eup %11711 }
 0xbc4   : > { %v11714_v62 = vpop.eup %11713  ;;  %10854 = vmatmul.mubr.msk.bf16.vlgmr.msra.gmra.mrb[128].mxu0 %vm1113_vm4, %v3887_v5  ;;  %v3881_v3 = vmul.f32 %v11712_v44, %v13031_v23  ;;  %v11542_v23 = vld [vmem:[%s14835_s4 + $0x8] sm:$0xff]  }
 0xbc5   : > { %10864 = vmatpush3.bf16.msra.mxu0 %v4185_v28  ;;  %10865 = vmatprep.mubr.msk.bf16.mxu0 %vm11962_vm1, %v14889_v42  ;;  %v3880_v4 = vmul.f32 %v11714_v62, %v13027_v39  ;;  %v11541_v39 = vld [vmem:[%s14835_s4] sm:$0xff]  }
 0xbc6   : > { %v3889_v18 = vpack.c.bf16 %v3881_v3, %v3881_v3  ;;  %10875 = vmatprep.subr.bf16.mxu0 %v11541_v39  ;;  %v11412_v3 = vpop.permute.xlu1 %11411 }
 0xbc7   : > { %v3888_v56 = vpack.c.bf16 %v3880_v4, %v3880_v4  ;;  %v11716_v20 = vpop.eup %11715 }
 0xbc8   : > { %v3882_v11 = vmul.f32 %v11716_v20, %v13037_v7  ;;  %v11543_v7 = vld [vmem:[%s14835_s4 + $0x10] sm:$0xff]  }
 0xbc9   : > { %10860 = vmatmul.mubr.msk.bf16.vlgmr.msra.gmra.mrb[136].mxu1 %vm1113_vm4, %v3888_v56 }
 0xbca   : > { %10870 = vmatpush3.bf16.msra.mxu1 %v4233_v53  ;;  %10871 = vmatprep.mubr.msk.bf16.mxu1 %vm11962_vm1, %v14889_v42  ;;  %v3890_v22 = vpack.c.bf16 %v3882_v11, %v3882_v11 }
 0xbcc   : > { %10866 = vmatmul.mubr.msk.bf16.vlgmr.msra.gmra.mrb[132].mxu0 %vm1113_vm4, %v3889_v18 }
 0xbcd   : > { %10876 = vmatpush3.bf16.msra.mxu0 %v11541_v39 }
 0xbce   : > { %10877 = vmatprep.subr.bf16.mxu0 %v11542_v23 }
 0xbd1   : > { %10872 = vmatmul.mubr.msk.bf16.vlgmr.msra.gmra.mrb[140].mxu1 %vm1113_vm4, %v3890_v22  ;;  %10878 = vmatpush3.bf16.msra.mxu0 %v11542_v23 }
 0xbd2   : > { %10879 = vmatprep.subr.bf16.mxu0 %v11543_v7 }
 0xbd5   : > { %10880 = vmatpush3.bf16.msra.mxu0 %v11543_v7  ;;  %v11422_v7 = vpop.permute.xlu1 %11421 }
 0xbd6   : > { %10881 = vmatprep.subr.bf16.mxu0 %v11544_v6 }
 0xbd9   : > { %10882 = vmatpush3.bf16.msra.mxu0 %v11544_v6 }
 0xc5a   : > { %v3933_v19 = vpop.f32.mrb[120].mxu0 }
 0xc5b   : > { %v3981_v10 = vpop.f32.mrb[128].mxu1  ;;  %v10831_v58 = vpop.f32.mrb[121].mxu0 }
 0xc5c   : > { %v11425_v34 = vpack.i.bf16 %v3981_v10, %v3933_v19  ;;  %v10837_v48 = vpop.f32.mrb[129].mxu1  ;;  %v3936_v17 = vpop.f32.mrb[122].mxu0  ;;  %v11414_v10 = vunpack.i.h.bf16 %v11412_v3  ;;  %v11413_v58 = vunpack.i.l.bf16 %v11412_v3 }
 0xc5d   : > { %v3984_v52 = vpop.f32.mrb[130].mxu1  ;;  %v10832_v63 = vpop.f32.mrb[123].mxu0 }
 0xc5e   : > { %11426 = vrot.lane.b32.xlu0 %v11425_v34, %s11964_s10  ;;  %v10838_v16 = vpop.f32.mrb[131].mxu1  ;;  %v11423_v34 = vunpack.i.l.bf16 %v11422_v7  ;;  %v4373_v17 = vsel %vm707_vm2, %v12497_v12, %v11413_v58 }
 0xc60   : > { %v4382_v16 = vsel %vm4379_vm5, %v4373_v17, %v11423_v34 }
 0xc62   : > { %11436 = vrot.lane.b32.xlu0 %v14892_v59, %s11968_s15  ;;  %v4029_v8 = vpop.f32.mrb[124].mxu0 }
 0xc63   : > { %v10843_v14 = vpop.f32.mrb[125].mxu0 }
 0xc64   : > { %v4032_v31 = vpop.f32.mrb[126].mxu0 }
 0xc65   : > { %v10844_v40 = vpop.f32.mrb[127].mxu0 }
 0xc66   : > { %11446 = vrot.lane.b32.xlu0 %v11445_v35, %s11966_s12  ;;  %v4077_v55 = vpop.f32.mrb[132].mxu1 }
 0xc67   : > { %v11430_v47 = vpack.i.bf16 %v4077_v55, %v4029_v8  ;;  %v10849_v37 = vpop.f32.mrb[133].mxu1 }
 0xc68   : > { %v4080_v25 = vpop.f32.mrb[134].mxu1 }
 0xc69   : > { %11431 = vrot.lane.b32.xlu1 %v11430_v47, %s11964_s10  ;;  %v10850_v29 = vpop.f32.mrb[135].mxu1 }
 0xc6d   : > { %11441 = vrot.lane.b32.xlu1 %v14893_v2, %s11968_s15 }
 0xc71   : > { %11451 = vrot.lane.b32.xlu1 %v11450_v51, %s11966_s12  ;;  %v11407_v51 = vpop.permute.xlu0 %11406 }
 0xc72   : > { %v11409_v44 = vunpack.i.h.bf16 %v11407_v51  ;;  %v11408_v62 = vunpack.i.l.bf16 %v11407_v51 }
 0xc74   : > { %v4372_v56 = vsel %vm707_vm2, %v12495_v49, %v11409_v44  ;;  %v4371_v20 = vsel %vm707_vm2, %v12493_v13, %v11408_v62  ;;  %v11424_v49 = vunpack.i.h.bf16 %v11422_v7  ;;  %v4374_v13 = vsel %vm707_vm2, %v12499_v9, %v11414_v10  ;;  %v14895_v62 = vld [vmem:[#allocation2_spill] sm:$0xff]  ;;  %v14898_v10 = vld [vmem:[#allocation5_spill] sm:$0xff] }
 0xc75   : > { %v11417_v5 = vpop.permute.xlu0 %11416 }
 0xc76   : > { %v11419_v28 = vunpack.i.h.bf16 %v11417_v5  ;;  %v11418_v4 = vunpack.i.l.bf16 %v11417_v5  ;;  %v4383_v6 = vsel %vm4379_vm5, %v4374_v13, %v11424_v49 }
 0xc78   : > { %v4380_v11 = vsel %vm4379_vm5, %v4371_v20, %v11418_v4  ;;  %v4381_v22 = vsel %vm4379_vm5, %v4372_v56, %v11419_v28  ;;  %v14861_v28 = vsub.s32 5, %v14895_v62 }
 0xc97   : > { %v4125_v46 = vpop.f32.mrb[128].mxu0 }
 0xc98   : > { %v10855_v27 = vpop.f32.mrb[129].mxu0 }
 0xc99   : > { %v4128_v21 = vpop.f32.mrb[130].mxu0 }
 0xc9a   : > { %v10856_v35 = vpop.f32.mrb[131].mxu0 }
 0xc9c   : > { %v4173_v15 = vpop.f32.mrb[136].mxu1 }
 0xc9d   : > { %v11455_v0 = vpack.i.bf16 %v4173_v15, %v4125_v46  ;;  %v10861_v54 = vpop.f32.mrb[137].mxu1 }
 0xc9e   : > { %v4176_v32 = vpop.f32.mrb[138].mxu1 }
 0xc9f   : > { %v4221_v50 = vpop.f32.mrb[132].mxu0  ;;  %11456 = vrot.lane.b32.xlu0 %v11455_v0, %s11964_s10  ;;  %v10862_v26 = vpop.f32.mrb[139].mxu1 }
 0xca0   : > { %v10867_v33 = vpop.f32.mrb[133].mxu0 }
 0xca1   : > { %v4224_v36 = vpop.f32.mrb[134].mxu0 }
 0xca2   : > { %v10868_v1 = vpop.f32.mrb[135].mxu0 }
 0xca3   : > { %v14894_v1 = vld [vmem:[#allocation13_spill] sm:$0xff] }
 0xca4   : > { %v4269_v41 = vpop.f32.mrb[140].mxu1 }
 0xca5   : > { %v11460_v24 = vpack.i.bf16 %v4269_v41, %v4221_v50  ;;  %v10873_v45 = vpop.f32.mrb[141].mxu1 }
 0xca6   : > { %v4272_v57 = vpop.f32.mrb[142].mxu1 }
 0xca7   : > { %v10874_v61 = vpop.f32.mrb[143].mxu1  ;;  %11461 = vrot.lane.b32.xlu1 %v11460_v24, %s11964_s10 }
 0xcd0   : > { %v11427_v43 = vpop.permute.xlu0 %11426 }
 0xcd1   : > { %v11429_v53 = vunpack.i.h.bf16 %v11427_v43  ;;  %v11428_v18 = vunpack.i.l.bf16 %v11427_v43 }
 0xcd3   : > { %v4389_v39 = vsel %vm4388_vm6, %v4380_v11, %v11428_v18  ;;  %v4390_v23 = vsel %vm4388_vm6, %v4381_v22, %v11429_v53  ;;  %v14896_v11 = vld [vmem:[#allocation4_spill] sm:$0xff] }
 0xcd4   : > { %v4397_v19 = vpack.c.bf16 %v4390_v23, %v4389_v39  ;;  %v11437_v31 = vpop.permute.xlu0 %11436  ;;  %v14897_v23 = vld [vmem:[#allocation7_spill] sm:$0xff] }
 0xcd5   : > { %v11439_v55 = vunpack.i.h.bf16 %v11437_v31  ;;  %v11438_v9 = vunpack.i.l.bf16 %v11437_v31  ;;  %v14900_v31 = vld [vmem:[#allocation8_spill] sm:$0xff] }
 0xcd6   : > { %10883 = vmatprep.mubr.msk.bf16.mxu0 %vm465_vm0, %v4397_v19 }
 0xcd7   : > { %v4376_v29 = vsel %vm707_vm2, %v12503_v30, %v11439_v55  ;;  %v4375_v2 = vsel %vm707_vm2, %v12501_v60, %v11438_v9 }
 0xcd8   : > { %v11447_v40 = vpop.permute.xlu0 %11446 }
 0xcd9   : > { %v11449_v37 = vunpack.i.h.bf16 %v11447_v40  ;;  %v11448_v12 = vunpack.i.l.bf16 %v11447_v40 }
 0xcdb   : > { %v11432_v48 = vpop.permute.xlu1 %11431  ;;  %v4384_v21 = vsel %vm4379_vm5, %v4375_v2, %v11448_v12  ;;  %v4385_v35 = vsel %vm4379_vm5, %v4376_v29, %v11449_v37  ;;  %v14902_v12 = vld [vmem:[#allocation9_spill] sm:$0xff]  ;;  %v14903_v2 = vld [vmem:[#allocation11_spill] sm:$0xff] }
 0xcdc   : > { %v11434_v52 = vunpack.i.h.bf16 %v11432_v48  ;;  %v11433_v63 = vunpack.i.l.bf16 %v11432_v48  ;;  %v14899_v48 = vld [vmem:[#allocation6_spill] sm:$0xff] }
 0xcde   : > { %v4392_v59 = vsel %vm4388_vm6, %v4383_v6, %v11434_v52  ;;  %v4391_v8 = vsel %vm4388_vm6, %v4382_v16, %v11433_v63 }
 0xcdf   : > { %v4398_v14 = vpack.c.bf16 %v4392_v59, %v4391_v8  ;;  %v11442_v47 = vpop.permute.xlu1 %11441 }
 0xce0   : > { %v11444_v50 = vunpack.i.h.bf16 %v11442_v47  ;;  %v11443_v26 = vunpack.i.l.bf16 %v11442_v47  ;;  %v14901_v47 = vld [vmem:[#allocation10_spill] sm:$0xff] }
 0xce1   : > { %10884 = vmatmul.mubr.msk.bf16.vlgmr.msra.gmra.mrb[136].mxu0 %vm465_vm0, %v4398_v14 }
 0xce2   : > { %v4378_v60 = vsel %vm707_vm2, %v12505_v38, %v11444_v50  ;;  %v4377_v41 = vsel %vm707_vm2, %v14894_v1, %v11443_v26  ;;  %v13171_v38 = vld [vmem:[%s14839_s8] sm:$0xff] }
 0xce3   : > { %v11452_v15 = vpop.permute.xlu1 %11451  ;;  %v4412_v4 = vrot.slane %v13171_v38, %v14861_v28 }
 0xce4   : > { %v11454_v33 = vunpack.i.h.bf16 %v11452_v15  ;;  %v11453_v36 = vunpack.i.l.bf16 %v11452_v15 }
 0xce6   : > { %v4386_v57 = vsel %vm4379_vm5, %v4377_v41, %v11453_v36  ;;  %v4387_v61 = vsel %vm4379_vm5, %v4378_v60, %v11454_v33 }
 0xd11   : > { %v11457_v25 = vpop.permute.xlu0 %11456 }
 0xd12   : > { %v11459_v46 = vunpack.i.h.bf16 %v11457_v25  ;;  %v11458_v27 = vunpack.i.l.bf16 %v11457_v25 }
 0xd14   : > { %v4393_v0 = vsel %vm4388_vm6, %v4384_v21, %v11458_v27  ;;  %v4394_v54 = vsel %vm4388_vm6, %v4385_v35, %v11459_v46 }
 0xd15   : > { %v4399_v32 = vpack.c.bf16 %v4394_v54, %v4393_v0 }
 0xd17   : > { %10887 = vmatprep.mubr.msk.bf16.mxu0 %vm465_vm0, %v4399_v32 }
 0xd19   : > { %v11462_v30 = vpop.permute.xlu1 %11461 }
 0xd1a   : > { %v11464_v24 = vunpack.i.h.bf16 %v11462_v30  ;;  %v11463_v45 = vunpack.i.l.bf16 %v11462_v30 }
 0xd1c   : > { %v4396_v51 = vsel %vm4388_vm6, %v4387_v61, %v11464_v24  ;;  %v4395_v5 = vsel %vm4388_vm6, %v4386_v57, %v11463_v45 }
 0xd1d   : > { %v4400_v44 = vpack.c.bf16 %v4396_v51, %v4395_v5 }
 0xd1f   : > { %10888 = vmatmul.mubr.msk.bf16.gmra.mrb[140].mxu0 %vm465_vm0, %v4400_v44 }
 0xdb4   : > { %v10885_v3 = vpop.f32.mrb[136].mxu0 }
 0xdb5   : > { %v4483_v43 = vpop.f32.mrb[137].mxu0  ;;  %v4492_v56 = vadd.f32 %v10885_v3, %v4412_v4  ;;  %v11545_v3 = vld [vmem:[%s14836_s5] sm:$0xff]  }
 0xdb6   : > { %v4484_v20 = vadd.f32 %v4483_v43, %v4412_v4  ;;  %v10886_v53 = vpop.f32.mrb[138].mxu0  ;;  %10891 = vmatprep.subr.bf16.mxu1 %v11545_v3  ;;  %v11546_v43 = vld [vmem:[%s14836_s5 + $0x8] sm:$0xff]  }
 0xdb7   : > { %v4486_v18 = vpop.f32.mrb[139].mxu0  ;;  %v4516_v19 = vadd.f32 %v4492_v56, %v14897_v23  ;;  %v4495_v7 = vadd.f32 %v10886_v53, %v4412_v4  ;;  %10892 = vmatpush3.bf16.msra.mxu1 %v11545_v3  ;;  %v11547_v56 = vld [vmem:[%s14836_s5 + $0x10] sm:$0xff]  }
 0xdb8   : > { %v4514_v22 = vadd.f32 %v4484_v20, %v14896_v11  ;;  %v4487_v39 = vadd.f32 %v4486_v18, %v4412_v4  ;;  %10893 = vmatprep.subr.bf16.mxu1 %v11546_v43  ;;  %v11548_v20 = vld [vmem:[%s14836_s5 + $0x18] sm:$0xff]  }
 0xdb9   : > { %v4517_v13 = vadd.f32 %v4495_v7, %v14899_v48  ;;  %v4528_v17 = vsel %vm465_vm0, %v4516_v19, 0.0 }
 0xdba   : > { %v4515_v58 = vadd.f32 %v4487_v39, %v14898_v10  ;;  %v4522_v49 = vsel %vm465_vm0, %v4514_v22, 0.0 }
 0xdbb   : > { %4523 = vadd.xlane.f32.xlu0 %v4522_v49  ;;  %v4531_v52 = vsel %vm465_vm0, %v4517_v13, 0.0  ;;  %10894 = vmatpush3.bf16.msra.mxu1 %v11546_v43 }
 0xdbc   : > { %v4525_v34 = vsel %vm465_vm0, %v4515_v58, 0.0  ;;  %10895 = vmatprep.subr.bf16.mxu1 %v11547_v56 }
 0xdbd   : > { %4526 = vadd.xlane.f32.xlu1 %v4525_v34 }
 0xdbf   : > { %4529 = vadd.xlane.f32.xlu0 %v4528_v17  ;;  %10896 = vmatpush3.bf16.msra.mxu1 %v11547_v56 }
 0xdc0   : > { %10897 = vmatprep.subr.bf16.mxu1 %v11548_v20 }
 0xdc3   : > { %4532 = vadd.xlane.f32.xlu0 %v4531_v52  ;;  %10898 = vmatpush3.bf16.msra.mxu1 %v11548_v20 }
 0xdf2   : > { %v10889_v63 = vpop.f32.mrb[140].mxu0 }
 0xdf3   : > { %v4499_v16 = vpop.f32.mrb[141].mxu0  ;;  %v4508_v6 = vadd.f32 %v10889_v63, %v4412_v4 }
 0xdf4   : > { %v4500_v59 = vadd.f32 %v4499_v16, %v4412_v4  ;;  %v10890_v8 = vpop.f32.mrb[142].mxu0 }
 0xdf5   : > { %v4502_v14 = vpop.f32.mrb[143].mxu0  ;;  %v4511_v55 = vadd.f32 %v10890_v8, %v4412_v4  ;;  %v4520_v37 = vadd.f32 %v4508_v6, %v14901_v47  ;;  %v11549_v8 = vld [vmem:[%s14837_s6] sm:$0xff]  }
 0xdf6   : > { %v4518_v40 = vadd.f32 %v4500_v59, %v14900_v31  ;;  %v4503_v9 = vadd.f32 %v4502_v14, %v4412_v4  ;;  %v11550_v14 = vld [vmem:[%s14837_s6 + $0x8] sm:$0xff]   ;;  %10907 = vmatprep.subr.bf16.mxu0 %v11549_v8  ;;  %v11551_v31 = vld [vmem:[%s14837_s6 + $0x10] sm:$0xff]  }
 0xdf7   : > { %v4521_v46 = vadd.f32 %v4511_v55, %v14903_v2  ;;  %v4540_v21 = vsel %vm465_vm0, %v4520_v37, 0.0  ;;  %10908 = vmatpush3.bf16.msra.mxu0 %v11549_v8  ;;  %v11553_v55 = vld [vmem:[%s14837_s6 + $0x20] sm:$0xff]  }
 0xdf8   : > { %v4519_v25 = vadd.f32 %v4503_v9, %v14902_v12  ;;  %v4534_v29 = vsel %vm465_vm0, %v4518_v40, 0.0  ;;  %10909 = vmatprep.subr.bf16.mxu0 %v11550_v14  ;;  %v11554_v9 = vld [vmem:[%s14837_s6 + $0x28] sm:$0xff]  }
 0xdf9   : > { %4535 = vadd.xlane.f32.xlu1 %v4534_v29  ;;  %v4543_v35 = vsel %vm465_vm0, %v4521_v46, 0.0 }
 0xdfa   : > { %v4537_v27 = vsel %vm465_vm0, %v4519_v25, 0.0 }
 0xdfb   : > { %4538 = vadd.xlane.f32.xlu0 %v4537_v27  ;;  %10910 = vmatpush3.bf16.msra.mxu0 %v11550_v14 }
 0xdfc   : > { %10911 = vmatprep.subr.bf16.mxu0 %v11551_v31 }
 0xdfd   : > { %4541 = vadd.xlane.f32.xlu1 %v4540_v21 }
 0xdff   : > { %4544 = vadd.xlane.f32.xlu0 %v4543_v35  ;;  %10912 = vmatpush3.bf16.msra.mxu0 %v11551_v31 }
 0xe48   : > { %v4524_v15 = vpop.xlane.xlu0 %4523 }
 0xe49   : > { %v4547_v0 = vmul.f32 0.015625, %v4524_v15 }
 0xe4a   : > { %v4527_v54 = vpop.xlane.xlu1 %4526 }
 0xe4b   : > { %v13192_v32 = vsub.f32 %v4514_v22, %v4547_v0  ;;  %v4548_v50 = vmul.f32 0.015625, %v4527_v54  ;;  %v13265_v0 = vld [vmem:[%s14839_s8 + $0x10] sm:$0xff] }
 0xe4c   : > { %v4530_v26 = vpop.xlane.xlu0 %4529 }
 0xe4d   : > { %v13194_v33 = vsub.f32 %v4515_v58, %v4548_v50  ;;  %v4549_v36 = vmul.f32 0.015625, %v4530_v26  ;;  %v4563_v30 = vmul.f32 %v13192_v32, %v13192_v32  ;;  %v14904_v50 = vld [vmem:[#allocation3_spill] sm:$0xff] }
 0xe4e   : > { %v4630_v26 = vrot.slane %v13265_v0, %v14904_v50  ;;  %v14093_v50 = vld [vmem:[%s12253_s29 + $0x5] ss:$0 sm:$0xff] }
 0xe4f   : > { %v13198_v60 = vsub.f32 %v4516_v19, %v4549_v36  ;;  %v4571_v1 = vsel %vm465_vm0, %v4563_v30, 0.0  ;;  %v4564_v41 = vmul.f32 %v13194_v33, %v13194_v33  ;;  %v13270_v36 = vsub.s32 1, %v14895_v62 }
 0xe50   : > { %4572 = vadd.xlane.f32.xlu1 %v4571_v1  ;;  %v4533_v24 = vpop.xlane.xlu0 %4532 }
 0xe51   : > { %v4550_v45 = vmul.f32 0.015625, %v4533_v24  ;;  %v4574_v57 = vsel %vm465_vm0, %v4564_v41, 0.0  ;;  %v4565_v61 = vmul.f32 %v13198_v60, %v13198_v60  ;;  %14905 = vst [vmem:[#allocation13_spill] sm:$0xff] %v13270_v36 }
 0xe52   : > { %4575 = vadd.xlane.f32.xlu0 %v4574_v57  ;;  %v4642_v57 = vrot.slane %v13265_v0, %v13270_v36 }
 0xe53   : > { %v13206_v51 = vsub.f32 %v4517_v13, %v4550_v45  ;;  %v4577_v5 = vsel %vm465_vm0, %v4565_v61, 0.0 }
 0xe54   : > { %4578 = vadd.xlane.f32.xlu1 %v4577_v5 }
 0xe55   : > { %v4566_v44 = vmul.f32 %v13206_v51, %v13206_v51 }
 0xe57   : > { %v4580_v4 = vsel %vm465_vm0, %v4566_v44, 0.0 }
 0xe58   : > { %4581 = vadd.xlane.f32.xlu0 %v4580_v4 }
 0xe86   : > { %v4536_v53 = vpop.xlane.xlu1 %4535 }
 0xe87   : > { %v4551_v18 = vmul.f32 0.015625, %v4536_v53 }
 0xe88   : > { %v4539_v11 = vpop.xlane.xlu0 %4538 }
 0xe89   : > { %v13224_v22 = vsub.f32 %v4518_v40, %v4551_v18  ;;  %v4552_v39 = vmul.f32 0.015625, %v4539_v11  ;;  %v11552_v40 = vld [vmem:[%s14837_s6 + $0x18] sm:$0xff]  }
 0xe8a   : > { %v4542_v23 = vpop.xlane.xlu1 %4541  ;;  %10913 = vmatprep.subr.bf16.mxu0 %v11552_v40 }
 0xe8b   : > { %v13226_v19 = vsub.f32 %v4519_v25, %v4552_v39  ;;  %v4553_v7 = vmul.f32 0.015625, %v4542_v23  ;;  %v4567_v10 = vmul.f32 %v13224_v22, %v13224_v22  ;;  %10914 = vmatpush3.bf16.msra.mxu0 %v11552_v40 }
 0xe8c   : > { %v4545_v58 = vpop.xlane.xlu0 %4544  ;;  %10915 = vmatprep.subr.bf16.mxu0 %v11553_v55 }
 0xe8d   : > { %v13230_v49 = vsub.f32 %v4520_v37, %v4553_v7  ;;  %v4554_v34 = vmul.f32 0.015625, %v4545_v58  ;;  %v4583_v48 = vsel %vm465_vm0, %v4567_v10, 0.0  ;;  %v4568_v13 = vmul.f32 %v13226_v19, %v13226_v19 }
 0xe8e   : > { %4584 = vadd.xlane.f32.xlu1 %v4583_v48 }
 0xe8f   : > { %v13235_v17 = vsub.f32 %v4521_v46, %v4554_v34  ;;  %v4586_v52 = vsel %vm465_vm0, %v4568_v13, 0.0  ;;  %v4569_v63 = vmul.f32 %v13230_v49, %v13230_v49  ;;  %10916 = vmatpush3.bf16.msra.mxu0 %v11553_v55 }
 0xe90   : > { %4587 = vadd.xlane.f32.xlu0 %v4586_v52  ;;  %10917 = vmatprep.subr.bf16.mxu0 %v11554_v9 }
 0xe91   : > { %v4589_v16 = vsel %vm465_vm0, %v4569_v63, 0.0  ;;  %v4570_v6 = vmul.f32 %v13235_v17, %v13235_v17 }
 0xe92   : > { %4590 = vadd.xlane.f32.xlu1 %v4589_v16 }
 0xe93   : > { %v4592_v59 = vsel %vm465_vm0, %v4570_v6, 0.0  ;;  %10918 = vmatpush3.bf16.msra.mxu0 %v11554_v9 }
 0xe94   : > { %4593 = vadd.xlane.f32.xlu0 %v4592_v59 }
 0xedd   : > { %v4573_v47 = vpop.xlane.xlu1 %4572 }
 0xede   : > { %v4595_v37 = vmul.f32 0.015625, %v4573_v47 }
 0xedf   : > { %v4576_v12 = vpop.xlane.xlu0 %4575 }
 0xee0   : > { %v4603_v25 = vadd.f32 1e-05, %v4595_v37  ;;  %v4596_v29 = vmul.f32 0.015625, %v4576_v12 }
 0xee1   : > { %v4579_v2 = vpop.xlane.xlu1 %4578 }
 0xee2   : > { %11717 = vrsqrt.f32 %v4603_v25  ;;  %v4604_v46 = vadd.f32 1e-05, %v4596_v29  ;;  %v4597_v27 = vmul.f32 0.015625, %v4579_v2 }
 0xee4   : > { %11719 = vrsqrt.f32 %v4604_v46  ;;  %v4605_v21 = vadd.f32 1e-05, %v4597_v27  ;;  %v14906_v46 = vmov 0   ;;  %v11556_v27 = vld [vmem:[%s14837_s6 + $0x38] sm:$0xff]  }
 0xee5   : > { %v4582_v35 = vpop.xlane.xlu0 %4581 }
 0xee6   : > { %11721 = vrsqrt.f32 %v4605_v21  ;;  %v4598_v15 = vmul.f32 0.015625, %v4582_v35  ;;  %v14860_v21 = vsub.s32 6, %v14895_v62 }
 0xee8   : > { %v4606_v54 = vadd.f32 1e-05, %v4598_v15  ;;  %v4666_v35 = vrot.slane %v13171_v38, %v14860_v21 }
 0xeea   : > { %11723 = vrsqrt.f32 %v4606_v54 }
 0xeec   : > { %v11718_v30 = vpop.eup %11717 }
 0xeed   : > { %v4619_v1 = vmul.f32 %v11718_v30, %v13192_v32 }
 0xeee   : > { %v11720_v41 = vpop.eup %11719 }
 0xeef   : > { %v4620_v24 = vmul.f32 %v11720_v41, %v13194_v33  ;;  %v4631_v45 = vmul.f32 %v4630_v26, %v4619_v1 }
 0xef0   : > { %v11722_v61 = vpop.eup %11721 }
 0xef1   : > { %v4621_v5 = vmul.f32 %v11722_v61, %v13198_v60  ;;  %v4632_v44 = vmul.f32 %v4630_v26, %v4620_v24  ;;  %v13277_v4 = vadd.f32 %v4642_v57, %v4631_v45 }
 0xef3   : > { %v13279_v3 = vadd.f32 %v4642_v57, %v4632_v44  ;;  %v4633_v56 = vmul.f32 %v4630_v26, %v4621_v5 }
 0xef4   : > { %v11724_v43 = vpop.eup %11723 }
 0xef5   : > { %v4622_v20 = vmul.f32 %v11724_v43, %v13206_v51  ;;  %v4651_v32 = vpack.c.bf16 %v13279_v3, %v13277_v4  ;;  %v13285_v53 = vadd.f32 %v4642_v57, %v4633_v56 }
 0xef7   : > { %v4634_v33 = vmul.f32 %v4630_v26, %v4622_v20  ;;  %10899 = vmatprep.mubr.msk.bf16.mxu1 %vm465_vm0, %v4651_v32 }
 0xef9   : > { %v13287_v18 = vadd.f32 %v4642_v57, %v4634_v33 }
 0xefb   : > { %v4652_v60 = vpack.c.bf16 %v13287_v18, %v13285_v53 }
 0xefd   : > { %10900 = vmatmul.mubr.msk.bf16.vlgmr.msra.gmra.mrb[144].mxu1 %vm465_vm0, %v4652_v60 }
 0xf1b   : > { %v4585_v11 = vpop.xlane.xlu1 %4584 }
 0xf1c   : > { %v4599_v39 = vmul.f32 0.015625, %v4585_v11 }
 0xf1d   : > { %v4588_v23 = vpop.xlane.xlu0 %4587 }
 0xf1e   : > { %v4607_v7 = vadd.f32 1e-05, %v4599_v39  ;;  %v4600_v51 = vmul.f32 0.015625, %v4588_v23 }
 0xf1f   : > { %v4591_v10 = vpop.xlane.xlu1 %4590 }
 0xf20   : > { %11725 = vrsqrt.f32 %v4607_v7  ;;  %v4608_v58 = vadd.f32 1e-05, %v4600_v51  ;;  %v4601_v34 = vmul.f32 0.015625, %v4591_v10 }
 0xf21   : > { %v4594_v48 = vpop.xlane.xlu0 %4593 }
 0xf22   : > { %11727 = vrsqrt.f32 %v4608_v58  ;;  %v4609_v13 = vadd.f32 1e-05, %v4601_v34  ;;  %v4602_v52 = vmul.f32 0.015625, %v4594_v48 }
 0xf24   : > { %11729 = vrsqrt.f32 %v4609_v13  ;;  %v4610_v63 = vadd.f32 1e-05, %v4602_v52  ;;  %v14859_v52 = vsub.s32 7, %v14895_v62 }
 0xf26   : > { %11731 = vrsqrt.f32 %v4610_v63  ;;  %v4799_v63 = vrot.slane %v13171_v38, %v14859_v52 }
 0xf2a   : > { %v11726_v16 = vpop.eup %11725 }
 0xf2b   : > { %v4623_v6 = vmul.f32 %v11726_v16, %v13224_v22 }
 0xf2c   : > { %v11728_v59 = vpop.eup %11727 }
 0xf2d   : > { %v4624_v8 = vmul.f32 %v11728_v59, %v13226_v19  ;;  %v4635_v14 = vmul.f32 %v4630_v26, %v4623_v6 }
 0xf2e   : > { %v11730_v31 = vpop.eup %11729 }
 0xf2f   : > { %v4636_v40 = vmul.f32 %v4630_v26, %v4624_v8  ;;  %v4625_v55 = vmul.f32 %v11730_v31, %v13230_v49  ;;  %v13295_v47 = vadd.f32 %v4642_v57, %v4635_v14 }
 0xf30   : > { %v11732_v9 = vpop.eup %11731 }
 0xf31   : > { %v13297_v37 = vadd.f32 %v4642_v57, %v4636_v40  ;;  %v4626_v12 = vmul.f32 %v11732_v9, %v13235_v17  ;;  %v4637_v25 = vmul.f32 %v4630_v26, %v4625_v55  ;;  %v11555_v17 = vld [vmem:[%s14837_s6 + $0x30] sm:$0xff]  }
 0xf32   : > { %10919 = vmatprep.subr.bf16.mxu0 %v11555_v17 }
 0xf33   : > { %v4653_v29 = vpack.c.bf16 %v13297_v37, %v13295_v47  ;;  %v4638_v22 = vmul.f32 %v4630_v26, %v4626_v12  ;;  %v13303_v19 = vadd.f32 %v4642_v57, %v4637_v25  ;;  %10920 = vmatpush3.bf16.msra.mxu0 %v11555_v17 }
 0xf34   : > { %10921 = vmatprep.subr.bf16.mxu0 %v11556_v27 }
 0xf35   : > { %10903 = vmatprep.mubr.msk.bf16.mxu1 %vm465_vm0, %v4653_v29  ;;  %v13305_v2 = vadd.f32 %v4642_v57, %v4638_v22 }
 0xf37   : > { %v4654_v49 = vpack.c.bf16 %v13305_v2, %v13303_v19  ;;  %10922 = vmatpush3.bf16.msra.mxu0 %v11556_v27 }
 0xf38   : > { %10931 = vmatprep.subr.bf16.mxu0 %v14889_v42 }
 0xf39   : > { %10904 = vmatmul.mubr.msk.bf16.gmra.mrb[148].mxu1 %vm465_vm0, %v4654_v49 }
 0xf3a   : > { %5154 = vmatprep.mubr.bf16.mxu1 %v14906_v46 }
 0xfd0   : > { %v10901_v15 = vpop.f32.mrb[144].mxu1 }
 0xfd1   : > { %v4746_v54 = vadd.f32 %v10901_v15, %v4666_v35  ;;  %v4737_v26 = vpop.f32.mrb[145].mxu1 }
 0xfd2   : > { %v4738_v30 = vadd.f32 %v4737_v26, %v4666_v35  ;;  %v10902_v1 = vpop.f32.mrb[146].mxu1 }
 0xfd3   : > { %v4749_v41 = vadd.f32 %v10902_v1, %v4666_v35  ;;  %v4740_v24 = vpop.f32.mrb[147].mxu1  ;;  %v4770_v57 = vmax.f32 %v4746_v54, 0.0 }
 0xfd4   : > { %v4741_v45 = vadd.f32 %v4740_v24, %v4666_v35  ;;  %v4768_v5 = vmax.f32 %v4738_v30, 0.0 }
 0xfd5   : > { %v4771_v61 = vmax.f32 %v4749_v41, 0.0 }
 0xfd6   : > { %v4769_v44 = vmax.f32 %v4741_v45, 0.0 }
 0xfd7   : > { %v4777_v43 = vpack.c.bf16 %v4771_v61, %v4770_v57 }
 0xfd8   : > { %v4776_v56 = vpack.c.bf16 %v4769_v44, %v4768_v5 }
 0xfda   : > { %10923 = vmatprep.mubr.bf16.mxu0 %v4776_v56 }
 0xfdb   : > { %10924 = vmatmul.mubr.bf16.vlgmr.msra.gmra.mrb[144].mxu0 %v4777_v43 }
0x100c   : > { %v10905_v20 = vpop.f32.mrb[148].mxu1 }
0x100d   : > { %v4762_v32 = vadd.f32 %v10905_v20, %v4666_v35  ;;  %v4753_v33 = vpop.f32.mrb[149].mxu1 }
0x100e   : > { %v4754_v60 = vadd.f32 %v4753_v33, %v4666_v35  ;;  %v10906_v11 = vpop.f32.mrb[150].mxu1 }
0x100f   : > { %v4765_v39 = vadd.f32 %v10906_v11, %v4666_v35  ;;  %v4756_v23 = vpop.f32.mrb[151].mxu1  ;;  %v4774_v51 = vmax.f32 %v4762_v32, 0.0 }
0x1010   : > { %v4757_v7 = vadd.f32 %v4756_v23, %v4666_v35  ;;  %v4772_v58 = vmax.f32 %v4754_v60, 0.0 }
0x1011   : > { %v4775_v10 = vmax.f32 %v4765_v39, 0.0 }
0x1012   : > { %v4773_v34 = vmax.f32 %v4757_v7, 0.0 }
0x1013   : > { %v4779_v48 = vpack.c.bf16 %v4775_v10, %v4774_v51 }
0x1014   : > { %v4778_v13 = vpack.c.bf16 %v4773_v34, %v4772_v58 }
0x1016   : > { %10927 = vmatprep.mubr.bf16.mxu0 %v4778_v13  ;;  %v11557_v13 = vld [vmem:[%s14834_s3 + $0x40] ss:$8 sps:$4 sm:$0xff]  }
0x1017   : > { %10928 = vmatmul.mubr.bf16.gmra.mrb[148].mxu0 %v4779_v48  ;;  %v11559_v48 = vld [vmem:[%s14834_s3 + $0x44] ss:$8 sps:$4 sm:$0xff]  }
0x1018   : > { %10933 = vmatprep.mubr.msk.bf16.mxu0 %vm11962_vm1, %v14889_v42  ;;  %5122 = vmatprep.subr.bf16.mxu1 %v11559_v48 }
0x1019   : > { %5123 = vmatpush1.bf16.msra.mxu1 %v11557_v13 }
0x10ae   : > { %v10925_v16 = vpop.f32.mrb[144].mxu0 }
0x10af   : > { %v4882_v6 = vpop.f32.mrb[145].mxu0  ;;  %v4891_v59 = vadd.f32 %v10925_v16, %v4799_v63  ;;  %v11560_v16 = vld [vmem:[%s14834_s3 + $0x50] ss:$8 sps:$4 sm:$0xff]  }
0x10b0   : > { %v4883_v8 = vadd.f32 %v4882_v6, %v4799_v63  ;;  %v10926_v14 = vpop.f32.mrb[146].mxu0  ;;  %v11565_v6 = vld [vmem:[%s14834_s3 + $0x64] ss:$8 sps:$4 sm:$0xff]  }
0x10b1   : > { %v4885_v31 = vpop.f32.mrb[147].mxu0  ;;  %v4894_v55 = vadd.f32 %v10926_v14, %v4799_v63  ;;  %v4915_v12 = vadd.f32 %v4891_v59, %v13285_v53  ;;  %v11563_v59 = vld [vmem:[%s14834_s3 + $0x60] ss:$8 sps:$4 sm:$0xff]   ;;  %v11568_v14 = vld [vmem:[%s14834_s3 + $0x74] ss:$8 sps:$4 sm:$0xff]  }
0x10b2   : > { %v4913_v40 = vadd.f32 %v4883_v8, %v13277_v4  ;;  %v4886_v9 = vadd.f32 %v4885_v31, %v4799_v63  ;;  %v11566_v8 = vld [vmem:[%s14834_s3 + $0x70] ss:$8 sps:$4 sm:$0xff]  }
0x10b3   : > { %v4916_v22 = vadd.f32 %v4894_v55, %v13287_v18  ;;  %v4927_v49 = vsel %vm465_vm0, %v4915_v12, 0.0 }
0x10b4   : > { %v4914_v25 = vadd.f32 %v4886_v9, %v13279_v3  ;;  %v4921_v29 = vsel %vm465_vm0, %v4913_v40, 0.0 }
0x10b5   : > { %4922 = vadd.xlane.f32.xlu1 %v4921_v29  ;;  %v4930_v17 = vsel %vm465_vm0, %v4916_v22, 0.0 }
0x10b6   : > { %v4924_v38 = vsel %vm465_vm0, %v4914_v25, 0.0 }
0x10b7   : > { %4925 = vadd.xlane.f32.xlu0 %v4924_v38 }
0x10b9   : > { %4928 = vadd.xlane.f32.xlu1 %v4927_v49 }
0x10bb   : > { %4931 = vadd.xlane.f32.xlu0 %v4930_v17 }
0x10ea   : > { %v10929_v4 = vpop.f32.mrb[148].mxu0 }
0x10eb   : > { %v4907_v27 = vadd.f32 %v10929_v4, %v4799_v63  ;;  %v4898_v35 = vpop.f32.mrb[149].mxu0 }
0x10ec   : > { %v4899_v53 = vadd.f32 %v4898_v35, %v4799_v63  ;;  %v10930_v15 = vpop.f32.mrb[150].mxu0 }
0x10ed   : > { %v4910_v3 = vadd.f32 %v10930_v15, %v4799_v63  ;;  %v4901_v54 = vpop.f32.mrb[151].mxu0  ;;  %v4919_v18 = vadd.f32 %v4907_v27, %v13303_v19 }
0x10ee   : > { %v4917_v26 = vadd.f32 %v4899_v53, %v13295_v47  ;;  %v4902_v30 = vadd.f32 %v4901_v54, %v4799_v63  ;;  %v11562_v63 = vld [vmem:[%s14834_s3 + $0x54] ss:$8 sps:$4 sm:$0xff]  }
0x10ef   : > { %v13341_v24 = vadd.f32 %v4910_v3, %v13305_v2  ;;  %v4939_v57 = vsel %vm465_vm0, %v4919_v18, 0.0  ;;  %5124 = vmatprep.subr.bf16.mxu1 %v11562_v63 }
0x10f0   : > { %v4918_v1 = vadd.f32 %v4902_v30, %v13297_v37  ;;  %v4933_v41 = vsel %vm465_vm0, %v4917_v26, 0.0  ;;  %5125 = vmatpush1.bf16.msra.mxu1 %v11560_v16 }
0x10f1   : > { %4934 = vadd.xlane.f32.xlu1 %v4933_v41  ;;  %v4942_v47 = vsel %vm465_vm0, %v13341_v24, 0.0  ;;  %5126 = vmatprep.subr.bf16.mxu1 %v11565_v6 }
0x10f2   : > { %v4936_v45 = vsel %vm465_vm0, %v4918_v1, 0.0 }
0x10f3   : > { %4937 = vadd.xlane.f32.xlu0 %v4936_v45 }
0x10f4   : > { %5127 = vmatpush1.bf16.msra.mxu1 %v11563_v59 }
0x10f5   : > { %4940 = vadd.xlane.f32.xlu1 %v4939_v57  ;;  %5128 = vmatprep.subr.bf16.mxu1 %v11568_v14 }
0x10f7   : > { %4943 = vadd.xlane.f32.xlu0 %v4942_v47 }
0x10f8   : > { %5129 = vmatpush1.bf16.msra.mxu1 %v11566_v8 }
0x10f9   : > { %10937 = vmatprep.subr.bf16.mxu1 %v14889_v42 }
0x1142   : > { %v4923_v61 = vpop.xlane.xlu1 %4922 }
0x1143   : > { %v4945_v19 = vmul.f32 0.015625, %v4923_v61 }
0x1144   : > { %v4926_v5 = vpop.xlane.xlu0 %4925 }
0x1145   : > { %v13347_v37 = vsub.f32 %v4913_v40, %v4945_v19  ;;  %v4946_v44 = vmul.f32 0.015625, %v4926_v5 }
0x1146   : > { %v4929_v43 = vpop.xlane.xlu1 %4928 }
0x1147   : > { %v13349_v56 = vsub.f32 %v4914_v25, %v4946_v44  ;;  %v4947_v2 = vmul.f32 0.015625, %v4929_v43  ;;  %v4961_v20 = vmul.f32 %v13347_v37, %v13347_v37 }
0x1148   : > { %v4932_v32 = vpop.xlane.xlu0 %4931 }
0x1149   : > { %v13353_v33 = vsub.f32 %v4915_v12, %v4947_v2  ;;  %v4948_v60 = vmul.f32 0.015625, %v4932_v32  ;;  %v4969_v11 = vsel %vm465_vm0, %v4961_v20, 0.0  ;;  %v4962_v39 = vmul.f32 %v13349_v56, %v13349_v56 }
0x114a   : > { %4970 = vadd.xlane.f32.xlu1 %v4969_v11  ;;  %v13414_v2 = vsub.s32 2, %v14895_v62  ;;  %v13419_v32 = vsub.s32 3, %v14895_v62 }
0x114b   : > { %v13358_v23 = vsub.f32 %v4916_v22, %v4948_v60  ;;  %v4972_v7 = vsel %vm465_vm0, %v4962_v39, 0.0  ;;  %v4963_v51 = vmul.f32 %v13353_v33, %v13353_v33 }
0x114c   : > { %4973 = vadd.xlane.f32.xlu0 %v4972_v7  ;;  %14907 = vst [vmem:[#allocation4_spill] sm:$0xff] %v13414_v2  ;;  %v5028_v20 = vrot.slane %v13265_v0, %v13414_v2  ;;  %14908 = vst [vmem:[#allocation7_spill] sm:$0xff] %v13419_v32  ;;  %v5040_v7 = vrot.slane %v13265_v0, %v13419_v32  ;;  %v14083_v32 = vld [vmem:[%s12253_s29 + $0x3] ss:$0 sm:$0xff] }
0x114d   : > { %v4975_v10 = vsel %vm465_vm0, %v4963_v51, 0.0  ;;  %v4964_v58 = vmul.f32 %v13358_v23, %v13358_v23 }
0x114e   : > { %4976 = vadd.xlane.f32.xlu1 %v4975_v10 }
0x114f   : > { %v4978_v34 = vsel %vm465_vm0, %v4964_v58, 0.0 }
0x1150   : > { %4979 = vadd.xlane.f32.xlu0 %v4978_v34 }
0x117e   : > { %v4935_v31 = vpop.xlane.xlu1 %4934 }
0x117f   : > { %v4949_v40 = vmul.f32 0.015625, %v4935_v31 }
0x1180   : > { %v4938_v55 = vpop.xlane.xlu0 %4937 }
0x1181   : > { %v13392_v9 = vsub.f32 %v4917_v26, %v4949_v40  ;;  %v4950_v12 = vmul.f32 0.015625, %v4938_v55 }
0x1182   : > { %v4941_v25 = vpop.xlane.xlu1 %4940 }
0x1183   : > { %v13394_v29 = vsub.f32 %v4918_v1, %v4950_v12  ;;  %v4951_v22 = vmul.f32 0.015625, %v4941_v25  ;;  %v4965_v38 = vmul.f32 %v13392_v9, %v13392_v9 }
0x1184   : > { %v4944_v49 = vpop.xlane.xlu0 %4943 }
0x1185   : > { %v13398_v17 = vsub.f32 %v4919_v18, %v4951_v22  ;;  %v4952_v4 = vmul.f32 0.015625, %v4944_v49  ;;  %v4981_v27 = vsel %vm465_vm0, %v4965_v38, 0.0  ;;  %v4966_v35 = vmul.f32 %v13394_v29, %v13394_v29 }
0x1186   : > { %4982 = vadd.xlane.f32.xlu1 %v4981_v27 }
0x1187   : > { %v13404_v53 = vsub.f32 %v13341_v24, %v4952_v4  ;;  %v4984_v15 = vsel %vm465_vm0, %v4966_v35, 0.0  ;;  %v4967_v3 = vmul.f32 %v13398_v17, %v13398_v17 }
0x1188   : > { %4985 = vadd.xlane.f32.xlu0 %v4984_v15 }
0x1189   : > { %v4987_v54 = vsel %vm465_vm0, %v4967_v3, 0.0  ;;  %v4968_v26 = vmul.f32 %v13404_v53, %v13404_v53 }
0x118a   : > { %4988 = vadd.xlane.f32.xlu1 %v4987_v54 }
0x118b   : > { %v4990_v30 = vsel %vm465_vm0, %v4968_v26, 0.0 }
0x118c   : > { %4991 = vadd.xlane.f32.xlu0 %v4990_v30 }
0x11d7   : > { %v4971_v18 = vpop.xlane.xlu1 %4970 }
0x11d8   : > { %v4993_v1 = vmul.f32 0.015625, %v4971_v18 }
0x11d9   : > { %v4974_v41 = vpop.xlane.xlu0 %4973 }
0x11da   : > { %v5001_v24 = vadd.f32 1e-05, %v4993_v1  ;;  %v4994_v45 = vmul.f32 0.015625, %v4974_v41 }
0x11db   : > { %v4977_v57 = vpop.xlane.xlu1 %4976 }
0x11dc   : > { %11733 = vrsqrt.f32 %v5001_v24  ;;  %v5002_v47 = vadd.f32 1e-05, %v4994_v45  ;;  %v4995_v61 = vmul.f32 0.015625, %v4977_v57 }
0x11dd   : > { %v4980_v19 = vpop.xlane.xlu0 %4979 }
0x11de   : > { %11735 = vrsqrt.f32 %v5002_v47  ;;  %v5003_v5 = vadd.f32 1e-05, %v4995_v61  ;;  %v4996_v44 = vmul.f32 0.015625, %v4980_v19 }
0x11e0   : > { %11737 = vrsqrt.f32 %v5003_v5  ;;  %v5004_v43 = vadd.f32 1e-05, %v4996_v44 }
0x11e2   : > { %11739 = vrsqrt.f32 %v5004_v43 }
0x11e6   : > { %v11734_v60 = vpop.eup %11733 }
0x11e7   : > { %v5017_v11 = vmul.f32 %v11734_v60, %v13347_v37 }
0x11e8   : > { %v11736_v39 = vpop.eup %11735 }
0x11e9   : > { %v5029_v51 = vmul.f32 %v5028_v20, %v5017_v11  ;;  %v5018_v10 = vmul.f32 %v11736_v39, %v13349_v56 }
0x11ea   : > { %v11738_v58 = vpop.eup %11737 }
0x11eb   : > { %v5030_v34 = vmul.f32 %v5028_v20, %v5018_v10  ;;  %v13425_v13 = vadd.f32 %v5040_v7, %v5029_v51  ;;  %v5019_v16 = vmul.f32 %v11738_v58, %v13353_v33 }
0x11ec   : > { %v11740_v48 = vpop.eup %11739 }
0x11ed   : > { %14909 = vst [vmem:[#allocation5_spill] sm:$0xff] %v13425_v13  ;;  %v13427_v63 = vadd.f32 %v5040_v7, %v5030_v34  ;;  %v5020_v6 = vmul.f32 %v11740_v48, %v13358_v23  ;;  %v5031_v8 = vmul.f32 %v5028_v20, %v5019_v16 }
0x11ef   : > { %14910 = vst [vmem:[#allocation6_spill] sm:$0xff] %v13427_v63  ;;  %v5049_v37 = vpack.c.bf16 %v13427_v63, %v13425_v13  ;;  %v5032_v59 = vmul.f32 %v5028_v20, %v5020_v6  ;;  %v13437_v14 = vadd.f32 %v5040_v7, %v5031_v8 }
0x11f1   : > { %10013 = vmatmul.mubr.msk.bf16.vlgmr.msra.gmra.mrb[152].mxu1 %vm465_vm0, %v5049_v37  ;;  %v13435_v56 = vadd.f32 %v5040_v7, %v5032_v59  ;;  %14912 = vst [vmem:[#allocation10_spill] sm:$0xff] %v13437_v14 }
0x11f2   : > { %5164 = vmatprep.mubr.bf16.mxu1 %v14906_v46 }
0x11f3   : > { %14911 = vst [vmem:[#allocation8_spill] sm:$0xff] %v13435_v56  ;;  %v5050_v31 = vpack.c.bf16 %v13435_v56, %v13437_v14 }
0x11f9   : > { %10014 = vmatmul.mubr.msk.bf16.gmra.mrb[156].mxu1 %vm465_vm0, %v5050_v31 }
0x11fa   : > { %5174 = vmatprep.mubr.bf16.mxu1 %v14906_v46 }
0x1213   : > { %v4983_v33 = vpop.xlane.xlu1 %4982 }
0x1214   : > { %v4997_v23 = vmul.f32 0.015625, %v4983_v33 }
0x1215   : > { %v4986_v40 = vpop.xlane.xlu0 %4985 }
0x1216   : > { %v5005_v55 = vadd.f32 1e-05, %v4997_v23  ;;  %v4998_v12 = vmul.f32 0.015625, %v4986_v40 }
0x1217   : > { %v4989_v25 = vpop.xlane.xlu1 %4988 }
0x1218   : > { %11741 = vrsqrt.f32 %v5005_v55  ;;  %v5006_v22 = vadd.f32 1e-05, %v4998_v12  ;;  %v4999_v38 = vmul.f32 0.015625, %v4989_v25 }
0x1219   : > { %v4992_v49 = vpop.xlane.xlu0 %4991 }
0x121a   : > { %11743 = vrsqrt.f32 %v5006_v22  ;;  %v5007_v4 = vadd.f32 1e-05, %v4999_v38  ;;  %v5000_v27 = vmul.f32 0.015625, %v4992_v49 }
0x121c   : > { %11745 = vrsqrt.f32 %v5007_v4  ;;  %v5008_v35 = vadd.f32 1e-05, %v5000_v27 }
0x121e   : > { %11747 = vrsqrt.f32 %v5008_v35 }
0x1222   : > { %v11742_v15 = vpop.eup %11741 }
0x1223   : > { %v5021_v3 = vmul.f32 %v11742_v15, %v13392_v9 }
0x1224   : > { %v11744_v54 = vpop.eup %11743 }
0x1225   : > { %v5022_v26 = vmul.f32 %v11744_v54, %v13394_v29  ;;  %v5033_v30 = vmul.f32 %v5028_v20, %v5021_v3 }
0x1226   : > { %v11746_v18 = vpop.eup %11745 }
0x1227   : > { %v5034_v1 = vmul.f32 %v5028_v20, %v5022_v26  ;;  %v13445_v24 = vadd.f32 %v5040_v7, %v5033_v30  ;;  %v5023_v57 = vmul.f32 %v11746_v18, %v13398_v17  ;;  %v14917_v17 = vld [vmem:[#allocation12_spill] sm:$0xff] }
0x1228   : > { %v11748_v41 = vpop.eup %11747 }
0x1229   : > { %14913 = vst [vmem:[#allocation9_spill] sm:$0xff] %v13445_v24  ;;  %v13447_v45 = vadd.f32 %v5040_v7, %v5034_v1  ;;  %v5024_v47 = vmul.f32 %v11748_v41, %v13404_v53  ;;  %v5035_v9 = vmul.f32 %v5028_v20, %v5023_v57  ;;  %v5065_v53 = vrot.slane %v13265_v0, %v14917_v17 }
0x122b   : > { %14914 = vst [vmem:[#allocation11_spill] sm:$0xff] %v13447_v45  ;;  %v5051_v61 = vpack.c.bf16 %v13447_v45, %v13445_v24  ;;  %v5036_v19 = vmul.f32 %v5028_v20, %v5024_v47  ;;  %v13457_v5 = vadd.f32 %v5040_v7, %v5035_v9  ;;  %v14103_v24 = vld [vmem:[%s12253_s29 + $0x7] ss:$0 sm:$0xff] }
0x122d   : > { %10015 = vmatmul.mubr.msk.bf16.gmra.mrb[160].mxu1 %vm465_vm0, %v5051_v61  ;;  %v13455_v29 = vadd.f32 %v5040_v7, %v5036_v19  ;;  %14916 = vst [vmem:[#allocation15_spill] sm:$0xff] %v13457_v5  ;;  %v359_v19 = vld [vmem:[%s14839_s8 + $0x18] sm:$0xff] }
0x122e   : > { %5184 = vmatprep.mubr.bf16.mxu1 %v14906_v46 }
0x122f   : > { %14915 = vst [vmem:[#allocation14_spill] sm:$0xff] %v13455_v29  ;;  %v5052_v44 = vpack.c.bf16 %v13455_v29, %v13457_v5 }
0x1235   : > { %10016 = vmatmul.mubr.msk.bf16.gmra.mrb[164].mxu1 %vm465_vm0, %v5052_v44 }
0x1236   : > { %10939 = vmatprep.mubr.msk.bf16.mxu1 %vm11962_vm1, %v14889_v42 }
0x12c4   : > { %v5156_v43 = vpop.f32.mrb[152].mxu1 }
0x12c5   : > { %v5157_v60 = vadd.f32 %v5156_v43, %v5065_v53  ;;  %v13466_v20 = vpop.f32.mrb[153].mxu1 }
0x12c6   : > { %v5160_v46 = vpop.f32.mrb[154].mxu1 }
0x12c7   : > { %v13468_v11 = vpack.c.bf16 %v5157_v60, %v5157_v60  ;;  %v5161_v39 = vadd.f32 %v5160_v46, %v5065_v53  ;;  %v13470_v7 = vpop.f32.mrb[155].mxu1 }
0x12c9   : > { %v13472_v51 = vpack.c.bf16 %v5161_v39, %v5161_v39  ;;  %5212 = vrot.lane.b32.xlu1 %v13468_v11, %s11963_s26 }
0x12cb   : > { %5261 = vrot.lane.b32.xlu0 %v13472_v51, %s11963_s26 }
0x12cc   : > { %v5166_v10 = vpop.f32.mrb[156].mxu1 }
0x12cd   : > { %v5167_v0 = vadd.f32 %v5166_v10, %v5065_v53  ;;  %v13478_v58 = vpop.f32.mrb[157].mxu1 }
0x12ce   : > { %v5170_v34 = vpop.f32.mrb[158].mxu1 }
0x12cf   : > { %v13480_v48 = vpack.c.bf16 %v5167_v0, %v5167_v0  ;;  %v5171_v16 = vadd.f32 %v5170_v34, %v5065_v53  ;;  %v13482_v6 = vpop.f32.mrb[159].mxu1 }
0x12d1   : > { %5310 = vrot.lane.b32.xlu1 %v13480_v48, %s11963_s26  ;;  %v13486_v37 = vpack.c.bf16 %v5171_v16, %v5171_v16 }
0x12d5   : > { %5359 = vrot.lane.b32.xlu1 %v13486_v37, %s11963_s26 }
0x1300   : > { %v5176_v59 = vpop.f32.mrb[160].mxu1 }
0x1301   : > { %v5177_v8 = vadd.f32 %v5176_v59, %v5065_v53  ;;  %v13490_v31 = vpop.f32.mrb[161].mxu1 }
0x1302   : > { %v5180_v33 = vpop.f32.mrb[162].mxu1 }
0x1303   : > { %v13492_v23 = vpack.c.bf16 %v5177_v8, %v5177_v8  ;;  %v5181_v40 = vadd.f32 %v5180_v33, %v5065_v53  ;;  %v13494_v55 = vpop.f32.mrb[163].mxu1 }
0x1305   : > { %v13496_v12 = vpack.c.bf16 %v5181_v40, %v5181_v40  ;;  %5408 = vrot.lane.b32.xlu0 %v13492_v23, %s11963_s26 }
0x1307   : > { %5457 = vrot.lane.b32.xlu1 %v13496_v12, %s11963_s26 }
0x1308   : > { %v5186_v25 = vpop.f32.mrb[164].mxu1 }
0x1309   : > { %v5187_v22 = vadd.f32 %v5186_v25, %v5065_v53  ;;  %v13502_v38 = vpop.f32.mrb[165].mxu1  ;;  %v13583_v25 = vld [vmem:[%s12253_s29] ss:$0 sm:$0xff] }
0x130a   : > { %v5190_v49 = vpop.f32.mrb[166].mxu1 }
0x130b   : > { %v13504_v4 = vpack.c.bf16 %v5187_v22, %v5187_v22  ;;  %v5191_v27 = vadd.f32 %v5190_v49, %v5065_v53  ;;  %v13506_v35 = vpop.f32.mrb[167].mxu1  ;;  %v13545_v53 = vrot.slane %v359_v19, %v14917_v17 }
0x130d   : > { %v13508_v15 = vpack.c.bf16 %v5191_v27, %v5191_v27  ;;  %5506 = vrot.lane.b32.xlu0 %v13504_v4, %s11963_s26  ;;  %v5159_v60 = vadd.f32 %v13466_v20, %v13545_v53  ;;  %v5163_v17 = vadd.f32 %v13470_v7, %v13545_v53 }
0x130f   : > { %5555 = vrot.lane.b32.xlu1 %v13508_v15, %s11963_s26  ;;  %v13563_v20 = vpack.c.bf16 %v5159_v60, %v5159_v60  ;;  %v13566_v0 = vpack.c.bf16 %v5163_v17, %v5163_v17 }
0x1311   : > { %v5719_v7 = vsel %vm1213_vm3, %v13563_v20, 0  ;;  %v5765_v34 = vsel %vm1213_vm3, %v13566_v0, 0 }
0x133b   : > { %v5213_v3 = vpop.permute.xlu1 %5212 }
0x133c   : > { %v5218_v54 = vsel %vm707_vm2, %v5213_v3, 0 }
0x133d   : > { %10932 = vmatpush3.bf16.xpose.msra.mxu0 %v5218_v54  ;;  %v5262_v26 = vpop.permute.xlu0 %5261 }
0x133e   : > { %v5267_v30 = vsel %vm707_vm2, %v5262_v26, 0  ;;  %10943 = vmatprep.subr.bf16.mxu0 %v14889_v42  ;;  %v13589_v26 = vld [vmem:[%s12253_s29 + $0x1] ss:$0 sm:$0xff] }
0x133f   : > { %10938 = vmatpush3.bf16.xpose.msra.mxu1 %v5267_v30 }
0x1340   : > { %10949 = vmatprep.subr.bf16.mxu1 %v14889_v42 }
0x1343   : > { %v5311_v18 = vpop.permute.xlu1 %5310 }
0x1344   : > { %v5316_v1 = vsel %vm707_vm2, %v5311_v18, 0  ;;  %10934 = vmatmul.mubr.msk.bf16.vlgmr.msra.gmra.mrb[152].mxu0 %vm707_vm2, %v13468_v11 }
0x1345   : > { %10944 = vmatpush3.bf16.xpose.msra.mxu0 %v5316_v1  ;;  %10945 = vmatprep.mubr.msk.bf16.mxu0 %vm11962_vm1, %v14889_v42 }
0x1346   : > { %10940 = vmatmul.mubr.msk.bf16.vlgmr.msra.gmra.mrb[168].mxu1 %vm707_vm2, %v13472_v51  ;;  %10955 = vmatprep.subr.bf16.mxu0 %v14889_v42 }
0x1347   : > { %v5360_v41 = vpop.permute.xlu1 %5359  ;;  %10951 = vmatprep.mubr.msk.bf16.mxu1 %vm11962_vm1, %v14889_v42 }
0x1348   : > { %v5365_v57 = vsel %vm707_vm2, %v5360_v41, 0 }
0x1349   : > { %10950 = vmatpush3.bf16.xpose.msra.mxu1 %v5365_v57 }
0x134a   : > { %10961 = vmatprep.subr.bf16.mxu1 %v14889_v42 }
0x134c   : > { %10946 = vmatmul.mubr.msk.bf16.vlgmr.msra.gmra.mrb[156].mxu0 %vm707_vm2, %v13480_v48 }
0x134d   : > { %10957 = vmatprep.mubr.msk.bf16.mxu0 %vm11962_vm1, %v14889_v42 }
0x1350   : > { %10952 = vmatmul.mubr.msk.bf16.vlgmr.msra.gmra.mrb[172].mxu1 %vm707_vm2, %v13486_v37 }
0x1351   : > { %10963 = vmatprep.mubr.msk.bf16.mxu1 %vm11962_vm1, %v14889_v42 }
0x1377   : > { %v5409_v47 = vpop.permute.xlu0 %5408 }
0x1378   : > { %v5414_v61 = vsel %vm707_vm2, %v5409_v47, 0 }
0x1379   : > { %v5458_v9 = vpop.permute.xlu1 %5457  ;;  %10956 = vmatpush3.bf16.xpose.msra.mxu0 %v5414_v61 }
0x137a   : > { %v5463_v44 = vsel %vm707_vm2, %v5458_v9, 0  ;;  %10967 = vmatprep.subr.bf16.mxu0 %v14889_v42  ;;  %v13599_v9 = vld [vmem:[%s12253_s29 + $0x2] ss:$0 sm:$0xff] }
0x137b   : > { %10962 = vmatpush3.bf16.xpose.msra.mxu1 %v5463_v44 }
0x137c   : > { %10973 = vmatprep.subr.bf16.mxu1 %v14889_v42 }
0x137f   : > { %v5507_v43 = vpop.permute.xlu0 %5506 }
0x1380   : > { %v5512_v46 = vsel %vm707_vm2, %v5507_v43, 0  ;;  %10958 = vmatmul.mubr.msk.bf16.vlgmr.msra.gmra.mrb[160].mxu0 %vm707_vm2, %v13492_v23 }
0x1381   : > { %v5556_v39 = vpop.permute.xlu1 %5555  ;;  %10968 = vmatpush3.bf16.xpose.msra.mxu0 %v5512_v46  ;;  %10969 = vmatprep.mubr.msk.bf16.mxu0 %vm11962_vm1, %v14889_v42 }
0x1382   : > { %v5561_v10 = vsel %vm707_vm2, %v5556_v39, 0  ;;  %10964 = vmatmul.mubr.msk.bf16.vlgmr.msra.gmra.mrb[176].mxu1 %vm707_vm2, %v13496_v12  ;;  %10979 = vmatprep.subr.bf16.mxu0 %v14889_v42 }
0x1383   : > { %10974 = vmatpush3.bf16.xpose.msra.mxu1 %v5561_v10  ;;  %10975 = vmatprep.mubr.msk.bf16.mxu1 %vm11962_vm1, %v14889_v42 }
0x1384   : > { %10985 = vmatprep.subr.bf16.mxu1 %v14889_v42 }
0x1388   : > { %10970 = vmatmul.mubr.msk.bf16.vlgmr.msra.gmra.mrb[164].mxu0 %vm707_vm2, %v13504_v4 }
0x1389   : > { %10980 = vmatpush3.bf16.msra.mxu0 %v5719_v7  ;;  %10981 = vmatprep.mubr.msk.bf16.mxu0 %vm11962_vm1, %v14889_v42  ;;  %v13604_v7 = vld [vmem:[%s12253_s29 + $0x3] ss:$0 sm:$0xff] }
0x138a   : > { %10976 = vmatmul.mubr.msk.bf16.vlgmr.msra.gmra.mrb[180].mxu1 %vm707_vm2, %v13508_v15  ;;  %10991 = vmatprep.subr.bf16.mxu0 %v14889_v42 }
0x138b   : > { %10986 = vmatpush3.bf16.msra.mxu1 %v5765_v34  ;;  %10987 = vmatprep.mubr.msk.bf16.mxu1 %vm11962_vm1, %v14889_v42 }
0x138c   : > { %10997 = vmatprep.subr.bf16.mxu1 %v14889_v42 }
0x1417   : > { %v5254_v16 = vpop.f32.mrb[152].mxu0 }
0x1418   : > { %v5603_v59 = vmul.f32 0.25, %v5254_v16  ;;  %v10935_v8 = vpop.f32.mrb[153].mxu0 }
0x1419   : > { %v5257_v33 = vpop.f32.mrb[154].mxu0  ;;  %v5303_v40 = vpop.f32.mrb[168].mxu1 }
0x141a   : > { %v13586_v22 = vadd.f32 %v13583_v25, %v5603_v59  ;;  %v5604_v49 = vmul.f32 0.25, %v5303_v40  ;;  %v10936_v27 = vpop.f32.mrb[155].mxu0  ;;  %v10941_v3 = vpop.f32.mrb[169].mxu1 }
0x141b   : > { %v5306_v54 = vpop.f32.mrb[170].mxu1  ;;  %v13609_v3 = vld [vmem:[%s12253_s29 + $0x4] ss:$0 sm:$0xff] }
0x141c   : > { %v13592_v30 = vadd.f32 %v13589_v26, %v5604_v49  ;;  %v10942_v18 = vpop.f32.mrb[171].mxu1  ;;  %v5619_v1 = vsel %vm1113_vm4, %v13586_v22, -inf }
0x141d   : > { %5620 = vmax.xlane.f32.xlu0 %v5619_v1 }
0x141e   : > { %v5622_v41 = vsel %vm1113_vm4, %v13592_v30, -inf }
0x141f   : > { %v5352_v57 = vpop.f32.mrb[156].mxu0  ;;  %5623 = vmax.xlane.f32.xlu1 %v5622_v41 }
0x1420   : > { %v5605_v47 = vmul.f32 0.25, %v5352_v57  ;;  %v10947_v61 = vpop.f32.mrb[157].mxu0 }
0x1421   : > { %v5355_v19 = vpop.f32.mrb[158].mxu0 }
0x1422   : > { %v5613_v44 = vadd.f32 %v13599_v9, %v5605_v47  ;;  %v10948_v43 = vpop.f32.mrb[159].mxu0  ;;  %v13613_v47 = vld [vmem:[%s12253_s29 + $0x5] ss:$0 sm:$0xff] }
0x1423   : > { %v5401_v60 = vpop.f32.mrb[172].mxu1 }
0x1424   : > { %v5606_v46 = vmul.f32 0.25, %v5401_v60  ;;  %v10953_v39 = vpop.f32.mrb[173].mxu1  ;;  %v5625_v17 = vsel %vm1113_vm4, %v5613_v44, -inf }
0x1425   : > { %5626 = vmax.xlane.f32.xlu0 %v5625_v17  ;;  %v5404_v10 = vpop.f32.mrb[174].mxu1 }
0x1426   : > { %v5614_v34 = vadd.f32 %v13604_v7, %v5606_v46  ;;  %v10954_v16 = vpop.f32.mrb[175].mxu1 }
0x1428   : > { %v5628_v59 = vsel %vm1113_vm4, %v5614_v34, -inf }
0x1429   : > { %5629 = vmax.xlane.f32.xlu0 %v5628_v59  ;;  %v13619_v59 = vld [vmem:[%s12253_s29 + $0x6] ss:$0 sm:$0xff] }
0x1453   : > { %v5450_v8 = vpop.f32.mrb[160].mxu0 }
0x1454   : > { %v5607_v33 = vmul.f32 0.25, %v5450_v8  ;;  %v10959_v40 = vpop.f32.mrb[161].mxu0 }
0x1455   : > { %v5453_v49 = vpop.f32.mrb[162].mxu0  ;;  %v5499_v27 = vpop.f32.mrb[176].mxu1 }
0x1456   : > { %v5615_v54 = vadd.f32 %v13609_v3, %v5607_v33  ;;  %v5608_v18 = vmul.f32 0.25, %v5499_v27  ;;  %v10960_v1 = vpop.f32.mrb[163].mxu0  ;;  %v10965_v41 = vpop.f32.mrb[177].mxu1 }
0x1457   : > { %v5502_v57 = vpop.f32.mrb[178].mxu1 }
0x1458   : > { %v5616_v61 = vadd.f32 %v13613_v47, %v5608_v18  ;;  %v10966_v19 = vpop.f32.mrb[179].mxu1  ;;  %v5631_v43 = vsel %vm1113_vm4, %v5615_v54, -inf  ;;  %v13625_v18 = vld [vmem:[%s12253_s29 + $0x7] ss:$0 sm:$0xff] }
0x1459   : > { %5632 = vmax.xlane.f32.xlu1 %v5631_v43 }
0x145a   : > { %v5634_v60 = vsel %vm1113_vm4, %v5616_v61, -inf }
0x145b   : > { %5635 = vmax.xlane.f32.xlu0 %v5634_v60  ;;  %v5548_v46 = vpop.f32.mrb[164].mxu0 }
0x145c   : > { %v5609_v39 = vmul.f32 0.25, %v5548_v46  ;;  %v10971_v17 = vpop.f32.mrb[165].mxu0 }
0x145d   : > { %v5551_v10 = vpop.f32.mrb[166].mxu0  ;;  %v5597_v16 = vpop.f32.mrb[180].mxu1 }
0x145e   : > { %v13622_v8 = vadd.f32 %v13619_v59, %v5609_v39  ;;  %v5610_v33 = vmul.f32 0.25, %v5597_v16  ;;  %v10972_v40 = vpop.f32.mrb[167].mxu0  ;;  %v10977_v49 = vpop.f32.mrb[181].mxu1 }
0x145f   : > { %v5600_v27 = vpop.f32.mrb[182].mxu1 }
0x1460   : > { %v5618_v1 = vadd.f32 %v13625_v18, %v5610_v33  ;;  %v10978_v41 = vpop.f32.mrb[183].mxu1  ;;  %v5637_v57 = vsel %vm1113_vm4, %v13622_v8, -inf }
0x1461   : > { %5638 = vmax.xlane.f32.xlu1 %v5637_v57 }
0x1462   : > { %v5640_v19 = vsel %vm1113_vm4, %v5618_v1, -inf }
0x1463   : > { %5641 = vmax.xlane.f32.xlu0 %v5640_v19 }
0x14aa   : > { %v5621_v43 = vpop.xlane.xlu0 %5620 }
0x14ab   : > { %v5643_v60 = vsub.f32 %v13586_v22, %v5621_v43 }
0x14ac   : > { %v5624_v46 = vpop.xlane.xlu1 %5623 }
0x14ad   : > { %v5651_v39 = vmul.f32 1.442695, %v5643_v60  ;;  %v5644_v17 = vsub.f32 %v13592_v30, %v5624_v46 }
0x14af   : > { %11749 = vpow2.f32 %v5651_v39  ;;  %v5653_v10 = vmul.f32 1.442695, %v5644_v17 }
0x14b1   : > { %11751 = vpow2.f32 %v5653_v10 }
0x14b2   : > { %v5627_v16 = vpop.xlane.xlu0 %5626 }
0x14b3   : > { %v5645_v33 = vsub.f32 %v5613_v44, %v5627_v16 }
0x14b5   : > { %v5655_v40 = vmul.f32 1.442695, %v5645_v33 }
0x14b6   : > { %v5630_v49 = vpop.xlane.xlu0 %5629 }
0x14b7   : > { %11753 = vpow2.f32 %v5655_v40  ;;  %v5646_v27 = vsub.f32 %v5614_v34, %v5630_v49 }
0x14b9   : > { %v13633_v41 = vpop.eup %11749  ;;  %v5657_v57 = vmul.f32 1.442695, %v5646_v27 }
0x14ba   : > { %v5667_v19 = vsel %vm1113_vm4, %v13633_v41, 0.0 }
0x14bb   : > { %v13637_v22 = vpop.eup %11751  ;;  %11755 = vpow2.f32 %v5657_v57  ;;  %5668 = vadd.xlane.f32.xlu1 %v5667_v19 }
0x14bc   : > { %v5670_v30 = vsel %vm1113_vm4, %v13637_v22, 0.0 }
0x14bd   : > { %5671 = vadd.xlane.f32.xlu0 %v5670_v30 }
0x14c1   : > { %v13641_v43 = vpop.eup %11753 }
0x14c2   : > { %v5673_v44 = vsel %vm1113_vm4, %v13641_v43, 0.0 }
0x14c3   : > { %5674 = vadd.xlane.f32.xlu1 %v5673_v44 }
0x14c5   : > { %v13645_v34 = vpop.eup %11755 }
0x14c6   : > { %v5676_v60 = vsel %vm1113_vm4, %v13645_v34, 0.0 }
0x14c7   : > { %5677 = vadd.xlane.f32.xlu0 %v5676_v60 }
0x14e6   : > { %v5633_v46 = vpop.xlane.xlu1 %5632 }
0x14e7   : > { %v5647_v39 = vsub.f32 %v5615_v54, %v5633_v46 }
0x14e8   : > { %v5636_v17 = vpop.xlane.xlu0 %5635 }
0x14e9   : > { %v5659_v10 = vmul.f32 1.442695, %v5647_v39  ;;  %v5648_v16 = vsub.f32 %v5616_v61, %v5636_v17 }
0x14eb   : > { %11757 = vpow2.f32 %v5659_v10  ;;  %v5661_v33 = vmul.f32 1.442695, %v5648_v16  ;;  %v5169_v16 = vadd.f32 %v13478_v58, %v13545_v53 }
0x14ed   : > { %11759 = vpow2.f32 %v5661_v33 }
0x14f0   : > { %v5642_v40 = vpop.xlane.xlu0 %5641 }
0x14f1   : > { %v5650_v49 = vsub.f32 %v5618_v1, %v5642_v40  ;;  %v5639_v1 = vpop.xlane.xlu1 %5638  ;;  %v5173_v40 = vadd.f32 %v13482_v6, %v13545_v53  ;;  %v5179_v6 = vadd.f32 %v13490_v31, %v13545_v53 }
0x14f2   : > { %v5649_v60 = vsub.f32 %v13622_v8, %v5639_v1 }
0x14f3   : > { %v5665_v27 = vmul.f32 1.442695, %v5650_v49  ;;  %v13703_v1 = vpack.c.bf16 %v5173_v40, %v5173_v40  ;;  %v13721_v31 = vpack.c.bf16 %v5179_v6, %v5179_v6 }
0x14f4   : > { %v5663_v46 = vmul.f32 1.442695, %v5649_v60 }
0x14f5   : > { %v13649_v57 = vpop.eup %11757  ;;  %11761 = vpow2.f32 %v5665_v27  ;;  %v13700_v27 = vpack.c.bf16 %v5169_v16, %v5169_v16 }
0x14f6   : > { %v5679_v19 = vsel %vm1113_vm4, %v13649_v57, 0.0  ;;  %11763 = vpow2.f32 %v5663_v46 }
0x14f7   : > { %v13653_v30 = vpop.eup %11759  ;;  %5680 = vadd.xlane.f32.xlu1 %v5679_v19  ;;  %v5811_v46 = vsel %vm1213_vm3, %v13700_v27, 0 }
0x14f8   : > { %v5682_v54 = vsel %vm1113_vm4, %v13653_v30, 0.0 }
0x14f9   : > { %5683 = vadd.xlane.f32.xlu0 %v5682_v54 }
0x14ff   : > { %v13657_v61 = vpop.eup %11761 }
0x1500   : > { %v5688_v44 = vsel %vm1113_vm4, %v13657_v61, 0.0  ;;  %v13674_v39 = vpop.eup %11763 }
0x1501   : > { %5689 = vadd.xlane.f32.xlu0 %v5688_v44  ;;  %v5685_v8 = vsel %vm1113_vm4, %v13674_v39, 0.0 }
0x1508   : > { %6085 = vrot.lane.b32.xlu1 %v13468_v11, %s11964_s10 }
0x1517   : > { %6135 = vrot.lane.b32.xlu0 %v13472_v51, %s11964_s10 }
0x151b   : > { %6185 = vrot.lane.b32.xlu0 %v13480_v48, %s11964_s10 }
0x151f   : > { %6183 = vrot.lane.b32.xlu0 %v13480_v48, %s11965_s11 }
0x1523   : > { %6285 = vrot.lane.b32.xlu0 %v13492_v23, %s11964_s10 }
0x1527   : > { %6283 = vrot.lane.b32.xlu0 %v13492_v23, %s11965_s11 }
0x152b   : > { %6385 = vrot.lane.b32.xlu0 %v13504_v4, %s11964_s10 }
0x152c   : > { %5686 = vadd.xlane.f32.xlu1 %v5685_v8 }
0x152f   : > { %6383 = vrot.lane.b32.xlu0 %v13504_v4, %s11965_s11 }
0x1533   : > { %6645 = vrot.lane.b32.xlu0 %v13566_v0, %s11965_s11 }
0x153d   : > { %6083 = vrot.lane.b32.xlu1 %v13468_v11, %s11965_s11 }
0x1541   : > { %6133 = vrot.lane.b32.xlu1 %v13472_v51, %s11965_s11 }
0x1545   : > { %6235 = vrot.lane.b32.xlu1 %v13486_v37, %s11964_s10 }
0x1548   : > { %v5669_v17 = vpop.xlane.xlu1 %5668 }
0x1549   : > { %11765 = vrcp.f32 %v5669_v17  ;;  %6233 = vrot.lane.b32.xlu1 %v13486_v37, %s11965_s11  ;;  %v5183_v17 = vadd.f32 %v13494_v55, %v13545_v53 }
0x154a   : > { %v5672_v10 = vpop.xlane.xlu0 %5671 }
0x154b   : > { %11767 = vrcp.f32 %v5672_v10  ;;  %v13731_v40 = vpack.c.bf16 %v5183_v17, %v5183_v17 }
0x154d   : > { %6335 = vrot.lane.b32.xlu1 %v13496_v12, %s11964_s10 }
0x1550   : > { %v5675_v33 = vpop.xlane.xlu1 %5674 }
0x1551   : > { %11769 = vrcp.f32 %v5675_v33  ;;  %6333 = vrot.lane.b32.xlu1 %v13496_v12, %s11965_s11 }
0x1553   : > { %v11766_v49 = vpop.eup %11765 }
0x1554   : > { %v5678_v19 = vpop.xlane.xlu0 %5677  ;;  %v5699_v54 = vmul.f32 %v11766_v49, %v13633_v41  ;;  %v5857_v41 = vsel %vm1213_vm3, %v13703_v1, 0  ;;  %v5903_v49 = vsel %vm1213_vm3, %v13721_v31, 0 }
0x1555   : > { %v11768_v44 = vpop.eup %11767  ;;  %11771 = vrcp.f32 %v5678_v19  ;;  %6435 = vrot.lane.b32.xlu1 %v13508_v15, %s11964_s10  ;;  %v5949_v19 = vsel %vm1213_vm3, %v13731_v40, 0 }
0x1556   : > { %v5707_v58 = vpack.c.bf16 %v5699_v54, %v5699_v54  ;;  %v5700_v60 = vmul.f32 %v11768_v44, %v13637_v22  ;;  %v5189_v44 = vadd.f32 %v13502_v38, %v13545_v53 }
0x1558   : > { %10982 = vmatmul.mubr.msk.bf16.vlgmr.msra.gmra.mrb[168].mxu0 %vm1113_vm4, %v5707_v58  ;;  %v5708_v8 = vpack.c.bf16 %v5700_v60, %v5700_v60  ;;  %v5193_v58 = vadd.f32 %v13506_v35, %v13545_v53 }
0x1559   : > { %10992 = vmatpush3.bf16.msra.mxu0 %v5811_v46  ;;  %10993 = vmatprep.mubr.msk.bf16.mxu0 %vm11962_vm1, %v14889_v42  ;;  %v13754_v46 = vpack.c.bf16 %v5189_v44, %v5189_v44 }
0x155a   : > { %6433 = vrot.lane.b32.xlu1 %v13508_v15, %s11965_s11  ;;  %10988 = vmatmul.mubr.msk.bf16.vlgmr.msra.gmra.mrb[184].mxu1 %vm1113_vm4, %v5708_v8 }
0x155b   : > { %v11770_v22 = vpop.eup %11769  ;;  %10998 = vmatpush3.bf16.msra.mxu1 %v5857_v41  ;;  %11003 = vmatprep.subr.bf16.mxu0 %v14889_v42  ;;  %v5995_v38 = vsel %vm1213_vm3, %v13754_v46, 0 }
0x155c   : > { %v5701_v10 = vmul.f32 %v11770_v22, %v13641_v43  ;;  %10999 = vmatprep.mubr.msk.bf16.mxu1 %vm11962_vm1, %v14889_v42  ;;  %11009 = vmatprep.subr.bf16.mxu1 %v14889_v42  ;;  %v13757_v22 = vpack.c.bf16 %v5193_v58, %v5193_v58 }
0x155e   : > { %6596 = vrot.lane.b32.xlu1 %v13563_v20, %s11965_s11  ;;  %v5709_v16 = vpack.c.bf16 %v5701_v10, %v5701_v10  ;;  %v6041_v35 = vsel %vm1213_vm3, %v13757_v22, 0 }
0x155f   : > { %v11772_v33 = vpop.eup %11771 }
0x1560   : > { %10994 = vmatmul.mubr.msk.bf16.vlgmr.msra.gmra.mrb[172].mxu0 %vm1113_vm4, %v5709_v16  ;;  %v5702_v55 = vmul.f32 %v11772_v33, %v13645_v34 }
0x1561   : > { %11004 = vmatpush3.bf16.msra.mxu0 %v5903_v49  ;;  %11005 = vmatprep.mubr.msk.bf16.mxu0 %vm11962_vm1, %v14889_v42 }
0x1562   : > { %6694 = vrot.lane.b32.xlu1 %v13700_v27, %s11965_s11  ;;  %v5710_v43 = vpack.c.bf16 %v5702_v55, %v5702_v55  ;;  %11015 = vmatprep.subr.bf16.mxu0 %v14889_v42 }
0x1564   : > { %11000 = vmatmul.mubr.msk.bf16.vlgmr.msra.gmra.mrb[188].mxu1 %vm1113_vm4, %v5710_v43 }
0x1565   : > { %11010 = vmatpush3.bf16.msra.mxu1 %v5949_v19  ;;  %11011 = vmatprep.mubr.msk.bf16.mxu1 %vm11962_vm1, %v14889_v42 }
0x1566   : > { %6743 = vrot.lane.b32.xlu1 %v13703_v1, %s11965_s11  ;;  %11021 = vmatprep.subr.bf16.mxu1 %v14889_v42 }
0x1584   : > { %v5681_v34 = vpop.xlane.xlu1 %5680 }
0x1585   : > { %11773 = vrcp.f32 %v5681_v34 }
0x1586   : > { %v5684_v54 = vpop.xlane.xlu0 %5683 }
0x1587   : > { %11775 = vrcp.f32 %v5684_v54 }
0x1588   : > { %v6086_v55 = vpop.permute.xlu1 %6085 }
0x158e   : > { %v5690_v60 = vpop.xlane.xlu0 %5689 }
0x158f   : > { %v11774_v6 = vpop.eup %11773  ;;  %11777 = vrcp.f32 %v5690_v60 }
0x1590   : > { %v5703_v8 = vmul.f32 %v11774_v6, %v13649_v57 }
0x1591   : > { %v11776_v41 = vpop.eup %11775 }
0x1592   : > { %v5711_v17 = vpack.c.bf16 %v5703_v8, %v5703_v8  ;;  %v5704_v10 = vmul.f32 %v11776_v41, %v13653_v30  ;;  %v6136_v30 = vpop.permute.xlu0 %6135 }
0x1593   : > { %v6141_v49 = vsel %vm707_vm2, %v6136_v30, 0 }
0x1594   : > { %11006 = vmatmul.mubr.msk.bf16.vlgmr.msra.gmra.mrb[176].mxu0 %vm1113_vm4, %v5711_v17  ;;  %v5712_v16 = vpack.c.bf16 %v5704_v10, %v5704_v10  ;;  %v6091_v17 = vsel %vm707_vm2, %v6086_v55, 0 }
0x1595   : > { %11016 = vmatpush3.bf16.msra.mxu0 %v5995_v38  ;;  %11017 = vmatprep.mubr.msk.bf16.mxu0 %vm11962_vm1, %v14889_v42 }
0x1596   : > { %11012 = vmatmul.mubr.msk.bf16.vlgmr.msra.gmra.mrb[192].mxu1 %vm1113_vm4, %v5712_v16  ;;  %11027 = vmatprep.subr.bf16.mxu0 %v14889_v42  ;;  %v6186_v43 = vpop.permute.xlu0 %6185 }
0x1597   : > { %11022 = vmatpush3.bf16.msra.mxu1 %v6041_v35  ;;  %11023 = vmatprep.mubr.msk.bf16.mxu1 %vm11962_vm1, %v14889_v42 }
0x1598   : > { %11033 = vmatprep.subr.bf16.mxu1 %v14889_v42 }
0x1599   : > { %v11778_v53 = vpop.eup %11777 }
0x159a   : > { %v5706_v57 = vmul.f32 %v11778_v53, %v13657_v61  ;;  %v6184_v34 = vpop.permute.xlu0 %6183  ;;  %v6191_v53 = vsel %vm707_vm2, %v6186_v43, 0 }
0x159c   : > { %v5714_v33 = vpack.c.bf16 %v5706_v57, %v5706_v57 }
0x159e   : > { %11024 = vmatmul.mubr.msk.bf16.vlgmr.msra.gmra.mrb[196].mxu1 %vm1113_vm4, %v5714_v33  ;;  %v6286_v61 = vpop.permute.xlu0 %6285 }
0x159f   : > { %11035 = vmatprep.mubr.msk.bf16.mxu1 %vm11962_vm1, %v14889_v42  ;;  %v6291_v55 = vsel %vm707_vm2, %v6286_v61, 0 }
0x15a0   : > { %11034 = vmatpush3.bf16.xpose.msra.mxu1 %v6141_v49 }
0x15a1   : > { %11045 = vmatprep.subr.bf16.mxu1 %v14889_v42 }
0x15a2   : > { %v6284_v10 = vpop.permute.xlu0 %6283 }
0x15a6   : > { %v6386_v35 = vpop.permute.xlu0 %6385 }
0x15aa   : > { %v6384_v30 = vpop.permute.xlu0 %6383 }
0x15ae   : > { %v6646_v43 = vpop.permute.xlu0 %6645 }
0x15b9   : > { %v5687_v19 = vpop.xlane.xlu1 %5686 }
0x15ba   : > { %11779 = vrcp.f32 %v5687_v19 }
0x15bd   : > { %v6084_v54 = vpop.permute.xlu1 %6083 }
0x15c1   : > { %v6134_v44 = vpop.permute.xlu1 %6133 }
0x15c2   : > { %11036 = vmatmul.mubr.msk.bf16.vlgmr.msra.gmra.mrb[200].mxu1 %vm707_vm2, %v6134_v44 }
0x15c3   : > { %11047 = vmatprep.mubr.msk.bf16.mxu1 %vm11962_vm1, %v14889_v42 }
0x15c4   : > { %v11780_v58 = vpop.eup %11779 }
0x15c5   : > { %v6236_v60 = vpop.permute.xlu1 %6235  ;;  %v5705_v6 = vmul.f32 %v11780_v58, %v13674_v39 }
0x15c6   : > { %v6241_v8 = vsel %vm707_vm2, %v6236_v60, 0 }
0x15c7   : > { %11046 = vmatpush3.bf16.xpose.msra.mxu1 %v6241_v8  ;;  %v5713_v41 = vpack.c.bf16 %v5705_v6, %v5705_v6 }
0x15c8   : > { %11057 = vmatprep.subr.bf16.mxu1 %v14889_v42 }
0x15c9   : > { %11018 = vmatmul.mubr.msk.bf16.vlgmr.msra.gmra.mrb[180].mxu0 %vm1113_vm4, %v5713_v41  ;;  %v6234_v38 = vpop.permute.xlu1 %6233 }
0x15ca   : > { %11028 = vmatpush3.bf16.xpose.msra.mxu0 %v6091_v17  ;;  %11029 = vmatprep.mubr.msk.bf16.mxu0 %vm11962_vm1, %v14889_v42 }
0x15cb   : > { %11039 = vmatprep.subr.bf16.mxu0 %v14889_v42 }
0x15cd   : > { %v6336_v16 = vpop.permute.xlu1 %6335 }
0x15ce   : > { %v6341_v39 = vsel %vm707_vm2, %v6336_v16, 0  ;;  %11048 = vmatmul.mubr.msk.bf16.vlgmr.msra.gmra.mrb[204].mxu1 %vm707_vm2, %v6234_v38 }
0x15cf   : > { %11058 = vmatpush3.bf16.xpose.msra.mxu1 %v6341_v39  ;;  %11059 = vmatprep.mubr.msk.bf16.mxu1 %vm11962_vm1, %v14889_v42 }
0x15d0   : > { %11069 = vmatprep.subr.bf16.mxu1 %v14889_v42 }
0x15d1   : > { %11030 = vmatmul.mubr.msk.bf16.vlgmr.msra.gmra.mrb[184].mxu0 %vm707_vm2, %v6084_v54  ;;  %v6334_v57 = vpop.permute.xlu1 %6333  ;;  %v6651_v54 = vsel %vm1213_vm3, %v6646_v43, 0 }
0x15d2   : > { %11040 = vmatpush3.bf16.xpose.msra.mxu0 %v6191_v53  ;;  %11041 = vmatprep.mubr.msk.bf16.mxu0 %vm11962_vm1, %v14889_v42 }
0x15d3   : > { %11051 = vmatprep.subr.bf16.mxu0 %v14889_v42 }
0x15d5   : > { %v6436_v33 = vpop.permute.xlu1 %6435 }
0x15d6   : > { %v6441_v49 = vsel %vm707_vm2, %v6436_v33, 0  ;;  %11060 = vmatmul.mubr.msk.bf16.vlgmr.msra.gmra.mrb[208].mxu1 %vm707_vm2, %v6334_v57 }
0x15d7   : > { %11070 = vmatpush3.bf16.xpose.msra.mxu1 %v6441_v49  ;;  %11071 = vmatprep.mubr.msk.bf16.mxu1 %vm11962_vm1, %v14889_v42 }
0x15d8   : > { %11081 = vmatprep.subr.bf16.mxu1 %v14889_v42 }
0x15d9   : > { %11042 = vmatmul.mubr.msk.bf16.vlgmr.msra.gmra.mrb[188].mxu0 %vm707_vm2, %v6184_v34  ;;  %v6434_v19 = vpop.permute.xlu1 %6433  ;;  %v6391_v34 = vsel %vm707_vm2, %v6386_v35, 0 }
0x15da   : > { %11052 = vmatpush3.bf16.xpose.msra.mxu0 %v6291_v55  ;;  %11053 = vmatprep.mubr.msk.bf16.mxu0 %vm11962_vm1, %v14889_v42 }
0x15db   : > { %11063 = vmatprep.subr.bf16.mxu0 %v14889_v42 }
0x15dd   : > { %v6597_v44 = vpop.permute.xlu1 %6596 }
0x15de   : > { %11072 = vmatmul.mubr.msk.bf16.vlgmr.msra.gmra.mrb[212].mxu1 %vm707_vm2, %v6434_v19  ;;  %v6602_v61 = vsel %vm1213_vm3, %v6597_v44, 0 }
0x15df   : > { %11082 = vmatpush3.bf16.msra.mxu1 %v6651_v54  ;;  %11083 = vmatprep.mubr.msk.bf16.mxu1 %vm11962_vm1, %v14889_v42 }
0x15e0   : > { %11093 = vmatprep.subr.bf16.mxu1 %v14889_v42 }
0x15e1   : > { %11054 = vmatmul.mubr.msk.bf16.vlgmr.msra.gmra.mrb[192].mxu0 %vm707_vm2, %v6284_v10 }
0x15e2   : > { %11064 = vmatpush3.bf16.xpose.msra.mxu0 %v6391_v34  ;;  %11065 = vmatprep.mubr.msk.bf16.mxu0 %vm11962_vm1, %v14889_v42 }
0x15e3   : > { %11075 = vmatprep.subr.bf16.mxu0 %v14889_v42 }
0x15e9   : > { %11066 = vmatmul.mubr.msk.bf16.vlgmr.msra.gmra.mrb[196].mxu0 %vm707_vm2, %v6384_v30 }
0x15ea   : > { %11076 = vmatpush3.bf16.msra.mxu0 %v6602_v61  ;;  %11077 = vmatprep.mubr.msk.bf16.mxu0 %vm11962_vm1, %v14889_v42 }
0x15eb   : > { %11087 = vmatprep.subr.bf16.mxu0 %v14889_v42 }
0x162b   : > { %v13824_v58 = vpop.f32.mrb[168].mxu0 }
0x162c   : > { %v10983_v60 = vpop.f32.mrb[169].mxu0 }
0x162d   : > { %v5758_v6 = vpop.f32.mrb[170].mxu0  ;;  %v13826_v8 = vpop.f32.mrb[184].mxu1 }
0x162e   : > { %v10984_v41 = vpop.f32.mrb[171].mxu0  ;;  %v10989_v17 = vpop.f32.mrb[185].mxu1 }
0x162f   : > { %v5804_v10 = vpop.f32.mrb[186].mxu1 }
0x1630   : > { %v10990_v38 = vpop.f32.mrb[187].mxu1 }
0x1633   : > { %v13828_v16 = vpop.f32.mrb[172].mxu0 }
0x1634   : > { %14918 = vst [vmem:[#allocation12_spill] sm:$0xff] %v13828_v16  ;;  %v10995_v39 = vpop.f32.mrb[173].mxu0 }
0x1635   : > { %v5850_v35 = vpop.f32.mrb[174].mxu0 }
0x1636   : > { %v10996_v53 = vpop.f32.mrb[175].mxu0 }
0x1637   : > { %v13830_v57 = vpop.f32.mrb[188].mxu1 }
0x1638   : > { %14919 = vst [vmem:[#allocation16_spill] sm:$0xff] %v13830_v57  ;;  %v11001_v30 = vpop.f32.mrb[189].mxu1 }
0x1639   : > { %v5896_v33 = vpop.f32.mrb[190].mxu1 }
0x163a   : > { %v11002_v49 = vpop.f32.mrb[191].mxu1 }
0x1667   : > { %v13832_v55 = vpop.f32.mrb[176].mxu0 }
0x1668   : > { %v11007_v43 = vpop.f32.mrb[177].mxu0 }
0x1669   : > { %v5942_v19 = vpop.f32.mrb[178].mxu0  ;;  %v13834_v54 = vpop.f32.mrb[192].mxu1 }
0x166a   : > { %v11008_v34 = vpop.f32.mrb[179].mxu0  ;;  %v11013_v44 = vpop.f32.mrb[193].mxu1 }
0x166b   : > { %v5988_v61 = vpop.f32.mrb[194].mxu1 }
0x166c   : > { %v11014_v60 = vpop.f32.mrb[195].mxu1 }
0x1671   : > { %v13836_v6 = vpop.f32.mrb[196].mxu1 }
0x1672   : > { %v11025_v41 = vpop.f32.mrb[197].mxu1 }
0x1673   : > { %v6080_v17 = vpop.f32.mrb[198].mxu1 }
0x1674   : > { %v11026_v10 = vpop.f32.mrb[199].mxu1 }
0x1695   : > { %v6177_v38 = vpop.f32.mrb[200].mxu1 }
0x1696   : > { %v6484_v39 = vmul.f32 0.25, %v6177_v38  ;;  %v11037_v35 = vpop.f32.mrb[201].mxu1 }
0x1697   : > { %v6180_v53 = vpop.f32.mrb[202].mxu1 }
0x1698   : > { %v13839_v30 = vadd.f32 %v13589_v26, %v6484_v39  ;;  %v11038_v33 = vpop.f32.mrb[203].mxu1 }
0x169a   : > { %v6502_v49 = vsel %vm1113_vm4, %v13839_v30, -inf }
0x169b   : > { %6503 = vmax.xlane.f32.xlu1 %v6502_v49 }
0x169c   : > { %v13843_v43 = vpop.f32.mrb[180].mxu0 }
0x169d   : > { %v11019_v19 = vpop.f32.mrb[181].mxu0 }
0x169e   : > { %v6034_v34 = vpop.f32.mrb[182].mxu0 }
0x169f   : > { %v11020_v44 = vpop.f32.mrb[183].mxu0 }
0x16a1   : > { %v6277_v61 = vpop.f32.mrb[204].mxu1 }
0x16a2   : > { %v11049_v60 = vpop.f32.mrb[205].mxu1  ;;  %v6486_v44 = vmul.f32 0.25, %v6277_v61 }
0x16a3   : > { %v6280_v41 = vpop.f32.mrb[206].mxu1 }
0x16a4   : > { %v6127_v17 = vpop.f32.mrb[184].mxu0  ;;  %v11050_v10 = vpop.f32.mrb[207].mxu1 }
0x16a5   : > { %v6483_v38 = vmul.f32 0.25, %v6127_v17  ;;  %v11031_v35 = vpop.f32.mrb[185].mxu0 }
0x16a6   : > { %v6130_v53 = vpop.f32.mrb[186].mxu0  ;;  %v6494_v35 = vadd.f32 %v13604_v7, %v6486_v44 }
0x16a7   : > { %v6491_v26 = vadd.f32 %v13583_v25, %v6483_v38  ;;  %v11032_v39 = vpop.f32.mrb[187].mxu0 }
0x16a9   : > { %v6377_v33 = vpop.f32.mrb[208].mxu1  ;;  %v6499_v52 = vsel %vm1113_vm4, %v6491_v26, -inf }
0x16aa   : > { %6500 = vmax.xlane.f32.xlu0 %v6499_v52  ;;  %v11061_v49 = vpop.f32.mrb[209].mxu1  ;;  %v6488_v53 = vmul.f32 0.25, %v6377_v33 }
0x16ab   : > { %v6380_v21 = vpop.f32.mrb[210].mxu1 }
0x16ac   : > { %v6227_v19 = vpop.f32.mrb[188].mxu0  ;;  %v11062_v34 = vpop.f32.mrb[211].mxu1 }
0x16ad   : > { %v6485_v28 = vmul.f32 0.25, %v6227_v19  ;;  %v11043_v60 = vpop.f32.mrb[189].mxu0  ;;  %v6496_v34 = vadd.f32 %v13613_v47, %v6488_v53 }
0x16ae   : > { %v6230_v41 = vpop.f32.mrb[190].mxu0 }
0x16af   : > { %v6493_v10 = vadd.f32 %v13599_v9, %v6485_v28  ;;  %v11044_v17 = vpop.f32.mrb[191].mxu0  ;;  %v6508_v41 = vsel %vm1113_vm4, %v6494_v35, -inf  ;;  %v6514_v44 = vsel %vm1113_vm4, %v6496_v34, -inf }
0x16b1   : > { %v6477_v25 = vpop.f32.mrb[212].mxu1  ;;  %v6505_v38 = vsel %vm1113_vm4, %v6493_v10, -inf }
0x16b2   : > { %v11073_v39 = vpop.f32.mrb[213].mxu1  ;;  %6506 = vmax.xlane.f32.xlu0 %v6505_v38  ;;  %v6490_v61 = vmul.f32 0.25, %v6477_v25 }
0x16b3   : > { %v6480_v52 = vpop.f32.mrb[214].mxu1 }
0x16b4   : > { %v6327_v49 = vpop.f32.mrb[192].mxu0  ;;  %v11074_v21 = vpop.f32.mrb[215].mxu1  ;;  %v13854_v33 = vadd.f32 %v13625_v18, %v6490_v61 }
0x16b5   : > { %v6487_v19 = vmul.f32 0.25, %v6327_v49  ;;  %v11055_v60 = vpop.f32.mrb[193].mxu0  ;;  %v13866_v49 = vpop.permute.xlu1 %6694 }
0x16b6   : > { %6509 = vmax.xlane.f32.xlu0 %v6508_v41  ;;  %v6330_v28 = vpop.f32.mrb[194].mxu0  ;;  %v6520_v38 = vsel %vm1113_vm4, %v13854_v33, -inf }
0x16b7   : > { %v6495_v9 = vadd.f32 %v13609_v3, %v6487_v19  ;;  %v11056_v7 = vpop.f32.mrb[195].mxu0 }
0x16b9   : > { %v6511_v17 = vsel %vm1113_vm4, %v6495_v9, -inf  ;;  %v13868_v21 = vpop.permute.xlu1 %6743 }
0x16ba   : > { %6515 = vmax.xlane.f32.xlu0 %v6514_v44  ;;  %6512 = vmax.xlane.f32.xlu1 %v6511_v17 }
0x16bc   : > { %v6427_v47 = vpop.f32.mrb[196].mxu0 }
0x16bd   : > { %v6489_v53 = vmul.f32 0.25, %v6427_v47  ;;  %v11067_v25 = vpop.f32.mrb[197].mxu0 }
0x16be   : > { %6521 = vmax.xlane.f32.xlu0 %v6520_v38  ;;  %v6430_v39 = vpop.f32.mrb[198].mxu0 }
0x16bf   : > { %v6497_v3 = vadd.f32 %v13619_v59, %v6489_v53  ;;  %v11068_v52 = vpop.f32.mrb[199].mxu0 }
0x16c1   : > { %v6517_v18 = vsel %vm1113_vm4, %v6497_v3, -inf }
0x16c2   : > { %6518 = vmax.xlane.f32.xlu1 %v6517_v18 }
0x16d3   : > { %6841 = vrot.lane.b32.xlu1 %v13731_v40, %s11965_s11 }
0x16d4   : > { %6792 = vrot.lane.b32.xlu0 %v13721_v31, %s11965_s11 }
0x1728   : > { %v6504_v61 = vpop.xlane.xlu1 %6503 }
0x1729   : > { %v6524_v19 = vsub.f32 %v13839_v30, %v6504_v61 }
0x172b   : > { %v6533_v60 = vmul.f32 1.442695, %v6524_v19 }
0x172d   : > { %11781 = vpow2.f32 %v6533_v60 }
0x1737   : > { %v13871_v59 = vpop.eup %11781  ;;  %v6501_v41 = vpop.xlane.xlu0 %6500 }
0x1738   : > { %v6523_v28 = vsub.f32 %v6491_v26, %v6501_v41  ;;  %v6550_v7 = vsel %vm1113_vm4, %v13871_v59, 0.0 }
0x1739   : > { %6551 = vadd.xlane.f32.xlu0 %v6550_v7 }
0x173a   : > { %v6531_v44 = vmul.f32 1.442695, %v6523_v28 }
0x173c   : > { %11783 = vpow2.f32 %v6531_v44 }
0x173f   : > { %v6507_v17 = vpop.xlane.xlu0 %6506 }
0x1740   : > { %v6525_v47 = vsub.f32 %v6493_v10, %v6507_v17 }
0x1742   : > { %v6535_v53 = vmul.f32 1.442695, %v6525_v47 }
0x1743   : > { %v6510_v25 = vpop.xlane.xlu0 %6509 }
0x1744   : > { %11785 = vpow2.f32 %v6535_v53  ;;  %v6526_v38 = vsub.f32 %v6494_v35, %v6510_v25 }
0x1746   : > { %v13875_v39 = vpop.eup %11783  ;;  %v6537_v30 = vmul.f32 1.442695, %v6526_v38 }
0x1747   : > { %v6513_v52 = vpop.xlane.xlu1 %6512  ;;  %v6516_v18 = vpop.xlane.xlu0 %6515  ;;  %v6547_v26 = vsel %vm1113_vm4, %v13875_v39, 0.0 }
0x1748   : > { %11787 = vpow2.f32 %v6537_v30  ;;  %v6527_v61 = vsub.f32 %v6495_v9, %v6513_v52  ;;  %v6528_v19 = vsub.f32 %v6496_v34, %v6516_v18  ;;  %6548 = vadd.xlane.f32.xlu1 %v6547_v26 }
0x174a   : > { %v6539_v60 = vmul.f32 1.442695, %v6527_v61  ;;  %v6541_v41 = vmul.f32 1.442695, %v6528_v19 }
0x174b   : > { %v6522_v53 = vpop.xlane.xlu0 %6521 }
0x174c   : > { %11789 = vpow2.f32 %v6539_v60  ;;  %v6530_v38 = vsub.f32 %v13854_v33, %v6522_v53 }
0x174d   : > { %11791 = vpow2.f32 %v6541_v41 }
0x174e   : > { %v13879_v10 = vpop.eup %11785  ;;  %v6545_v52 = vmul.f32 1.442695, %v6530_v38 }
0x174f   : > { %v6553_v35 = vsel %vm1113_vm4, %v13879_v10, 0.0  ;;  %v6519_v47 = vpop.xlane.xlu1 %6518  ;;  %v6793_v33 = vpop.permute.xlu0 %6792 }
0x1750   : > { %6554 = vadd.xlane.f32.xlu1 %v6553_v35  ;;  %v6529_v25 = vsub.f32 %v6497_v3, %v6519_v47 }
0x1752   : > { %v13883_v28 = vpop.eup %11787  ;;  %v6543_v30 = vmul.f32 1.442695, %v6529_v25 }
0x1753   : > { %v6556_v7 = vsel %vm1113_vm4, %v13883_v28, 0.0  ;;  %v6842_v41 = vpop.permute.xlu1 %6841 }
0x1754   : > { %6557 = vadd.xlane.f32.xlu0 %v6556_v7  ;;  %11793 = vpow2.f32 %v6543_v30 }
0x1755   : > { %11795 = vpow2.f32 %v6545_v52 }
0x1756   : > { %v13887_v44 = vpop.eup %11789 }
0x1757   : > { %v13889_v34 = vpop.eup %11791  ;;  %v6559_v9 = vsel %vm1113_vm4, %v13887_v44, 0.0 }
0x1758   : > { %6560 = vadd.xlane.f32.xlu1 %v6559_v9  ;;  %v6562_v17 = vsel %vm1113_vm4, %v13889_v34, 0.0 }
0x1759   : > { %6563 = vadd.xlane.f32.xlu0 %v6562_v17  ;;  %v6749_v17 = vsel %vm1213_vm3, %v13868_v21, 0  ;;  %v6700_v21 = vsel %vm1213_vm3, %v13866_v49, 0 }
0x175e   : > { %v13900_v18 = vpop.eup %11793 }
0x175f   : > { %v13902_v26 = vpop.eup %11795  ;;  %v6565_v61 = vsel %vm1113_vm4, %v13900_v18, 0.0 }
0x1760   : > { %v6568_v19 = vsel %vm1113_vm4, %v13902_v26, 0.0 }
0x1769   : > { %6939 = vrot.lane.b32.xlu1 %v13757_v22, %s11965_s11 }
0x176f   : > { %6890 = vrot.lane.b32.xlu0 %v13754_v46, %s11965_s11 }
0x178d   : > { %6566 = vadd.xlane.f32.xlu1 %v6565_v61 }
0x178e   : > { %6569 = vadd.xlane.f32.xlu0 %v6568_v19 }
0x179e   : > { %7039 = vrot.lane.b32.xlu1 %v13472_v51, %s11966_s12 }
0x17a2   : > { %7037 = vrot.lane.b32.xlu1 %v13472_v51, %s11967_s14 }
0x17a4   : > { %6989 = vrot.lane.b32.xlu0 %v13468_v11, %s11966_s12 }
0x17a6   : > { %7139 = vrot.lane.b32.xlu1 %v13486_v37, %s11966_s12 }
0x17a8   : > { %6987 = vrot.lane.b32.xlu0 %v13468_v11, %s11967_s14 }
0x17aa   : > { %7137 = vrot.lane.b32.xlu1 %v13486_v37, %s11967_s14 }
0x17ac   : > { %7089 = vrot.lane.b32.xlu0 %v13480_v48, %s11966_s12 }
0x17ae   : > { %7239 = vrot.lane.b32.xlu1 %v13496_v12, %s11966_s12 }
0x17b0   : > { %7087 = vrot.lane.b32.xlu0 %v13480_v48, %s11967_s14 }
0x17b2   : > { %7237 = vrot.lane.b32.xlu1 %v13496_v12, %s11967_s14 }
0x17b4   : > { %7189 = vrot.lane.b32.xlu0 %v13492_v23, %s11966_s12 }
0x17b6   : > { %7339 = vrot.lane.b32.xlu1 %v13508_v15, %s11966_s12 }
0x17b8   : > { %7187 = vrot.lane.b32.xlu0 %v13492_v23, %s11967_s14 }
0x17ba   : > { %7337 = vrot.lane.b32.xlu1 %v13508_v15, %s11967_s14 }
0x17bc   : > { %7289 = vrot.lane.b32.xlu0 %v13504_v4, %s11966_s12 }
0x17be   : > { %7499 = vrot.lane.b32.xlu1 %v13563_v20, %s11967_s14 }
0x17c0   : > { %7287 = vrot.lane.b32.xlu0 %v13504_v4, %s11967_s14 }
0x17c2   : > { %7595 = vrot.lane.b32.xlu1 %v13700_v27, %s11967_s14 }
0x17c4   : > { %7547 = vrot.lane.b32.xlu0 %v13566_v0, %s11967_s14 }
0x17c6   : > { %7643 = vrot.lane.b32.xlu1 %v13703_v1, %s11967_s14  ;;  %v6552_v3 = vpop.xlane.xlu0 %6551 }
0x17c7   : > { %11797 = vrcp.f32 %v6552_v3 }
0x17d1   : > { %v11798_v60 = vpop.eup %11797 }
0x17d2   : > { %v6580_v35 = vmul.f32 %v11798_v60, %v13871_v59  ;;  %v6798_v60 = vsel %vm1213_vm3, %v6793_v33, 0 }
0x17d4   : > { %v6588_v7 = vpack.c.bf16 %v6580_v35, %v6580_v35 }
0x17d5   : > { %v6549_v9 = vpop.xlane.xlu1 %6548 }
0x17d6   : > { %11799 = vrcp.f32 %v6549_v9  ;;  %11084 = vmatmul.mubr.msk.bf16.vlgmr.msra.gmra.mrb[216].mxu1 %vm1113_vm4, %v6588_v7 }
0x17d7   : > { %11094 = vmatpush3.bf16.msra.mxu1 %v6749_v17  ;;  %11095 = vmatprep.mubr.msk.bf16.mxu1 %vm11962_vm1, %v14889_v42  ;;  %v6847_v17 = vsel %vm1213_vm3, %v6842_v41, 0 }
0x17d8   : > { %11105 = vmatprep.subr.bf16.mxu1 %v14889_v42 }
0x17dd   : > { %v6555_v47 = vpop.xlane.xlu1 %6554 }
0x17de   : > { %11801 = vrcp.f32 %v6555_v47 }
0x17e0   : > { %v11800_v53 = vpop.eup %11799 }
0x17e1   : > { %v6558_v25 = vpop.xlane.xlu0 %6557  ;;  %v6579_v59 = vmul.f32 %v11800_v53, %v13875_v39 }
0x17e2   : > { %11803 = vrcp.f32 %v6558_v25 }
0x17e3   : > { %v6587_v38 = vpack.c.bf16 %v6579_v59, %v6579_v59 }
0x17e5   : > { %11078 = vmatmul.mubr.msk.bf16.vlgmr.msra.gmra.mrb[200].mxu0 %vm1113_vm4, %v6587_v38  ;;  %v6561_v30 = vpop.xlane.xlu1 %6560 }
0x17e6   : > { %11088 = vmatpush3.bf16.msra.mxu0 %v6700_v21  ;;  %11805 = vrcp.f32 %v6561_v30  ;;  %v6564_v52 = vpop.xlane.xlu0 %6563  ;;  %11089 = vmatprep.mubr.msk.bf16.mxu0 %vm11962_vm1, %v14889_v42 }
0x17e7   : > { %11807 = vrcp.f32 %v6564_v52  ;;  %11099 = vmatprep.subr.bf16.mxu0 %v14889_v42 }
0x17e8   : > { %v11802_v61 = vpop.eup %11801 }
0x17e9   : > { %v6581_v39 = vmul.f32 %v11802_v61, %v13879_v10  ;;  %v6940_v25 = vpop.permute.xlu1 %6939 }
0x17ea   : > { %v6891_v33 = vpop.permute.xlu0 %6890  ;;  %v6945_v41 = vsel %vm1213_vm3, %v6940_v25, 0 }
0x17eb   : > { %v6589_v19 = vpack.c.bf16 %v6581_v39, %v6581_v39  ;;  %v6896_v53 = vsel %vm1213_vm3, %v6891_v33, 0 }
0x17ec   : > { %v11804_v3 = vpop.eup %11803 }
0x17ed   : > { %11090 = vmatmul.mubr.msk.bf16.vlgmr.msra.gmra.mrb[204].mxu0 %vm1113_vm4, %v6589_v19  ;;  %v6582_v49 = vmul.f32 %v11804_v3, %v13883_v28 }
0x17ee   : > { %11100 = vmatpush3.bf16.msra.mxu0 %v6798_v60  ;;  %11101 = vmatprep.mubr.msk.bf16.mxu0 %vm11962_vm1, %v14889_v42 }
0x17ef   : > { %v6590_v35 = vpack.c.bf16 %v6582_v49, %v6582_v49  ;;  %11111 = vmatprep.subr.bf16.mxu0 %v14889_v42 }
0x17f0   : > { %v11806_v7 = vpop.eup %11805 }
0x17f1   : > { %v11808_v9 = vpop.eup %11807  ;;  %11096 = vmatmul.mubr.msk.bf16.vlgmr.msra.gmra.mrb[220].mxu1 %vm1113_vm4, %v6590_v35  ;;  %v6583_v10 = vmul.f32 %v11806_v7, %v13887_v44 }
0x17f2   : > { %11106 = vmatpush3.bf16.msra.mxu1 %v6847_v17  ;;  %11107 = vmatprep.mubr.msk.bf16.mxu1 %vm11962_vm1, %v14889_v42  ;;  %v6584_v47 = vmul.f32 %v11808_v9, %v13889_v34 }
0x17f3   : > { %v6591_v28 = vpack.c.bf16 %v6583_v10, %v6583_v10  ;;  %11117 = vmatprep.subr.bf16.mxu1 %v14889_v42 }
0x17f4   : > { %v6592_v44 = vpack.c.bf16 %v6584_v47, %v6584_v47 }
0x17f5   : > { %11102 = vmatmul.mubr.msk.bf16.vlgmr.msra.gmra.mrb[208].mxu0 %vm1113_vm4, %v6591_v28 }
0x17f6   : > { %11112 = vmatpush3.bf16.msra.mxu0 %v6896_v53  ;;  %11113 = vmatprep.mubr.msk.bf16.mxu0 %vm11962_vm1, %v14889_v42 }
0x17f7   : > { %11123 = vmatprep.subr.bf16.mxu0 %v14889_v42 }
0x17f9   : > { %11108 = vmatmul.mubr.msk.bf16.vlgmr.msra.gmra.mrb[224].mxu1 %vm1113_vm4, %v6592_v44 }
0x17fa   : > { %11118 = vmatpush3.bf16.msra.mxu1 %v6945_v41  ;;  %11119 = vmatprep.mubr.msk.bf16.mxu1 %vm11962_vm1, %v14889_v42 }
0x17fb   : > { %11129 = vmatprep.subr.bf16.mxu1 %v14889_v42 }
0x181a   : > { %v6567_v34 = vpop.xlane.xlu1 %6566 }
0x181b   : > { %11809 = vrcp.f32 %v6567_v34  ;;  %v6570_v59 = vpop.xlane.xlu0 %6569 }
0x181c   : > { %11811 = vrcp.f32 %v6570_v59 }
0x181e   : > { %v7040_v38 = vpop.permute.xlu1 %7039 }
0x181f   : > { %v6990_v21 = vpop.permute.xlu0 %6989  ;;  %v7045_v10 = vsel %vm707_vm2, %v7040_v38, 0 }
0x1820   : > { %v6995_v9 = vsel %vm707_vm2, %v6990_v21, 0 }
0x1822   : > { %v7038_v30 = vpop.permute.xlu1 %7037 }
0x1823   : > { %v6988_v52 = vpop.permute.xlu0 %6987 }
0x1825   : > { %v11810_v61 = vpop.eup %11809 }
0x1826   : > { %v11812_v39 = vpop.eup %11811  ;;  %v7140_v19 = vpop.permute.xlu1 %7139  ;;  %v6585_v3 = vmul.f32 %v11810_v61, %v13900_v18 }
0x1827   : > { %v7090_v60 = vpop.permute.xlu0 %7089  ;;  %v6586_v49 = vmul.f32 %v11812_v39, %v13902_v26  ;;  %v7145_v47 = vsel %vm707_vm2, %v7140_v19, 0 }
0x1828   : > { %v6593_v35 = vpack.c.bf16 %v6585_v3, %v6585_v3  ;;  %v7095_v28 = vsel %vm707_vm2, %v7090_v60, 0 }
0x1829   : > { %v6594_v7 = vpack.c.bf16 %v6586_v49, %v6586_v49 }
0x182a   : > { %v7138_v17 = vpop.permute.xlu1 %7137  ;;  %11114 = vmatmul.mubr.msk.bf16.vlgmr.msra.gmra.mrb[212].mxu0 %vm1113_vm4, %v6593_v35 }
0x182b   : > { %11120 = vmatmul.mubr.msk.bf16.vlgmr.msra.gmra.mrb[228].mxu1 %vm1113_vm4, %v6594_v7  ;;  %11124 = vmatpush3.bf16.xpose.msra.mxu0 %v6995_v9  ;;  %v7088_v33 = vpop.permute.xlu0 %7087 }
0x182c   : > { %11130 = vmatpush3.bf16.xpose.msra.mxu1 %v7045_v10  ;;  %11125 = vmatprep.mubr.msk.bf16.mxu0 %vm11962_vm1, %v14889_v42 }
0x182d   : > { %11131 = vmatprep.mubr.msk.bf16.mxu1 %vm11962_vm1, %v14889_v42  ;;  %11135 = vmatprep.subr.bf16.mxu0 %v14889_v42 }
0x182e   : > { %11141 = vmatprep.subr.bf16.mxu1 %v14889_v42  ;;  %v7240_v18 = vpop.permute.xlu1 %7239 }
0x182f   : > { %v7190_v26 = vpop.permute.xlu0 %7189  ;;  %v7245_v41 = vsel %vm707_vm2, %v7240_v18, 0 }
0x1830   : > { %v7195_v44 = vsel %vm707_vm2, %v7190_v26, 0 }
0x1832   : > { %11126 = vmatmul.mubr.msk.bf16.vlgmr.msra.gmra.mrb[216].mxu0 %vm707_vm2, %v6988_v52  ;;  %v7238_v53 = vpop.permute.xlu1 %7237 }
0x1833   : > { %11132 = vmatmul.mubr.msk.bf16.vlgmr.msra.gmra.mrb[232].mxu1 %vm707_vm2, %v7038_v30  ;;  %11136 = vmatpush3.bf16.xpose.msra.mxu0 %v7095_v28  ;;  %v7188_v25 = vpop.permute.xlu0 %7187 }
0x1834   : > { %11142 = vmatpush3.bf16.xpose.msra.mxu1 %v7145_v47  ;;  %11137 = vmatprep.mubr.msk.bf16.mxu0 %vm11962_vm1, %v14889_v42 }
0x1835   : > { %11143 = vmatprep.mubr.msk.bf16.mxu1 %vm11962_vm1, %v14889_v42  ;;  %11147 = vmatprep.subr.bf16.mxu0 %v14889_v42 }
0x1836   : > { %11153 = vmatprep.subr.bf16.mxu1 %v14889_v42  ;;  %v7340_v34 = vpop.permute.xlu1 %7339 }
0x1837   : > { %v7290_v59 = vpop.permute.xlu0 %7289  ;;  %v7345_v52 = vsel %vm707_vm2, %v7340_v34, 0 }
0x1838   : > { %v7295_v21 = vsel %vm707_vm2, %v7290_v59, 0 }
0x183a   : > { %11138 = vmatmul.mubr.msk.bf16.vlgmr.msra.gmra.mrb[220].mxu0 %vm707_vm2, %v7088_v33  ;;  %v7338_v38 = vpop.permute.xlu1 %7337 }
0x183b   : > { %11144 = vmatmul.mubr.msk.bf16.vlgmr.msra.gmra.mrb[236].mxu1 %vm707_vm2, %v7138_v17  ;;  %11148 = vmatpush3.bf16.xpose.msra.mxu0 %v7195_v44  ;;  %v7288_v30 = vpop.permute.xlu0 %7287  ;;  %v14069_v17 = vld [vmem:[%s12253_s29 + $0x1] ss:$0 sm:$0xff] }
0x183c   : > { %11154 = vmatpush3.bf16.xpose.msra.mxu1 %v7245_v41  ;;  %11149 = vmatprep.mubr.msk.bf16.mxu0 %vm11962_vm1, %v14889_v42 }
0x183d   : > { %11155 = vmatprep.mubr.msk.bf16.mxu1 %vm11962_vm1, %v14889_v42  ;;  %11159 = vmatprep.subr.bf16.mxu0 %v14889_v42 }
0x183e   : > { %11165 = vmatprep.subr.bf16.mxu1 %v14889_v42  ;;  %v7500_v61 = vpop.permute.xlu1 %7499 }
0x183f   : > { %v7548_v39 = vpop.permute.xlu0 %7547  ;;  %v7505_v19 = vsel %vm1213_vm3, %v7500_v61, 0 }
0x1840   : > { %v7553_v3 = vsel %vm1213_vm3, %v7548_v39, 0 }
0x1842   : > { %11150 = vmatmul.mubr.msk.bf16.vlgmr.msra.gmra.mrb[224].mxu0 %vm707_vm2, %v7188_v25 }
0x1843   : > { %11156 = vmatmul.mubr.msk.bf16.vlgmr.msra.gmra.mrb[240].mxu1 %vm707_vm2, %v7238_v53  ;;  %11160 = vmatpush3.bf16.xpose.msra.mxu0 %v7295_v21 }
0x1844   : > { %11166 = vmatpush3.bf16.xpose.msra.mxu1 %v7345_v52  ;;  %11161 = vmatprep.mubr.msk.bf16.mxu0 %vm11962_vm1, %v14889_v42 }
0x1845   : > { %11167 = vmatprep.mubr.msk.bf16.mxu1 %vm11962_vm1, %v14889_v42  ;;  %11171 = vmatprep.subr.bf16.mxu0 %v14889_v42 }
0x1846   : > { %11177 = vmatprep.subr.bf16.mxu1 %v14889_v42 }
0x184a   : > { %11162 = vmatmul.mubr.msk.bf16.vlgmr.msra.gmra.mrb[228].mxu0 %vm707_vm2, %v7288_v30 }
0x184b   : > { %11168 = vmatmul.mubr.msk.bf16.vlgmr.msra.gmra.mrb[244].mxu1 %vm707_vm2, %v7338_v38  ;;  %11172 = vmatpush3.bf16.msra.mxu0 %v7505_v19 }
0x184c   : > { %11178 = vmatpush3.bf16.msra.mxu1 %v7553_v3  ;;  %11173 = vmatprep.mubr.msk.bf16.mxu0 %vm11962_vm1, %v14889_v42 }
0x184d   : > { %11179 = vmatprep.mubr.msk.bf16.mxu1 %vm11962_vm1, %v14889_v42  ;;  %11183 = vmatprep.subr.bf16.mxu0 %v14889_v42 }
0x184e   : > { %11189 = vmatprep.subr.bf16.mxu1 %v14889_v42 }
0x18a9   : > { %v14038_v60 = vpop.f32.mrb[216].mxu1 }
0x18aa   : > { %v11085_v49 = vpop.f32.mrb[217].mxu1 }
0x18ab   : > { %v6690_v35 = vpop.f32.mrb[218].mxu1 }
0x18ac   : > { %v11086_v7 = vpop.f32.mrb[219].mxu1 }
0x18b8   : > { %v14040_v9 = vpop.f32.mrb[200].mxu0 }
0x18b9   : > { %v11079_v10 = vpop.f32.mrb[201].mxu0 }
0x18ba   : > { %v6641_v33 = vpop.f32.mrb[202].mxu0 }
0x18bb   : > { %v11080_v18 = vpop.f32.mrb[203].mxu0 }
0x18c0   : > { %v14044_v26 = vpop.f32.mrb[204].mxu0 }
0x18c1   : > { %v11091_v28 = vpop.f32.mrb[205].mxu0 }
0x18c2   : > { %v6739_v47 = vpop.f32.mrb[206].mxu0 }
0x18c3   : > { %v11092_v53 = vpop.f32.mrb[207].mxu0 }
0x18c4   : > { %v14046_v25 = vpop.f32.mrb[220].mxu1 }
0x18c5   : > { %v11097_v41 = vpop.f32.mrb[221].mxu1 }
0x18c6   : > { %v6788_v34 = vpop.f32.mrb[222].mxu1 }
0x18c7   : > { %v11098_v59 = vpop.f32.mrb[223].mxu1 }
0x18c8   : > { %v14050_v38 = vpop.f32.mrb[208].mxu0 }
0x18c9   : > { %v11103_v21 = vpop.f32.mrb[209].mxu0 }
0x18ca   : > { %v6837_v30 = vpop.f32.mrb[210].mxu0 }
0x18cb   : > { %v11104_v52 = vpop.f32.mrb[211].mxu0 }
0x18cc   : > { %v14052_v61 = vpop.f32.mrb[224].mxu1 }
0x18cd   : > { %v11109_v19 = vpop.f32.mrb[225].mxu1 }
0x18ce   : > { %v6886_v3 = vpop.f32.mrb[226].mxu1 }
0x18cf   : > { %v11110_v49 = vpop.f32.mrb[227].mxu1 }
0x18d0   : > { %v14063_v49 = vld [vmem:[%s12253_s29] ss:$0 sm:$0xff] }
0x18fd   : > { %v14056_v35 = vpop.f32.mrb[212].mxu0 }
0x18fe   : > { %v14058_v7 = vpop.f32.mrb[228].mxu1  ;;  %v11115_v10 = vpop.f32.mrb[213].mxu0 }
0x18ff   : > { %v11121_v18 = vpop.f32.mrb[229].mxu1  ;;  %v6935_v28 = vpop.f32.mrb[214].mxu0 }
0x1900   : > { %v6984_v47 = vpop.f32.mrb[230].mxu1  ;;  %v11116_v53 = vpop.f32.mrb[215].mxu0 }
0x1901   : > { %v11122_v41 = vpop.f32.mrb[231].mxu1 }
0x1905   : > { %v7031_v34 = vpop.f32.mrb[216].mxu0 }
0x1906   : > { %v7387_v59 = vmul.f32 0.25, %v7031_v34  ;;  %v7081_v21 = vpop.f32.mrb[232].mxu1  ;;  %v11127_v30 = vpop.f32.mrb[217].mxu0 }
0x1907   : > { %v7388_v52 = vmul.f32 0.25, %v7081_v21  ;;  %v11133_v19 = vpop.f32.mrb[233].mxu1  ;;  %v7034_v3 = vpop.f32.mrb[218].mxu0 }
0x1908   : > { %v14066_v10 = vadd.f32 %v14063_v49, %v7387_v59  ;;  %v7084_v39 = vpop.f32.mrb[234].mxu1  ;;  %v11128_v18 = vpop.f32.mrb[219].mxu0 }
0x1909   : > { %v14072_v28 = vadd.f32 %v14069_v17, %v7388_v52  ;;  %v11134_v47 = vpop.f32.mrb[235].mxu1  ;;  %v14079_v18 = vld [vmem:[%s12253_s29 + $0x2] ss:$0 sm:$0xff] }
0x190a   : > { %v7403_v53 = vsel %vm1113_vm4, %v14066_v10, -inf }
0x190b   : > { %v7406_v41 = vsel %vm1113_vm4, %v14072_v28, -inf  ;;  %7404 = vmax.xlane.f32.xlu0 %v7403_v53 }
0x190c   : > { %7407 = vmax.xlane.f32.xlu1 %v7406_v41 }
0x190d   : > { %v7131_v34 = vpop.f32.mrb[220].mxu0 }
0x190e   : > { %v7389_v59 = vmul.f32 0.25, %v7131_v34  ;;  %v7181_v39 = vpop.f32.mrb[236].mxu1  ;;  %v11139_v21 = vpop.f32.mrb[221].mxu0 }
0x190f   : > { %v7390_v30 = vmul.f32 0.25, %v7181_v39  ;;  %v11145_v19 = vpop.f32.mrb[237].mxu1  ;;  %v7134_v3 = vpop.f32.mrb[222].mxu0 }
0x1910   : > { %v7397_v52 = vadd.f32 %v14079_v18, %v7389_v59  ;;  %v7184_v47 = vpop.f32.mrb[238].mxu1  ;;  %v11140_v33 = vpop.f32.mrb[223].mxu0 }
0x1911   : > { %v11146_v44 = vpop.f32.mrb[239].mxu1  ;;  %v7398_v53 = vadd.f32 %v14083_v32, %v7390_v30  ;;  %v14089_v33 = vld [vmem:[%s12253_s29 + $0x4] ss:$0 sm:$0xff] }
0x1912   : > { %v7409_v41 = vsel %vm1113_vm4, %v7397_v52, -inf }
0x1913   : > { %7410 = vmax.xlane.f32.xlu0 %v7409_v41  ;;  %v7412_v3 = vsel %vm1113_vm4, %v7398_v53, -inf }
0x1915   : > { %v7231_v34 = vpop.f32.mrb[224].mxu0 }
0x1916   : > { %v7391_v39 = vmul.f32 0.25, %v7231_v34  ;;  %v7281_v21 = vpop.f32.mrb[240].mxu1  ;;  %v11151_v19 = vpop.f32.mrb[225].mxu0 }
0x1917   : > { %v7392_v2 = vmul.f32 0.25, %v7281_v21  ;;  %v11157_v59 = vpop.f32.mrb[241].mxu1  ;;  %7413 = vmax.xlane.f32.xlu0 %v7412_v3  ;;  %v7234_v47 = vpop.f32.mrb[226].mxu0 }
0x1918   : > { %v7399_v44 = vadd.f32 %v14089_v33, %v7391_v39  ;;  %v7284_v36 = vpop.f32.mrb[242].mxu1  ;;  %v11152_v30 = vpop.f32.mrb[227].mxu0 }
0x1919   : > { %v7400_v41 = vadd.f32 %v14093_v50, %v7392_v2  ;;  %v11158_v34 = vpop.f32.mrb[243].mxu1  ;;  %v14099_v30 = vld [vmem:[%s12253_s29 + $0x6] ss:$0 sm:$0xff] }
0x191a   : > { %v7415_v19 = vsel %vm1113_vm4, %v7399_v44, -inf }
0x191b   : > { %v7418_v21 = vsel %vm1113_vm4, %v7400_v41, -inf  ;;  %7416 = vmax.xlane.f32.xlu1 %v7415_v19 }
0x191c   : > { %7419 = vmax.xlane.f32.xlu0 %v7418_v21 }
0x191d   : > { %v7331_v3 = vpop.f32.mrb[228].mxu0 }
0x191e   : > { %v7393_v59 = vmul.f32 0.25, %v7331_v3  ;;  %v7381_v47 = vpop.f32.mrb[244].mxu1  ;;  %v11163_v29 = vpop.f32.mrb[229].mxu0 }
0x191f   : > { %v7394_v39 = vmul.f32 0.25, %v7381_v47  ;;  %v11169_v36 = vpop.f32.mrb[245].mxu1  ;;  %v7334_v45 = vpop.f32.mrb[230].mxu0 }
0x1920   : > { %v7401_v5 = vadd.f32 %v14099_v30, %v7393_v59  ;;  %v7384_v2 = vpop.f32.mrb[246].mxu1  ;;  %v11164_v34 = vpop.f32.mrb[231].mxu0 }
0x1921   : > { %v7402_v56 = vadd.f32 %v14103_v24, %v7394_v39  ;;  %v11170_v63 = vpop.f32.mrb[247].mxu1  ;;  %v14112_v45 = vpop.permute.xlu1 %7595 }
0x1922   : > { %v7421_v19 = vsel %vm1113_vm4, %v7401_v5, -inf }
0x1923   : > { %v7424_v21 = vsel %vm1113_vm4, %v7402_v56, -inf  ;;  %7422 = vmax.xlane.f32.xlu1 %v7421_v19 }
0x1924   : > { %7425 = vmax.xlane.f32.xlu0 %v7424_v21 }
0x1925   : > { %v14114_v29 = vpop.permute.xlu1 %7643 }
0x1934   : > { %7739 = vrot.lane.b32.xlu1 %v13731_v40, %s11967_s14 }
0x193a   : > { %7691 = vrot.lane.b32.xlu0 %v13721_v31, %s11967_s14 }
0x1998   : > { %v7405_v3 = vpop.xlane.xlu0 %7404 }
0x1999   : > { %v7408_v59 = vpop.xlane.xlu1 %7407  ;;  %v7427_v63 = vsub.f32 %v14066_v10, %v7405_v3 }
0x199a   : > { %v7428_v47 = vsub.f32 %v14072_v28, %v7408_v59 }
0x199b   : > { %v7435_v39 = vmul.f32 1.442695, %v7427_v63 }
0x199c   : > { %v7437_v36 = vmul.f32 1.442695, %v7428_v47 }
0x199d   : > { %11813 = vpow2.f32 %v7435_v39 }
0x199e   : > { %11815 = vpow2.f32 %v7437_v36 }
0x19a0   : > { %v7411_v2 = vpop.xlane.xlu0 %7410 }
0x19a1   : > { %v7429_v34 = vsub.f32 %v7397_v52, %v7411_v2 }
0x19a3   : > { %v7439_v19 = vmul.f32 1.442695, %v7429_v34 }
0x19a4   : > { %v7414_v21 = vpop.xlane.xlu0 %7413 }
0x19a5   : > { %11817 = vpow2.f32 %v7439_v19  ;;  %v7430_v14 = vsub.f32 %v7398_v53, %v7414_v21 }
0x19a7   : > { %v14118_v13 = vpop.eup %11813  ;;  %v7441_v62 = vmul.f32 1.442695, %v7430_v14 }
0x19a8   : > { %v14120_v16 = vpop.eup %11815  ;;  %v7417_v57 = vpop.xlane.xlu1 %7416  ;;  %v7451_v10 = vsel %vm1113_vm4, %v14118_v13, 0.0 }
0x19a9   : > { %11819 = vpow2.f32 %v7441_v62  ;;  %v7431_v28 = vsub.f32 %v7399_v44, %v7417_v57  ;;  %v7420_v3 = vpop.xlane.xlu0 %7419  ;;  %v7454_v59 = vsel %vm1113_vm4, %v14120_v16, 0.0  ;;  %7452 = vadd.xlane.f32.xlu1 %v7451_v10 }
0x19aa   : > { %v7432_v52 = vsub.f32 %v7400_v41, %v7420_v3  ;;  %7455 = vadd.xlane.f32.xlu0 %v7454_v59 }
0x19ab   : > { %v7443_v63 = vmul.f32 1.442695, %v7431_v28 }
0x19ac   : > { %v7445_v53 = vmul.f32 1.442695, %v7432_v52 }
0x19ad   : > { %11821 = vpow2.f32 %v7443_v63 }
0x19ae   : > { %11823 = vpow2.f32 %v7445_v53 }
0x19af   : > { %v14126_v14 = vpop.eup %11817 }
0x19b0   : > { %v7457_v47 = vsel %vm1113_vm4, %v14126_v14, 0.0  ;;  %v7423_v2 = vpop.xlane.xlu1 %7422 }
0x19b1   : > { %7458 = vadd.xlane.f32.xlu1 %v7457_v47  ;;  %v7426_v34 = vpop.xlane.xlu0 %7425  ;;  %v7433_v19 = vsub.f32 %v7401_v5, %v7423_v2 }
0x19b2   : > { %v7434_v21 = vsub.f32 %v7402_v56, %v7426_v34 }
0x19b3   : > { %v14130_v39 = vpop.eup %11819  ;;  %v7447_v10 = vmul.f32 1.442695, %v7433_v19 }
0x19b4   : > { %v7460_v62 = vsel %vm1113_vm4, %v14130_v39, 0.0  ;;  %v7449_v28 = vmul.f32 1.442695, %v7434_v21  ;;  %v7740_v56 = vpop.permute.xlu1 %7739 }
0x19b5   : > { %7461 = vadd.xlane.f32.xlu0 %v7460_v62  ;;  %11825 = vpow2.f32 %v7447_v10  ;;  %v7692_v5 = vpop.permute.xlu0 %7691 }
0x19b6   : > { %11827 = vpow2.f32 %v7449_v28  ;;  %v7697_v2 = vsel %vm1213_vm3, %v7692_v5, 0 }
0x19b7   : > { %v14134_v57 = vpop.eup %11821 }
0x19b8   : > { %v14136_v44 = vpop.eup %11823  ;;  %v7463_v41 = vsel %vm1113_vm4, %v14134_v57, 0.0 }
0x19b9   : > { %7464 = vadd.xlane.f32.xlu1 %v7463_v41  ;;  %v7466_v36 = vsel %vm1113_vm4, %v14136_v44, 0.0  ;;  %v7649_v41 = vsel %vm1213_vm3, %v14114_v29, 0 }
0x19ba   : > { %7467 = vadd.xlane.f32.xlu0 %v7466_v36 }
0x19bf   : > { %v14146_v3 = vpop.eup %11825 }
0x19c0   : > { %v14148_v59 = vpop.eup %11827  ;;  %v7469_v52 = vsel %vm1113_vm4, %v14146_v3, 0.0 }
0x19c1   : > { %v7472_v63 = vsel %vm1113_vm4, %v14148_v59, 0.0 }
0x19ca   : > { %7835 = vrot.lane.b32.xlu1 %v13757_v22, %s11967_s14 }
0x19d0   : > { %7787 = vrot.lane.b32.xlu0 %v13754_v46, %s11967_s14 }
0x19ee   : > { %7470 = vadd.xlane.f32.xlu1 %v7469_v52 }
0x19ef   : > { %7473 = vadd.xlane.f32.xlu0 %v7472_v63 }
0x19ff   : > { %7935 = vrot.lane.b32.xlu1 %v13472_v51, %s11968_s15 }
0x1a03   : > { %7933 = vrot.lane.b32.xlu1 %v13472_v51, %s11969_s16 }
0x1a05   : > { %7885 = vrot.lane.b32.xlu0 %v13468_v11, %s11968_s15 }
0x1a07   : > { %8035 = vrot.lane.b32.xlu1 %v13486_v37, %s11968_s15 }
0x1a09   : > { %7883 = vrot.lane.b32.xlu0 %v13468_v11, %s11969_s16 }
0x1a0b   : > { %8033 = vrot.lane.b32.xlu1 %v13486_v37, %s11969_s16 }
0x1a0d   : > { %7985 = vrot.lane.b32.xlu0 %v13480_v48, %s11968_s15 }
0x1a0f   : > { %8135 = vrot.lane.b32.xlu1 %v13496_v12, %s11968_s15 }
0x1a11   : > { %7983 = vrot.lane.b32.xlu0 %v13480_v48, %s11969_s16 }
0x1a13   : > { %8133 = vrot.lane.b32.xlu1 %v13496_v12, %s11969_s16 }
0x1a15   : > { %8085 = vrot.lane.b32.xlu0 %v13492_v23, %s11968_s15 }
0x1a17   : > { %8235 = vrot.lane.b32.xlu1 %v13508_v15, %s11968_s15 }
0x1a19   : > { %8083 = vrot.lane.b32.xlu0 %v13492_v23, %s11969_s16 }
0x1a1b   : > { %8233 = vrot.lane.b32.xlu1 %v13508_v15, %s11969_s16 }
0x1a1d   : > { %8185 = vrot.lane.b32.xlu0 %v13504_v4, %s11968_s15 }
0x1a1f   : > { %8395 = vrot.lane.b32.xlu1 %v13563_v20, %s11969_s16 }
0x1a21   : > { %8183 = vrot.lane.b32.xlu0 %v13504_v4, %s11969_s16  ;;  %v7601_v4 = vsel %vm1213_vm3, %v14112_v45, 0 }
0x1a36   : > { %v7453_v11 = vpop.xlane.xlu1 %7452 }
0x1a37   : > { %11829 = vrcp.f32 %v7453_v11  ;;  %v7456_v51 = vpop.xlane.xlu0 %7455 }
0x1a38   : > { %11831 = vrcp.f32 %v7456_v51 }
0x1a3e   : > { %v7459_v48 = vpop.xlane.xlu1 %7458 }
0x1a3f   : > { %11833 = vrcp.f32 %v7459_v48 }
0x1a41   : > { %v11830_v37 = vpop.eup %11829 }
0x1a42   : > { %v11832_v23 = vpop.eup %11831  ;;  %v7462_v12 = vpop.xlane.xlu0 %7461  ;;  %v7483_v15 = vmul.f32 %v11830_v37, %v14118_v13 }
0x1a43   : > { %11835 = vrcp.f32 %v7462_v12  ;;  %v7484_v53 = vmul.f32 %v11832_v23, %v14120_v16 }
0x1a44   : > { %v7491_v20 = vpack.c.bf16 %v7483_v15, %v7483_v15 }
0x1a45   : > { %v7492_v47 = vpack.c.bf16 %v7484_v53, %v7484_v53 }
0x1a46   : > { %11174 = vmatmul.mubr.msk.bf16.vlgmr.msra.gmra.mrb[232].mxu0 %vm1113_vm4, %v7491_v20  ;;  %v7465_v62 = vpop.xlane.xlu1 %7464 }
0x1a47   : > { %11184 = vmatpush3.bf16.msra.mxu0 %v7601_v4  ;;  %11837 = vrcp.f32 %v7465_v62  ;;  %11180 = vmatmul.mubr.msk.bf16.vlgmr.msra.gmra.mrb[248].mxu1 %vm1113_vm4, %v7492_v47  ;;  %v7468_v36 = vpop.xlane.xlu0 %7467 }
0x1a48   : > { %11190 = vmatpush3.bf16.msra.mxu1 %v7649_v41  ;;  %11839 = vrcp.f32 %v7468_v36  ;;  %11185 = vmatprep.mubr.msk.bf16.mxu0 %vm11962_vm1, %v14889_v42 }
0x1a49   : > { %v11834_v13 = vpop.eup %11833  ;;  %11195 = vmatprep.subr.bf16.mxu0 %v14889_v42  ;;  %11191 = vmatprep.mubr.msk.bf16.mxu1 %vm11962_vm1, %v14889_v42 }
0x1a4a   : > { %v7485_v16 = vmul.f32 %v11834_v13, %v14126_v14  ;;  %11201 = vmatprep.subr.bf16.mxu1 %v14889_v42  ;;  %v7745_v14 = vsel %vm1213_vm3, %v7740_v56, 0  ;;  %v7836_v11 = vpop.permute.xlu1 %7835 }
0x1a4b   : > { %v7788_v52 = vpop.permute.xlu0 %7787  ;;  %v7841_v56 = vsel %vm1213_vm3, %v7836_v11, 0 }
0x1a4c   : > { %v7493_v45 = vpack.c.bf16 %v7485_v16, %v7485_v16  ;;  %v7793_v5 = vsel %vm1213_vm3, %v7788_v52, 0 }
0x1a4d   : > { %v11836_v29 = vpop.eup %11835 }
0x1a4e   : > { %11186 = vmatmul.mubr.msk.bf16.vlgmr.msra.gmra.mrb[236].mxu0 %vm1113_vm4, %v7493_v45  ;;  %v7486_v34 = vmul.f32 %v11836_v29, %v14130_v39 }
0x1a4f   : > { %11196 = vmatpush3.bf16.msra.mxu0 %v7697_v2  ;;  %11197 = vmatprep.mubr.msk.bf16.mxu0 %vm11962_vm1, %v14889_v42 }
0x1a50   : > { %v7494_v19 = vpack.c.bf16 %v7486_v34, %v7486_v34  ;;  %11207 = vmatprep.subr.bf16.mxu0 %v14889_v42 }
0x1a51   : > { %v11838_v21 = vpop.eup %11837 }
0x1a52   : > { %v11840_v10 = vpop.eup %11839  ;;  %11192 = vmatmul.mubr.msk.bf16.vlgmr.msra.gmra.mrb[252].mxu1 %vm1113_vm4, %v7494_v19  ;;  %v7487_v28 = vmul.f32 %v11838_v21, %v14134_v57 }
0x1a53   : > { %11202 = vmatpush3.bf16.msra.mxu1 %v7745_v14  ;;  %11203 = vmatprep.mubr.msk.bf16.mxu1 %vm11962_vm1, %v14889_v42  ;;  %v7488_v39 = vmul.f32 %v11840_v10, %v14136_v44 }
0x1a54   : > { %v7495_v63 = vpack.c.bf16 %v7487_v28, %v7487_v28  ;;  %11213 = vmatprep.subr.bf16.mxu1 %v14889_v42 }
0x1a55   : > { %v7496_v57 = vpack.c.bf16 %v7488_v39, %v7488_v39 }
0x1a56   : > { %11198 = vmatmul.mubr.msk.bf16.vlgmr.msra.gmra.mrb[240].mxu0 %vm1113_vm4, %v7495_v63 }
0x1a57   : > { %11208 = vmatpush3.bf16.msra.mxu0 %v7793_v5  ;;  %11209 = vmatprep.mubr.msk.bf16.mxu0 %vm11962_vm1, %v14889_v42 }
0x1a58   : > { %11219 = vmatprep.subr.bf16.mxu0 %v14889_v42 }
0x1a5a   : > { %11204 = vmatmul.mubr.msk.bf16.vlgmr.msra.gmra.mrb[0].mxu1 %vm1113_vm4, %v7496_v57 }
0x1a5b   : > { %11214 = vmatpush3.bf16.msra.mxu1 %v7841_v56  ;;  %11215 = vmatprep.mubr.msk.bf16.mxu1 %vm11962_vm1, %v14889_v42 }
0x1a5c   : > { %11225 = vmatprep.subr.bf16.mxu1 %v14889_v42 }
0x1a7b   : > { %v7471_v44 = vpop.xlane.xlu1 %7470 }
0x1a7c   : > { %11841 = vrcp.f32 %v7471_v44  ;;  %v7474_v51 = vpop.xlane.xlu0 %7473 }
0x1a7d   : > { %11843 = vrcp.f32 %v7474_v51 }
0x1a7f   : > { %v7936_v48 = vpop.permute.xlu1 %7935 }
0x1a80   : > { %v7886_v37 = vpop.permute.xlu0 %7885  ;;  %v7941_v45 = vsel %vm707_vm2, %v7936_v48, 0 }
0x1a81   : > { %v7891_v13 = vsel %vm707_vm2, %v7886_v37, 0 }
0x1a83   : > { %v7934_v23 = vpop.permute.xlu1 %7933 }
0x1a84   : > { %v7884_v12 = vpop.permute.xlu0 %7883 }
0x1a86   : > { %v11842_v15 = vpop.eup %11841 }
0x1a87   : > { %v11844_v53 = vpop.eup %11843  ;;  %v8036_v20 = vpop.permute.xlu1 %8035  ;;  %v7489_v47 = vmul.f32 %v11842_v15, %v14146_v3 }
0x1a88   : > { %v7490_v4 = vmul.f32 %v11844_v53, %v14148_v59  ;;  %v7986_v62 = vpop.permute.xlu0 %7985  ;;  %v8041_v2 = vsel %vm707_vm2, %v8036_v20, 0 }
0x1a89   : > { %v7497_v41 = vpack.c.bf16 %v7489_v47, %v7489_v47  ;;  %v7991_v29 = vsel %vm707_vm2, %v7986_v62, 0 }
0x1a8a   : > { %v7498_v36 = vpack.c.bf16 %v7490_v4, %v7490_v4 }
0x1a8b   : > { %v8034_v16 = vpop.permute.xlu1 %8033  ;;  %11210 = vmatmul.mubr.msk.bf16.vlgmr.msra.gmra.mrb[244].mxu0 %vm1113_vm4, %v7497_v41 }
0x1a8c   : > { %11216 = vmatmul.mubr.msk.bf16.vlgmr.msra.gmra.mrb[4].mxu1 %vm1113_vm4, %v7498_v36  ;;  %11220 = vmatpush3.bf16.xpose.msra.mxu0 %v7891_v13  ;;  %v7984_v3 = vpop.permute.xlu0 %7983 }
0x1a8d   : > { %11226 = vmatpush3.bf16.xpose.msra.mxu1 %v7941_v45  ;;  %11221 = vmatprep.mubr.msk.bf16.mxu0 %vm11962_vm1, %v14889_v42 }
0x1a8e   : > { %11227 = vmatprep.mubr.msk.bf16.mxu1 %vm11962_vm1, %v14889_v42  ;;  %11231 = vmatprep.subr.bf16.mxu0 %v14889_v42 }
0x1a8f   : > { %11237 = vmatprep.subr.bf16.mxu1 %v14889_v42  ;;  %v8136_v59 = vpop.permute.xlu1 %8135 }
0x1a90   : > { %v8086_v34 = vpop.permute.xlu0 %8085  ;;  %v8141_v14 = vsel %vm707_vm2, %v8136_v59, 0 }
0x1a91   : > { %v8091_v10 = vsel %vm707_vm2, %v8086_v34, 0 }
0x1a93   : > { %11222 = vmatmul.mubr.msk.bf16.vlgmr.msra.gmra.mrb[248].mxu0 %vm707_vm2, %v7884_v12  ;;  %v8134_v19 = vpop.permute.xlu1 %8133 }
0x1a94   : > { %11228 = vmatmul.mubr.msk.bf16.vlgmr.msra.gmra.mrb[8].mxu1 %vm707_vm2, %v7934_v23  ;;  %11232 = vmatpush3.bf16.xpose.msra.mxu0 %v7991_v29  ;;  %v8084_v21 = vpop.permute.xlu0 %8083 }
0x1a95   : > { %11238 = vmatpush3.bf16.xpose.msra.mxu1 %v8041_v2  ;;  %11233 = vmatprep.mubr.msk.bf16.mxu0 %vm11962_vm1, %v14889_v42 }
0x1a96   : > { %11239 = vmatprep.mubr.msk.bf16.mxu1 %vm11962_vm1, %v14889_v42  ;;  %11243 = vmatprep.subr.bf16.mxu0 %v14889_v42 }
0x1a97   : > { %11249 = vmatprep.subr.bf16.mxu1 %v14889_v42  ;;  %v8236_v28 = vpop.permute.xlu1 %8235 }
0x1a98   : > { %v8186_v52 = vpop.permute.xlu0 %8185  ;;  %v8241_v5 = vsel %vm707_vm2, %v8236_v28, 0 }
0x1a99   : > { %v8191_v63 = vsel %vm707_vm2, %v8186_v52, 0 }
0x1a9b   : > { %11234 = vmatmul.mubr.msk.bf16.vlgmr.msra.gmra.mrb[252].mxu0 %vm707_vm2, %v7984_v3  ;;  %v8234_v39 = vpop.permute.xlu1 %8233 }
0x1a9c   : > { %11240 = vmatmul.mubr.msk.bf16.vlgmr.msra.gmra.mrb[12].mxu1 %vm707_vm2, %v8034_v16  ;;  %11244 = vmatpush3.bf16.xpose.msra.mxu0 %v8091_v10  ;;  %v8184_v57 = vpop.permute.xlu0 %8183 }
0x1a9d   : > { %11250 = vmatpush3.bf16.xpose.msra.mxu1 %v8141_v14  ;;  %11245 = vmatprep.mubr.msk.bf16.mxu0 %vm11962_vm1, %v14889_v42 }
0x1a9e   : > { %11251 = vmatprep.mubr.msk.bf16.mxu1 %vm11962_vm1, %v14889_v42  ;;  %11255 = vmatprep.subr.bf16.mxu0 %v14889_v42 }
0x1a9f   : > { %11261 = vmatprep.subr.bf16.mxu1 %v14889_v42  ;;  %v8396_v11 = vpop.permute.xlu1 %8395 }
0x1aa0   : > { %v8401_v56 = vsel %vm1213_vm3, %v8396_v11, 0 }
0x1aa3   : > { %11246 = vmatmul.mubr.msk.bf16.vlgmr.msra.gmra.mrb[0].mxu0 %vm707_vm2, %v8084_v21 }
0x1aa4   : > { %11252 = vmatmul.mubr.msk.bf16.vlgmr.msra.gmra.mrb[16].mxu1 %vm707_vm2, %v8134_v19  ;;  %11256 = vmatpush3.bf16.xpose.msra.mxu0 %v8191_v63 }
0x1aa5   : > { %11262 = vmatpush3.bf16.xpose.msra.mxu1 %v8241_v5  ;;  %11257 = vmatprep.mubr.msk.bf16.mxu0 %vm11962_vm1, %v14889_v42 }
0x1aa6   : > { %11263 = vmatprep.mubr.msk.bf16.mxu1 %vm11962_vm1, %v14889_v42  ;;  %11267 = vmatprep.subr.bf16.mxu0 %v14889_v42 }
0x1aa7   : > { %11273 = vmatprep.subr.bf16.mxu1 %v14889_v42 }
0x1aab   : > { %11258 = vmatmul.mubr.msk.bf16.vlgmr.msra.gmra.mrb[4].mxu0 %vm707_vm2, %v8184_v57 }
0x1aac   : > { %11264 = vmatmul.mubr.msk.bf16.vlgmr.msra.gmra.mrb[20].mxu1 %vm707_vm2, %v8234_v39  ;;  %11268 = vmatpush3.bf16.msra.mxu0 %v8401_v56 }
0x1aad   : > { %11269 = vmatprep.mubr.msk.bf16.mxu0 %vm11962_vm1, %v14889_v42  ;;  %11275 = vmatprep.mubr.msk.bf16.mxu1 %vm11962_vm1, %v14889_v42 }
0x1aae   : > { %11279 = vmatprep.subr.bf16.mxu0 %v14889_v42 }
0x1b19   : > { %v14276_v44 = vpop.f32.mrb[232].mxu0 }
0x1b1a   : > { %v14278_v51 = vpop.f32.mrb[248].mxu1  ;;  %v11175_v48 = vpop.f32.mrb[233].mxu0 }
0x1b1b   : > { %v11475_v37 = vpack.i.bf16 %v14278_v51, %v14276_v44  ;;  %v11181_v23 = vpop.f32.mrb[249].mxu1  ;;  %v7544_v12 = vpop.f32.mrb[234].mxu0 }
0x1b1c   : > { %v7592_v15 = vpop.f32.mrb[250].mxu1  ;;  %v11176_v53 = vpop.f32.mrb[235].mxu0 }
0x1b1d   : > { %v11182_v20 = vpop.f32.mrb[251].mxu1 }
0x1b21   : > { %v14282_v47 = vpop.f32.mrb[236].mxu0 }
0x1b22   : > { %v11187_v4 = vpop.f32.mrb[237].mxu0 }
0x1b23   : > { %v7640_v62 = vpop.f32.mrb[238].mxu0 }
0x1b24   : > { %v11188_v41 = vpop.f32.mrb[239].mxu0 }
0x1b25   : > { %v14284_v36 = vpop.f32.mrb[252].mxu1 }
0x1b26   : > { %v11480_v13 = vpack.i.bf16 %v14284_v36, %v14282_v47  ;;  %v11193_v16 = vpop.f32.mrb[253].mxu1 }
0x1b27   : > { %v7688_v45 = vpop.f32.mrb[254].mxu1 }
0x1b28   : > { %v11194_v3 = vpop.f32.mrb[255].mxu1 }
0x1b29   : > { %v14288_v59 = vpop.f32.mrb[240].mxu0 }
0x1b2a   : > { %v11199_v29 = vpop.f32.mrb[241].mxu0 }
0x1b2b   : > { %v7736_v2 = vpop.f32.mrb[242].mxu0 }
0x1b2c   : > { %v11200_v34 = vpop.f32.mrb[243].mxu0 }
0x1b2d   : > { %v14290_v19 = vpop.f32.mrb[0].mxu1 }
0x1b2e   : > { %v11500_v21 = vpack.i.bf16 %v14290_v19, %v14288_v59  ;;  %v11205_v10 = vpop.f32.mrb[1].mxu1 }
0x1b2f   : > { %v7784_v14 = vpop.f32.mrb[2].mxu1 }
0x1b30   : > { %v11206_v28 = vpop.f32.mrb[3].mxu1 }
0x1b5e   : > { %v14294_v52 = vpop.f32.mrb[244].mxu0 }
0x1b5f   : > { %v14296_v39 = vpop.f32.mrb[4].mxu1  ;;  %v11211_v63 = vpop.f32.mrb[245].mxu0 }
0x1b60   : > { %v11510_v5 = vpack.i.bf16 %v14296_v39, %v14294_v52  ;;  %v11217_v11 = vpop.f32.mrb[5].mxu1  ;;  %v7832_v57 = vpop.f32.mrb[246].mxu0 }
0x1b61   : > { %v7880_v56 = vpop.f32.mrb[6].mxu1  ;;  %v11212_v48 = vpop.f32.mrb[247].mxu0 }
0x1b62   : > { %v11218_v23 = vpop.f32.mrb[7].mxu1 }
0x1b66   : > { %v7927_v12 = vpop.f32.mrb[248].mxu0 }
0x1b67   : > { %v8283_v15 = vmul.f32 0.25, %v7927_v12  ;;  %v7977_v53 = vpop.f32.mrb[8].mxu1  ;;  %v11223_v20 = vpop.f32.mrb[249].mxu0 }
0x1b68   : > { %v8284_v4 = vmul.f32 0.25, %v7977_v53  ;;  %v11229_v62 = vpop.f32.mrb[9].mxu1  ;;  %v7930_v41 = vpop.f32.mrb[250].mxu0 }
0x1b69   : > { %v14301_v16 = vadd.f32 %v14063_v49, %v8283_v15  ;;  %v7980_v45 = vpop.f32.mrb[10].mxu1  ;;  %v11224_v3 = vpop.f32.mrb[251].mxu0 }
0x1b6a   : > { %v8292_v29 = vadd.f32 %v14069_v17, %v8284_v4  ;;  %v11230_v2 = vpop.f32.mrb[11].mxu1 }
0x1b6b   : > { %v8299_v34 = vsel %vm1113_vm4, %v14301_v16, -inf }
0x1b6c   : > { %v8302_v10 = vsel %vm1113_vm4, %v8292_v29, -inf  ;;  %8300 = vmax.xlane.f32.xlu0 %v8299_v34 }
0x1b6d   : > { %8303 = vmax.xlane.f32.xlu1 %v8302_v10 }
0x1b6e   : > { %v8027_v14 = vpop.f32.mrb[252].mxu0 }
0x1b6f   : > { %v8285_v28 = vmul.f32 0.25, %v8027_v14  ;;  %v8077_v63 = vpop.f32.mrb[12].mxu1  ;;  %v11235_v11 = vpop.f32.mrb[253].mxu0 }
0x1b70   : > { %v8286_v57 = vmul.f32 0.25, %v8077_v63  ;;  %v11241_v56 = vpop.f32.mrb[13].mxu1  ;;  %v8030_v49 = vpop.f32.mrb[254].mxu0 }
0x1b71   : > { %v8293_v48 = vadd.f32 %v14079_v18, %v8285_v28  ;;  %v8080_v23 = vpop.f32.mrb[14].mxu1  ;;  %v11236_v12 = vpop.f32.mrb[255].mxu0 }
0x1b72   : > { %v11242_v17 = vpop.f32.mrb[15].mxu1  ;;  %v8294_v15 = vadd.f32 %v14083_v32, %v8286_v57 }
0x1b73   : > { %v8305_v53 = vsel %vm1113_vm4, %v8293_v48, -inf }
0x1b74   : > { %8306 = vmax.xlane.f32.xlu0 %v8305_v53  ;;  %v8308_v45 = vsel %vm1113_vm4, %v8294_v15, -inf }
0x1b76   : > { %v8127_v20 = vpop.f32.mrb[0].mxu0 }
0x1b77   : > { %v8287_v4 = vmul.f32 0.25, %v8127_v20  ;;  %v8177_v62 = vpop.f32.mrb[16].mxu1  ;;  %v11247_v41 = vpop.f32.mrb[1].mxu0 }
0x1b78   : > { %v8288_v3 = vmul.f32 0.25, %v8177_v62  ;;  %v11253_v2 = vpop.f32.mrb[17].mxu1  ;;  %8309 = vmax.xlane.f32.xlu0 %v8308_v45  ;;  %v8130_v34 = vpop.f32.mrb[2].mxu0 }
0x1b79   : > { %v14312_v18 = vadd.f32 %v14089_v33, %v8287_v4  ;;  %v8180_v10 = vpop.f32.mrb[18].mxu1  ;;  %v11248_v14 = vpop.f32.mrb[3].mxu0 }
0x1b7a   : > { %v14315_v32 = vadd.f32 %v14093_v50, %v8288_v3  ;;  %v11254_v28 = vpop.f32.mrb[19].mxu1 }
0x1b7b   : > { %v8311_v63 = vsel %vm1113_vm4, %v14312_v18, -inf }
0x1b7c   : > { %v8314_v11 = vsel %vm1113_vm4, %v14315_v32, -inf  ;;  %8312 = vmax.xlane.f32.xlu1 %v8311_v63 }
0x1b7d   : > { %8315 = vmax.xlane.f32.xlu0 %v8314_v11 }
0x1b7e   : > { %v8227_v57 = vpop.f32.mrb[4].mxu0 }
0x1b7f   : > { %v8289_v56 = vmul.f32 0.25, %v8227_v57  ;;  %v8277_v49 = vpop.f32.mrb[20].mxu1  ;;  %v11259_v23 = vpop.f32.mrb[5].mxu0 }
0x1b80   : > { %v8290_v33 = vmul.f32 0.25, %v8277_v49  ;;  %v11265_v12 = vpop.f32.mrb[21].mxu1  ;;  %v8230_v17 = vpop.f32.mrb[6].mxu0 }
0x1b81   : > { %v8297_v53 = vadd.f32 %v14099_v30, %v8289_v56  ;;  %v8280_v50 = vpop.f32.mrb[22].mxu1  ;;  %v11260_v20 = vpop.f32.mrb[7].mxu0 }
0x1b82   : > { %v8298_v4 = vadd.f32 %v14103_v24, %v8290_v33  ;;  %v11266_v62 = vpop.f32.mrb[23].mxu1 }
0x1b83   : > { %v8317_v41 = vsel %vm1113_vm4, %v8297_v53, -inf }
0x1b84   : > { %v8320_v45 = vsel %vm1113_vm4, %v8298_v4, -inf  ;;  %8318 = vmax.xlane.f32.xlu1 %v8317_v41 }
0x1b85   : > { %8321 = vmax.xlane.f32.xlu0 %v8320_v45 }
0x1b95   : > { %8491 = vrot.lane.b32.xlu1 %v13700_v27, %s11969_s16 }
0x1b99   : > { %8539 = vrot.lane.b32.xlu1 %v13703_v1, %s11969_s16 }
0x1b9b   : > { %8443 = vrot.lane.b32.xlu0 %v13566_v0, %s11969_s16 }
0x1bf9   : > { %v8301_v30 = vpop.xlane.xlu0 %8300 }
0x1bfa   : > { %v8304_v3 = vpop.xlane.xlu1 %8303  ;;  %v8323_v24 = vsub.f32 %v14301_v16, %v8301_v30 }
0x1bfb   : > { %v8324_v2 = vsub.f32 %v8292_v29, %v8304_v3 }
0x1bfc   : > { %v8331_v34 = vmul.f32 1.442695, %v8323_v24 }
0x1bfd   : > { %v8333_v10 = vmul.f32 1.442695, %v8324_v2 }
0x1bfe   : > { %11845 = vpow2.f32 %v8331_v34 }
0x1bff   : > { %11847 = vpow2.f32 %v8333_v10 }
0x1c01   : > { %v8307_v14 = vpop.xlane.xlu0 %8306 }
0x1c02   : > { %v8325_v28 = vsub.f32 %v8293_v48, %v8307_v14 }
0x1c04   : > { %v8335_v63 = vmul.f32 1.442695, %v8325_v28  ;;  %v14920_v28 = vpack.i.bf16 %v14046_v25, %v14044_v26  ;;  %v14923_v26 = vpack.i.bf16 %v14052_v61, %v14050_v38 }
0x1c05   : > { %v8310_v11 = vpop.xlane.xlu0 %8309 }
0x1c06   : > { %11849 = vpow2.f32 %v8335_v63  ;;  %v8326_v27 = vsub.f32 %v8294_v15, %v8310_v11  ;;  %v14921_v63 = vpack.i.bf16 %v14058_v7, %v14056_v35 }
0x1c08   : > { %v14332_v57 = vpop.eup %11845  ;;  %v8337_v1 = vmul.f32 1.442695, %v8326_v27 }
0x1c09   : > { %v14334_v56 = vpop.eup %11847  ;;  %v8347_v0 = vsel %vm1113_vm4, %v14332_v57, 0.0  ;;  %v8313_v50 = vpop.xlane.xlu1 %8312 }
0x1c0a   : > { %11851 = vpow2.f32 %v8337_v1  ;;  %v8350_v16 = vsel %vm1113_vm4, %v14334_v56, 0.0  ;;  %8348 = vadd.xlane.f32.xlu1 %v8347_v0  ;;  %v8316_v29 = vpop.xlane.xlu0 %8315  ;;  %v8327_v20 = vsub.f32 %v14312_v18, %v8313_v50 }
0x1c0b   : > { %8351 = vadd.xlane.f32.xlu0 %v8350_v16  ;;  %v8328_v41 = vsub.f32 %v14315_v32, %v8316_v29 }
0x1c0c   : > { %v8339_v45 = vmul.f32 1.442695, %v8327_v20 }
0x1c0d   : > { %v8341_v3 = vmul.f32 1.442695, %v8328_v41 }
0x1c0e   : > { %11853 = vpow2.f32 %v8339_v45 }
0x1c0f   : > { %11855 = vpow2.f32 %v8341_v3 }
0x1c10   : > { %v14340_v48 = vpop.eup %11849 }
0x1c11   : > { %v8353_v15 = vsel %vm1113_vm4, %v14340_v48, 0.0  ;;  %v8319_v62 = vpop.xlane.xlu1 %8318 }
0x1c12   : > { %v8322_v49 = vpop.xlane.xlu0 %8321  ;;  %8354 = vadd.xlane.f32.xlu1 %v8353_v15  ;;  %v8329_v30 = vsub.f32 %v8297_v53, %v8319_v62 }
0x1c13   : > { %v8330_v2 = vsub.f32 %v8298_v4, %v8322_v49 }
0x1c14   : > { %v14344_v23 = vpop.eup %11851  ;;  %v8343_v24 = vmul.f32 1.442695, %v8329_v30 }
0x1c15   : > { %v8356_v33 = vsel %vm1113_vm4, %v14344_v23, 0.0  ;;  %v8345_v34 = vmul.f32 1.442695, %v8330_v2 }
0x1c16   : > { %v8444_v12 = vpop.permute.xlu0 %8443  ;;  %8357 = vadd.xlane.f32.xlu0 %v8356_v33  ;;  %11857 = vpow2.f32 %v8343_v24 }
0x1c17   : > { %v8449_v17 = vsel %vm1213_vm3, %v8444_v12, 0  ;;  %11859 = vpow2.f32 %v8345_v34 }
0x1c18   : > { %11274 = vmatpush3.bf16.msra.mxu1 %v8449_v17 }
0x1c19   : > { %11285 = vmatprep.subr.bf16.mxu1 %v14889_v42 }
0x1c23   : > { %8635 = vrot.lane.b32.xlu1 %v13731_v40, %s11969_s16  ;;  %v14356_v40 = vpop.eup %11853 }
0x1c24   : > { %v14358_v10 = vpop.eup %11855 }
0x1c25   : > { %v14362_v18 = vpop.eup %11857  ;;  %v8362_v53 = vsel %vm1113_vm4, %v14358_v10, 0.0 }
0x1c26   : > { %v8365_v32 = vsel %vm1113_vm4, %v14362_v18, 0.0  ;;  %v14368_v4 = vpop.eup %11859 }
0x1c27   : > { %v8368_v14 = vsel %vm1113_vm4, %v14368_v4, 0.0 }
0x1c2c   : > { %8587 = vrot.lane.b32.xlu0 %v13721_v31, %s11969_s16  ;;  %v8359_v31 = vsel %vm1113_vm4, %v14356_v40, 0.0 }
0x1c47   : > { %8360 = vadd.xlane.f32.xlu1 %v8359_v31 }
0x1c4b   : > { %8366 = vadd.xlane.f32.xlu1 %v8365_v32  ;;  %8363 = vadd.xlane.f32.xlu0 %v8362_v53 }
0x1c4f   : > { %8369 = vadd.xlane.f32.xlu0 %v8368_v14 }
0x1c5c   : > { %8731 = vrot.lane.b32.xlu1 %v13757_v22, %s11969_s16  ;;  %v14922_v22 = vpack.i.bf16 %v14038_v60, %v14040_v9 }
0x1c60   : > { %11471 = vrot.lane.b32.xlu1 %v14920_v28, %s11968_s15 }
0x1c64   : > { %11481 = vrot.lane.b32.xlu1 %v11480_v13, %s11966_s12 }
0x1c65   : > { %8683 = vrot.lane.b32.xlu0 %v13754_v46, %s11969_s16  ;;  %v8492_v46 = vpop.permute.xlu1 %8491 }
0x1c66   : > { %v8497_v38 = vsel %vm1213_vm3, %v8492_v46, 0 }
0x1c68   : > { %11491 = vrot.lane.b32.xlu1 %v14921_v63, %s11968_s15 }
0x1c69   : > { %11466 = vrot.lane.b32.xlu0 %v14922_v22, %s11968_s15  ;;  %v8540_v25 = vpop.permute.xlu1 %8539 }
0x1c6a   : > { %v8545_v61 = vsel %vm1213_vm3, %v8540_v25, 0 }
0x1c6d   : > { %11476 = vrot.lane.b32.xlu0 %v11475_v37, %s11966_s12 }
0x1c71   : > { %11486 = vrot.lane.b32.xlu0 %v14923_v26, %s11968_s15 }
0x1c97   : > { %v8349_v47 = vpop.xlane.xlu1 %8348 }
0x1c98   : > { %11861 = vrcp.f32 %v8349_v47  ;;  %v8352_v35 = vpop.xlane.xlu0 %8351 }
0x1c99   : > { %11863 = vrcp.f32 %v8352_v35 }
0x1c9f   : > { %v8355_v7 = vpop.xlane.xlu1 %8354 }
0x1ca0   : > { %11865 = vrcp.f32 %v8355_v7 }
0x1ca2   : > { %v11862_v60 = vpop.eup %11861 }
0x1ca3   : > { %v11864_v9 = vpop.eup %11863  ;;  %v8379_v36 = vmul.f32 %v11862_v60, %v14332_v57  ;;  %v8358_v13 = vpop.xlane.xlu0 %8357 }
0x1ca4   : > { %v8380_v44 = vmul.f32 %v11864_v9, %v14334_v56  ;;  %11867 = vrcp.f32 %v8358_v13  ;;  %v8636_v29 = vpop.permute.xlu1 %8635 }
0x1ca5   : > { %v8387_v51 = vpack.c.bf16 %v8379_v36, %v8379_v36 }
0x1ca6   : > { %v8388_v37 = vpack.c.bf16 %v8380_v44, %v8380_v44 }
0x1ca7   : > { %11270 = vmatmul.mubr.msk.bf16.vlgmr.msra.gmra.mrb[8].mxu0 %vm1113_vm4, %v8387_v51  ;;  %v8588_v57 = vpop.permute.xlu0 %8587 }
0x1ca8   : > { %11276 = vmatmul.mubr.msk.bf16.vlgmr.msra.gmra.mrb[24].mxu1 %vm1113_vm4, %v8388_v37  ;;  %11280 = vmatpush3.bf16.msra.mxu0 %v8497_v38  ;;  %v8593_v16 = vsel %vm1213_vm3, %v8588_v57, 0 }
0x1ca9   : > { %11286 = vmatpush3.bf16.msra.mxu1 %v8545_v61  ;;  %11281 = vmatprep.mubr.msk.bf16.mxu0 %vm11962_vm1, %v14889_v42  ;;  %v11572_v61 = vld [vmem:[%s14835_s4 + $0x38] sm:$0xff]  }
0x1caa   : > { %v11866_v11 = vpop.eup %11865  ;;  %11291 = vmatprep.subr.bf16.mxu0 %v14889_v42  ;;  %11287 = vmatprep.mubr.msk.bf16.mxu1 %vm11962_vm1, %v14889_v42 }
0x1cab   : > { %v8381_v27 = vmul.f32 %v11866_v11, %v14340_v48  ;;  %11297 = vmatprep.subr.bf16.mxu1 %v14889_v42  ;;  %v8641_v48 = vsel %vm1213_vm3, %v8636_v29, 0 }
0x1cad   : > { %v8389_v1 = vpack.c.bf16 %v8381_v27, %v8381_v27 }
0x1cae   : > { %v11868_v56 = vpop.eup %11867 }
0x1caf   : > { %v8382_v0 = vmul.f32 %v11868_v56, %v14344_v23  ;;  %11282 = vmatmul.mubr.msk.bf16.vlgmr.msra.gmra.mrb[12].mxu0 %vm1113_vm4, %v8389_v1 }
0x1cb0   : > { %11292 = vmatpush3.bf16.msra.mxu0 %v8593_v16  ;;  %11293 = vmatprep.mubr.msk.bf16.mxu0 %vm11962_vm1, %v14889_v42 }
0x1cb1   : > { %v8390_v15 = vpack.c.bf16 %v8382_v0, %v8382_v0  ;;  %11303 = vmatprep.subr.bf16.mxu0 %v14889_v42 }
0x1cb3   : > { %11288 = vmatmul.mubr.msk.bf16.vlgmr.msra.gmra.mrb[28].mxu1 %vm1113_vm4, %v8390_v15 }
0x1cb4   : > { %11298 = vmatpush3.bf16.msra.mxu1 %v8641_v48  ;;  %11299 = vmatprep.mubr.msk.bf16.mxu1 %vm11962_vm1, %v14889_v42 }
0x1cb5   : > { %11309 = vmatprep.subr.bf16.mxu1 %v14889_v42 }
0x1cd4   : > { %v8361_v49 = vpop.xlane.xlu1 %8360 }
0x1cd5   : > { %11869 = vrcp.f32 %v8361_v49 }
0x1cd8   : > { %v8367_v23 = vpop.xlane.xlu1 %8366  ;;  %v8364_v33 = vpop.xlane.xlu0 %8363 }
0x1cd9   : > { %11871 = vrcp.f32 %v8367_v23 }
0x1cda   : > { %11873 = vrcp.f32 %v8364_v33 }
0x1cdc   : > { %v8732_v12 = vpop.permute.xlu1 %8731  ;;  %v8370_v17 = vpop.xlane.xlu0 %8369 }
0x1cdd   : > { %11875 = vrcp.f32 %v8370_v17  ;;  %v8737_v63 = vsel %vm1213_vm3, %v8732_v12, 0 }
0x1cdf   : > { %v11870_v50 = vpop.eup %11869 }
0x1ce0   : > { %v8383_v20 = vmul.f32 %v11870_v50, %v14356_v40  ;;  %v14425_v62 = vpop.permute.xlu1 %11471  ;;  %v8684_v41 = vpop.permute.xlu0 %8683 }
0x1ce1   : > { %v8689_v24 = vsel %vm1213_vm3, %v8684_v41, 0 }
0x1ce2   : > { %v8391_v45 = vpack.c.bf16 %v8383_v20, %v8383_v20 }
0x1ce3   : > { %v11872_v30 = vpop.eup %11871 }
0x1ce4   : > { %v11874_v3 = vpop.eup %11873  ;;  %v14428_v2 = vpop.permute.xlu1 %11481  ;;  %11294 = vmatmul.mubr.msk.bf16.vlgmr.msra.gmra.mrb[16].mxu0 %vm1113_vm4, %v8391_v45  ;;  %v8385_v40 = vmul.f32 %v11872_v30, %v14362_v18 }
0x1ce5   : > { %v14431_v34 = vpop.permute.xlu0 %11466  ;;  %v8384_v31 = vmul.f32 %v11874_v3, %v14358_v10  ;;  %11304 = vmatpush3.bf16.msra.mxu0 %v8689_v24  ;;  %11305 = vmatprep.mubr.msk.bf16.mxu0 %vm11962_vm1, %v14889_v42 }
0x1ce6   : > { %v8393_v46 = vpack.c.bf16 %v8385_v40, %v8385_v40  ;;  %v11468_v40 = vunpack.i.l.bf16 %v14431_v34 }
0x1ce7   : > { %v8392_v32 = vpack.c.bf16 %v8384_v31, %v8384_v31  ;;  %v11876_v53 = vpop.eup %11875 }
0x1ce8   : > { %v11492_v14 = vpop.permute.xlu1 %11491  ;;  %v8386_v10 = vmul.f32 %v11876_v53, %v14368_v4 }
0x1ce9   : > { %v14437_v28 = vpop.permute.xlu0 %11476  ;;  %v11494_v22 = vunpack.i.h.bf16 %v11492_v14  ;;  %v11493_v26 = vunpack.i.l.bf16 %v11492_v14  ;;  %11300 = vmatmul.mubr.msk.bf16.vlgmr.msra.gmra.mrb[32].mxu1 %vm1113_vm4, %v8392_v32 }
0x1cea   : > { %11310 = vmatpush3.bf16.msra.mxu1 %v8737_v63  ;;  %11311 = vmatprep.mubr.msk.bf16.mxu1 %vm11962_vm1, %v14889_v42  ;;  %v8394_v60 = vpack.c.bf16 %v8386_v10, %v8386_v10  ;;  %v11479_v32 = vunpack.i.h.bf16 %v14437_v28  ;;  %v11478_v53 = vunpack.i.l.bf16 %v14437_v28  ;;  %v11474_v28 = vunpack.i.h.bf16 %v14425_v62 }
0x1ceb   : > { %v14446_v18 = vsel %vm707_vm2, %v13836_v6, %v11494_v22  ;;  %v14450_v25 = vsel %vm707_vm2, %v13843_v43, %v11493_v26  ;;  %v11569_v6 = vld [vmem:[%s14835_s4 + $0x20] sm:$0xff]   ;;  %v11570_v43 = vld [vmem:[%s14835_s4 + $0x28] sm:$0xff]   ;;  %v8875_v22 = vsel %vm707_vm2, %v13824_v58, %v11468_v40  ;;  %v11483_v58 = vunpack.i.l.bf16 %v14428_v2 }
0x1cec   : > { %11306 = vmatmul.mubr.msk.bf16.vlgmr.msra.gmra.mrb[20].mxu0 %vm1113_vm4, %v8393_v46  ;;  %11315 = vmatprep.subr.bf16.mxu0 %v11569_v6  ;;  %v8883_v10 = vsel %vm4379_vm5, %v8875_v22, %v11478_v53  ;;  %v14929_v40 = vld [vmem:[#allocation10_spill] sm:$0xff] }
0x1ced   : > { %v11487_v47 = vpop.permute.xlu0 %11486  ;;  %11316 = vmatpush3.bf16.msra.mxu0 %v11569_v6 }
0x1cee   : > { %v11489_v35 = vunpack.i.h.bf16 %v11487_v47  ;;  %v11488_v7 = vunpack.i.l.bf16 %v11487_v47  ;;  %11317 = vmatprep.subr.bf16.mxu0 %v11570_v43 }
0x1cf0   : > { %v14455_v9 = vsel %vm707_vm2, %v13834_v54, %v11489_v35  ;;  %v14459_v42 = vsel %vm707_vm2, %v13832_v55, %v11488_v7  ;;  %v11571_v54 = vld [vmem:[%s14835_s4 + $0x30] sm:$0xff]  }
0x1cf1   : > { %11312 = vmatmul.mubr.msk.bf16.vlgmr.msra.gmra.mrb[36].mxu1 %vm1113_vm4, %v8394_v60  ;;  %11318 = vmatpush3.bf16.msra.mxu0 %v11570_v43  ;;  %v11484_v60 = vunpack.i.h.bf16 %v14428_v2  ;;  %v14924_v43 = vld [vmem:[#allocation16_spill] sm:$0xff] }
0x1cf2   : > { %11319 = vmatprep.subr.bf16.mxu0 %v11571_v54 }
0x1cf5   : > { %11320 = vmatpush3.bf16.msra.mxu0 %v11571_v54  ;;  %v8878_v54 = vsel %vm707_vm2, %v14924_v43, %v11474_v28 }
0x1cf6   : > { %11321 = vmatprep.subr.bf16.mxu0 %v11572_v61 }
0x1cf9   : > { %11322 = vmatpush3.bf16.msra.mxu0 %v11572_v61 }
0x1d7a   : > { %v8437_v55 = vpop.f32.mrb[8].mxu0 }
0x1d7b   : > { %v8485_v4 = vpop.f32.mrb[24].mxu1  ;;  %v11271_v36 = vpop.f32.mrb[9].mxu0 }
0x1d7c   : > { %v11495_v13 = vpack.i.bf16 %v8485_v4, %v8437_v55  ;;  %v11277_v44 = vpop.f32.mrb[25].mxu1  ;;  %v8440_v51 = vpop.f32.mrb[10].mxu0  ;;  %v14925_v55 = vld [vmem:[#allocation12_spill] sm:$0xff] }
0x1d7d   : > { %v8488_v37 = vpop.f32.mrb[26].mxu1  ;;  %v11272_v38 = vpop.f32.mrb[11].mxu0  ;;  %v8886_v51 = vsel %vm4379_vm5, %v8878_v54, %v11484_v60 }
0x1d7e   : > { %11496 = vrot.lane.b32.xlu0 %v11495_v13, %s11964_s10  ;;  %v11278_v11 = vpop.f32.mrb[27].mxu1 }
0x1d82   : > { %11501 = vrot.lane.b32.xlu0 %v11500_v21, %s11966_s12  ;;  %v8533_v27 = vpop.f32.mrb[12].mxu0 }
0x1d83   : > { %v11283_v57 = vpop.f32.mrb[13].mxu0 }
0x1d84   : > { %v8536_v1 = vpop.f32.mrb[14].mxu0 }
0x1d85   : > { %v11284_v56 = vpop.f32.mrb[15].mxu0 }
0x1d86   : > { %v8581_v0 = vpop.f32.mrb[28].mxu1 }
0x1d87   : > { %v11505_v16 = vpack.i.bf16 %v8581_v0, %v8533_v27  ;;  %v11289_v29 = vpop.f32.mrb[29].mxu1 }
0x1d88   : > { %v8584_v15 = vpop.f32.mrb[30].mxu1 }
0x1d89   : > { %11506 = vrot.lane.b32.xlu1 %v11505_v16, %s11964_s10  ;;  %v11290_v48 = vpop.f32.mrb[31].mxu1 }
0x1d8d   : > { %11511 = vrot.lane.b32.xlu1 %v11510_v5, %s11966_s12  ;;  %v11469_v5 = vunpack.i.h.bf16 %v14431_v34 }
0x1d8f   : > { %v8876_v63 = vsel %vm707_vm2, %v13826_v8, %v11469_v5  ;;  %v11473_v8 = vunpack.i.l.bf16 %v14425_v62 }
0x1d90   : > { %v8884_v47 = vsel %vm4379_vm5, %v8876_v63, %v11479_v32 }
0x1d91   : > { %v8877_v4 = vsel %vm707_vm2, %v14925_v55, %v11473_v8 }
0x1d92   : > { %v8885_v44 = vsel %vm4379_vm5, %v8877_v4, %v11483_v58  ;;  %v14933_v4 = vld [vmem:[#allocation15_spill] sm:$0xff] }
0x1db7   : > { %v8629_v49 = vpop.f32.mrb[16].mxu0 }
0x1db8   : > { %v11295_v23 = vpop.f32.mrb[17].mxu0 }
0x1db9   : > { %v8632_v59 = vpop.f32.mrb[18].mxu0 }
0x1dba   : > { %v11296_v19 = vpop.f32.mrb[19].mxu0 }
0x1dbc   : > { %v8677_v21 = vpop.f32.mrb[32].mxu1 }
0x1dbd   : > { %v11515_v33 = vpack.i.bf16 %v8677_v21, %v8629_v49  ;;  %v11301_v12 = vpop.f32.mrb[33].mxu1 }
0x1dbe   : > { %v8680_v17 = vpop.f32.mrb[34].mxu1 }
0x1dbf   : > { %11516 = vrot.lane.b32.xlu0 %v11515_v33, %s11964_s10  ;;  %v11302_v50 = vpop.f32.mrb[35].mxu1  ;;  %v8725_v20 = vpop.f32.mrb[20].mxu0 }
0x1dc0   : > { %v11307_v41 = vpop.f32.mrb[21].mxu0  ;;  %v14529_v50 = vld [vmem:[%s14839_s8 + $0x10] sm:$0xff] }
0x1dc1   : > { %v8728_v45 = vpop.f32.mrb[22].mxu0 }
0x1dc2   : > { %v11308_v30 = vpop.f32.mrb[23].mxu0 }
0x1dc4   : > { %v8773_v3 = vpop.f32.mrb[36].mxu1 }
0x1dc5   : > { %v11520_v24 = vpack.i.bf16 %v8773_v3, %v8725_v20  ;;  %v11313_v31 = vpop.f32.mrb[37].mxu1  ;;  %v14926_v20 = vld [vmem:[#allocation2_spill] sm:$0xff] }
0x1dc6   : > { %v8776_v52 = vpop.f32.mrb[38].mxu1  ;;  %v14927_v41 = vsub.s32 5, %v14926_v20 }
0x1dc7   : > { %v11314_v39 = vpop.f32.mrb[39].mxu1  ;;  %11521 = vrot.lane.b32.xlu1 %v11520_v24, %s11964_s10  ;;  %v14928_v52 = vld [vmem:[#allocation5_spill] sm:$0xff] }
0x1dc8   : > { %v8915_v45 = vrot.slane %v14529_v50, %v14927_v41  ;;  %v11573_v41 = vld [vmem:[%s14836_s5 + $0x20] sm:$0xff]  }
0x1dc9   : > { %11331 = vmatprep.subr.bf16.mxu1 %v11573_v41 }
0x1dca   : > { %11332 = vmatpush3.bf16.msra.mxu1 %v11573_v41 }
0x1df0   : > { %v11497_v14 = vpop.permute.xlu0 %11496 }
0x1df1   : > { %v11499_v26 = vunpack.i.h.bf16 %v11497_v14  ;;  %v11498_v46 = vunpack.i.l.bf16 %v11497_v14  ;;  %v14930_v14 = vld [vmem:[#allocation6_spill] sm:$0xff] }
0x1df3   : > { %v8891_v35 = vsel %vm4388_vm6, %v8883_v10, %v11498_v46  ;;  %v8892_v34 = vsel %vm4388_vm6, %v8884_v47, %v11499_v26  ;;  %v14931_v46 = vld [vmem:[#allocation8_spill] sm:$0xff] }
0x1df4   : > { %v8899_v7 = vpack.c.bf16 %v8892_v34, %v8891_v35  ;;  %v11502_v2 = vpop.permute.xlu0 %11501 }
0x1df5   : > { %v11504_v61 = vunpack.i.h.bf16 %v11502_v2  ;;  %v11503_v11 = vunpack.i.l.bf16 %v11502_v2 }
0x1df6   : > { %11323 = vmatprep.mubr.msk.bf16.mxu0 %vm465_vm0, %v8899_v7 }
0x1df7   : > { %v8887_v56 = vsel %vm4379_vm5, %v14459_v42, %v11503_v11  ;;  %v8888_v0 = vsel %vm4379_vm5, %v14455_v9, %v11504_v61 }
0x1dfb   : > { %v11507_v6 = vpop.permute.xlu1 %11506 }
0x1dfc   : > { %v11509_v36 = vunpack.i.h.bf16 %v11507_v6  ;;  %v11508_v13 = vunpack.i.l.bf16 %v11507_v6  ;;  %v14932_v6 = vld [vmem:[#allocation9_spill] sm:$0xff] }
0x1dfe   : > { %v8894_v37 = vsel %vm4388_vm6, %v8886_v51, %v11509_v36  ;;  %v8893_v62 = vsel %vm4388_vm6, %v8885_v44, %v11508_v13  ;;  %v14934_v13 = vld [vmem:[#allocation11_spill] sm:$0xff] }
0x1dff   : > { %v8900_v38 = vpack.c.bf16 %v8894_v37, %v8893_v62  ;;  %v11512_v16 = vpop.permute.xlu1 %11511  ;;  %v14935_v37 = vld [vmem:[#allocation14_spill] sm:$0xff] }
0x1e00   : > { %v11514_v49 = vunpack.i.h.bf16 %v11512_v16  ;;  %v11513_v23 = vunpack.i.l.bf16 %v11512_v16 }
0x1e01   : > { %11324 = vmatmul.mubr.msk.bf16.vlgmr.msra.gmra.mrb[24].mxu0 %vm465_vm0, %v8900_v38 }
0x1e02   : > { %v8890_v33 = vsel %vm4379_vm5, %v14446_v18, %v11514_v49  ;;  %v8889_v42 = vsel %vm4379_vm5, %v14450_v25, %v11513_v23 }
0x1e31   : > { %v11517_v27 = vpop.permute.xlu0 %11516 }
0x1e32   : > { %v11519_v57 = vunpack.i.h.bf16 %v11517_v27  ;;  %v11518_v1 = vunpack.i.l.bf16 %v11517_v27 }
0x1e34   : > { %v8895_v29 = vsel %vm4388_vm6, %v8887_v56, %v11518_v1  ;;  %v8896_v15 = vsel %vm4388_vm6, %v8888_v0, %v11519_v57 }
0x1e35   : > { %v8901_v48 = vpack.c.bf16 %v8896_v15, %v8895_v29 }
0x1e37   : > { %11327 = vmatprep.mubr.msk.bf16.mxu0 %vm465_vm0, %v8901_v48 }
0x1e39   : > { %v11522_v59 = vpop.permute.xlu1 %11521 }
0x1e3a   : > { %v11524_v19 = vunpack.i.h.bf16 %v11522_v59  ;;  %v11523_v21 = vunpack.i.l.bf16 %v11522_v59 }
0x1e3c   : > { %v8898_v9 = vsel %vm4388_vm6, %v8890_v33, %v11524_v19  ;;  %v8897_v12 = vsel %vm4388_vm6, %v8889_v42, %v11523_v21 }
0x1e3d   : > { %v8902_v17 = vpack.c.bf16 %v8898_v9, %v8897_v12 }
0x1e3f   : > { %11328 = vmatmul.mubr.msk.bf16.gmra.mrb[28].mxu0 %vm465_vm0, %v8902_v17 }
0x1ed4   : > { %v11325_v18 = vpop.f32.mrb[24].mxu0 }
0x1ed5   : > { %v8986_v30 = vpop.f32.mrb[25].mxu0  ;;  %v8995_v3 = vadd.f32 %v11325_v18, %v8915_v45  ;;  %v11575_v18 = vld [vmem:[%s14836_s5 + $0x30] sm:$0xff]  }
0x1ed6   : > { %v8987_v25 = vadd.f32 %v8986_v30, %v8915_v45  ;;  %v11326_v24 = vpop.f32.mrb[26].mxu0  ;;  %v11576_v30 = vld [vmem:[%s14836_s5 + $0x38] sm:$0xff]  }
0x1ed7   : > { %v8989_v31 = vpop.f32.mrb[27].mxu0  ;;  %v9019_v32 = vadd.f32 %v8995_v3, %v14929_v40  ;;  %v8998_v53 = vadd.f32 %v11326_v24, %v8915_v45 }
0x1ed8   : > { %v9017_v39 = vadd.f32 %v8987_v25, %v14928_v52  ;;  %v8990_v5 = vadd.f32 %v8989_v31, %v8915_v45 }
0x1ed9   : > { %v9020_v10 = vadd.f32 %v8998_v53, %v14931_v46  ;;  %v9031_v47 = vsel %vm465_vm0, %v9019_v32, 0.0 }
0x1eda   : > { %v9018_v63 = vadd.f32 %v8990_v5, %v14930_v14  ;;  %v9025_v22 = vsel %vm465_vm0, %v9017_v39, 0.0 }
0x1edb   : > { %9026 = vadd.xlane.f32.xlu0 %v9025_v22  ;;  %v9034_v35 = vsel %vm465_vm0, %v9020_v10, 0.0 }
0x1edc   : > { %v9028_v26 = vsel %vm465_vm0, %v9018_v63, 0.0 }
0x1edd   : > { %9029 = vadd.xlane.f32.xlu1 %v9028_v26 }
0x1edf   : > { %9032 = vadd.xlane.f32.xlu0 %v9031_v47 }
0x1ee3   : > { %9035 = vadd.xlane.f32.xlu0 %v9034_v35 }
0x1f12   : > { %v11329_v34 = vpop.f32.mrb[28].mxu0 }
0x1f13   : > { %v9002_v7 = vpop.f32.mrb[29].mxu0  ;;  %v9011_v28 = vadd.f32 %v11329_v34, %v8915_v45 }
0x1f14   : > { %v9003_v8 = vadd.f32 %v9002_v7, %v8915_v45  ;;  %v11330_v60 = vpop.f32.mrb[30].mxu0 }
0x1f15   : > { %v9005_v58 = vpop.f32.mrb[31].mxu0  ;;  %v9014_v54 = vadd.f32 %v11330_v60, %v8915_v45  ;;  %v9023_v36 = vadd.f32 %v9011_v28, %v14933_v4  ;;  %v11577_v28 = vld [vmem:[%s14837_s6 + $0x40] sm:$0xff]   ;;  %v11579_v60 = vld [vmem:[%s14837_s6 + $0x50] sm:$0xff]  }
0x1f16   : > { %v9021_v43 = vadd.f32 %v9003_v8, %v14932_v6  ;;  %v9006_v55 = vadd.f32 %v9005_v58, %v8915_v45  ;;  %v11574_v45 = vld [vmem:[%s14836_s5 + $0x28] sm:$0xff]   ;;  %11347 = vmatprep.subr.bf16.mxu0 %v11577_v28  ;;  %v11580_v58 = vld [vmem:[%s14837_s6 + $0x58] sm:$0xff]   ;;  %v11581_v6 = vld [vmem:[%s14837_s6 + $0x60] sm:$0xff]  }
0x1f17   : > { %v9024_v62 = vadd.f32 %v9014_v54, %v14935_v37  ;;  %v9043_v2 = vsel %vm465_vm0, %v9023_v36, 0.0  ;;  %11333 = vmatprep.subr.bf16.mxu1 %v11574_v45  ;;  %v11578_v8 = vld [vmem:[%s14837_s6 + $0x48] sm:$0xff]   ;;  %11348 = vmatpush3.bf16.msra.mxu0 %v11577_v28 }
0x1f18   : > { %v9022_v44 = vadd.f32 %v9006_v55, %v14934_v13  ;;  %v9037_v51 = vsel %vm465_vm0, %v9021_v43, 0.0  ;;  %11334 = vmatpush3.bf16.msra.mxu1 %v11574_v45  ;;  %11349 = vmatprep.subr.bf16.mxu0 %v11578_v8 }
0x1f19   : > { %9038 = vadd.xlane.f32.xlu1 %v9037_v51  ;;  %v9046_v61 = vsel %vm465_vm0, %v9024_v62, 0.0  ;;  %11335 = vmatprep.subr.bf16.mxu1 %v11575_v18 }
0x1f1a   : > { %v9040_v38 = vsel %vm465_vm0, %v9022_v44, 0.0 }
0x1f1b   : > { %9041 = vadd.xlane.f32.xlu0 %v9040_v38  ;;  %11350 = vmatpush3.bf16.msra.mxu0 %v11578_v8 }
0x1f1c   : > { %11336 = vmatpush3.bf16.msra.mxu1 %v11575_v18  ;;  %11351 = vmatprep.subr.bf16.mxu0 %v11579_v60 }
0x1f1d   : > { %9044 = vadd.xlane.f32.xlu1 %v9043_v2  ;;  %11337 = vmatprep.subr.bf16.mxu1 %v11576_v30 }
0x1f1f   : > { %9047 = vadd.xlane.f32.xlu0 %v9046_v61  ;;  %11352 = vmatpush3.bf16.msra.mxu0 %v11579_v60  ;;  %v14623_v61 = vld [vmem:[%s14839_s8 + $0x20] sm:$0xf] }
0x1f20   : > { %11338 = vmatpush3.bf16.msra.mxu1 %v11576_v30  ;;  %11353 = vmatprep.subr.bf16.mxu0 %v11580_v58 }
0x1f23   : > { %11354 = vmatpush3.bf16.msra.mxu0 %v11580_v58 }
0x1f24   : > { %11355 = vmatprep.subr.bf16.mxu0 %v11581_v6 }
0x1f27   : > { %11356 = vmatpush3.bf16.msra.mxu0 %v11581_v6 }
0x1f68   : > { %v9027_v11 = vpop.xlane.xlu0 %9026 }
0x1f69   : > { %v9049_v27 = vmul.f32 0.015625, %v9027_v11 }
0x1f6a   : > { %v9030_v57 = vpop.xlane.xlu1 %9029 }
0x1f6b   : > { %v14550_v1 = vsub.f32 %v9017_v39, %v9049_v27  ;;  %v9050_v56 = vmul.f32 0.015625, %v9030_v57  ;;  %v14936_v27 = vld [vmem:[#allocation3_spill] sm:$0xff] }
0x1f6c   : > { %v9033_v0 = vpop.xlane.xlu0 %9032  ;;  %v9132_v57 = vrot.slane %v14623_v61, %v14936_v27 }
0x1f6d   : > { %v14552_v16 = vsub.f32 %v9018_v63, %v9050_v56  ;;  %v9051_v29 = vmul.f32 0.015625, %v9033_v0  ;;  %v9065_v15 = vmul.f32 %v14550_v1, %v14550_v1 }
0x1f6f   : > { %v14556_v48 = vsub.f32 %v9019_v32, %v9051_v29  ;;  %v9073_v49 = vsel %vm465_vm0, %v9065_v15, 0.0  ;;  %v9066_v23 = vmul.f32 %v14552_v16, %v14552_v16 }
0x1f70   : > { %9074 = vadd.xlane.f32.xlu1 %v9073_v49  ;;  %v9036_v59 = vpop.xlane.xlu0 %9035  ;;  %v14937_v49 = vld [vmem:[#allocation13_spill] sm:$0xff] }
0x1f71   : > { %v9052_v19 = vmul.f32 0.015625, %v9036_v59  ;;  %v9076_v21 = vsel %vm465_vm0, %v9066_v23, 0.0  ;;  %v9067_v33 = vmul.f32 %v14556_v48, %v14556_v48  ;;  %v9144_v23 = vrot.slane %v14623_v61, %v14937_v49 }
0x1f72   : > { %9077 = vadd.xlane.f32.xlu0 %v9076_v21 }
0x1f73   : > { %v14564_v42 = vsub.f32 %v9020_v10, %v9052_v19  ;;  %v9079_v9 = vsel %vm465_vm0, %v9067_v33, 0.0 }
0x1f74   : > { %9080 = vadd.xlane.f32.xlu1 %v9079_v9 }
0x1f75   : > { %v9068_v12 = vmul.f32 %v14564_v42, %v14564_v42 }
0x1f77   : > { %v9082_v17 = vsel %vm465_vm0, %v9068_v12, 0.0 }
0x1f78   : > { %9083 = vadd.xlane.f32.xlu0 %v9082_v17 }
0x1fa6   : > { %v9039_v3 = vpop.xlane.xlu1 %9038 }
0x1fa7   : > { %v9053_v25 = vmul.f32 0.015625, %v9039_v3 }
0x1fa8   : > { %v9042_v24 = vpop.xlane.xlu0 %9041 }
0x1fa9   : > { %v14582_v31 = vsub.f32 %v9021_v43, %v9053_v25  ;;  %v9054_v52 = vmul.f32 0.015625, %v9042_v24  ;;  %v11582_v43 = vld [vmem:[%s14837_s6 + $0x68] sm:$0xff]  }
0x1faa   : > { %v9045_v39 = vpop.xlane.xlu1 %9044  ;;  %11357 = vmatprep.subr.bf16.mxu0 %v11582_v43 }
0x1fab   : > { %v14584_v5 = vsub.f32 %v9022_v44, %v9054_v52  ;;  %v9055_v40 = vmul.f32 0.015625, %v9045_v39  ;;  %v9069_v32 = vmul.f32 %v14582_v31, %v14582_v31  ;;  %11358 = vmatpush3.bf16.msra.mxu0 %v11582_v43 }
0x1fac   : > { %v9048_v53 = vpop.xlane.xlu0 %9047 }
0x1fad   : > { %v14588_v14 = vsub.f32 %v9023_v36, %v9055_v40  ;;  %v9056_v63 = vmul.f32 0.015625, %v9048_v53  ;;  %v9085_v22 = vsel %vm465_vm0, %v9069_v32, 0.0  ;;  %v9070_v26 = vmul.f32 %v14584_v5, %v14584_v5 }
0x1fae   : > { %9086 = vadd.xlane.f32.xlu1 %v9085_v22 }
0x1faf   : > { %v14593_v46 = vsub.f32 %v9024_v62, %v9056_v63  ;;  %v9088_v10 = vsel %vm465_vm0, %v9070_v26, 0.0  ;;  %v9071_v47 = vmul.f32 %v14588_v14, %v14588_v14 }
0x1fb0   : > { %9089 = vadd.xlane.f32.xlu0 %v9088_v10 }
0x1fb1   : > { %v9091_v35 = vsel %vm465_vm0, %v9071_v47, 0.0  ;;  %v9072_v34 = vmul.f32 %v14593_v46, %v14593_v46 }
0x1fb2   : > { %9092 = vadd.xlane.f32.xlu1 %v9091_v35 }
0x1fb3   : > { %v9094_v7 = vsel %vm465_vm0, %v9072_v34, 0.0 }
0x1fb4   : > { %9095 = vadd.xlane.f32.xlu0 %v9094_v7 }
0x1ffd   : > { %v9075_v54 = vpop.xlane.xlu1 %9074 }
0x1ffe   : > { %v9097_v55 = vmul.f32 0.015625, %v9075_v54 }
0x1fff   : > { %v9078_v4 = vpop.xlane.xlu0 %9077 }
0x2000   : > { %v9105_v36 = vadd.f32 1e-05, %v9097_v55  ;;  %v9098_v13 = vmul.f32 0.015625, %v9078_v4 }
0x2001   : > { %v9081_v44 = vpop.xlane.xlu1 %9080 }
0x2002   : > { %11877 = vrsqrt.f32 %v9105_v36  ;;  %v9106_v51 = vadd.f32 1e-05, %v9098_v13  ;;  %v9099_v37 = vmul.f32 0.015625, %v9081_v44  ;;  %v11584_v13 = vld [vmem:[%s14837_s6 + $0x78] sm:$0xff]   ;;  %v14938_v44 = vsub.s32 6, %v14926_v20 }
0x2004   : > { %11879 = vrsqrt.f32 %v9106_v51  ;;  %v9107_v62 = vadd.f32 1e-05, %v9099_v37  ;;  %v9169_v51 = vrot.slane %v14529_v50, %v14938_v44 }
0x2005   : > { %v9084_v38 = vpop.xlane.xlu0 %9083 }
0x2006   : > { %11881 = vrsqrt.f32 %v9107_v62  ;;  %v9100_v2 = vmul.f32 0.015625, %v9084_v38 }
0x2008   : > { %v9108_v11 = vadd.f32 1e-05, %v9100_v2 }
0x200a   : > { %11883 = vrsqrt.f32 %v9108_v11 }
0x200c   : > { %v11878_v56 = vpop.eup %11877 }
0x200d   : > { %v9121_v0 = vmul.f32 %v11878_v56, %v14550_v1 }
0x200e   : > { %v11880_v29 = vpop.eup %11879 }
0x200f   : > { %v9122_v15 = vmul.f32 %v11880_v29, %v14552_v16  ;;  %v9133_v59 = vmul.f32 %v9132_v57, %v9121_v0 }
0x2010   : > { %v11882_v19 = vpop.eup %11881 }
0x2011   : > { %v9123_v21 = vmul.f32 %v11882_v19, %v14556_v48  ;;  %v9134_v33 = vmul.f32 %v9132_v57, %v9122_v15  ;;  %v14632_v9 = vadd.f32 %v9144_v23, %v9133_v59 }
0x2013   : > { %v14634_v12 = vadd.f32 %v9144_v23, %v9134_v33  ;;  %v9135_v41 = vmul.f32 %v9132_v57, %v9123_v21 }
0x2014   : > { %v11884_v17 = vpop.eup %11883 }
0x2015   : > { %v9124_v45 = vmul.f32 %v11884_v17, %v14564_v42  ;;  %v9153_v1 = vpack.c.bf16 %v14634_v12, %v14632_v9  ;;  %v14640_v18 = vadd.f32 %v9144_v23, %v9135_v41 }
0x2017   : > { %v9136_v16 = vmul.f32 %v9132_v57, %v9124_v45  ;;  %11339 = vmatprep.mubr.msk.bf16.mxu1 %vm465_vm0, %v9153_v1 }
0x2019   : > { %v14642_v30 = vadd.f32 %v9144_v23, %v9136_v16 }
0x201b   : > { %v9154_v48 = vpack.c.bf16 %v14642_v30, %v14640_v18 }
0x201d   : > { %11340 = vmatmul.mubr.msk.bf16.vlgmr.msra.gmra.mrb[40].mxu1 %vm465_vm0, %v9154_v48 }
0x203b   : > { %v9087_v3 = vpop.xlane.xlu1 %9086 }
0x203c   : > { %v9101_v25 = vmul.f32 0.015625, %v9087_v3 }
0x203d   : > { %v9090_v24 = vpop.xlane.xlu0 %9089 }
0x203e   : > { %v9109_v52 = vadd.f32 1e-05, %v9101_v25  ;;  %v9102_v42 = vmul.f32 0.015625, %v9090_v24 }
0x203f   : > { %v9093_v39 = vpop.xlane.xlu1 %9092 }
0x2040   : > { %11885 = vrsqrt.f32 %v9109_v52  ;;  %v9110_v40 = vadd.f32 1e-05, %v9102_v42  ;;  %v9103_v32 = vmul.f32 0.015625, %v9093_v39 }
0x2041   : > { %v9096_v53 = vpop.xlane.xlu0 %9095 }
0x2042   : > { %11887 = vrsqrt.f32 %v9110_v40  ;;  %v9111_v63 = vadd.f32 1e-05, %v9103_v32  ;;  %v9104_v22 = vmul.f32 0.015625, %v9096_v53  ;;  %v14939_v40 = vsub.s32 7, %v14926_v20 }
0x2044   : > { %11889 = vrsqrt.f32 %v9111_v63  ;;  %v9112_v26 = vadd.f32 1e-05, %v9104_v22  ;;  %v9303_v32 = vrot.slane %v14529_v50, %v14939_v40 }
0x2046   : > { %11891 = vrsqrt.f32 %v9112_v26 }
0x204a   : > { %v11886_v10 = vpop.eup %11885 }
0x204b   : > { %v9125_v47 = vmul.f32 %v11886_v10, %v14582_v31 }
0x204c   : > { %v11888_v35 = vpop.eup %11887 }
0x204d   : > { %v9126_v34 = vmul.f32 %v11888_v35, %v14584_v5  ;;  %v9137_v7 = vmul.f32 %v9132_v57, %v9125_v47 }
0x204e   : > { %v11890_v28 = vpop.eup %11889 }
0x204f   : > { %v9127_v8 = vmul.f32 %v11890_v28, %v14588_v14  ;;  %v9138_v60 = vmul.f32 %v9132_v57, %v9126_v34  ;;  %v14651_v54 = vadd.f32 %v9144_v23, %v9137_v7 }
0x2050   : > { %v11892_v58 = vpop.eup %11891 }
0x2051   : > { %v9139_v6 = vmul.f32 %v9132_v57, %v9127_v8  ;;  %v9128_v43 = vmul.f32 %v11892_v58, %v14593_v46  ;;  %v14653_v55 = vadd.f32 %v9144_v23, %v9138_v60  ;;  %v11583_v46 = vld [vmem:[%s14837_s6 + $0x70] sm:$0xff]  }
0x2052   : > { %11359 = vmatprep.subr.bf16.mxu0 %v11583_v46 }
0x2053   : > { %v9140_v4 = vmul.f32 %v9132_v57, %v9128_v43  ;;  %v9155_v31 = vpack.c.bf16 %v14653_v55, %v14651_v54  ;;  %v14657_v36 = vadd.f32 %v9144_v23, %v9139_v6  ;;  %11360 = vmatpush3.bf16.msra.mxu0 %v11583_v46 }
0x2054   : > { %11361 = vmatprep.subr.bf16.mxu0 %v11584_v13 }
0x2055   : > { %v14659_v5 = vadd.f32 %v9144_v23, %v9140_v4  ;;  %11343 = vmatprep.mubr.msk.bf16.mxu1 %vm465_vm0, %v9155_v31 }
0x2057   : > { %v9156_v14 = vpack.c.bf16 %v14659_v5, %v14657_v36  ;;  %11362 = vmatpush3.bf16.msra.mxu0 %v11584_v13 }
0x2059   : > { %11344 = vmatmul.mubr.msk.bf16.gmra.mrb[44].mxu1 %vm465_vm0, %v9156_v14 }
0x20f0   : > { %v11341_v37 = vpop.f32.mrb[40].mxu1 }
0x20f1   : > { %v9249_v62 = vadd.f32 %v11341_v37, %v9169_v51  ;;  %v9240_v38 = vpop.f32.mrb[41].mxu1 }
0x20f2   : > { %v9241_v2 = vadd.f32 %v9240_v38, %v9169_v51  ;;  %v11342_v11 = vpop.f32.mrb[42].mxu1 }
0x20f3   : > { %v9252_v27 = vadd.f32 %v11342_v11, %v9169_v51  ;;  %v9243_v57 = vpop.f32.mrb[43].mxu1  ;;  %v9273_v0 = vmax.f32 %v9249_v62, 0.0 }
0x20f4   : > { %v9244_v56 = vadd.f32 %v9243_v57, %v9169_v51  ;;  %v9271_v15 = vmax.f32 %v9241_v2, 0.0 }
0x20f5   : > { %v9274_v29 = vmax.f32 %v9252_v27, 0.0 }
0x20f6   : > { %v9272_v23 = vmax.f32 %v9244_v56, 0.0 }
0x20f7   : > { %v9280_v59 = vpack.c.bf16 %v9274_v29, %v9273_v0 }
0x20f8   : > { %v9279_v19 = vpack.c.bf16 %v9272_v23, %v9271_v15 }
0x20fa   : > { %11363 = vmatprep.mubr.bf16.mxu0 %v9279_v19 }
0x20fb   : > { %11364 = vmatmul.mubr.bf16.vlgmr.msra.gmra.mrb[32].mxu0 %v9280_v59 }
0x212c   : > { %v11345_v21 = vpop.f32.mrb[44].mxu1 }
0x212d   : > { %v9265_v33 = vadd.f32 %v11345_v21, %v9169_v51  ;;  %v9256_v17 = vpop.f32.mrb[45].mxu1 }
0x212e   : > { %v9257_v41 = vadd.f32 %v9256_v17, %v9169_v51  ;;  %v11346_v45 = vpop.f32.mrb[46].mxu1 }
0x212f   : > { %v9268_v1 = vadd.f32 %v11346_v45, %v9169_v51  ;;  %v9259_v16 = vpop.f32.mrb[47].mxu1  ;;  %v9277_v3 = vmax.f32 %v9265_v33, 0.0 }
0x2130   : > { %v9260_v48 = vadd.f32 %v9259_v16, %v9169_v51  ;;  %v9275_v24 = vmax.f32 %v9257_v41, 0.0 }
0x2131   : > { %v9278_v25 = vmax.f32 %v9268_v1, 0.0 }
0x2132   : > { %v9276_v52 = vmax.f32 %v9260_v48, 0.0 }
0x2133   : > { %v9282_v42 = vpack.c.bf16 %v9278_v25, %v9277_v3 }
0x2134   : > { %v9281_v39 = vpack.c.bf16 %v9276_v52, %v9275_v24 }
0x2136   : > { %11367 = vmatprep.mubr.bf16.mxu0 %v9281_v39 }
0x2137   : > { %11368 = vmatmul.mubr.bf16.gmra.mrb[36].mxu0 %v9282_v42 }
0x21ce   : > { %v11365_v53 = vpop.f32.mrb[32].mxu0 }
0x21cf   : > { %v9386_v63 = vpop.f32.mrb[33].mxu0  ;;  %v9395_v22 = vadd.f32 %v11365_v53, %v9303_v32 }
0x21d0   : > { %v9387_v26 = vadd.f32 %v9386_v63, %v9303_v32  ;;  %v11366_v10 = vpop.f32.mrb[34].mxu0 }
0x21d1   : > { %v9389_v47 = vpop.f32.mrb[35].mxu0  ;;  %v9398_v34 = vadd.f32 %v11366_v10, %v9303_v32  ;;  %v9419_v28 = vadd.f32 %v9395_v22, %v14640_v18 }
0x21d2   : > { %v9417_v35 = vadd.f32 %v9387_v26, %v14632_v9  ;;  %v9390_v7 = vadd.f32 %v9389_v47, %v9303_v32 }
0x21d3   : > { %v9420_v20 = vadd.f32 %v9398_v34, %v14642_v30  ;;  %v9431_v58 = vsel %vm465_vm0, %v9419_v28, 0.0 }
0x21d4   : > { %v9418_v8 = vadd.f32 %v9390_v7, %v14634_v12  ;;  %v9425_v60 = vsel %vm465_vm0, %v9417_v35, 0.0 }
0x21d5   : > { %9426 = vadd.xlane.f32.xlu1 %v9425_v60  ;;  %v9434_v6 = vsel %vm465_vm0, %v9420_v20, 0.0 }
0x21d6   : > { %v9428_v50 = vsel %vm465_vm0, %v9418_v8, 0.0 }
0x21d7   : > { %9429 = vadd.xlane.f32.xlu0 %v9428_v50 }
0x21d9   : > { %9432 = vadd.xlane.f32.xlu1 %v9431_v58 }
0x21db   : > { %9435 = vadd.xlane.f32.xlu0 %v9434_v6 }
0x220a   : > { %v11369_v9 = vpop.f32.mrb[36].mxu0 }
0x220b   : > { %v9411_v43 = vadd.f32 %v11369_v9, %v9303_v32  ;;  %v9402_v4 = vpop.f32.mrb[37].mxu0 }
0x220c   : > { %v9403_v18 = vadd.f32 %v9402_v4, %v9303_v32  ;;  %v11370_v31 = vpop.f32.mrb[38].mxu0 }
0x220d   : > { %v9414_v12 = vadd.f32 %v11370_v31, %v9303_v32  ;;  %v9405_v14 = vpop.f32.mrb[39].mxu0  ;;  %v9423_v30 = vadd.f32 %v9411_v43, %v14657_v36 }
0x220e   : > { %v9421_v46 = vadd.f32 %v9403_v18, %v14651_v54  ;;  %v9406_v13 = vadd.f32 %v9405_v14, %v9303_v32  ;;  %v14940_v14 = vld [vmem:[#allocation4_spill] sm:$0xff] }
0x220f   : > { %v9424_v37 = vadd.f32 %v9414_v12, %v14659_v5  ;;  %v9443_v38 = vsel %vm465_vm0, %v9423_v30, 0.0 }
0x2210   : > { %v9422_v44 = vadd.f32 %v9406_v13, %v14653_v55  ;;  %v9437_v51 = vsel %vm465_vm0, %v9421_v46, 0.0 }
0x2211   : > { %9438 = vadd.xlane.f32.xlu1 %v9437_v51  ;;  %v9446_v2 = vsel %vm465_vm0, %v9424_v37, 0.0 }
0x2212   : > { %v9440_v62 = vsel %vm465_vm0, %v9422_v44, 0.0 }
0x2213   : > { %9441 = vadd.xlane.f32.xlu0 %v9440_v62 }
0x2215   : > { %9444 = vadd.xlane.f32.xlu1 %v9443_v38 }
0x2217   : > { %9447 = vadd.xlane.f32.xlu0 %v9446_v2 }
0x2262   : > { %v9427_v54 = vpop.xlane.xlu1 %9426 }
0x2263   : > { %v9449_v11 = vmul.f32 0.015625, %v9427_v54 }
0x2264   : > { %v9430_v27 = vpop.xlane.xlu0 %9429 }
0x2265   : > { %v14693_v36 = vsub.f32 %v9417_v35, %v9449_v11  ;;  %v9450_v55 = vmul.f32 0.015625, %v9430_v27 }
0x2266   : > { %v9433_v57 = vpop.xlane.xlu1 %9432 }
0x2267   : > { %v14695_v56 = vsub.f32 %v9418_v8, %v9450_v55  ;;  %v9451_v0 = vmul.f32 0.015625, %v9433_v57  ;;  %v9465_v5 = vmul.f32 %v14693_v36, %v14693_v36 }
0x2268   : > { %v9436_v29 = vpop.xlane.xlu0 %9435 }
0x2269   : > { %v14699_v15 = vsub.f32 %v9419_v28, %v9451_v0  ;;  %v9452_v23 = vmul.f32 0.015625, %v9436_v29  ;;  %v9473_v59 = vsel %vm465_vm0, %v9465_v5, 0.0  ;;  %v9466_v19 = vmul.f32 %v14695_v56, %v14695_v56 }
0x226a   : > { %9474 = vadd.xlane.f32.xlu1 %v9473_v59 }
0x226b   : > { %v14704_v21 = vsub.f32 %v9420_v20, %v9452_v23  ;;  %v9476_v33 = vsel %vm465_vm0, %v9466_v19, 0.0  ;;  %v9467_v17 = vmul.f32 %v14699_v15, %v14699_v15 }
0x226c   : > { %9477 = vadd.xlane.f32.xlu0 %v9476_v33 }
0x226d   : > { %v9479_v41 = vsel %vm465_vm0, %v9467_v17, 0.0  ;;  %v9468_v45 = vmul.f32 %v14704_v21, %v14704_v21 }
0x226e   : > { %9480 = vadd.xlane.f32.xlu1 %v9479_v41 }
0x226f   : > { %v9482_v1 = vsel %vm465_vm0, %v9468_v45, 0.0 }
0x2270   : > { %9483 = vadd.xlane.f32.xlu0 %v9482_v1 }
0x229e   : > { %v9439_v16 = vpop.xlane.xlu1 %9438 }
0x229f   : > { %v9453_v48 = vmul.f32 0.015625, %v9439_v16 }
0x22a0   : > { %v9442_v3 = vpop.xlane.xlu0 %9441 }
0x22a1   : > { %v14713_v25 = vsub.f32 %v9421_v46, %v9453_v48  ;;  %v9454_v24 = vmul.f32 0.015625, %v9442_v3  ;;  %v9532_v46 = vrot.slane %v14623_v61, %v14940_v14 }
0x22a2   : > { %v9445_v52 = vpop.xlane.xlu1 %9444 }
0x22a3   : > { %v14715_v42 = vsub.f32 %v9422_v44, %v9454_v24  ;;  %v9455_v39 = vmul.f32 0.015625, %v9445_v52  ;;  %v9469_v40 = vmul.f32 %v14713_v25, %v14713_v25  ;;  %v14941_v44 = vld [vmem:[#allocation7_spill] sm:$0xff] }
0x22a4   : > { %v9448_v32 = vpop.xlane.xlu0 %9447  ;;  %v9544_v51 = vrot.slane %v14623_v61, %v14941_v44 }
0x22a5   : > { %v14719_v53 = vsub.f32 %v9423_v30, %v9455_v39  ;;  %v9456_v63 = vmul.f32 0.015625, %v9448_v32  ;;  %v9485_v22 = vsel %vm465_vm0, %v9469_v40, 0.0  ;;  %v9470_v26 = vmul.f32 %v14715_v42, %v14715_v42 }
0x22a6   : > { %9486 = vadd.xlane.f32.xlu1 %v9485_v22 }
0x22a7   : > { %v14724_v10 = vsub.f32 %v9424_v37, %v9456_v63  ;;  %v9488_v47 = vsel %vm465_vm0, %v9470_v26, 0.0  ;;  %v9471_v35 = vmul.f32 %v14719_v53, %v14719_v53 }
0x22a8   : > { %9489 = vadd.xlane.f32.xlu0 %v9488_v47 }
0x22a9   : > { %v9491_v34 = vsel %vm465_vm0, %v9471_v35, 0.0  ;;  %v9472_v7 = vmul.f32 %v14724_v10, %v14724_v10 }
0x22aa   : > { %9492 = vadd.xlane.f32.xlu1 %v9491_v34 }
0x22ab   : > { %v9494_v28 = vsel %vm465_vm0, %v9472_v7, 0.0 }
0x22ac   : > { %9495 = vadd.xlane.f32.xlu0 %v9494_v28 }
0x22f7   : > { %v9475_v8 = vpop.xlane.xlu1 %9474 }
0x22f8   : > { %v9497_v60 = vmul.f32 0.015625, %v9475_v8 }
0x22f9   : > { %v9478_v20 = vpop.xlane.xlu0 %9477 }
0x22fa   : > { %v9505_v50 = vadd.f32 1e-05, %v9497_v60  ;;  %v9498_v58 = vmul.f32 0.015625, %v9478_v20 }
0x22fb   : > { %v9481_v6 = vpop.xlane.xlu1 %9480 }
0x22fc   : > { %11893 = vrsqrt.f32 %v9505_v50  ;;  %v9506_v9 = vadd.f32 1e-05, %v9498_v58  ;;  %v9499_v43 = vmul.f32 0.015625, %v9481_v6 }
0x22fd   : > { %v9484_v4 = vpop.xlane.xlu0 %9483 }
0x22fe   : > { %11895 = vrsqrt.f32 %v9506_v9  ;;  %v9507_v18 = vadd.f32 1e-05, %v9499_v43  ;;  %v9500_v31 = vmul.f32 0.015625, %v9484_v4 }
0x2300   : > { %11897 = vrsqrt.f32 %v9507_v18  ;;  %v9508_v12 = vadd.f32 1e-05, %v9500_v31 }
0x2302   : > { %11899 = vrsqrt.f32 %v9508_v12 }
0x2306   : > { %v11894_v13 = vpop.eup %11893 }
0x2307   : > { %v9521_v30 = vmul.f32 %v11894_v13, %v14693_v36 }
0x2308   : > { %v11896_v37 = vpop.eup %11895 }
0x2309   : > { %v9533_v62 = vmul.f32 %v9532_v46, %v9521_v30  ;;  %v9522_v38 = vmul.f32 %v11896_v37, %v14695_v56 }
0x230a   : > { %v11898_v2 = vpop.eup %11897 }
0x230b   : > { %v9545_v54 = vadd.f32 %v9544_v51, %v9533_v62  ;;  %v9534_v11 = vmul.f32 %v9532_v46, %v9522_v38  ;;  %v9523_v27 = vmul.f32 %v11898_v2, %v14699_v15 }
0x230c   : > { %v11900_v55 = vpop.eup %11899 }
0x230d   : > { %v9553_v57 = vsel %vm465_vm0, %v9545_v54, 0.0  ;;  %v9546_v0 = vadd.f32 %v9544_v51, %v9534_v11  ;;  %v9535_v5 = vmul.f32 %v9532_v46, %v9523_v27  ;;  %v9524_v29 = vmul.f32 %v11900_v55, %v14704_v21 }
0x230e   : > { %9554 = vadd.xlane.f32.xlu1 %v9553_v57 }
0x230f   : > { %v9556_v36 = vsel %vm465_vm0, %v9546_v0, 0.0  ;;  %v9547_v61 = vadd.f32 %v9544_v51, %v9535_v5  ;;  %v9536_v23 = vmul.f32 %v9532_v46, %v9524_v29  ;;  %v11586_v5 = vld [vmem:[%s14838_s7 + $0x8] sm:$0xff]   ;;  %v11587_v29 = vld [vmem:[%s14838_s7 + $0x10] sm:$0xff]  }
0x2310   : > { %9557 = vadd.xlane.f32.xlu0 %v9556_v36  ;;  %v11588_v36 = vld [vmem:[%s14838_s7 + $0x18] sm:$0xff]  }
0x2311   : > { %v9559_v56 = vsel %vm465_vm0, %v9547_v61, 0.0  ;;  %v9548_v59 = vadd.f32 %v9544_v51, %v9536_v23 }
0x2312   : > { %9560 = vadd.xlane.f32.xlu1 %v9559_v56 }
0x2313   : > { %v9562_v19 = vsel %vm465_vm0, %v9548_v59, 0.0 }
0x2314   : > { %9563 = vadd.xlane.f32.xlu0 %v9562_v19 }
0x2333   : > { %v9487_v15 = vpop.xlane.xlu1 %9486 }
0x2334   : > { %v9501_v33 = vmul.f32 0.015625, %v9487_v15 }
0x2335   : > { %v9490_v17 = vpop.xlane.xlu0 %9489 }
0x2336   : > { %v9509_v41 = vadd.f32 1e-05, %v9501_v33  ;;  %v9502_v45 = vmul.f32 0.015625, %v9490_v17 }
0x2337   : > { %v9493_v1 = vpop.xlane.xlu1 %9492 }
0x2338   : > { %11901 = vrsqrt.f32 %v9509_v41  ;;  %v9510_v21 = vadd.f32 1e-05, %v9502_v45  ;;  %v9503_v16 = vmul.f32 0.015625, %v9493_v1 }
0x2339   : > { %v9496_v48 = vpop.xlane.xlu0 %9495 }
0x233a   : > { %11903 = vrsqrt.f32 %v9510_v21  ;;  %v9511_v3 = vadd.f32 1e-05, %v9503_v16  ;;  %v9504_v24 = vmul.f32 0.015625, %v9496_v48 }
0x233c   : > { %11905 = vrsqrt.f32 %v9511_v3  ;;  %v9512_v52 = vadd.f32 1e-05, %v9504_v24 }
0x233e   : > { %11907 = vrsqrt.f32 %v9512_v52 }
0x2342   : > { %v11902_v39 = vpop.eup %11901 }
0x2343   : > { %v9525_v40 = vmul.f32 %v11902_v39, %v14713_v25 }
0x2344   : > { %v11904_v32 = vpop.eup %11903 }
0x2345   : > { %v9537_v63 = vmul.f32 %v9532_v46, %v9525_v40  ;;  %v9526_v22 = vmul.f32 %v11904_v32, %v14715_v42 }
0x2346   : > { %v11906_v26 = vpop.eup %11905 }
0x2347   : > { %v9549_v47 = vadd.f32 %v9544_v51, %v9537_v63  ;;  %v9538_v35 = vmul.f32 %v9532_v46, %v9526_v22  ;;  %v9527_v34 = vmul.f32 %v11906_v26, %v14719_v53 }
0x2348   : > { %v11908_v7 = vpop.eup %11907 }
0x2349   : > { %v9565_v28 = vsel %vm465_vm0, %v9549_v47, 0.0  ;;  %v9550_v8 = vadd.f32 %v9544_v51, %v9538_v35  ;;  %v9539_v60 = vmul.f32 %v9532_v46, %v9527_v34  ;;  %v9528_v20 = vmul.f32 %v11908_v7, %v14724_v10 }
0x234a   : > { %9566 = vadd.xlane.f32.xlu1 %v9565_v28 }
0x234b   : > { %v9568_v50 = vsel %vm465_vm0, %v9550_v8, 0.0  ;;  %v9551_v25 = vadd.f32 %v9544_v51, %v9539_v60  ;;  %v9540_v58 = vmul.f32 %v9532_v46, %v9528_v20 }
0x234c   : > { %9569 = vadd.xlane.f32.xlu0 %v9568_v50 }
0x234d   : > { %v9571_v42 = vsel %vm465_vm0, %v9551_v25, 0.0  ;;  %v9552_v6 = vadd.f32 %v9544_v51, %v9540_v58 }
0x234e   : > { %9572 = vadd.xlane.f32.xlu1 %v9571_v42 }
0x234f   : > { %v9574_v9 = vsel %vm465_vm0, %v9552_v6, 0.0 }
0x2350   : > { %9575 = vadd.xlane.f32.xlu0 %v9574_v9 }
0x239b   : > { %v9555_v53 = vpop.xlane.xlu1 %9554 }
0x239c   : > { %v9577_v43 = vmul.f32 0.015625, %v9555_v53 }
0x239d   : > { %v9558_v4 = vpop.xlane.xlu0 %9557 }
0x239e   : > { %v14753_v18 = vsub.f32 %v9545_v54, %v9577_v43  ;;  %v9578_v31 = vmul.f32 0.015625, %v9558_v4 }
0x239f   : > { %v9561_v10 = vpop.xlane.xlu1 %9560 }
0x23a0   : > { %v14755_v12 = vsub.f32 %v9546_v0, %v9578_v31  ;;  %v9579_v13 = vmul.f32 0.015625, %v9561_v10  ;;  %v9593_v46 = vmul.f32 %v14753_v18, %v14753_v18  ;;  %v11585_v0 = vld [vmem:[%s14838_s7] sm:$0xff]  }
0x23a1   : > { %v9564_v30 = vpop.xlane.xlu0 %9563  ;;  %11371 = vmatprep.subr.bf16.mxu1 %v11585_v0 }
0x23a2   : > { %v14759_v37 = vsub.f32 %v9547_v61, %v9579_v13  ;;  %v9580_v51 = vmul.f32 0.015625, %v9564_v30  ;;  %v9601_v62 = vsel %vm465_vm0, %v9593_v46, 0.0  ;;  %v9594_v38 = vmul.f32 %v14755_v12, %v14755_v12  ;;  %11372 = vmatpush3.bf16.msra.mxu1 %v11585_v0 }
0x23a3   : > { %9602 = vadd.xlane.f32.xlu1 %v9601_v62  ;;  %11373 = vmatprep.subr.bf16.mxu1 %v11586_v5 }
0x23a4   : > { %v14764_v2 = vsub.f32 %v9548_v59, %v9580_v51  ;;  %v9604_v54 = vsel %vm465_vm0, %v9594_v38, 0.0  ;;  %v9595_v11 = vmul.f32 %v14759_v37, %v14759_v37 }
0x23a5   : > { %9605 = vadd.xlane.f32.xlu0 %v9604_v54 }
0x23a6   : > { %v9607_v27 = vsel %vm465_vm0, %v9595_v11, 0.0  ;;  %v9596_v55 = vmul.f32 %v14764_v2, %v14764_v2  ;;  %11374 = vmatpush3.bf16.msra.mxu1 %v11586_v5 }
0x23a7   : > { %9608 = vadd.xlane.f32.xlu1 %v9607_v27  ;;  %11375 = vmatprep.subr.bf16.mxu1 %v11587_v29 }
0x23a8   : > { %v9610_v57 = vsel %vm465_vm0, %v9596_v55, 0.0 }
0x23a9   : > { %9611 = vadd.xlane.f32.xlu0 %v9610_v57 }
0x23aa   : > { %11376 = vmatpush3.bf16.msra.mxu1 %v11587_v29 }
0x23ab   : > { %11377 = vmatprep.subr.bf16.mxu1 %v11588_v36 }
0x23ae   : > { %11378 = vmatpush3.bf16.msra.mxu1 %v11588_v36 }
0x23d7   : > { %v9567_v61 = vpop.xlane.xlu1 %9566 }
0x23d8   : > { %v9581_v23 = vmul.f32 0.015625, %v9567_v61 }
0x23d9   : > { %v9570_v56 = vpop.xlane.xlu0 %9569 }
0x23da   : > { %v14785_v59 = vsub.f32 %v9549_v47, %v9581_v23  ;;  %v9582_v19 = vmul.f32 0.015625, %v9570_v56 }
0x23db   : > { %v9573_v15 = vpop.xlane.xlu1 %9572 }
0x23dc   : > { %v14787_v33 = vsub.f32 %v9550_v8, %v9582_v19  ;;  %v9583_v17 = vmul.f32 0.015625, %v9573_v15  ;;  %v9597_v41 = vmul.f32 %v14785_v59, %v14785_v59 }
0x23dd   : > { %v9576_v45 = vpop.xlane.xlu0 %9575 }
0x23de   : > { %v14791_v1 = vsub.f32 %v9551_v25, %v9583_v17  ;;  %v9584_v21 = vmul.f32 0.015625, %v9576_v45  ;;  %v9613_v16 = vsel %vm465_vm0, %v9597_v41, 0.0  ;;  %v9598_v48 = vmul.f32 %v14787_v33, %v14787_v33  ;;  %v11951_v25 = vld [vmem:[%s14839_s8] sm:$0xff] }
0x23df   : > { %9614 = vadd.xlane.f32.xlu1 %v9613_v16  ;;  %v9660_v58 = vrot.slane %v11951_v25, %v14937_v49  ;;  %v9672_v43 = vrot.slane %v11951_v25, %v14940_v14 }
0x23e0   : > { %v14796_v3 = vsub.f32 %v9552_v6, %v9584_v21  ;;  %v9616_v24 = vsel %vm465_vm0, %v9598_v48, 0.0  ;;  %v9599_v52 = vmul.f32 %v14791_v1, %v14791_v1 }
0x23e1   : > { %9617 = vadd.xlane.f32.xlu0 %v9616_v24 }
0x23e2   : > { %v9619_v39 = vsel %vm465_vm0, %v9599_v52, 0.0  ;;  %v9600_v40 = vmul.f32 %v14796_v3, %v14796_v3 }
0x23e3   : > { %9620 = vadd.xlane.f32.xlu1 %v9619_v39 }
0x23e4   : > { %v9622_v32 = vsel %vm465_vm0, %v9600_v40, 0.0 }
0x23e5   : > { %9623 = vadd.xlane.f32.xlu0 %v9622_v32 }
0x2430   : > { %v9603_v63 = vpop.xlane.xlu1 %9602 }
0x2431   : > { %v9625_v22 = vmul.f32 0.015625, %v9603_v63 }
0x2432   : > { %v9606_v26 = vpop.xlane.xlu0 %9605 }
0x2433   : > { %v9633_v47 = vadd.f32 1e-05, %v9625_v22  ;;  %v9626_v35 = vmul.f32 0.015625, %v9606_v26 }
0x2434   : > { %v9609_v34 = vpop.xlane.xlu1 %9608 }
0x2435   : > { %11909 = vrsqrt.f32 %v9633_v47  ;;  %v9634_v7 = vadd.f32 1e-05, %v9626_v35  ;;  %v9627_v28 = vmul.f32 0.015625, %v9609_v34 }
0x2436   : > { %v9612_v8 = vpop.xlane.xlu0 %9611 }
0x2437   : > { %11911 = vrsqrt.f32 %v9634_v7  ;;  %v9635_v60 = vadd.f32 1e-05, %v9627_v28  ;;  %v9628_v20 = vmul.f32 0.015625, %v9612_v8 }
0x2439   : > { %11913 = vrsqrt.f32 %v9635_v60  ;;  %v9636_v50 = vadd.f32 1e-05, %v9628_v20 }
0x243b   : > { %11915 = vrsqrt.f32 %v9636_v50 }
0x243f   : > { %v11910_v42 = vpop.eup %11909 }
0x2440   : > { %v9649_v6 = vmul.f32 %v11910_v42, %v14753_v18 }
0x2441   : > { %v11912_v9 = vpop.eup %11911 }
0x2442   : > { %v9650_v53 = vmul.f32 %v11912_v9, %v14755_v12  ;;  %v9661_v4 = vmul.f32 %v9660_v58, %v9649_v6 }
0x2443   : > { %v11914_v31 = vpop.eup %11913 }
0x2444   : > { %v9651_v10 = vmul.f32 %v11914_v31, %v14759_v37  ;;  %v9662_v13 = vmul.f32 %v9660_v58, %v9650_v53  ;;  %v9673_v62 = vadd.f32 %v9672_v43, %v9661_v4 }
0x2445   : > { %v11916_v46 = vpop.eup %11915 }
0x2446   : > { %v9663_v30 = vmul.f32 %v9660_v58, %v9651_v10  ;;  %v9652_v51 = vmul.f32 %v11916_v46, %v14764_v2  ;;  %v9674_v38 = vadd.f32 %v9672_v43, %v9662_v13 }
0x2448   : > { %v9664_v49 = vmul.f32 %v9660_v58, %v9652_v51  ;;  %v9681_v54 = vpack.c.bf16 %v9674_v38, %v9673_v62  ;;  %v9675_v11 = vadd.f32 %v9672_v43, %v9663_v30 }
0x244a   : > { %v9676_v18 = vadd.f32 %v9672_v43, %v9664_v49  ;;  %11379 = vmatprep.mubr.msk.bf16.mxu1 %vm465_vm0, %v9681_v54 }
0x244c   : > { %v9682_v12 = vpack.c.bf16 %v9676_v18, %v9675_v11 }
0x244e   : > { %11380 = vmatmul.mubr.msk.bf16.vlgmr.msra.gmra.mrb[48].mxu1 %vm465_vm0, %v9682_v12 }
0x246c   : > { %v9615_v14 = vpop.xlane.xlu1 %9614 }
0x246d   : > { %v9629_v27 = vmul.f32 0.015625, %v9615_v14 }
0x246e   : > { %v9618_v55 = vpop.xlane.xlu0 %9617 }
0x246f   : > { %v9637_v37 = vadd.f32 1e-05, %v9629_v27  ;;  %v9630_v57 = vmul.f32 0.015625, %v9618_v55 }
0x2470   : > { %v9621_v0 = vpop.xlane.xlu1 %9620 }
0x2471   : > { %11917 = vrsqrt.f32 %v9637_v37  ;;  %v9638_v5 = vadd.f32 1e-05, %v9630_v57  ;;  %v9631_v2 = vmul.f32 0.015625, %v9621_v0 }
0x2472   : > { %v9624_v29 = vpop.xlane.xlu0 %9623 }
0x2473   : > { %11919 = vrsqrt.f32 %v9638_v5  ;;  %v9639_v36 = vadd.f32 1e-05, %v9631_v2  ;;  %v9632_v61 = vmul.f32 0.015625, %v9624_v29 }
0x2475   : > { %11921 = vrsqrt.f32 %v9639_v36  ;;  %v9640_v23 = vadd.f32 1e-05, %v9632_v61 }
0x2477   : > { %11923 = vrsqrt.f32 %v9640_v23 }
0x247b   : > { %v11918_v56 = vpop.eup %11917 }
0x247c   : > { %v9653_v19 = vmul.f32 %v11918_v56, %v14785_v59 }
0x247d   : > { %v11920_v15 = vpop.eup %11919 }
0x247e   : > { %v9654_v17 = vmul.f32 %v11920_v15, %v14787_v33  ;;  %v9665_v41 = vmul.f32 %v9660_v58, %v9653_v19  ;;  %v9696_v33 = vrot.slane %v11951_v25, %v14941_v44 }
0x247f   : > { %v11922_v45 = vpop.eup %11921 }
0x2480   : > { %v9655_v21 = vmul.f32 %v11922_v45, %v14791_v1  ;;  %v9666_v16 = vmul.f32 %v9660_v58, %v9654_v17  ;;  %v9677_v39 = vadd.f32 %v9672_v43, %v9665_v41 }
0x2481   : > { %v11924_v48 = vpop.eup %11923 }
0x2482   : > { %v9667_v24 = vmul.f32 %v9660_v58, %v9655_v21  ;;  %v9656_v52 = vmul.f32 %v11924_v48, %v14796_v3  ;;  %v9678_v40 = vadd.f32 %v9672_v43, %v9666_v16 }
0x2484   : > { %v9679_v32 = vadd.f32 %v9672_v43, %v9667_v24  ;;  %v9668_v63 = vmul.f32 %v9660_v58, %v9656_v52  ;;  %v9683_v22 = vpack.c.bf16 %v9678_v40, %v9677_v39 }
0x2486   : > { %v9680_v26 = vadd.f32 %v9672_v43, %v9668_v63  ;;  %11383 = vmatprep.mubr.msk.bf16.mxu1 %vm465_vm0, %v9683_v22 }
0x2488   : > { %v9684_v59 = vpack.c.bf16 %v9680_v26, %v9679_v32 }
0x248a   : > { %11384 = vmatmul.mubr.msk.bf16.gmra.mrb[52].mxu1 %vm465_vm0, %v9684_v59 }
0x2521   : > { %v11381_v1 = vpop.f32.mrb[48].mxu1 }
0x2522   : > { %v9776_v3 = vadd.f32 %v11381_v1, %v9696_v33  ;;  %v9767_v47 = vpop.f32.mrb[49].mxu1 }
0x2523   : > { %v9768_v35 = vadd.f32 %v9767_v47, %v9696_v33  ;;  %v11382_v34 = vpop.f32.mrb[50].mxu1 }
0x2524   : > { %9800 = vst [vmem:[%s353_s27 + $0x10] sm:$0xff] %v9776_v3  ;;  %v9779_v7 = vadd.f32 %v11382_v34, %v9696_v33  ;;  %v9770_v28 = vpop.f32.mrb[51].mxu1 }
0x2525   : > { %9798 = vst [vmem:[%s353_s27] sm:$0xff] %v9768_v35  ;;  %v9771_v8 = vadd.f32 %v9770_v28, %v9696_v33 }
0x2526   : > { %9801 = vst [vmem:[%s353_s27 + $0x18] sm:$0xff] %v9779_v7 }
0x2527   : > { %9799 = vst [vmem:[%s353_s27 + $0x8] sm:$0xff] %v9771_v8 }
0x255d   : > { %v11385_v60 = vpop.f32.mrb[52].mxu1 }
0x255e   : > { %v9792_v20 = vadd.f32 %v11385_v60, %v9696_v33  ;;  %v9783_v44 = vpop.f32.mrb[53].mxu1 }
0x255f   : > { %v9784_v50 = vadd.f32 %v9783_v44, %v9696_v33  ;;  %v11386_v25 = vpop.f32.mrb[54].mxu1 }
0x2560   : > { %9804 = vst [vmem:[%s353_s27 + $0x30] sm:$0xff] %v9792_v20  ;;  %v9795_v58 = vadd.f32 %v11386_v25, %v9696_v33  ;;  %v9786_v42 = vpop.f32.mrb[55].mxu1 }
0x2561   : > { %9802 = vst [vmem:[%s353_s27 + $0x20] sm:$0xff] %v9784_v50  ;;  %v9787_v6 = vadd.f32 %v9786_v42, %v9696_v33 }
0x2562   : > { %9805 = vst [vmem:[%s353_s27 + $0x38] sm:$0xff] %v9795_v58 }
0x2563   : > { %9803 = vst [vmem:[%s353_s27 + $0x28] sm:$0xff] %v9787_v6 }
0x2564 PF: > { %s19_s30 = sadd.s32 1, %s11958_s30  }
0x2565   : > { %p16_p4 = scmp.ge.s32.totalorder %s19_s30, 4  }
0x2567   :  { %18 = sbr.rel (!%p16_p4) target bundleno = 1 (0x1), region = 93 }

</bundles_post_ra>
